<compile_context>
chip_gen: v5e
topology: v5e:2x2
jax: 0.10.0
libtpu: 0.0.40
codegen_flags: <defaults>
</compile_context>

<pallas_src>
import functools

import jax
import jax.numpy as jnp
from jax.experimental import pallas as pl
from jax.experimental.pallas import tpu as pltpu

GN_EPS = 1e-5          # torch.nn.GroupNorm default
LN_EPS = 1e-12         # module signature: ln_eps=1e-12
_VMEM_LIMIT = 32 * 1024 * 1024
_SQRT1_2 = 0.7071067811865476


# ----------------------------------------------------------------------------
# In-kernel helpers
# ----------------------------------------------------------------------------
def _erf(x):
    # Abramowitz & Stegun 7.1.26 (|err| < 1.5e-7); erf-form GELU matches
    # torch.nn.GELU() closely.  The polynomial rides the VPU slot under the
    # MXU-bound matmuls, the exp goes to the EUP.
    a = jnp.abs(x)
    t = 1.0 / (1.0 + 0.3275911 * a)
    poly = t * (0.254829592 + t * (-0.284496736 + t * (1.421413741
                + t * (-1.453152027 + t * 1.061405429))))
    y = 1.0 - poly * jnp.exp(-a * a)
    return jnp.where(x < 0, -y, y)


def _gelu(x):
    return 0.5 * x * (1.0 + _erf(x * _SQRT1_2))


def _emit_stats(y, m_ref, r_ref, eps):
    # per-batch GroupNorm(1, C) statistics of this kernel's output, written as
    # lane-dense (1, 1, 128) rows so the consumer just broadcasts lane 0.
    mu = jnp.mean(y)
    var = jnp.mean(jnp.square(y - mu))
    m_ref[...] = jnp.full((1, 1, 128), mu, jnp.float32)
    r_ref[...] = jnp.full((1, 1, 128), jax.lax.rsqrt(var + eps), jnp.float32)


# ----------------------------------------------------------------------------
# Kernel 1: strided 3x3 conv as three dense frequency matmuls
#           + bias + GELU + GroupNorm stats of the output.
# ----------------------------------------------------------------------------
def _conv_s1_kernel(x_ref, w_ref, b_ref, y_ref, m_ref, r_ref, *, eps):
    # x_ref: (1, T+2, F*Cin)   w_ref: (3, F*Cin, F1*Cout) bf16   b_ref: (1, N)
    t_out = y_ref.shape[1]
    xv = x_ref[0].astype(jnp.bfloat16)
    acc = jnp.dot(xv[0:t_out, :], w_ref[0], preferred_element_type=jnp.float32)
    acc += jnp.dot(xv[1:t_out + 1, :], w_ref[1], preferred_element_type=jnp.float32)
    acc += jnp.dot(xv[2:t_out + 2, :], w_ref[2], preferred_element_type=jnp.float32)
    y = _gelu(acc + b_ref[...])
    y_ref[0] = y.astype(y_ref.dtype)
    _emit_stats(y, m_ref, r_ref, eps)


def _conv_s2_kernel(xe_ref, xo_ref, w_ref, b_ref, y_ref, m_ref, r_ref, *, eps):
    # time stride 2 handled via even/odd time planes (split once in XLA):
    #   tap kw=0 -> even[t], kw=1 -> odd[t], kw=2 -> even[t+1]
    t_out = y_ref.shape[1]
    xe = xe_ref[0].astype(jnp.bfloat16)
    xo = xo_ref[0].astype(jnp.bfloat16)
    acc = jnp.dot(xe[0:t_out, :], w_ref[0], preferred_element_type=jnp.float32)
    acc += jnp.dot(xo[0:t_out, :], w_ref[1], preferred_element_type=jnp.float32)
    acc += jnp.dot(xe[1:t_out + 1, :], w_ref[2], preferred_element_type=jnp.float32)
    y = _gelu(acc + b_ref[...])
    y_ref[0] = y.astype(y_ref.dtype)
    _emit_stats(y, m_ref, r_ref, eps)


def _conv_call(kernel, xs, a, bias, t_out):
    b_sz = xs[0].shape[0]
    n = a.shape[2]
    in_specs = [pl.BlockSpec((1,) + x.shape[1:], lambda b: (b, 0, 0)) for x in xs]
    in_specs += [pl.BlockSpec(a.shape, lambda b: (0, 0, 0)),
                 pl.BlockSpec((1, n), lambda b: (0, 0))]
    out_shapes = (jax.ShapeDtypeStruct((b_sz, t_out, n), jnp.float32),
                  jax.ShapeDtypeStruct((b_sz, 1, 128), jnp.float32),
                  jax.ShapeDtypeStruct((b_sz, 1, 128), jnp.float32))
    out_specs = [pl.BlockSpec((1, t_out, n), lambda b: (b, 0, 0)),
                 pl.BlockSpec((1, 1, 128), lambda b: (b, 0, 0)),
                 pl.BlockSpec((1, 1, 128), lambda b: (b, 0, 0))]
    return pl.pallas_call(
        functools.partial(kernel, eps=GN_EPS),
        out_shape=out_shapes,
        grid_spec=pltpu.PrefetchScalarGridSpec(
            num_scalar_prefetch=0, grid=(b_sz,),
            in_specs=in_specs, out_specs=out_specs),
        compiler_params=pltpu.CompilerParams(
            dimension_semantics=("parallel",),
            vmem_limit_bytes=_VMEM_LIMIT),
    )(*xs, a, bias.reshape(1, n))


def freq_conv_s1(x, a, bias, t_out):
    return _conv_call(_conv_s1_kernel, (x,), a, bias, t_out)


def freq_conv_s2(x_even, x_odd, a, bias, t_out):
    return _conv_call(_conv_s2_kernel, (x_even, x_odd), a, bias, t_out)


# ----------------------------------------------------------------------------
# Kernel 2: fused PoolFormer token mixer
#   y = x + ls1 * (AvgPool7x7_no_pad_count(GN1(x)) - GN1(x)),  + GN2 stats of y
# ----------------------------------------------------------------------------
def _pool_mix_kernel(x_ref, g_ref, b_ref, ls_ref, m_ref, r_ref,
                     y_ref, m2_ref, r2_ref, *, pool, eps):
    _, t_sz, f_sz, c_sz = x_ref.shape
    pad = pool // 2
    x = x_ref[0].astype(jnp.float32)                         # (T, F, C)
    mean = m_ref[...][:, :, 0:1]                             # (1, 1, 1)
    rstd = r_ref[...][:, :, 0:1]
    g = g_ref[...].reshape(1, 1, c_sz)
    bb = b_ref[...].reshape(1, 1, c_sz)
    xn = (x - mean) * rstd * g + bb                          # GroupNorm(1, C)

    # separable 7+7 pooling: 7 shifted adds along T (pure addressing) then 7
    # along F (sublanes); zero halo built in VMEM, never materialized in HBM.
    zt = jnp.zeros((pad, f_sz, c_sz), jnp.float32)
    xt = jnp.concatenate([zt, xn, zt], axis=0)               # (T+2p, F, C)
    rows = xt[0:t_sz]
    for d in range(1, pool):
        rows = rows + xt[d:d + t_sz]
    zf = jnp.zeros((t_sz, pad, c_sz), jnp.float32)
    rw = jnp.concatenate([zf, rows, zf], axis=1)             # (T, F+2p, C)
    tot = rw[:, 0:f_sz, :]
    for d in range(1, pool):
        tot = tot + rw[:, d:d + f_sz, :]

    # count_include_pad=False divisor from in-kernel iota (no side input).
    it = jax.lax.broadcasted_iota(jnp.int32, (t_sz, 1, 1), 0)
    ct = (jnp.minimum(it + pad, t_sz - 1) - jnp.maximum(it - pad, 0) + 1).astype(jnp.float32)
    jf = jax.lax.broadcasted_iota(jnp.int32, (1, f_sz, 1), 1)
    cf = (jnp.minimum(jf + pad, f_sz - 1) - jnp.maximum(jf - pad, 0) + 1).astype(jnp.float32)
    avg = tot * (1.0 / (ct * cf))

    ls = ls_ref[...].reshape(1, 1, c_sz)
    y = x + ls * (avg - xn)
    y_ref[0] = y.astype(y_ref.dtype)
    _emit_stats(y, m2_ref, r2_ref, eps)


def pool_token_mixer(x, gamma, beta, ls, mean, rstd, pool=7):
    b_sz, t_sz, f_sz, c_sz = x.shape
    out_shapes = (jax.ShapeDtypeStruct((b_sz, t_sz, f_sz, c_sz), x.dtype),
                  jax.ShapeDtypeStruct((b_sz, 1, 128), jnp.float32),
                  jax.ShapeDtypeStruct((b_sz, 1, 128), jnp.float32))
    return pl.pallas_call(
        functools.partial(_pool_mix_kernel, pool=pool, eps=GN_EPS),
        out_shape=out_shapes,
        grid_spec=pltpu.PrefetchScalarGridSpec(
            num_scalar_prefetch=0, grid=(b_sz,),
            in_specs=[
                pl.BlockSpec((1, t_sz, f_sz, c_sz), lambda b: (b, 0, 0, 0)),
                pl.BlockSpec((1, c_sz), lambda b: (0, 0)),
                pl.BlockSpec((1, c_sz), lambda b: (0, 0)),
                pl.BlockSpec((1, c_sz), lambda b: (0, 0)),
                pl.BlockSpec((1, 1, 128), lambda b: (b, 0, 0)),
                pl.BlockSpec((1, 1, 128), lambda b: (b, 0, 0)),
            ],
            out_specs=[
                pl.BlockSpec((1, t_sz, f_sz, c_sz), lambda b: (b, 0, 0, 0)),
                pl.BlockSpec((1, 1, 128), lambda b: (b, 0, 0)),
                pl.BlockSpec((1, 1, 128), lambda b: (b, 0, 0)),
            ]),
        compiler_params=pltpu.CompilerParams(
            dimension_semantics=("parallel",),
            vmem_limit_bytes=_VMEM_LIMIT),
    )(x, gamma.reshape(1, c_sz), beta.reshape(1, c_sz), ls.reshape(1, c_sz),
      mean, rstd)


# ----------------------------------------------------------------------------
# Kernel 3: fused channel-MLP branch
#   y = x + ls2 * fc2(GELU(fc1(GN2(x))))      (GN2 stats precomputed by producer)
# ----------------------------------------------------------------------------
def _mlp_kernel(x_ref, g_ref, b_ref, w1_ref, b1_ref, w2_ref, b2_ref, ls_ref,
                m_ref, r_ref, y_ref):
    x = x_ref[0].astype(jnp.float32)                         # (tP, C)
    mean = m_ref[...][0, :, 0:1]                             # (1, 1)
    rstd = r_ref[...][0, :, 0:1]
    xn = (x - mean) * rstd * g_ref[...] + b_ref[...]
    h = jnp.dot(xn.astype(jnp.bfloat16), w1_ref[...],
                preferred_element_type=jnp.float32) + b1_ref[...]
    h = _gelu(h)
    y = jnp.dot(h.astype(jnp.bfloat16), w2_ref[...],
                preferred_element_type=jnp.float32) + b2_ref[...]
    y_ref[0] = (x + ls_ref[...] * y).astype(y_ref.dtype)


def channel_mlp(x, gamma, beta, w1, b1, w2, b2, ls, mean, rstd, tile_p=512):
    b_sz, p_sz, c_sz = x.shape
    h_sz = w1.shape[1]
    tp = p_sz if p_sz <= tile_p else tile_p
    return pl.pallas_call(
        _mlp_kernel,
        out_shape=jax.ShapeDtypeStruct((b_sz, p_sz, c_sz), x.dtype),
        grid_spec=pltpu.PrefetchScalarGridSpec(
            num_scalar_prefetch=0, grid=(b_sz, pl.cdiv(p_sz, tp)),
            in_specs=[
                pl.BlockSpec((1, tp, c_sz), lambda b, i: (b, i, 0)),
                pl.BlockSpec((1, c_sz), lambda b, i: (0, 0)),
                pl.BlockSpec((1, c_sz), lambda b, i: (0, 0)),
                pl.BlockSpec((c_sz, h_sz), lambda b, i: (0, 0)),
                pl.BlockSpec((1, h_sz), lambda b, i: (0, 0)),
                pl.BlockSpec((h_sz, c_sz), lambda b, i: (0, 0)),
                pl.BlockSpec((1, c_sz), lambda b, i: (0, 0)),
                pl.BlockSpec((1, c_sz), lambda b, i: (0, 0)),
                pl.BlockSpec((1, 1, 128), lambda b, i: (b, 0, 0)),
                pl.BlockSpec((1, 1, 128), lambda b, i: (b, 0, 0)),
            ],
            out_specs=pl.BlockSpec((1, tp, c_sz), lambda b, i: (b, i, 0))),
        compiler_params=pltpu.CompilerParams(
            dimension_semantics=("parallel", "parallel"),
            vmem_limit_bytes=_VMEM_LIMIT),
    )(x, gamma.reshape(1, c_sz), beta.reshape(1, c_sz), w1, b1.reshape(1, h_sz),
      w2, b2.reshape(1, c_sz), ls.reshape(1, c_sz), mean, rstd)


# ----------------------------------------------------------------------------
# Kernel 4: fused projection (Linear) + LayerNorm(eps=1e-12), tiled over time.
# ----------------------------------------------------------------------------
def _proj_ln_kernel(x_ref, w_ref, b_ref, g_ref, bb_ref, o_ref, *, eps):
    x = x_ref[0].astype(jnp.bfloat16)                        # (tT, K)
    y = jnp.dot(x, w_ref[...], preferred_element_type=jnp.float32) + b_ref[...]
    mu = jnp.mean(y, axis=-1, keepdims=True)
    var = jnp.mean(jnp.square(y - mu), axis=-1, keepdims=True)
    yn = (y - mu) * jax.lax.rsqrt(var + eps)
    o_ref[0] = (yn * g_ref[...] + bb_ref[...]).astype(o_ref.dtype)


def proj_layernorm(x, w, bias, gamma, beta, tile_t=256):
    b_sz, t_sz, k_sz = x.shape
    d_sz = w.shape[1]
    tt = t_sz if t_sz <= tile_t else tile_t
    return pl.pallas_call(
        functools.partial(_proj_ln_kernel, eps=LN_EPS),
        out_shape=jax.ShapeDtypeStruct((b_sz, t_sz, d_sz), jnp.float32),
        grid_spec=pltpu.PrefetchScalarGridSpec(
            num_scalar_prefetch=0, grid=(b_sz, pl.cdiv(t_sz, tt)),
            in_specs=[
                pl.BlockSpec((1, tt, k_sz), lambda b, i: (b, i, 0)),
                pl.BlockSpec((k_sz, d_sz), lambda b, i: (0, 0)),
                pl.BlockSpec((1, d_sz), lambda b, i: (0, 0)),
                pl.BlockSpec((1, d_sz), lambda b, i: (0, 0)),
                pl.BlockSpec((1, d_sz), lambda b, i: (0, 0)),
            ],
            out_specs=pl.BlockSpec((1, tt, d_sz), lambda b, i: (b, i, 0))),
        compiler_params=pltpu.CompilerParams(
            dimension_semantics=("parallel", "parallel"),
            vmem_limit_bytes=_VMEM_LIMIT),
    )(x, w, bias.reshape(1, d_sz), gamma.reshape(1, d_sz), beta.reshape(1, d_sz))


# ----------------------------------------------------------------------------
# Offline weight preparation (done once, outside the forward pass).
# ----------------------------------------------------------------------------
def _dense_freq_weight(w, bias, f_in, stride_f):
    # w: (kh=3 freq, kw=3 time, Cin, Cout).  Lowers the strided 3x3 conv to
    # three (F_in*Cin, F_out*Cout) matmuls (one per time tap kw) with the
    # frequency taps and frequency zero-padding folded into a dense matrix.
    kh, kw, cin, cout = w.shape
    f_out = (f_in - 1) // stride_f + 1
    f_idx = jnp.arange(f_in)[:, None, None]
    fo_idx = jnp.arange(f_out)[None, :, None]
    k_idx = jnp.arange(kh)[None, None, :]
    sel = (f_idx == stride_f * fo_idx + k_idx - 1).astype(jnp.float32)  # (F_in,F_out,kh)
    a = jnp.einsum("fok,kwic->wfioc", sel, w).reshape(kw, f_in * cin, f_out * cout)
    return a.astype(jnp.bfloat16), jnp.tile(bias, (f_out,))


def prepare_params(p, input_dim, d_model):
    chnls = (32, 128)
    f1 = (input_dim + 1) // 2
    f2 = (f1 + 1) // 2
    conv1_a, conv1_b = _dense_freq_weight(p["conv1_w"], p["conv1_b"], input_dim, 2)
    conv2_a, conv2_b = _dense_freq_weight(p["conv2_w"], p["conv2_b"], f1, 2)

    def blk(bp):
        q = dict(bp)
        q["fc1_w"] = bp["fc1_w"].astype(jnp.bfloat16)
        q["fc2_w"] = bp["fc2_w"].astype(jnp.bfloat16)
        return q

    # permute proj rows once: torch order c*F2+f  ->  natural order f*C2+c,
    # so the forward pass needs no HBM transpose before the projection.
    proj_w = p["proj_w"].reshape(chnls[1], f2, d_model).transpose(1, 0, 2)
    proj_w = proj_w.reshape(f2 * chnls[1], d_model).astype(jnp.bfloat16)
    return dict(conv1_a=conv1_a, conv1_b=conv1_b, conv2_a=conv2_a, conv2_b=conv2_b,
                blk1=blk(p["blk1"]), blk2=blk(p["blk2"]),
                proj_w=proj_w, proj_b=p["proj_b"], ln_g=p["ln_g"], ln_b=p["ln_b"])


# ----------------------------------------------------------------------------
# Forward pass
# ----------------------------------------------------------------------------
def pool_stem_forward(x_bft, kp):
    # x_bft: [B, feat_dim, seq_len]  ->  [B, seq_len', d_model]
    chnls = (32, 128)
    b_sz, f_in, t_in = x_bft.shape
    f1 = (f_in + 1) // 2
    f2 = (f1 + 1) // 2
    t2 = (t_in - 1) // 2 + 1

    # conv1: 3x3, stride (2,1) on (freq, time), bias+GELU (+ GN1 stats)
    xt = jnp.transpose(x_bft, (0, 2, 1))                 # (B, T, F) time-major (tiny)
    xt = jnp.pad(xt, ((0, 0), (1, 1), (0, 0)))           # zero halo along time
    y1, m1, r1 = freq_conv_s1(xt, kp["conv1_a"], kp["conv1_b"], t_out=t_in)

    # PoolFormer block 1 (C=32)
    p1 = kp["blk1"]
    z1, m1b, r1b = pool_token_mixer(y1.reshape(b_sz, t_in, f1, chnls[0]),
                                    p1["gn1_g"], p1["gn1_b"], p1["ls1"], m1, r1)
    a1 = channel_mlp(z1.reshape(b_sz, t_in * f1, chnls[0]),
                     p1["gn2_g"], p1["gn2_b"], p1["fc1_w"], p1["fc1_b"],
                     p1["fc2_w"], p1["fc2_b"], p1["ls2"], m1b, r1b)
    a1 = a1.reshape(b_sz, t_in, f1 * chnls[0])

    # conv2: 3x3, stride (2,2); time stride via even/odd time planes
    a1p = jnp.pad(a1, ((0, 0), (1, 1), (0, 0)))
    y2, m2, r2 = freq_conv_s2(a1p[:, 0::2, :], a1p[:, 1::2, :],
                              kp["conv2_a"], kp["conv2_b"], t_out=t2)

    # PoolFormer block 2 (C=128)
    p2 = kp["blk2"]
    z2, m2b, r2b = pool_token_mixer(y2.reshape(b_sz, t2, f2, chnls[1]),
                                    p2["gn1_g"], p2["gn1_b"], p2["ls1"], m2, r2)
    a2 = channel_mlp(z2.reshape(b_sz, t2 * f2, chnls[1]),
                     p2["gn2_g"], p2["gn2_b"], p2["fc1_w"], p2["fc1_b"],
                     p2["fc2_w"], p2["fc2_b"], p2["ls2"], m2b, r2b)

    # fused projection + LayerNorm (dropout = identity at inference)
    return proj_layernorm(a2.reshape(b_sz, t2, f2 * chnls[1]),
                          kp["proj_w"], kp["proj_b"], kp["ln_g"], kp["ln_b"])


# ----------------------------------------------------------------------------
# Parameter init (torch-equivalent shapes; conv weights kept as (kh,kw,Cin,Cout),
# i.e. torch's (Cout,Cin,kh,kw).transpose(2,3,1,0); proj_w rows in torch order).
# ----------------------------------------------------------------------------
def init_params(key, input_dim, d_model):
    chnls = (32, 128)
    f1 = (input_dim + 1) // 2
    f2 = (f1 + 1) // 2
    keys = iter(jax.random.split(key, 32))

    def nrm(shape, scale=0.05):
        return scale * jax.random.normal(next(keys), shape, jnp.float32)

    def blk(c, exp=3):
        h = c * exp
        return dict(
            gn1_g=jnp.ones((c,), jnp.float32), gn1_b=jnp.zeros((c,), jnp.float32),
            ls1=jnp.full((c,), 0.1, jnp.float32),
            gn2_g=jnp.ones((c,), jnp.float32), gn2_b=jnp.zeros((c,), jnp.float32),
            ls2=jnp.full((c,), 0.1, jnp.float32),
            fc1_w=nrm((c, h)), fc1_b=nrm((h,)),
            fc2_w=nrm((h, c)), fc2_b=nrm((c,)),
        )

    return dict(
        conv1_w=nrm((3, 3, 1, chnls[0])), conv1_b=nrm((chnls[0],)),
        blk1=blk(chnls[0]),
        conv2_w=nrm((3, 3, chnls[0], chnls[1])), conv2_b=nrm((chnls[1],)),
        blk2=blk(chnls[1]),
        proj_w=nrm((f2 * chnls[1], d_model)), proj_b=nrm((d_model,)),
        ln_g=jnp.ones((d_model,), jnp.float32), ln_b=jnp.zeros((d_model,), jnp.float32),
    )


if __name__ == "__main__":
    key = jax.random.PRNGKey(0)
    kx, kp = jax.random.split(key)
    B, input_dim, T, d_model = 2, 16, 8, 32
    x = jax.random.normal(kx, (B, input_dim, T), jnp.float32)

    params = init_params(kp, input_dim, d_model)
    kparams = prepare_params(params, input_dim, d_model)     # one-time weight prep

    y = jax.jit(pool_stem_forward)(x, kparams)
    jax.block_until_ready(y)

    t2 = (T - 1) // 2 + 1
    assert y.shape == (B, t2, d_model), y.shape
    assert bool(jnp.all(jnp.isfinite(y)))
    print("KERNEL_OK")
</pallas_src>

<mosaic_0001>
module attributes {stable_mosaic.version = 11 : i64} {
  func.func @_conv_s1_kernel(%arg0: i32, %arg1: memref<1x10x16xf32, #tpu.memory_space<vmem>>, %arg2: memref<3x16x256xbf16, #tpu.memory_space<vmem>>, %arg3: memref<1x256xf32, #tpu.memory_space<vmem>>, %arg4: memref<1x8x256xf32, #tpu.memory_space<vmem>>, %arg5: memref<1x1x128xf32, #tpu.memory_space<vmem>>, %arg6: memref<1x1x128xf32, #tpu.memory_space<vmem>>) attributes {dimension_semantics = [#tpu.dimension_semantics<parallel>], iteration_bounds = array<i64: 2>, scalar_prefetch = 0 : i64, scratch_operands = 0 : i64, tpu.core_type = #tpu.core_type<tc>, window_params = [{transform_indices = @transform_0, window_bounds = array<i64: 1, 10, 16>}, {pipeline_mode = #tpu.pipeline_mode<synchronous>, transform_indices = @transform_1, window_bounds = array<i64: 3, 16, 256>}, {pipeline_mode = #tpu.pipeline_mode<synchronous>, transform_indices = @transform_2, window_bounds = array<i64: 1, 256>}, {transform_indices = @transform_3, window_bounds = array<i64: 1, 8, 256>}, {transform_indices = @transform_4, window_bounds = array<i64: 1, 1, 128>}, {transform_indices = @transform_5, window_bounds = array<i64: 1, 1, 128>}]} {
    %c0 = arith.constant 0 : index
    %c0_0 = arith.constant 0 : index
    %c0_1 = arith.constant 0 : index
    %0 = vector.load %arg1[%c0, %c0_0, %c0_1] : memref<1x10x16xf32, #tpu.memory_space<vmem>>, vector<1x10x16xf32>
    %1 = vector.shape_cast %0 : vector<1x10x16xf32> to vector<10x16xf32>
    %2 = arith.truncf %1 : vector<10x16xf32> to vector<10x16xbf16>
    %3 = vector.extract_strided_slice %2 {offsets = [0, 0], sizes = [8, 16], strides = [1, 1]} : vector<10x16xbf16> to vector<8x16xbf16>
    %c0_2 = arith.constant 0 : index
    %c0_3 = arith.constant 0 : index
    %c0_4 = arith.constant 0 : index
    %4 = vector.load %arg2[%c0_2, %c0_3, %c0_4] : memref<3x16x256xbf16, #tpu.memory_space<vmem>>, vector<1x16x256xbf16>
    %5 = vector.shape_cast %4 : vector<1x16x256xbf16> to vector<16x256xbf16>
    %cst = arith.constant dense<0.000000e+00> : vector<8x256xf32>
    %6 = tpu.matmul %3, %5, %cst {dimension_numbers = #tpu.dot_dimension_numbers<[1], [0], [0], [1], [0, 0, 1, 1], [], []>} : vector<8x16xbf16>, vector<16x256xbf16>, vector<8x256xf32> -> vector<8x256xf32>
    %7 = vector.extract_strided_slice %2 {offsets = [1, 0], sizes = [8, 16], strides = [1, 1]} : vector<10x16xbf16> to vector<8x16xbf16>
    %c1 = arith.constant 1 : index
    %c0_5 = arith.constant 0 : index
    %c0_6 = arith.constant 0 : index
    %8 = vector.load %arg2[%c1, %c0_5, %c0_6] : memref<3x16x256xbf16, #tpu.memory_space<vmem>>, vector<1x16x256xbf16>
    %9 = vector.shape_cast %8 : vector<1x16x256xbf16> to vector<16x256xbf16>
    %cst_7 = arith.constant dense<0.000000e+00> : vector<8x256xf32>
    %10 = tpu.matmul %7, %9, %cst_7 {dimension_numbers = #tpu.dot_dimension_numbers<[1], [0], [0], [1], [0, 0, 1, 1], [], []>} : vector<8x16xbf16>, vector<16x256xbf16>, vector<8x256xf32> -> vector<8x256xf32>
    %11 = arith.addf %6, %10 : vector<8x256xf32>
    %12 = vector.extract_strided_slice %2 {offsets = [2, 0], sizes = [8, 16], strides = [1, 1]} : vector<10x16xbf16> to vector<8x16xbf16>
    %c2 = arith.constant 2 : index
    %c0_8 = arith.constant 0 : index
    %c0_9 = arith.constant 0 : index
    %13 = vector.load %arg2[%c2, %c0_8, %c0_9] : memref<3x16x256xbf16, #tpu.memory_space<vmem>>, vector<1x16x256xbf16>
    %14 = vector.shape_cast %13 : vector<1x16x256xbf16> to vector<16x256xbf16>
    %cst_10 = arith.constant dense<0.000000e+00> : vector<8x256xf32>
    %15 = tpu.matmul %12, %14, %cst_10 {dimension_numbers = #tpu.dot_dimension_numbers<[1], [0], [0], [1], [0, 0, 1, 1], [], []>} : vector<8x16xbf16>, vector<16x256xbf16>, vector<8x256xf32> -> vector<8x256xf32>
    %16 = arith.addf %11, %15 : vector<8x256xf32>
    %c0_11 = arith.constant 0 : index
    %c0_12 = arith.constant 0 : index
    %17 = vector.load %arg3[%c0_11, %c0_12] : memref<1x256xf32, #tpu.memory_space<vmem>>, vector<1x256xf32>
    %18 = vector.broadcast %17 : vector<1x256xf32> to vector<8x256xf32>
    %19 = arith.addf %16, %18 : vector<8x256xf32>
    %cst_13 = arith.constant 5.000000e-01 : f32
    %20 = vector.broadcast %cst_13 : f32 to vector<8x256xf32>
    %21 = arith.mulf %20, %19 : vector<8x256xf32>
    %cst_14 = arith.constant 0.707106769 : f32
    %22 = vector.broadcast %cst_14 : f32 to vector<8x256xf32>
    %23 = arith.mulf %19, %22 : vector<8x256xf32>
    %24 = math.absf %23 : vector<8x256xf32>
    %cst_15 = arith.constant 0.327591091 : f32
    %25 = vector.broadcast %cst_15 : f32 to vector<8x256xf32>
    %26 = arith.mulf %25, %24 : vector<8x256xf32>
    %cst_16 = arith.constant 1.000000e+00 : f32
    %27 = vector.broadcast %cst_16 : f32 to vector<8x256xf32>
    %28 = arith.addf %27, %26 : vector<8x256xf32>
    %cst_17 = arith.constant 1.000000e+00 : f32
    %29 = vector.broadcast %cst_17 : f32 to vector<8x256xf32>
    %30 = arith.divf %29, %28 : vector<8x256xf32>
    %cst_18 = arith.constant 1.06140542 : f32
    %31 = vector.broadcast %cst_18 : f32 to vector<8x256xf32>
    %32 = arith.mulf %30, %31 : vector<8x256xf32>
    %cst_19 = arith.constant -1.45315206 : f32
    %33 = vector.broadcast %cst_19 : f32 to vector<8x256xf32>
    %34 = arith.addf %33, %32 : vector<8x256xf32>
    %35 = arith.mulf %30, %34 : vector<8x256xf32>
    %cst_20 = arith.constant 1.42141378 : f32
    %36 = vector.broadcast %cst_20 : f32 to vector<8x256xf32>
    %37 = arith.addf %36, %35 : vector<8x256xf32>
    %38 = arith.mulf %30, %37 : vector<8x256xf32>
    %cst_21 = arith.constant -0.284496725 : f32
    %39 = vector.broadcast %cst_21 : f32 to vector<8x256xf32>
    %40 = arith.addf %39, %38 : vector<8x256xf32>
    %41 = arith.mulf %30, %40 : vector<8x256xf32>
    %cst_22 = arith.constant 0.254829586 : f32
    %42 = vector.broadcast %cst_22 : f32 to vector<8x256xf32>
    %43 = arith.addf %42, %41 : vector<8x256xf32>
    %44 = arith.mulf %30, %43 : vector<8x256xf32>
    %cst_23 = arith.constant 0.000000e+00 : f32
    %45 = vector.broadcast %cst_23 : f32 to vector<8x256xf32>
    %46 = arith.subf %45, %24 : vector<8x256xf32>
    %47 = arith.mulf %46, %24 : vector<8x256xf32>
    %48 = math.exp %47 : vector<8x256xf32>
    %49 = arith.mulf %44, %48 : vector<8x256xf32>
    %cst_24 = arith.constant 1.000000e+00 : f32
    %50 = vector.broadcast %cst_24 : f32 to vector<8x256xf32>
    %51 = arith.subf %50, %49 : vector<8x256xf32>
    %cst_25 = arith.constant 0.000000e+00 : f32
    %52 = vector.broadcast %cst_25 : f32 to vector<8x256xf32>
    %53 = arith.cmpf olt, %23, %52 : vector<8x256xf32>
    %cst_26 = arith.constant 0.000000e+00 : f32
    %54 = vector.broadcast %cst_26 : f32 to vector<8x256xf32>
    %55 = arith.subf %54, %51 : vector<8x256xf32>
    %56 = arith.select %53, %55, %51 : vector<8x256xi1>, vector<8x256xf32>
    %cst_27 = arith.constant 1.000000e+00 : f32
    %57 = vector.broadcast %cst_27 : f32 to vector<8x256xf32>
    %58 = arith.addf %57, %56 : vector<8x256xf32>
    %59 = arith.mulf %21, %58 : vector<8x256xf32>
    %c0_28 = arith.constant 0 : index
    %c0_29 = arith.constant 0 : index
    %c0_30 = arith.constant 0 : index
    %60 = vector.load %arg4[%c0_28, %c0_29, %c0_30] : memref<1x8x256xf32, #tpu.memory_space<vmem>>, vector<1x8x256xf32>
    %61 = vector.shape_cast %60 : vector<1x8x256xf32> to vector<8x256xf32>
    %62 = vector.shape_cast %59 : vector<8x256xf32> to vector<1x8x256xf32>
    tpu.vector_store %arg4[%c0_28, %c0_29, %c0_30], %62 {strides = array<i32>} : memref<1x8x256xf32, #tpu.memory_space<vmem>>, vector<1x8x256xf32>,
    %63 = vector.shape_cast %59 : vector<8x256xf32> to vector<1x8x256xf32>
    %cst_31 = arith.constant dense<0.000000e+00> : vector<1xf32>
    %64 = vector.multi_reduction <add>, %63, %cst_31 [1, 2] : vector<1x8x256xf32> to vector<1xf32>
    %65 = vector.shape_cast %64 : vector<1xf32> to vector<1x1x1xf32>
    %66 = vector.extract %65[0, 0, 0] : f32 from vector<1x1x1xf32>
    %cst_32 = arith.constant 2.048000e+03 : f32
    %67 = arith.divf %66, %cst_32 : f32
    %68 = vector.broadcast %67 : f32 to vector<8x256xf32>
    %69 = arith.subf %59, %68 : vector<8x256xf32>
    %70 = arith.mulf %69, %69 : vector<8x256xf32>
    %71 = vector.shape_cast %70 : vector<8x256xf32> to vector<1x8x256xf32>
    %cst_33 = arith.constant dense<0.000000e+00> : vector<1xf32>
    %72 = vector.multi_reduction <add>, %71, %cst_33 [1, 2] : vector<1x8x256xf32> to vector<1xf32>
    %73 = vector.shape_cast %72 : vector<1xf32> to vector<1x1x1xf32>
    %74 = vector.extract %73[0, 0, 0] : f32 from vector<1x1x1xf32>
    %cst_34 = arith.constant 2.048000e+03 : f32
    %75 = arith.divf %74, %cst_34 : f32
    %76 = vector.broadcast %67 : f32 to vector<1x1x128xf32>
    %c0_35 = arith.constant 0 : index
    %c0_36 = arith.constant 0 : index
    %c0_37 = arith.constant 0 : index
    %77 = vector.load %arg5[%c0_35, %c0_36, %c0_37] : memref<1x1x128xf32, #tpu.memory_space<vmem>>, vector<1x1x128xf32>
    tpu.vector_store %arg5[%c0_35, %c0_36, %c0_37], %76 {strides = array<i32>} : memref<1x1x128xf32, #tpu.memory_space<vmem>>, vector<1x1x128xf32>,
    %cst_38 = arith.constant 9.99999974E-6 : f32
    %78 = arith.addf %75, %cst_38 : f32
    %79 = math.rsqrt %78 : f32
    %80 = vector.broadcast %79 : f32 to vector<1x1x128xf32>
    %c0_39 = arith.constant 0 : index
    %c0_40 = arith.constant 0 : index
    %c0_41 = arith.constant 0 : index
    %81 = vector.load %arg6[%c0_39, %c0_40, %c0_41] : memref<1x1x128xf32, #tpu.memory_space<vmem>>, vector<1x1x128xf32>
    tpu.vector_store %arg6[%c0_39, %c0_40, %c0_41], %80 {strides = array<i32>} : memref<1x1x128xf32, #tpu.memory_space<vmem>>, vector<1x1x128xf32>,
    return
  }
  func.func @transform_0(%arg0: i32) -> (i32, i32, i32) {
    %c0_i32 = arith.constant 0 : i32
    %c0_i32_0 = arith.constant 0 : i32
    %c0_i32_1 = arith.constant 0 : i32
    return %arg0, %c0_i32, %c0_i32_0 : i32, i32, i32
  }
  func.func @transform_1(%arg0: i32) -> (i32, i32, i32) {
    %c0_i32 = arith.constant 0 : i32
    %c0_i32_0 = arith.constant 0 : i32
    %c0_i32_1 = arith.constant 0 : i32
    %c0_i32_2 = arith.constant 0 : i32
    return %c0_i32, %c0_i32_0, %c0_i32_1 : i32, i32, i32
  }
  func.func @transform_2(%arg0: i32) -> (i32, i32) {
    %c0_i32 = arith.constant 0 : i32
    %c0_i32_0 = arith.constant 0 : i32
    %c0_i32_1 = arith.constant 0 : i32
    return %c0_i32, %c0_i32_0 : i32, i32
  }
  func.func @transform_3(%arg0: i32) -> (i32, i32, i32) {
    %c0_i32 = arith.constant 0 : i32
    %c0_i32_0 = arith.constant 0 : i32
    %c0_i32_1 = arith.constant 0 : i32
    return %arg0, %c0_i32, %c0_i32_0 : i32, i32, i32
  }
  func.func @transform_4(%arg0: i32) -> (i32, i32, i32) {
    %c0_i32 = arith.constant 0 : i32
    %c0_i32_0 = arith.constant 0 : i32
    %c0_i32_1 = arith.constant 0 : i32
    return %arg0, %c0_i32, %c0_i32_0 : i32, i32, i32
  }
  func.func @transform_5(%arg0: i32) -> (i32, i32, i32) {
    %c0_i32 = arith.constant 0 : i32
    %c0_i32_0 = arith.constant 0 : i32
    %c0_i32_1 = arith.constant 0 : i32
    return %arg0, %c0_i32, %c0_i32_0 : i32, i32, i32
  }
}

module attributes {stable_mosaic.version = 11 : i64} {
  func.func @_pool_mix_kernel(%arg0: i32, %arg1: memref<1x8x8x32xf32, #tpu.memory_space<vmem>>, %arg2: memref<1x32xf32, #tpu.memory_space<vmem>>, %arg3: memref<1x32xf32, #tpu.memory_space<vmem>>, %arg4: memref<1x32xf32, #tpu.memory_space<vmem>>, %arg5: memref<1x1x128xf32, #tpu.memory_space<vmem>>, %arg6: memref<1x1x128xf32, #tpu.memory_space<vmem>>, %arg7: memref<1x8x8x32xf32, #tpu.memory_space<vmem>>, %arg8: memref<1x1x128xf32, #tpu.memory_space<vmem>>, %arg9: memref<1x1x128xf32, #tpu.memory_space<vmem>>) attributes {dimension_semantics = [#tpu.dimension_semantics<parallel>], iteration_bounds = array<i64: 2>, scalar_prefetch = 0 : i64, scratch_operands = 0 : i64, tpu.core_type = #tpu.core_type<tc>, window_params = [{transform_indices = @transform_0, window_bounds = array<i64: 1, 8, 8, 32>}, {pipeline_mode = #tpu.pipeline_mode<synchronous>, transform_indices = @transform_1, window_bounds = array<i64: 1, 32>}, {pipeline_mode = #tpu.pipeline_mode<synchronous>, transform_indices = @transform_2, window_bounds = array<i64: 1, 32>}, {pipeline_mode = #tpu.pipeline_mode<synchronous>, transform_indices = @transform_3, window_bounds = array<i64: 1, 32>}, {transform_indices = @transform_4, window_bounds = array<i64: 1, 1, 128>}, {transform_indices = @transform_5, window_bounds = array<i64: 1, 1, 128>}, {transform_indices = @transform_6, window_bounds = array<i64: 1, 8, 8, 32>}, {transform_indices = @transform_7, window_bounds = array<i64: 1, 1, 128>}, {transform_indices = @transform_8, window_bounds = array<i64: 1, 1, 128>}]} {
    %c0 = arith.constant 0 : index
    %c0_0 = arith.constant 0 : index
    %c0_1 = arith.constant 0 : index
    %c0_2 = arith.constant 0 : index
    %0 = vector.load %arg1[%c0, %c0_0, %c0_1, %c0_2] : memref<1x8x8x32xf32, #tpu.memory_space<vmem>>, vector<1x8x8x32xf32>
    %1 = vector.shape_cast %0 : vector<1x8x8x32xf32> to vector<8x8x32xf32>
    %c0_3 = arith.constant 0 : index
    %c0_4 = arith.constant 0 : index
    %c0_5 = arith.constant 0 : index
    %2 = vector.load %arg5[%c0_3, %c0_4, %c0_5] : memref<1x1x128xf32, #tpu.memory_space<vmem>>, vector<1x1x128xf32>
    %3 = vector.extract_strided_slice %2 {offsets = [0, 0, 0], sizes = [1, 1, 1], strides = [1, 1, 1]} : vector<1x1x128xf32> to vector<1x1x1xf32>
    %c0_6 = arith.constant 0 : index
    %c0_7 = arith.constant 0 : index
    %c0_8 = arith.constant 0 : index
    %4 = vector.load %arg6[%c0_6, %c0_7, %c0_8] : memref<1x1x128xf32, #tpu.memory_space<vmem>>, vector<1x1x128xf32>
    %5 = vector.extract_strided_slice %4 {offsets = [0, 0, 0], sizes = [1, 1, 1], strides = [1, 1, 1]} : vector<1x1x128xf32> to vector<1x1x1xf32>
    %c0_9 = arith.constant 0 : index
    %c0_10 = arith.constant 0 : index
    %6 = vector.load %arg2[%c0_9, %c0_10] : memref<1x32xf32, #tpu.memory_space<vmem>>, vector<1x32xf32>
    %7 = vector.shape_cast %6 : vector<1x32xf32> to vector<1x1x32xf32>
    %c0_11 = arith.constant 0 : index
    %c0_12 = arith.constant 0 : index
    %8 = vector.load %arg3[%c0_11, %c0_12] : memref<1x32xf32, #tpu.memory_space<vmem>>, vector<1x32xf32>
    %9 = vector.shape_cast %8 : vector<1x32xf32> to vector<1x1x32xf32>
    %10 = vector.broadcast %3 : vector<1x1x1xf32> to vector<8x8x32xf32>
    %11 = arith.subf %1, %10 : vector<8x8x32xf32>
    %12 = vector.broadcast %5 : vector<1x1x1xf32> to vector<8x8x32xf32>
    %13 = arith.mulf %11, %12 : vector<8x8x32xf32>
    %14 = vector.broadcast %7 : vector<1x1x32xf32> to vector<8x8x32xf32>
    %15 = arith.mulf %13, %14 : vector<8x8x32xf32>
    %16 = vector.broadcast %9 : vector<1x1x32xf32> to vector<8x8x32xf32>
    %17 = arith.addf %15, %16 : vector<8x8x32xf32>
    %cst = arith.constant 0.000000e+00 : f32
    %18 = vector.broadcast %cst : f32 to vector<3x8x32xf32>
    %19 = tpu.concatenate %18, %17, %18 in 0 : vector<3x8x32xf32>, vector<8x8x32xf32>, vector<3x8x32xf32> -> vector<14x8x32xf32>
    %20 = vector.extract_strided_slice %19 {offsets = [0, 0, 0], sizes = [8, 8, 32], strides = [1, 1, 1]} : vector<14x8x32xf32> to vector<8x8x32xf32>
    %21 = vector.extract_strided_slice %19 {offsets = [1, 0, 0], sizes = [8, 8, 32], strides = [1, 1, 1]} : vector<14x8x32xf32> to vector<8x8x32xf32>
    %22 = arith.addf %20, %21 : vector<8x8x32xf32>
    %23 = vector.extract_strided_slice %19 {offsets = [2, 0, 0], sizes = [8, 8, 32], strides = [1, 1, 1]} : vector<14x8x32xf32> to vector<8x8x32xf32>
    %24 = arith.addf %22, %23 : vector<8x8x32xf32>
    %25 = vector.extract_strided_slice %19 {offsets = [3, 0, 0], sizes = [8, 8, 32], strides = [1, 1, 1]} : vector<14x8x32xf32> to vector<8x8x32xf32>
    %26 = arith.addf %24, %25 : vector<8x8x32xf32>
    %27 = vector.extract_strided_slice %19 {offsets = [4, 0, 0], sizes = [8, 8, 32], strides = [1, 1, 1]} : vector<14x8x32xf32> to vector<8x8x32xf32>
    %28 = arith.addf %26, %27 : vector<8x8x32xf32>
    %29 = vector.extract_strided_slice %19 {offsets = [5, 0, 0], sizes = [8, 8, 32], strides = [1, 1, 1]} : vector<14x8x32xf32> to vector<8x8x32xf32>
    %30 = arith.addf %28, %29 : vector<8x8x32xf32>
    %31 = vector.extract_strided_slice %19 {offsets = [6, 0, 0], sizes = [8, 8, 32], strides = [1, 1, 1]} : vector<14x8x32xf32> to vector<8x8x32xf32>
    %32 = arith.addf %30, %31 : vector<8x8x32xf32>
    %cst_13 = arith.constant 0.000000e+00 : f32
    %33 = vector.broadcast %cst_13 : f32 to vector<8x3x32xf32>
    %34 = tpu.concatenate %33, %32, %33 in 1 : vector<8x3x32xf32>, vector<8x8x32xf32>, vector<8x3x32xf32> -> vector<8x14x32xf32>
    %35 = vector.extract_strided_slice %34 {offsets = [0, 0, 0], sizes = [8, 8, 32], strides = [1, 1, 1]} : vector<8x14x32xf32> to vector<8x8x32xf32>
    %36 = vector.extract_strided_slice %34 {offsets = [0, 1, 0], sizes = [8, 8, 32], strides = [1, 1, 1]} : vector<8x14x32xf32> to vector<8x8x32xf32>
    %37 = arith.addf %35, %36 : vector<8x8x32xf32>
    %38 = vector.extract_strided_slice %34 {offsets = [0, 2, 0], sizes = [8, 8, 32], strides = [1, 1, 1]} : vector<8x14x32xf32> to vector<8x8x32xf32>
    %39 = arith.addf %37, %38 : vector<8x8x32xf32>
    %40 = vector.extract_strided_slice %34 {offsets = [0, 3, 0], sizes = [8, 8, 32], strides = [1, 1, 1]} : vector<8x14x32xf32> to vector<8x8x32xf32>
    %41 = arith.addf %39, %40 : vector<8x8x32xf32>
    %42 = vector.extract_strided_slice %34 {offsets = [0, 4, 0], sizes = [8, 8, 32], strides = [1, 1, 1]} : vector<8x14x32xf32> to vector<8x8x32xf32>
    %43 = arith.addf %41, %42 : vector<8x8x32xf32>
    %44 = vector.extract_strided_slice %34 {offsets = [0, 5, 0], sizes = [8, 8, 32], strides = [1, 1, 1]} : vector<8x14x32xf32> to vector<8x8x32xf32>
    %45 = arith.addf %43, %44 : vector<8x8x32xf32>
    %46 = vector.extract_strided_slice %34 {offsets = [0, 6, 0], sizes = [8, 8, 32], strides = [1, 1, 1]} : vector<8x14x32xf32> to vector<8x8x32xf32>
    %47 = arith.addf %45, %46 : vector<8x8x32xf32>
    %48 = tpu.iota {dimensions = array<i32: 0>} : vector<8x1x1xi32>
    %c3_i32 = arith.constant 3 : i32
    %49 = vector.broadcast %c3_i32 : i32 to vector<8x1x1xi32>
    %50 = arith.addi %48, %49 : vector<8x1x1xi32>
    %c7_i32 = arith.constant 7 : i32
    %51 = vector.broadcast %c7_i32 : i32 to vector<8x1x1xi32>
    %52 = arith.minsi %50, %51 : vector<8x1x1xi32>
    %c3_i32_14 = arith.constant 3 : i32
    %53 = vector.broadcast %c3_i32_14 : i32 to vector<8x1x1xi32>
    %54 = arith.subi %48, %53 : vector<8x1x1xi32>
    %c0_i32 = arith.constant 0 : i32
    %55 = vector.broadcast %c0_i32 : i32 to vector<8x1x1xi32>
    %56 = arith.maxsi %54, %55 : vector<8x1x1xi32>
    %57 = arith.subi %52, %56 : vector<8x1x1xi32>
    %c1_i32 = arith.constant 1 : i32
    %58 = vector.broadcast %c1_i32 : i32 to vector<8x1x1xi32>
    %59 = arith.addi %57, %58 : vector<8x1x1xi32>
    %60 = arith.sitofp %59 : vector<8x1x1xi32> to vector<8x1x1xf32>
    %61 = tpu.iota {dimensions = array<i32: 1>} : vector<1x8x1xi32>
    %c3_i32_15 = arith.constant 3 : i32
    %62 = vector.broadcast %c3_i32_15 : i32 to vector<1x8x1xi32>
    %63 = arith.addi %61, %62 : vector<1x8x1xi32>
    %c7_i32_16 = arith.constant 7 : i32
    %64 = vector.broadcast %c7_i32_16 : i32 to vector<1x8x1xi32>
    %65 = arith.minsi %63, %64 : vector<1x8x1xi32>
    %c3_i32_17 = arith.constant 3 : i32
    %66 = vector.broadcast %c3_i32_17 : i32 to vector<1x8x1xi32>
    %67 = arith.subi %61, %66 : vector<1x8x1xi32>
    %c0_i32_18 = arith.constant 0 : i32
    %68 = vector.broadcast %c0_i32_18 : i32 to vector<1x8x1xi32>
    %69 = arith.maxsi %67, %68 : vector<1x8x1xi32>
    %70 = arith.subi %65, %69 : vector<1x8x1xi32>
    %c1_i32_19 = arith.constant 1 : i32
    %71 = vector.broadcast %c1_i32_19 : i32 to vector<1x8x1xi32>
    %72 = arith.addi %70, %71 : vector<1x8x1xi32>
    %73 = arith.sitofp %72 : vector<1x8x1xi32> to vector<1x8x1xf32>
    %74 = vector.broadcast %60 : vector<8x1x1xf32> to vector<8x8x1xf32>
    %75 = vector.broadcast %73 : vector<1x8x1xf32> to vector<8x8x1xf32>
    %76 = arith.mulf %74, %75 : vector<8x8x1xf32>
    %cst_20 = arith.constant 1.000000e+00 : f32
    %77 = vector.broadcast %cst_20 : f32 to vector<8x8x1xf32>
    %78 = arith.divf %77, %76 : vector<8x8x1xf32>
    %79 = vector.broadcast %78 : vector<8x8x1xf32> to vector<8x8x32xf32>
    %80 = arith.mulf %47, %79 : vector<8x8x32xf32>
    %c0_21 = arith.constant 0 : index
    %c0_22 = arith.constant 0 : index
    %81 = vector.load %arg4[%c0_21, %c0_22] : memref<1x32xf32, #tpu.memory_space<vmem>>, vector<1x32xf32>
    %82 = vector.shape_cast %81 : vector<1x32xf32> to vector<1x1x32xf32>
    %83 = arith.subf %80, %17 : vector<8x8x32xf32>
    %84 = vector.broadcast %82 : vector<1x1x32xf32> to vector<8x8x32xf32>
    %85 = arith.mulf %84, %83 : vector<8x8x32xf32>
    %86 = arith.addf %1, %85 : vector<8x8x32xf32>
    %c0_23 = arith.constant 0 : index
    %c0_24 = arith.constant 0 : index
    %c0_25 = arith.constant 0 : index
    %c0_26 = arith.constant 0 : index
    %87 = vector.load %arg7[%c0_23, %c0_24, %c0_25, %c0_26] : memref<1x8x8x32xf32, #tpu.memory_space<vmem>>, vector<1x8x8x32xf32>
    %88 = vector.shape_cast %87 : vector<1x8x8x32xf32> to vector<8x8x32xf32>
    %89 = vector.shape_cast %86 : vector<8x8x32xf32> to vector<1x8x8x32xf32>
    tpu.vector_store %arg7[%c0_23, %c0_24, %c0_25, %c0_26], %89 {strides = array<i32>} : memref<1x8x8x32xf32, #tpu.memory_space<vmem>>, vector<1x8x8x32xf32>,
    %90 = vector.shape_cast %86 : vector<8x8x32xf32> to vector<1x8x8x32xf32>
    %cst_27 = arith.constant dense<0.000000e+00> : vector<1xf32>
    %91 = vector.multi_reduction <add>, %90, %cst_27 [1, 2, 3] : vector<1x8x8x32xf32> to vector<1xf32>
    %92 = vector.shape_cast %91 : vector<1xf32> to vector<1x1x1x1xf32>
    %93 = vector.extract %92[0, 0, 0, 0] : f32 from vector<1x1x1x1xf32>
    %cst_28 = arith.constant 2.048000e+03 : f32
    %94 = arith.divf %93, %cst_28 : f32
    %95 = vector.broadcast %94 : f32 to vector<8x8x32xf32>
    %96 = arith.subf %86, %95 : vector<8x8x32xf32>
    %97 = arith.mulf %96, %96 : vector<8x8x32xf32>
    %98 = vector.shape_cast %97 : vector<8x8x32xf32> to vector<1x8x8x32xf32>
    %cst_29 = arith.constant dense<0.000000e+00> : vector<1xf32>
    %99 = vector.multi_reduction <add>, %98, %cst_29 [1, 2, 3] : vector<1x8x8x32xf32> to vector<1xf32>
    %100 = vector.shape_cast %99 : vector<1xf32> to vector<1x1x1x1xf32>
    %101 = vector.extract %100[0, 0, 0, 0] : f32 from vector<1x1x1x1xf32>
    %cst_30 = arith.constant 2.048000e+03 : f32
    %102 = arith.divf %101, %cst_30 : f32
    %103 = vector.broadcast %94 : f32 to vector<1x1x128xf32>
    %c0_31 = arith.constant 0 : index
    %c0_32 = arith.constant 0 : index
    %c0_33 = arith.constant 0 : index
    %104 = vector.load %arg8[%c0_31, %c0_32, %c0_33] : memref<1x1x128xf32, #tpu.memory_space<vmem>>, vector<1x1x128xf32>
    tpu.vector_store %arg8[%c0_31, %c0_32, %c0_33], %103 {strides = array<i32>} : memref<1x1x128xf32, #tpu.memory_space<vmem>>, vector<1x1x128xf32>,
    %cst_34 = arith.constant 9.99999974E-6 : f32
    %105 = arith.addf %102, %cst_34 : f32
    %106 = math.rsqrt %105 : f32
    %107 = vector.broadcast %106 : f32 to vector<1x1x128xf32>
    %c0_35 = arith.constant 0 : index
    %c0_36 = arith.constant 0 : index
    %c0_37 = arith.constant 0 : index
    %108 = vector.load %arg9[%c0_35, %c0_36, %c0_37] : memref<1x1x128xf32, #tpu.memory_space<vmem>>, vector<1x1x128xf32>
    tpu.vector_store %arg9[%c0_35, %c0_36, %c0_37], %107 {strides = array<i32>} : memref<1x1x128xf32, #tpu.memory_space<vmem>>, vector<1x1x128xf32>,
    return
  }
  func.func @transform_0(%arg0: i32) -> (i32, i32, i32, i32) {
    %c0_i32 = arith.constant 0 : i32
    %c0_i32_0 = arith.constant 0 : i32
    %c0_i32_1 = arith.constant 0 : i32
    %c0_i32_2 = arith.constant 0 : i32
    return %arg0, %c0_i32, %c0_i32_0, %c0_i32_1 : i32, i32, i32, i32
  }
  func.func @transform_1(%arg0: i32) -> (i32, i32) {
    %c0_i32 = arith.constant 0 : i32
    %c0_i32_0 = arith.constant 0 : i32
    %c0_i32_1 = arith.constant 0 : i32
    return %c0_i32, %c0_i32_0 : i32, i32
  }
  func.func @transform_2(%arg0: i32) -> (i32, i32) {
    %c0_i32 = arith.constant 0 : i32
    %c0_i32_0 = arith.constant 0 : i32
    %c0_i32_1 = arith.constant 0 : i32
    return %c0_i32, %c0_i32_0 : i32, i32
  }
  func.func @transform_3(%arg0: i32) -> (i32, i32) {
    %c0_i32 = arith.constant 0 : i32
    %c0_i32_0 = arith.constant 0 : i32
    %c0_i32_1 = arith.constant 0 : i32
    return %c0_i32, %c0_i32_0 : i32, i32
  }
  func.func @transform_4(%arg0: i32) -> (i32, i32, i32) {
    %c0_i32 = arith.constant 0 : i32
    %c0_i32_0 = arith.constant 0 : i32
    %c0_i32_1 = arith.constant 0 : i32
    return %arg0, %c0_i32, %c0_i32_0 : i32, i32, i32
  }
  func.func @transform_5(%arg0: i32) -> (i32, i32, i32) {
    %c0_i32 = arith.constant 0 : i32
    %c0_i32_0 = arith.constant 0 : i32
    %c0_i32_1 = arith.constant 0 : i32
    return %arg0, %c0_i32, %c0_i32_0 : i32, i32, i32
  }
  func.func @transform_6(%arg0: i32) -> (i32, i32, i32, i32) {
    %c0_i32 = arith.constant 0 : i32
    %c0_i32_0 = arith.constant 0 : i32
    %c0_i32_1 = arith.constant 0 : i32
    %c0_i32_2 = arith.constant 0 : i32
    return %arg0, %c0_i32, %c0_i32_0, %c0_i32_1 : i32, i32, i32, i32
  }
  func.func @transform_7(%arg0: i32) -> (i32, i32, i32) {
    %c0_i32 = arith.constant 0 : i32
    %c0_i32_0 = arith.constant 0 : i32
    %c0_i32_1 = arith.constant 0 : i32
    return %arg0, %c0_i32, %c0_i32_0 : i32, i32, i32
  }
  func.func @transform_8(%arg0: i32) -> (i32, i32, i32) {
    %c0_i32 = arith.constant 0 : i32
    %c0_i32_0 = arith.constant 0 : i32
    %c0_i32_1 = arith.constant 0 : i32
    return %arg0, %c0_i32, %c0_i32_0 : i32, i32, i32
  }
}

module attributes {stable_mosaic.version = 11 : i64} {
  func.func @_mlp_kernel(%arg0: i32, %arg1: i32, %arg2: memref<1x64x32xf32, #tpu.memory_space<vmem>>, %arg3: memref<1x32xf32, #tpu.memory_space<vmem>>, %arg4: memref<1x32xf32, #tpu.memory_space<vmem>>, %arg5: memref<32x96xbf16, #tpu.memory_space<vmem>>, %arg6: memref<1x96xf32, #tpu.memory_space<vmem>>, %arg7: memref<96x32xbf16, #tpu.memory_space<vmem>>, %arg8: memref<1x32xf32, #tpu.memory_space<vmem>>, %arg9: memref<1x32xf32, #tpu.memory_space<vmem>>, %arg10: memref<1x1x128xf32, #tpu.memory_space<vmem>>, %arg11: memref<1x1x128xf32, #tpu.memory_space<vmem>>, %arg12: memref<1x64x32xf32, #tpu.memory_space<vmem>>) attributes {dimension_semantics = [#tpu.dimension_semantics<parallel>, #tpu.dimension_semantics<parallel>], iteration_bounds = array<i64: 2, 1>, scalar_prefetch = 0 : i64, scratch_operands = 0 : i64, tpu.core_type = #tpu.core_type<tc>, window_params = [{transform_indices = @transform_0, window_bounds = array<i64: 1, 64, 32>}, {pipeline_mode = #tpu.pipeline_mode<synchronous>, transform_indices = @transform_1, window_bounds = array<i64: 1, 32>}, {pipeline_mode = #tpu.pipeline_mode<synchronous>, transform_indices = @transform_2, window_bounds = array<i64: 1, 32>}, {pipeline_mode = #tpu.pipeline_mode<synchronous>, transform_indices = @transform_3, window_bounds = array<i64: 32, 96>}, {pipeline_mode = #tpu.pipeline_mode<synchronous>, transform_indices = @transform_4, window_bounds = array<i64: 1, 96>}, {pipeline_mode = #tpu.pipeline_mode<synchronous>, transform_indices = @transform_5, window_bounds = array<i64: 96, 32>}, {pipeline_mode = #tpu.pipeline_mode<synchronous>, transform_indices = @transform_6, window_bounds = array<i64: 1, 32>}, {pipeline_mode = #tpu.pipeline_mode<synchronous>, transform_indices = @transform_7, window_bounds = array<i64: 1, 32>}, {transform_indices = @transform_8, window_bounds = array<i64: 1, 1, 128>}, {transform_indices = @transform_9, window_bounds = array<i64: 1, 1, 128>}, {transform_indices = @transform_10, window_bounds = array<i64: 1, 64, 32>}]} {
    %c0 = arith.constant 0 : index
    %c0_0 = arith.constant 0 : index
    %c0_1 = arith.constant 0 : index
    %0 = vector.load %arg2[%c0, %c0_0, %c0_1] : memref<1x64x32xf32, #tpu.memory_space<vmem>>, vector<1x64x32xf32>
    %1 = vector.shape_cast %0 : vector<1x64x32xf32> to vector<64x32xf32>
    %c0_2 = arith.constant 0 : index
    %c0_3 = arith.constant 0 : index
    %c0_4 = arith.constant 0 : index
    %2 = vector.load %arg10[%c0_2, %c0_3, %c0_4] : memref<1x1x128xf32, #tpu.memory_space<vmem>>, vector<1x1x128xf32>
    %3 = vector.extract_strided_slice %2 {offsets = [0, 0, 0], sizes = [1, 1, 1], strides = [1, 1, 1]} : vector<1x1x128xf32> to vector<1x1x1xf32>
    %4 = vector.shape_cast %3 : vector<1x1x1xf32> to vector<1x1xf32>
    %c0_5 = arith.constant 0 : index
    %c0_6 = arith.constant 0 : index
    %c0_7 = arith.constant 0 : index
    %5 = vector.load %arg11[%c0_5, %c0_6, %c0_7] : memref<1x1x128xf32, #tpu.memory_space<vmem>>, vector<1x1x128xf32>
    %6 = vector.extract_strided_slice %5 {offsets = [0, 0, 0], sizes = [1, 1, 1], strides = [1, 1, 1]} : vector<1x1x128xf32> to vector<1x1x1xf32>
    %7 = vector.shape_cast %6 : vector<1x1x1xf32> to vector<1x1xf32>
    %8 = vector.broadcast %4 : vector<1x1xf32> to vector<64x32xf32>
    %9 = arith.subf %1, %8 : vector<64x32xf32>
    %10 = vector.broadcast %7 : vector<1x1xf32> to vector<64x32xf32>
    %11 = arith.mulf %9, %10 : vector<64x32xf32>
    %c0_8 = arith.constant 0 : index
    %c0_9 = arith.constant 0 : index
    %12 = vector.load %arg3[%c0_8, %c0_9] : memref<1x32xf32, #tpu.memory_space<vmem>>, vector<1x32xf32>
    %13 = vector.broadcast %12 : vector<1x32xf32> to vector<64x32xf32>
    %14 = arith.mulf %11, %13 : vector<64x32xf32>
    %c0_10 = arith.constant 0 : index
    %c0_11 = arith.constant 0 : index
    %15 = vector.load %arg4[%c0_10, %c0_11] : memref<1x32xf32, #tpu.memory_space<vmem>>, vector<1x32xf32>
    %16 = vector.broadcast %15 : vector<1x32xf32> to vector<64x32xf32>
    %17 = arith.addf %14, %16 : vector<64x32xf32>
    %18 = arith.truncf %17 : vector<64x32xf32> to vector<64x32xbf16>
    %c0_12 = arith.constant 0 : index
    %c0_13 = arith.constant 0 : index
    %19 = vector.load %arg5[%c0_12, %c0_13] : memref<32x96xbf16, #tpu.memory_space<vmem>>, vector<32x96xbf16>
    %cst = arith.constant dense<0.000000e+00> : vector<64x96xf32>
    %20 = tpu.matmul %18, %19, %cst {dimension_numbers = #tpu.dot_dimension_numbers<[1], [0], [0], [1], [0, 0, 1, 1], [], []>} : vector<64x32xbf16>, vector<32x96xbf16>, vector<64x96xf32> -> vector<64x96xf32>
    %c0_14 = arith.constant 0 : index
    %c0_15 = arith.constant 0 : index
    %21 = vector.load %arg6[%c0_14, %c0_15] : memref<1x96xf32, #tpu.memory_space<vmem>>, vector<1x96xf32>
    %22 = vector.broadcast %21 : vector<1x96xf32> to vector<64x96xf32>
    %23 = arith.addf %20, %22 : vector<64x96xf32>
    %cst_16 = arith.constant 5.000000e-01 : f32
    %24 = vector.broadcast %cst_16 : f32 to vector<64x96xf32>
    %25 = arith.mulf %24, %23 : vector<64x96xf32>
    %cst_17 = arith.constant 0.707106769 : f32
    %26 = vector.broadcast %cst_17 : f32 to vector<64x96xf32>
    %27 = arith.mulf %23, %26 : vector<64x96xf32>
    %28 = math.absf %27 : vector<64x96xf32>
    %cst_18 = arith.constant 0.327591091 : f32
    %29 = vector.broadcast %cst_18 : f32 to vector<64x96xf32>
    %30 = arith.mulf %29, %28 : vector<64x96xf32>
    %cst_19 = arith.constant 1.000000e+00 : f32
    %31 = vector.broadcast %cst_19 : f32 to vector<64x96xf32>
    %32 = arith.addf %31, %30 : vector<64x96xf32>
    %cst_20 = arith.constant 1.000000e+00 : f32
    %33 = vector.broadcast %cst_20 : f32 to vector<64x96xf32>
    %34 = arith.divf %33, %32 : vector<64x96xf32>
    %cst_21 = arith.constant 1.06140542 : f32
    %35 = vector.broadcast %cst_21 : f32 to vector<64x96xf32>
    %36 = arith.mulf %34, %35 : vector<64x96xf32>
    %cst_22 = arith.constant -1.45315206 : f32
    %37 = vector.broadcast %cst_22 : f32 to vector<64x96xf32>
    %38 = arith.addf %37, %36 : vector<64x96xf32>
    %39 = arith.mulf %34, %38 : vector<64x96xf32>
    %cst_23 = arith.constant 1.42141378 : f32
    %40 = vector.broadcast %cst_23 : f32 to vector<64x96xf32>
    %41 = arith.addf %40, %39 : vector<64x96xf32>
    %42 = arith.mulf %34, %41 : vector<64x96xf32>
    %cst_24 = arith.constant -0.284496725 : f32
    %43 = vector.broadcast %cst_24 : f32 to vector<64x96xf32>
    %44 = arith.addf %43, %42 : vector<64x96xf32>
    %45 = arith.mulf %34, %44 : vector<64x96xf32>
    %cst_25 = arith.constant 0.254829586 : f32
    %46 = vector.broadcast %cst_25 : f32 to vector<64x96xf32>
    %47 = arith.addf %46, %45 : vector<64x96xf32>
    %48 = arith.mulf %34, %47 : vector<64x96xf32>
    %cst_26 = arith.constant 0.000000e+00 : f32
    %49 = vector.broadcast %cst_26 : f32 to vector<64x96xf32>
    %50 = arith.subf %49, %28 : vector<64x96xf32>
    %51 = arith.mulf %50, %28 : vector<64x96xf32>
    %52 = math.exp %51 : vector<64x96xf32>
    %53 = arith.mulf %48, %52 : vector<64x96xf32>
    %cst_27 = arith.constant 1.000000e+00 : f32
    %54 = vector.broadcast %cst_27 : f32 to vector<64x96xf32>
    %55 = arith.subf %54, %53 : vector<64x96xf32>
    %cst_28 = arith.constant 0.000000e+00 : f32
    %56 = vector.broadcast %cst_28 : f32 to vector<64x96xf32>
    %57 = arith.cmpf olt, %27, %56 : vector<64x96xf32>
    %cst_29 = arith.constant 0.000000e+00 : f32
    %58 = vector.broadcast %cst_29 : f32 to vector<64x96xf32>
    %59 = arith.subf %58, %55 : vector<64x96xf32>
    %60 = arith.select %57, %59, %55 : vector<64x96xi1>, vector<64x96xf32>
    %cst_30 = arith.constant 1.000000e+00 : f32
    %61 = vector.broadcast %cst_30 : f32 to vector<64x96xf32>
    %62 = arith.addf %61, %60 : vector<64x96xf32>
    %63 = arith.mulf %25, %62 : vector<64x96xf32>
    %64 = arith.truncf %63 : vector<64x96xf32> to vector<64x96xbf16>
    %c0_31 = arith.constant 0 : index
    %c0_32 = arith.constant 0 : index
    %65 = vector.load %arg7[%c0_31, %c0_32] : memref<96x32xbf16, #tpu.memory_space<vmem>>, vector<96x32xbf16>
    %cst_33 = arith.constant dense<0.000000e+00> : vector<64x32xf32>
    %66 = tpu.matmul %64, %65, %cst_33 {dimension_numbers = #tpu.dot_dimension_numbers<[1], [0], [0], [1], [0, 0, 1, 1], [], []>} : vector<64x96xbf16>, vector<96x32xbf16>, vector<64x32xf32> -> vector<64x32xf32>
    %c0_34 = arith.constant 0 : index
    %c0_35 = arith.constant 0 : index
    %67 = vector.load %arg8[%c0_34, %c0_35] : memref<1x32xf32, #tpu.memory_space<vmem>>, vector<1x32xf32>
    %68 = vector.broadcast %67 : vector<1x32xf32> to vector<64x32xf32>
    %69 = arith.addf %66, %68 : vector<64x32xf32>
    %c0_36 = arith.constant 0 : index
    %c0_37 = arith.constant 0 : index
    %70 = vector.load %arg9[%c0_36, %c0_37] : memref<1x32xf32, #tpu.memory_space<vmem>>, vector<1x32xf32>
    %71 = vector.broadcast %70 : vector<1x32xf32> to vector<64x32xf32>
    %72 = arith.mulf %71, %69 : vector<64x32xf32>
    %73 = arith.addf %1, %72 : vector<64x32xf32>
    %c0_38 = arith.constant 0 : index
    %c0_39 = arith.constant 0 : index
    %c0_40 = arith.constant 0 : index
    %74 = vector.load %arg12[%c0_38, %c0_39, %c0_40] : memref<1x64x32xf32, #tpu.memory_space<vmem>>, vector<1x64x32xf32>
    %75 = vector.shape_cast %74 : vector<1x64x32xf32> to vector<64x32xf32>
    %76 = vector.shape_cast %73 : vector<64x32xf32> to vector<1x64x32xf32>
    tpu.vector_store %arg12[%c0_38, %c0_39, %c0_40], %76 {strides = array<i32>} : memref<1x64x32xf32, #tpu.memory_space<vmem>>, vector<1x64x32xf32>,
    return
  }
  func.func @transform_0(%arg0: i32, %arg1: i32) -> (i32, i32, i32) {
    %c0_i32 = arith.constant 0 : i32
    %c0_i32_0 = arith.constant 0 : i32
    return %arg0, %arg1, %c0_i32 : i32, i32, i32
  }
  func.func @transform_1(%arg0: i32, %arg1: i32) -> (i32, i32) {
    %c0_i32 = arith.constant 0 : i32
    %c0_i32_0 = arith.constant 0 : i32
    %c0_i32_1 = arith.constant 0 : i32
    return %c0_i32, %c0_i32_0 : i32, i32
  }
  func.func @transform_2(%arg0: i32, %arg1: i32) -> (i32, i32) {
    %c0_i32 = arith.constant 0 : i32
    %c0_i32_0 = arith.constant 0 : i32
    %c0_i32_1 = arith.constant 0 : i32
    return %c0_i32, %c0_i32_0 : i32, i32
  }
  func.func @transform_3(%arg0: i32, %arg1: i32) -> (i32, i32) {
    %c0_i32 = arith.constant 0 : i32
    %c0_i32_0 = arith.constant 0 : i32
    %c0_i32_1 = arith.constant 0 : i32
    return %c0_i32, %c0_i32_0 : i32, i32
  }
  func.func @transform_4(%arg0: i32, %arg1: i32) -> (i32, i32) {
    %c0_i32 = arith.constant 0 : i32
    %c0_i32_0 = arith.constant 0 : i32
    %c0_i32_1 = arith.constant 0 : i32
    return %c0_i32, %c0_i32_0 : i32, i32
  }
  func.func @transform_5(%arg0: i32, %arg1: i32) -> (i32, i32) {
    %c0_i32 = arith.constant 0 : i32
    %c0_i32_0 = arith.constant 0 : i32
    %c0_i32_1 = arith.constant 0 : i32
    return %c0_i32, %c0_i32_0 : i32, i32
  }
  func.func @transform_6(%arg0: i32, %arg1: i32) -> (i32, i32) {
    %c0_i32 = arith.constant 0 : i32
    %c0_i32_0 = arith.constant 0 : i32
    %c0_i32_1 = arith.constant 0 : i32
    return %c0_i32, %c0_i32_0 : i32, i32
  }
  func.func @transform_7(%arg0: i32, %arg1: i32) -> (i32, i32) {
    %c0_i32 = arith.constant 0 : i32
    %c0_i32_0 = arith.constant 0 : i32
    %c0_i32_1 = arith.constant 0 : i32
    return %c0_i32, %c0_i32_0 : i32, i32
  }
  func.func @transform_8(%arg0: i32, %arg1: i32) -> (i32, i32, i32) {
    %c0_i32 = arith.constant 0 : i32
    %c0_i32_0 = arith.constant 0 : i32
    %c0_i32_1 = arith.constant 0 : i32
    return %arg0, %c0_i32, %c0_i32_0 : i32, i32, i32
  }
  func.func @transform_9(%arg0: i32, %arg1: i32) -> (i32, i32, i32) {
    %c0_i32 = arith.constant 0 : i32
    %c0_i32_0 = arith.constant 0 : i32
    %c0_i32_1 = arith.constant 0 : i32
    return %arg0, %c0_i32, %c0_i32_0 : i32, i32, i32
  }
  func.func @transform_10(%arg0: i32, %arg1: i32) -> (i32, i32, i32) {
    %c0_i32 = arith.constant 0 : i32
    %c0_i32_0 = arith.constant 0 : i32
    return %arg0, %arg1, %c0_i32 : i32, i32, i32
  }
}

module attributes {stable_mosaic.version = 11 : i64} {
  func.func @_conv_s2_kernel(%arg0: i32, %arg1: memref<1x5x256xf32, #tpu.memory_space<vmem>>, %arg2: memref<1x5x256xf32, #tpu.memory_space<vmem>>, %arg3: memref<3x256x512xbf16, #tpu.memory_space<vmem>>, %arg4: memref<1x512xf32, #tpu.memory_space<vmem>>, %arg5: memref<1x4x512xf32, #tpu.memory_space<vmem>>, %arg6: memref<1x1x128xf32, #tpu.memory_space<vmem>>, %arg7: memref<1x1x128xf32, #tpu.memory_space<vmem>>) attributes {dimension_semantics = [#tpu.dimension_semantics<parallel>], iteration_bounds = array<i64: 2>, scalar_prefetch = 0 : i64, scratch_operands = 0 : i64, tpu.core_type = #tpu.core_type<tc>, window_params = [{transform_indices = @transform_0, window_bounds = array<i64: 1, 5, 256>}, {transform_indices = @transform_1, window_bounds = array<i64: 1, 5, 256>}, {pipeline_mode = #tpu.pipeline_mode<synchronous>, transform_indices = @transform_2, window_bounds = array<i64: 3, 256, 512>}, {pipeline_mode = #tpu.pipeline_mode<synchronous>, transform_indices = @transform_3, window_bounds = array<i64: 1, 512>}, {transform_indices = @transform_4, window_bounds = array<i64: 1, 4, 512>}, {transform_indices = @transform_5, window_bounds = array<i64: 1, 1, 128>}, {transform_indices = @transform_6, window_bounds = array<i64: 1, 1, 128>}]} {
    %c0 = arith.constant 0 : index
    %c0_0 = arith.constant 0 : index
    %c0_1 = arith.constant 0 : index
    %0 = vector.load %arg1[%c0, %c0_0, %c0_1] : memref<1x5x256xf32, #tpu.memory_space<vmem>>, vector<1x5x256xf32>
    %1 = vector.shape_cast %0 : vector<1x5x256xf32> to vector<5x256xf32>
    %2 = arith.truncf %1 : vector<5x256xf32> to vector<5x256xbf16>
    %c0_2 = arith.constant 0 : index
    %c0_3 = arith.constant 0 : index
    %c0_4 = arith.constant 0 : index
    %3 = vector.load %arg2[%c0_2, %c0_3, %c0_4] : memref<1x5x256xf32, #tpu.memory_space<vmem>>, vector<1x5x256xf32>
    %4 = vector.shape_cast %3 : vector<1x5x256xf32> to vector<5x256xf32>
    %5 = arith.truncf %4 : vector<5x256xf32> to vector<5x256xbf16>
    %6 = vector.extract_strided_slice %2 {offsets = [0, 0], sizes = [4, 256], strides = [1, 1]} : vector<5x256xbf16> to vector<4x256xbf16>
    %c0_5 = arith.constant 0 : index
    %c0_6 = arith.constant 0 : index
    %c0_7 = arith.constant 0 : index
    %7 = vector.load %arg3[%c0_5, %c0_6, %c0_7] : memref<3x256x512xbf16, #tpu.memory_space<vmem>>, vector<1x256x512xbf16>
    %8 = vector.shape_cast %7 : vector<1x256x512xbf16> to vector<256x512xbf16>
    %cst = arith.constant dense<0.000000e+00> : vector<4x512xf32>
    %9 = tpu.matmul %6, %8, %cst {dimension_numbers = #tpu.dot_dimension_numbers<[1], [0], [0], [1], [0, 0, 1, 1], [], []>} : vector<4x256xbf16>, vector<256x512xbf16>, vector<4x512xf32> -> vector<4x512xf32>
    %10 = vector.extract_strided_slice %5 {offsets = [0, 0], sizes = [4, 256], strides = [1, 1]} : vector<5x256xbf16> to vector<4x256xbf16>
    %c1 = arith.constant 1 : index
    %c0_8 = arith.constant 0 : index
    %c0_9 = arith.constant 0 : index
    %11 = vector.load %arg3[%c1, %c0_8, %c0_9] : memref<3x256x512xbf16, #tpu.memory_space<vmem>>, vector<1x256x512xbf16>
    %12 = vector.shape_cast %11 : vector<1x256x512xbf16> to vector<256x512xbf16>
    %cst_10 = arith.constant dense<0.000000e+00> : vector<4x512xf32>
    %13 = tpu.matmul %10, %12, %cst_10 {dimension_numbers = #tpu.dot_dimension_numbers<[1], [0], [0], [1], [0, 0, 1, 1], [], []>} : vector<4x256xbf16>, vector<256x512xbf16>, vector<4x512xf32> -> vector<4x512xf32>
    %14 = arith.addf %9, %13 : vector<4x512xf32>
    %15 = vector.extract_strided_slice %2 {offsets = [1, 0], sizes = [4, 256], strides = [1, 1]} : vector<5x256xbf16> to vector<4x256xbf16>
    %c2 = arith.constant 2 : index
    %c0_11 = arith.constant 0 : index
    %c0_12 = arith.constant 0 : index
    %16 = vector.load %arg3[%c2, %c0_11, %c0_12] : memref<3x256x512xbf16, #tpu.memory_space<vmem>>, vector<1x256x512xbf16>
    %17 = vector.shape_cast %16 : vector<1x256x512xbf16> to vector<256x512xbf16>
    %cst_13 = arith.constant dense<0.000000e+00> : vector<4x512xf32>
    %18 = tpu.matmul %15, %17, %cst_13 {dimension_numbers = #tpu.dot_dimension_numbers<[1], [0], [0], [1], [0, 0, 1, 1], [], []>} : vector<4x256xbf16>, vector<256x512xbf16>, vector<4x512xf32> -> vector<4x512xf32>
    %19 = arith.addf %14, %18 : vector<4x512xf32>
    %c0_14 = arith.constant 0 : index
    %c0_15 = arith.constant 0 : index
    %20 = vector.load %arg4[%c0_14, %c0_15] : memref<1x512xf32, #tpu.memory_space<vmem>>, vector<1x512xf32>
    %21 = vector.broadcast %20 : vector<1x512xf32> to vector<4x512xf32>
    %22 = arith.addf %19, %21 : vector<4x512xf32>
    %cst_16 = arith.constant 5.000000e-01 : f32
    %23 = vector.broadcast %cst_16 : f32 to vector<4x512xf32>
    %24 = arith.mulf %23, %22 : vector<4x512xf32>
    %cst_17 = arith.constant 0.707106769 : f32
    %25 = vector.broadcast %cst_17 : f32 to vector<4x512xf32>
    %26 = arith.mulf %22, %25 : vector<4x512xf32>
    %27 = math.absf %26 : vector<4x512xf32>
    %cst_18 = arith.constant 0.327591091 : f32
    %28 = vector.broadcast %cst_18 : f32 to vector<4x512xf32>
    %29 = arith.mulf %28, %27 : vector<4x512xf32>
    %cst_19 = arith.constant 1.000000e+00 : f32
    %30 = vector.broadcast %cst_19 : f32 to vector<4x512xf32>
    %31 = arith.addf %30, %29 : vector<4x512xf32>
    %cst_20 = arith.constant 1.000000e+00 : f32
    %32 = vector.broadcast %cst_20 : f32 to vector<4x512xf32>
    %33 = arith.divf %32, %31 : vector<4x512xf32>
    %cst_21 = arith.constant 1.06140542 : f32
    %34 = vector.broadcast %cst_21 : f32 to vector<4x512xf32>
    %35 = arith.mulf %33, %34 : vector<4x512xf32>
    %cst_22 = arith.constant -1.45315206 : f32
    %36 = vector.broadcast %cst_22 : f32 to vector<4x512xf32>
    %37 = arith.addf %36, %35 : vector<4x512xf32>
    %38 = arith.mulf %33, %37 : vector<4x512xf32>
    %cst_23 = arith.constant 1.42141378 : f32
    %39 = vector.broadcast %cst_23 : f32 to vector<4x512xf32>
    %40 = arith.addf %39, %38 : vector<4x512xf32>
    %41 = arith.mulf %33, %40 : vector<4x512xf32>
    %cst_24 = arith.constant -0.284496725 : f32
    %42 = vector.broadcast %cst_24 : f32 to vector<4x512xf32>
    %43 = arith.addf %42, %41 : vector<4x512xf32>
    %44 = arith.mulf %33, %43 : vector<4x512xf32>
    %cst_25 = arith.constant 0.254829586 : f32
    %45 = vector.broadcast %cst_25 : f32 to vector<4x512xf32>
    %46 = arith.addf %45, %44 : vector<4x512xf32>
    %47 = arith.mulf %33, %46 : vector<4x512xf32>
    %cst_26 = arith.constant 0.000000e+00 : f32
    %48 = vector.broadcast %cst_26 : f32 to vector<4x512xf32>
    %49 = arith.subf %48, %27 : vector<4x512xf32>
    %50 = arith.mulf %49, %27 : vector<4x512xf32>
    %51 = math.exp %50 : vector<4x512xf32>
    %52 = arith.mulf %47, %51 : vector<4x512xf32>
    %cst_27 = arith.constant 1.000000e+00 : f32
    %53 = vector.broadcast %cst_27 : f32 to vector<4x512xf32>
    %54 = arith.subf %53, %52 : vector<4x512xf32>
    %cst_28 = arith.constant 0.000000e+00 : f32
    %55 = vector.broadcast %cst_28 : f32 to vector<4x512xf32>
    %56 = arith.cmpf olt, %26, %55 : vector<4x512xf32>
    %cst_29 = arith.constant 0.000000e+00 : f32
    %57 = vector.broadcast %cst_29 : f32 to vector<4x512xf32>
    %58 = arith.subf %57, %54 : vector<4x512xf32>
    %59 = arith.select %56, %58, %54 : vector<4x512xi1>, vector<4x512xf32>
    %cst_30 = arith.constant 1.000000e+00 : f32
    %60 = vector.broadcast %cst_30 : f32 to vector<4x512xf32>
    %61 = arith.addf %60, %59 : vector<4x512xf32>
    %62 = arith.mulf %24, %61 : vector<4x512xf32>
    %c0_31 = arith.constant 0 : index
    %c0_32 = arith.constant 0 : index
    %c0_33 = arith.constant 0 : index
    %63 = vector.load %arg5[%c0_31, %c0_32, %c0_33] : memref<1x4x512xf32, #tpu.memory_space<vmem>>, vector<1x4x512xf32>
    %64 = vector.shape_cast %63 : vector<1x4x512xf32> to vector<4x512xf32>
    %65 = vector.shape_cast %62 : vector<4x512xf32> to vector<1x4x512xf32>
    tpu.vector_store %arg5[%c0_31, %c0_32, %c0_33], %65 {strides = array<i32>} : memref<1x4x512xf32, #tpu.memory_space<vmem>>, vector<1x4x512xf32>,
    %66 = vector.shape_cast %62 : vector<4x512xf32> to vector<1x4x512xf32>
    %cst_34 = arith.constant dense<0.000000e+00> : vector<1xf32>
    %67 = vector.multi_reduction <add>, %66, %cst_34 [1, 2] : vector<1x4x512xf32> to vector<1xf32>
    %68 = vector.shape_cast %67 : vector<1xf32> to vector<1x1x1xf32>
    %69 = vector.extract %68[0, 0, 0] : f32 from vector<1x1x1xf32>
    %cst_35 = arith.constant 2.048000e+03 : f32
    %70 = arith.divf %69, %cst_35 : f32
    %71 = vector.broadcast %70 : f32 to vector<4x512xf32>
    %72 = arith.subf %62, %71 : vector<4x512xf32>
    %73 = arith.mulf %72, %72 : vector<4x512xf32>
    %74 = vector.shape_cast %73 : vector<4x512xf32> to vector<1x4x512xf32>
    %cst_36 = arith.constant dense<0.000000e+00> : vector<1xf32>
    %75 = vector.multi_reduction <add>, %74, %cst_36 [1, 2] : vector<1x4x512xf32> to vector<1xf32>
    %76 = vector.shape_cast %75 : vector<1xf32> to vector<1x1x1xf32>
    %77 = vector.extract %76[0, 0, 0] : f32 from vector<1x1x1xf32>
    %cst_37 = arith.constant 2.048000e+03 : f32
    %78 = arith.divf %77, %cst_37 : f32
    %79 = vector.broadcast %70 : f32 to vector<1x1x128xf32>
    %c0_38 = arith.constant 0 : index
    %c0_39 = arith.constant 0 : index
    %c0_40 = arith.constant 0 : index
    %80 = vector.load %arg6[%c0_38, %c0_39, %c0_40] : memref<1x1x128xf32, #tpu.memory_space<vmem>>, vector<1x1x128xf32>
    tpu.vector_store %arg6[%c0_38, %c0_39, %c0_40], %79 {strides = array<i32>} : memref<1x1x128xf32, #tpu.memory_space<vmem>>, vector<1x1x128xf32>,
    %cst_41 = arith.constant 9.99999974E-6 : f32
    %81 = arith.addf %78, %cst_41 : f32
    %82 = math.rsqrt %81 : f32
    %83 = vector.broadcast %82 : f32 to vector<1x1x128xf32>
    %c0_42 = arith.constant 0 : index
    %c0_43 = arith.constant 0 : index
    %c0_44 = arith.constant 0 : index
    %84 = vector.load %arg7[%c0_42, %c0_43, %c0_44] : memref<1x1x128xf32, #tpu.memory_space<vmem>>, vector<1x1x128xf32>
    tpu.vector_store %arg7[%c0_42, %c0_43, %c0_44], %83 {strides = array<i32>} : memref<1x1x128xf32, #tpu.memory_space<vmem>>, vector<1x1x128xf32>,
    return
  }
  func.func @transform_0(%arg0: i32) -> (i32, i32, i32) {
    %c0_i32 = arith.constant 0 : i32
    %c0_i32_0 = arith.constant 0 : i32
    %c0_i32_1 = arith.constant 0 : i32
    return %arg0, %c0_i32, %c0_i32_0 : i32, i32, i32
  }
  func.func @transform_1(%arg0: i32) -> (i32, i32, i32) {
    %c0_i32 = arith.constant 0 : i32
    %c0_i32_0 = arith.constant 0 : i32
    %c0_i32_1 = arith.constant 0 : i32
    return %arg0, %c0_i32, %c0_i32_0 : i32, i32, i32
  }
  func.func @transform_2(%arg0: i32) -> (i32, i32, i32) {
    %c0_i32 = arith.constant 0 : i32
    %c0_i32_0 = arith.constant 0 : i32
    %c0_i32_1 = arith.constant 0 : i32
    %c0_i32_2 = arith.constant 0 : i32
    return %c0_i32, %c0_i32_0, %c0_i32_1 : i32, i32, i32
  }
  func.func @transform_3(%arg0: i32) -> (i32, i32) {
    %c0_i32 = arith.constant 0 : i32
    %c0_i32_0 = arith.constant 0 : i32
    %c0_i32_1 = arith.constant 0 : i32
    return %c0_i32, %c0_i32_0 : i32, i32
  }
  func.func @transform_4(%arg0: i32) -> (i32, i32, i32) {
    %c0_i32 = arith.constant 0 : i32
    %c0_i32_0 = arith.constant 0 : i32
    %c0_i32_1 = arith.constant 0 : i32
    return %arg0, %c0_i32, %c0_i32_0 : i32, i32, i32
  }
  func.func @transform_5(%arg0: i32) -> (i32, i32, i32) {
    %c0_i32 = arith.constant 0 : i32
    %c0_i32_0 = arith.constant 0 : i32
    %c0_i32_1 = arith.constant 0 : i32
    return %arg0, %c0_i32, %c0_i32_0 : i32, i32, i32
  }
  func.func @transform_6(%arg0: i32) -> (i32, i32, i32) {
    %c0_i32 = arith.constant 0 : i32
    %c0_i32_0 = arith.constant 0 : i32
    %c0_i32_1 = arith.constant 0 : i32
    return %arg0, %c0_i32, %c0_i32_0 : i32, i32, i32
  }
}

module attributes {stable_mosaic.version = 11 : i64} {
  func.func @_pool_mix_kernel(%arg0: i32, %arg1: memref<1x4x4x128xf32, #tpu.memory_space<vmem>>, %arg2: memref<1x128xf32, #tpu.memory_space<vmem>>, %arg3: memref<1x128xf32, #tpu.memory_space<vmem>>, %arg4: memref<1x128xf32, #tpu.memory_space<vmem>>, %arg5: memref<1x1x128xf32, #tpu.memory_space<vmem>>, %arg6: memref<1x1x128xf32, #tpu.memory_space<vmem>>, %arg7: memref<1x4x4x128xf32, #tpu.memory_space<vmem>>, %arg8: memref<1x1x128xf32, #tpu.memory_space<vmem>>, %arg9: memref<1x1x128xf32, #tpu.memory_space<vmem>>) attributes {dimension_semantics = [#tpu.dimension_semantics<parallel>], iteration_bounds = array<i64: 2>, scalar_prefetch = 0 : i64, scratch_operands = 0 : i64, tpu.core_type = #tpu.core_type<tc>, window_params = [{transform_indices = @transform_0, window_bounds = array<i64: 1, 4, 4, 128>}, {pipeline_mode = #tpu.pipeline_mode<synchronous>, transform_indices = @transform_1, window_bounds = array<i64: 1, 128>}, {pipeline_mode = #tpu.pipeline_mode<synchronous>, transform_indices = @transform_2, window_bounds = array<i64: 1, 128>}, {pipeline_mode = #tpu.pipeline_mode<synchronous>, transform_indices = @transform_3, window_bounds = array<i64: 1, 128>}, {transform_indices = @transform_4, window_bounds = array<i64: 1, 1, 128>}, {transform_indices = @transform_5, window_bounds = array<i64: 1, 1, 128>}, {transform_indices = @transform_6, window_bounds = array<i64: 1, 4, 4, 128>}, {transform_indices = @transform_7, window_bounds = array<i64: 1, 1, 128>}, {transform_indices = @transform_8, window_bounds = array<i64: 1, 1, 128>}]} {
    %c0 = arith.constant 0 : index
    %c0_0 = arith.constant 0 : index
    %c0_1 = arith.constant 0 : index
    %c0_2 = arith.constant 0 : index
    %0 = vector.load %arg1[%c0, %c0_0, %c0_1, %c0_2] : memref<1x4x4x128xf32, #tpu.memory_space<vmem>>, vector<1x4x4x128xf32>
    %1 = vector.shape_cast %0 : vector<1x4x4x128xf32> to vector<4x4x128xf32>
    %c0_3 = arith.constant 0 : index
    %c0_4 = arith.constant 0 : index
    %c0_5 = arith.constant 0 : index
    %2 = vector.load %arg5[%c0_3, %c0_4, %c0_5] : memref<1x1x128xf32, #tpu.memory_space<vmem>>, vector<1x1x128xf32>
    %3 = vector.extract_strided_slice %2 {offsets = [0, 0, 0], sizes = [1, 1, 1], strides = [1, 1, 1]} : vector<1x1x128xf32> to vector<1x1x1xf32>
    %c0_6 = arith.constant 0 : index
    %c0_7 = arith.constant 0 : index
    %c0_8 = arith.constant 0 : index
    %4 = vector.load %arg6[%c0_6, %c0_7, %c0_8] : memref<1x1x128xf32, #tpu.memory_space<vmem>>, vector<1x1x128xf32>
    %5 = vector.extract_strided_slice %4 {offsets = [0, 0, 0], sizes = [1, 1, 1], strides = [1, 1, 1]} : vector<1x1x128xf32> to vector<1x1x1xf32>
    %c0_9 = arith.constant 0 : index
    %c0_10 = arith.constant 0 : index
    %6 = vector.load %arg2[%c0_9, %c0_10] : memref<1x128xf32, #tpu.memory_space<vmem>>, vector<1x128xf32>
    %7 = vector.shape_cast %6 : vector<1x128xf32> to vector<1x1x128xf32>
    %c0_11 = arith.constant 0 : index
    %c0_12 = arith.constant 0 : index
    %8 = vector.load %arg3[%c0_11, %c0_12] : memref<1x128xf32, #tpu.memory_space<vmem>>, vector<1x128xf32>
    %9 = vector.shape_cast %8 : vector<1x128xf32> to vector<1x1x128xf32>
    %10 = vector.broadcast %3 : vector<1x1x1xf32> to vector<4x4x128xf32>
    %11 = arith.subf %1, %10 : vector<4x4x128xf32>
    %12 = vector.broadcast %5 : vector<1x1x1xf32> to vector<4x4x128xf32>
    %13 = arith.mulf %11, %12 : vector<4x4x128xf32>
    %14 = vector.broadcast %7 : vector<1x1x128xf32> to vector<4x4x128xf32>
    %15 = arith.mulf %13, %14 : vector<4x4x128xf32>
    %16 = vector.broadcast %9 : vector<1x1x128xf32> to vector<4x4x128xf32>
    %17 = arith.addf %15, %16 : vector<4x4x128xf32>
    %cst = arith.constant 0.000000e+00 : f32
    %18 = vector.broadcast %cst : f32 to vector<3x4x128xf32>
    %19 = tpu.concatenate %18, %17, %18 in 0 : vector<3x4x128xf32>, vector<4x4x128xf32>, vector<3x4x128xf32> -> vector<10x4x128xf32>
    %20 = vector.extract_strided_slice %19 {offsets = [0, 0, 0], sizes = [4, 4, 128], strides = [1, 1, 1]} : vector<10x4x128xf32> to vector<4x4x128xf32>
    %21 = vector.extract_strided_slice %19 {offsets = [1, 0, 0], sizes = [4, 4, 128], strides = [1, 1, 1]} : vector<10x4x128xf32> to vector<4x4x128xf32>
    %22 = arith.addf %20, %21 : vector<4x4x128xf32>
    %23 = vector.extract_strided_slice %19 {offsets = [2, 0, 0], sizes = [4, 4, 128], strides = [1, 1, 1]} : vector<10x4x128xf32> to vector<4x4x128xf32>
    %24 = arith.addf %22, %23 : vector<4x4x128xf32>
    %25 = vector.extract_strided_slice %19 {offsets = [3, 0, 0], sizes = [4, 4, 128], strides = [1, 1, 1]} : vector<10x4x128xf32> to vector<4x4x128xf32>
    %26 = arith.addf %24, %25 : vector<4x4x128xf32>
    %27 = vector.extract_strided_slice %19 {offsets = [4, 0, 0], sizes = [4, 4, 128], strides = [1, 1, 1]} : vector<10x4x128xf32> to vector<4x4x128xf32>
    %28 = arith.addf %26, %27 : vector<4x4x128xf32>
    %29 = vector.extract_strided_slice %19 {offsets = [5, 0, 0], sizes = [4, 4, 128], strides = [1, 1, 1]} : vector<10x4x128xf32> to vector<4x4x128xf32>
    %30 = arith.addf %28, %29 : vector<4x4x128xf32>
    %31 = vector.extract_strided_slice %19 {offsets = [6, 0, 0], sizes = [4, 4, 128], strides = [1, 1, 1]} : vector<10x4x128xf32> to vector<4x4x128xf32>
    %32 = arith.addf %30, %31 : vector<4x4x128xf32>
    %cst_13 = arith.constant 0.000000e+00 : f32
    %33 = vector.broadcast %cst_13 : f32 to vector<4x3x128xf32>
    %34 = tpu.concatenate %33, %32, %33 in 1 : vector<4x3x128xf32>, vector<4x4x128xf32>, vector<4x3x128xf32> -> vector<4x10x128xf32>
    %35 = vector.extract_strided_slice %34 {offsets = [0, 0, 0], sizes = [4, 4, 128], strides = [1, 1, 1]} : vector<4x10x128xf32> to vector<4x4x128xf32>
    %36 = vector.extract_strided_slice %34 {offsets = [0, 1, 0], sizes = [4, 4, 128], strides = [1, 1, 1]} : vector<4x10x128xf32> to vector<4x4x128xf32>
    %37 = arith.addf %35, %36 : vector<4x4x128xf32>
    %38 = vector.extract_strided_slice %34 {offsets = [0, 2, 0], sizes = [4, 4, 128], strides = [1, 1, 1]} : vector<4x10x128xf32> to vector<4x4x128xf32>
    %39 = arith.addf %37, %38 : vector<4x4x128xf32>
    %40 = vector.extract_strided_slice %34 {offsets = [0, 3, 0], sizes = [4, 4, 128], strides = [1, 1, 1]} : vector<4x10x128xf32> to vector<4x4x128xf32>
    %41 = arith.addf %39, %40 : vector<4x4x128xf32>
    %42 = vector.extract_strided_slice %34 {offsets = [0, 4, 0], sizes = [4, 4, 128], strides = [1, 1, 1]} : vector<4x10x128xf32> to vector<4x4x128xf32>
    %43 = arith.addf %41, %42 : vector<4x4x128xf32>
    %44 = vector.extract_strided_slice %34 {offsets = [0, 5, 0], sizes = [4, 4, 128], strides = [1, 1, 1]} : vector<4x10x128xf32> to vector<4x4x128xf32>
    %45 = arith.addf %43, %44 : vector<4x4x128xf32>
    %46 = vector.extract_strided_slice %34 {offsets = [0, 6, 0], sizes = [4, 4, 128], strides = [1, 1, 1]} : vector<4x10x128xf32> to vector<4x4x128xf32>
    %47 = arith.addf %45, %46 : vector<4x4x128xf32>
    %48 = tpu.iota {dimensions = array<i32: 0>} : vector<4x1x1xi32>
    %c3_i32 = arith.constant 3 : i32
    %49 = vector.broadcast %c3_i32 : i32 to vector<4x1x1xi32>
    %50 = arith.addi %48, %49 : vector<4x1x1xi32>
    %c3_i32_14 = arith.constant 3 : i32
    %51 = vector.broadcast %c3_i32_14 : i32 to vector<4x1x1xi32>
    %52 = arith.minsi %50, %51 : vector<4x1x1xi32>
    %c3_i32_15 = arith.constant 3 : i32
    %53 = vector.broadcast %c3_i32_15 : i32 to vector<4x1x1xi32>
    %54 = arith.subi %48, %53 : vector<4x1x1xi32>
    %c0_i32 = arith.constant 0 : i32
    %55 = vector.broadcast %c0_i32 : i32 to vector<4x1x1xi32>
    %56 = arith.maxsi %54, %55 : vector<4x1x1xi32>
    %57 = arith.subi %52, %56 : vector<4x1x1xi32>
    %c1_i32 = arith.constant 1 : i32
    %58 = vector.broadcast %c1_i32 : i32 to vector<4x1x1xi32>
    %59 = arith.addi %57, %58 : vector<4x1x1xi32>
    %60 = arith.sitofp %59 : vector<4x1x1xi32> to vector<4x1x1xf32>
    %61 = tpu.iota {dimensions = array<i32: 1>} : vector<1x4x1xi32>
    %c3_i32_16 = arith.constant 3 : i32
    %62 = vector.broadcast %c3_i32_16 : i32 to vector<1x4x1xi32>
    %63 = arith.addi %61, %62 : vector<1x4x1xi32>
    %c3_i32_17 = arith.constant 3 : i32
    %64 = vector.broadcast %c3_i32_17 : i32 to vector<1x4x1xi32>
    %65 = arith.minsi %63, %64 : vector<1x4x1xi32>
    %c3_i32_18 = arith.constant 3 : i32
    %66 = vector.broadcast %c3_i32_18 : i32 to vector<1x4x1xi32>
    %67 = arith.subi %61, %66 : vector<1x4x1xi32>
    %c0_i32_19 = arith.constant 0 : i32
    %68 = vector.broadcast %c0_i32_19 : i32 to vector<1x4x1xi32>
    %69 = arith.maxsi %67, %68 : vector<1x4x1xi32>
    %70 = arith.subi %65, %69 : vector<1x4x1xi32>
    %c1_i32_20 = arith.constant 1 : i32
    %71 = vector.broadcast %c1_i32_20 : i32 to vector<1x4x1xi32>
    %72 = arith.addi %70, %71 : vector<1x4x1xi32>
    %73 = arith.sitofp %72 : vector<1x4x1xi32> to vector<1x4x1xf32>
    %74 = vector.broadcast %60 : vector<4x1x1xf32> to vector<4x4x1xf32>
    %75 = vector.broadcast %73 : vector<1x4x1xf32> to vector<4x4x1xf32>
    %76 = arith.mulf %74, %75 : vector<4x4x1xf32>
    %cst_21 = arith.constant 1.000000e+00 : f32
    %77 = vector.broadcast %cst_21 : f32 to vector<4x4x1xf32>
    %78 = arith.divf %77, %76 : vector<4x4x1xf32>
    %79 = vector.broadcast %78 : vector<4x4x1xf32> to vector<4x4x128xf32>
    %80 = arith.mulf %47, %79 : vector<4x4x128xf32>
    %c0_22 = arith.constant 0 : index
    %c0_23 = arith.constant 0 : index
    %81 = vector.load %arg4[%c0_22, %c0_23] : memref<1x128xf32, #tpu.memory_space<vmem>>, vector<1x128xf32>
    %82 = vector.shape_cast %81 : vector<1x128xf32> to vector<1x1x128xf32>
    %83 = arith.subf %80, %17 : vector<4x4x128xf32>
    %84 = vector.broadcast %82 : vector<1x1x128xf32> to vector<4x4x128xf32>
    %85 = arith.mulf %84, %83 : vector<4x4x128xf32>
    %86 = arith.addf %1, %85 : vector<4x4x128xf32>
    %c0_24 = arith.constant 0 : index
    %c0_25 = arith.constant 0 : index
    %c0_26 = arith.constant 0 : index
    %c0_27 = arith.constant 0 : index
    %87 = vector.load %arg7[%c0_24, %c0_25, %c0_26, %c0_27] : memref<1x4x4x128xf32, #tpu.memory_space<vmem>>, vector<1x4x4x128xf32>
    %88 = vector.shape_cast %87 : vector<1x4x4x128xf32> to vector<4x4x128xf32>
    %89 = vector.shape_cast %86 : vector<4x4x128xf32> to vector<1x4x4x128xf32>
    tpu.vector_store %arg7[%c0_24, %c0_25, %c0_26, %c0_27], %89 {strides = array<i32>} : memref<1x4x4x128xf32, #tpu.memory_space<vmem>>, vector<1x4x4x128xf32>,
    %90 = vector.shape_cast %86 : vector<4x4x128xf32> to vector<1x4x4x128xf32>
    %cst_28 = arith.constant dense<0.000000e+00> : vector<1xf32>
    %91 = vector.multi_reduction <add>, %90, %cst_28 [1, 2, 3] : vector<1x4x4x128xf32> to vector<1xf32>
    %92 = vector.shape_cast %91 : vector<1xf32> to vector<1x1x1x1xf32>
    %93 = vector.extract %92[0, 0, 0, 0] : f32 from vector<1x1x1x1xf32>
    %cst_29 = arith.constant 2.048000e+03 : f32
    %94 = arith.divf %93, %cst_29 : f32
    %95 = vector.broadcast %94 : f32 to vector<4x4x128xf32>
    %96 = arith.subf %86, %95 : vector<4x4x128xf32>
    %97 = arith.mulf %96, %96 : vector<4x4x128xf32>
    %98 = vector.shape_cast %97 : vector<4x4x128xf32> to vector<1x4x4x128xf32>
    %cst_30 = arith.constant dense<0.000000e+00> : vector<1xf32>
    %99 = vector.multi_reduction <add>, %98, %cst_30 [1, 2, 3] : vector<1x4x4x128xf32> to vector<1xf32>
    %100 = vector.shape_cast %99 : vector<1xf32> to vector<1x1x1x1xf32>
    %101 = vector.extract %100[0, 0, 0, 0] : f32 from vector<1x1x1x1xf32>
    %cst_31 = arith.constant 2.048000e+03 : f32
    %102 = arith.divf %101, %cst_31 : f32
    %103 = vector.broadcast %94 : f32 to vector<1x1x128xf32>
    %c0_32 = arith.constant 0 : index
    %c0_33 = arith.constant 0 : index
    %c0_34 = arith.constant 0 : index
    %104 = vector.load %arg8[%c0_32, %c0_33, %c0_34] : memref<1x1x128xf32, #tpu.memory_space<vmem>>, vector<1x1x128xf32>
    tpu.vector_store %arg8[%c0_32, %c0_33, %c0_34], %103 {strides = array<i32>} : memref<1x1x128xf32, #tpu.memory_space<vmem>>, vector<1x1x128xf32>,
    %cst_35 = arith.constant 9.99999974E-6 : f32
    %105 = arith.addf %102, %cst_35 : f32
    %106 = math.rsqrt %105 : f32
    %107 = vector.broadcast %106 : f32 to vector<1x1x128xf32>
    %c0_36 = arith.constant 0 : index
    %c0_37 = arith.constant 0 : index
    %c0_38 = arith.constant 0 : index
    %108 = vector.load %arg9[%c0_36, %c0_37, %c0_38] : memref<1x1x128xf32, #tpu.memory_space<vmem>>, vector<1x1x128xf32>
    tpu.vector_store %arg9[%c0_36, %c0_37, %c0_38], %107 {strides = array<i32>} : memref<1x1x128xf32, #tpu.memory_space<vmem>>, vector<1x1x128xf32>,
    return
  }
  func.func @transform_0(%arg0: i32) -> (i32, i32, i32, i32) {
    %c0_i32 = arith.constant 0 : i32
    %c0_i32_0 = arith.constant 0 : i32
    %c0_i32_1 = arith.constant 0 : i32
    %c0_i32_2 = arith.constant 0 : i32
    return %arg0, %c0_i32, %c0_i32_0, %c0_i32_1 : i32, i32, i32, i32
  }
  func.func @transform_1(%arg0: i32) -> (i32, i32) {
    %c0_i32 = arith.constant 0 : i32
    %c0_i32_0 = arith.constant 0 : i32
    %c0_i32_1 = arith.constant 0 : i32
    return %c0_i32, %c0_i32_0 : i32, i32
  }
  func.func @transform_2(%arg0: i32) -> (i32, i32) {
    %c0_i32 = arith.constant 0 : i32
    %c0_i32_0 = arith.constant 0 : i32
    %c0_i32_1 = arith.constant 0 : i32
    return %c0_i32, %c0_i32_0 : i32, i32
  }
  func.func @transform_3(%arg0: i32) -> (i32, i32) {
    %c0_i32 = arith.constant 0 : i32
    %c0_i32_0 = arith.constant 0 : i32
    %c0_i32_1 = arith.constant 0 : i32
    return %c0_i32, %c0_i32_0 : i32, i32
  }
  func.func @transform_4(%arg0: i32) -> (i32, i32, i32) {
    %c0_i32 = arith.constant 0 : i32
    %c0_i32_0 = arith.constant 0 : i32
    %c0_i32_1 = arith.constant 0 : i32
    return %arg0, %c0_i32, %c0_i32_0 : i32, i32, i32
  }
  func.func @transform_5(%arg0: i32) -> (i32, i32, i32) {
    %c0_i32 = arith.constant 0 : i32
    %c0_i32_0 = arith.constant 0 : i32
    %c0_i32_1 = arith.constant 0 : i32
    return %arg0, %c0_i32, %c0_i32_0 : i32, i32, i32
  }
  func.func @transform_6(%arg0: i32) -> (i32, i32, i32, i32) {
    %c0_i32 = arith.constant 0 : i32
    %c0_i32_0 = arith.constant 0 : i32
    %c0_i32_1 = arith.constant 0 : i32
    %c0_i32_2 = arith.constant 0 : i32
    return %arg0, %c0_i32, %c0_i32_0, %c0_i32_1 : i32, i32, i32, i32
  }
  func.func @transform_7(%arg0: i32) -> (i32, i32, i32) {
    %c0_i32 = arith.constant 0 : i32
    %c0_i32_0 = arith.constant 0 : i32
    %c0_i32_1 = arith.constant 0 : i32
    return %arg0, %c0_i32, %c0_i32_0 : i32, i32, i32
  }
  func.func @transform_8(%arg0: i32) -> (i32, i32, i32) {
    %c0_i32 = arith.constant 0 : i32
    %c0_i32_0 = arith.constant 0 : i32
    %c0_i32_1 = arith.constant 0 : i32
    return %arg0, %c0_i32, %c0_i32_0 : i32, i32, i32
  }
}

module attributes {stable_mosaic.version = 11 : i64} {
  func.func @_mlp_kernel(%arg0: i32, %arg1: i32, %arg2: memref<1x16x128xf32, #tpu.memory_space<vmem>>, %arg3: memref<1x128xf32, #tpu.memory_space<vmem>>, %arg4: memref<1x128xf32, #tpu.memory_space<vmem>>, %arg5: memref<128x384xbf16, #tpu.memory_space<vmem>>, %arg6: memref<1x384xf32, #tpu.memory_space<vmem>>, %arg7: memref<384x128xbf16, #tpu.memory_space<vmem>>, %arg8: memref<1x128xf32, #tpu.memory_space<vmem>>, %arg9: memref<1x128xf32, #tpu.memory_space<vmem>>, %arg10: memref<1x1x128xf32, #tpu.memory_space<vmem>>, %arg11: memref<1x1x128xf32, #tpu.memory_space<vmem>>, %arg12: memref<1x16x128xf32, #tpu.memory_space<vmem>>) attributes {dimension_semantics = [#tpu.dimension_semantics<parallel>, #tpu.dimension_semantics<parallel>], iteration_bounds = array<i64: 2, 1>, scalar_prefetch = 0 : i64, scratch_operands = 0 : i64, tpu.core_type = #tpu.core_type<tc>, window_params = [{transform_indices = @transform_0, window_bounds = array<i64: 1, 16, 128>}, {pipeline_mode = #tpu.pipeline_mode<synchronous>, transform_indices = @transform_1, window_bounds = array<i64: 1, 128>}, {pipeline_mode = #tpu.pipeline_mode<synchronous>, transform_indices = @transform_2, window_bounds = array<i64: 1, 128>}, {pipeline_mode = #tpu.pipeline_mode<synchronous>, transform_indices = @transform_3, window_bounds = array<i64: 128, 384>}, {pipeline_mode = #tpu.pipeline_mode<synchronous>, transform_indices = @transform_4, window_bounds = array<i64: 1, 384>}, {pipeline_mode = #tpu.pipeline_mode<synchronous>, transform_indices = @transform_5, window_bounds = array<i64: 384, 128>}, {pipeline_mode = #tpu.pipeline_mode<synchronous>, transform_indices = @transform_6, window_bounds = array<i64: 1, 128>}, {pipeline_mode = #tpu.pipeline_mode<synchronous>, transform_indices = @transform_7, window_bounds = array<i64: 1, 128>}, {transform_indices = @transform_8, window_bounds = array<i64: 1, 1, 128>}, {transform_indices = @transform_9, window_bounds = array<i64: 1, 1, 128>}, {transform_indices = @transform_10, window_bounds = array<i64: 1, 16, 128>}]} {
    %c0 = arith.constant 0 : index
    %c0_0 = arith.constant 0 : index
    %c0_1 = arith.constant 0 : index
    %0 = vector.load %arg2[%c0, %c0_0, %c0_1] : memref<1x16x128xf32, #tpu.memory_space<vmem>>, vector<1x16x128xf32>
    %1 = vector.shape_cast %0 : vector<1x16x128xf32> to vector<16x128xf32>
    %c0_2 = arith.constant 0 : index
    %c0_3 = arith.constant 0 : index
    %c0_4 = arith.constant 0 : index
    %2 = vector.load %arg10[%c0_2, %c0_3, %c0_4] : memref<1x1x128xf32, #tpu.memory_space<vmem>>, vector<1x1x128xf32>
    %3 = vector.extract_strided_slice %2 {offsets = [0, 0, 0], sizes = [1, 1, 1], strides = [1, 1, 1]} : vector<1x1x128xf32> to vector<1x1x1xf32>
    %4 = vector.shape_cast %3 : vector<1x1x1xf32> to vector<1x1xf32>
    %c0_5 = arith.constant 0 : index
    %c0_6 = arith.constant 0 : index
    %c0_7 = arith.constant 0 : index
    %5 = vector.load %arg11[%c0_5, %c0_6, %c0_7] : memref<1x1x128xf32, #tpu.memory_space<vmem>>, vector<1x1x128xf32>
    %6 = vector.extract_strided_slice %5 {offsets = [0, 0, 0], sizes = [1, 1, 1], strides = [1, 1, 1]} : vector<1x1x128xf32> to vector<1x1x1xf32>
    %7 = vector.shape_cast %6 : vector<1x1x1xf32> to vector<1x1xf32>
    %8 = vector.broadcast %4 : vector<1x1xf32> to vector<16x128xf32>
    %9 = arith.subf %1, %8 : vector<16x128xf32>
    %10 = vector.broadcast %7 : vector<1x1xf32> to vector<16x128xf32>
    %11 = arith.mulf %9, %10 : vector<16x128xf32>
    %c0_8 = arith.constant 0 : index
    %c0_9 = arith.constant 0 : index
    %12 = vector.load %arg3[%c0_8, %c0_9] : memref<1x128xf32, #tpu.memory_space<vmem>>, vector<1x128xf32>
    %13 = vector.broadcast %12 : vector<1x128xf32> to vector<16x128xf32>
    %14 = arith.mulf %11, %13 : vector<16x128xf32>
    %c0_10 = arith.constant 0 : index
    %c0_11 = arith.constant 0 : index
    %15 = vector.load %arg4[%c0_10, %c0_11] : memref<1x128xf32, #tpu.memory_space<vmem>>, vector<1x128xf32>
    %16 = vector.broadcast %15 : vector<1x128xf32> to vector<16x128xf32>
    %17 = arith.addf %14, %16 : vector<16x128xf32>
    %18 = arith.truncf %17 : vector<16x128xf32> to vector<16x128xbf16>
    %c0_12 = arith.constant 0 : index
    %c0_13 = arith.constant 0 : index
    %19 = vector.load %arg5[%c0_12, %c0_13] : memref<128x384xbf16, #tpu.memory_space<vmem>>, vector<128x384xbf16>
    %cst = arith.constant dense<0.000000e+00> : vector<16x384xf32>
    %20 = tpu.matmul %18, %19, %cst {dimension_numbers = #tpu.dot_dimension_numbers<[1], [0], [0], [1], [0, 0, 1, 1], [], []>} : vector<16x128xbf16>, vector<128x384xbf16>, vector<16x384xf32> -> vector<16x384xf32>
    %c0_14 = arith.constant 0 : index
    %c0_15 = arith.constant 0 : index
    %21 = vector.load %arg6[%c0_14, %c0_15] : memref<1x384xf32, #tpu.memory_space<vmem>>, vector<1x384xf32>
    %22 = vector.broadcast %21 : vector<1x384xf32> to vector<16x384xf32>
    %23 = arith.addf %20, %22 : vector<16x384xf32>
    %cst_16 = arith.constant 5.000000e-01 : f32
    %24 = vector.broadcast %cst_16 : f32 to vector<16x384xf32>
    %25 = arith.mulf %24, %23 : vector<16x384xf32>
    %cst_17 = arith.constant 0.707106769 : f32
    %26 = vector.broadcast %cst_17 : f32 to vector<16x384xf32>
    %27 = arith.mulf %23, %26 : vector<16x384xf32>
    %28 = math.absf %27 : vector<16x384xf32>
    %cst_18 = arith.constant 0.327591091 : f32
    %29 = vector.broadcast %cst_18 : f32 to vector<16x384xf32>
    %30 = arith.mulf %29, %28 : vector<16x384xf32>
    %cst_19 = arith.constant 1.000000e+00 : f32
    %31 = vector.broadcast %cst_19 : f32 to vector<16x384xf32>
    %32 = arith.addf %31, %30 : vector<16x384xf32>
    %cst_20 = arith.constant 1.000000e+00 : f32
    %33 = vector.broadcast %cst_20 : f32 to vector<16x384xf32>
    %34 = arith.divf %33, %32 : vector<16x384xf32>
    %cst_21 = arith.constant 1.06140542 : f32
    %35 = vector.broadcast %cst_21 : f32 to vector<16x384xf32>
    %36 = arith.mulf %34, %35 : vector<16x384xf32>
    %cst_22 = arith.constant -1.45315206 : f32
    %37 = vector.broadcast %cst_22 : f32 to vector<16x384xf32>
    %38 = arith.addf %37, %36 : vector<16x384xf32>
    %39 = arith.mulf %34, %38 : vector<16x384xf32>
    %cst_23 = arith.constant 1.42141378 : f32
    %40 = vector.broadcast %cst_23 : f32 to vector<16x384xf32>
    %41 = arith.addf %40, %39 : vector<16x384xf32>
    %42 = arith.mulf %34, %41 : vector<16x384xf32>
    %cst_24 = arith.constant -0.284496725 : f32
    %43 = vector.broadcast %cst_24 : f32 to vector<16x384xf32>
    %44 = arith.addf %43, %42 : vector<16x384xf32>
    %45 = arith.mulf %34, %44 : vector<16x384xf32>
    %cst_25 = arith.constant 0.254829586 : f32
    %46 = vector.broadcast %cst_25 : f32 to vector<16x384xf32>
    %47 = arith.addf %46, %45 : vector<16x384xf32>
    %48 = arith.mulf %34, %47 : vector<16x384xf32>
    %cst_26 = arith.constant 0.000000e+00 : f32
    %49 = vector.broadcast %cst_26 : f32 to vector<16x384xf32>
    %50 = arith.subf %49, %28 : vector<16x384xf32>
    %51 = arith.mulf %50, %28 : vector<16x384xf32>
    %52 = math.exp %51 : vector<16x384xf32>
    %53 = arith.mulf %48, %52 : vector<16x384xf32>
    %cst_27 = arith.constant 1.000000e+00 : f32
    %54 = vector.broadcast %cst_27 : f32 to vector<16x384xf32>
    %55 = arith.subf %54, %53 : vector<16x384xf32>
    %cst_28 = arith.constant 0.000000e+00 : f32
    %56 = vector.broadcast %cst_28 : f32 to vector<16x384xf32>
    %57 = arith.cmpf olt, %27, %56 : vector<16x384xf32>
    %cst_29 = arith.constant 0.000000e+00 : f32
    %58 = vector.broadcast %cst_29 : f32 to vector<16x384xf32>
    %59 = arith.subf %58, %55 : vector<16x384xf32>
    %60 = arith.select %57, %59, %55 : vector<16x384xi1>, vector<16x384xf32>
    %cst_30 = arith.constant 1.000000e+00 : f32
    %61 = vector.broadcast %cst_30 : f32 to vector<16x384xf32>
    %62 = arith.addf %61, %60 : vector<16x384xf32>
    %63 = arith.mulf %25, %62 : vector<16x384xf32>
    %64 = arith.truncf %63 : vector<16x384xf32> to vector<16x384xbf16>
    %c0_31 = arith.constant 0 : index
    %c0_32 = arith.constant 0 : index
    %65 = vector.load %arg7[%c0_31, %c0_32] : memref<384x128xbf16, #tpu.memory_space<vmem>>, vector<384x128xbf16>
    %cst_33 = arith.constant dense<0.000000e+00> : vector<16x128xf32>
    %66 = tpu.matmul %64, %65, %cst_33 {dimension_numbers = #tpu.dot_dimension_numbers<[1], [0], [0], [1], [0, 0, 1, 1], [], []>} : vector<16x384xbf16>, vector<384x128xbf16>, vector<16x128xf32> -> vector<16x128xf32>
    %c0_34 = arith.constant 0 : index
    %c0_35 = arith.constant 0 : index
    %67 = vector.load %arg8[%c0_34, %c0_35] : memref<1x128xf32, #tpu.memory_space<vmem>>, vector<1x128xf32>
    %68 = vector.broadcast %67 : vector<1x128xf32> to vector<16x128xf32>
    %69 = arith.addf %66, %68 : vector<16x128xf32>
    %c0_36 = arith.constant 0 : index
    %c0_37 = arith.constant 0 : index
    %70 = vector.load %arg9[%c0_36, %c0_37] : memref<1x128xf32, #tpu.memory_space<vmem>>, vector<1x128xf32>
    %71 = vector.broadcast %70 : vector<1x128xf32> to vector<16x128xf32>
    %72 = arith.mulf %71, %69 : vector<16x128xf32>
    %73 = arith.addf %1, %72 : vector<16x128xf32>
    %c0_38 = arith.constant 0 : index
    %c0_39 = arith.constant 0 : index
    %c0_40 = arith.constant 0 : index
    %74 = vector.load %arg12[%c0_38, %c0_39, %c0_40] : memref<1x16x128xf32, #tpu.memory_space<vmem>>, vector<1x16x128xf32>
    %75 = vector.shape_cast %74 : vector<1x16x128xf32> to vector<16x128xf32>
    %76 = vector.shape_cast %73 : vector<16x128xf32> to vector<1x16x128xf32>
    tpu.vector_store %arg12[%c0_38, %c0_39, %c0_40], %76 {strides = array<i32>} : memref<1x16x128xf32, #tpu.memory_space<vmem>>, vector<1x16x128xf32>,
    return
  }
  func.func @transform_0(%arg0: i32, %arg1: i32) -> (i32, i32, i32) {
    %c0_i32 = arith.constant 0 : i32
    %c0_i32_0 = arith.constant 0 : i32
    return %arg0, %arg1, %c0_i32 : i32, i32, i32
  }
  func.func @transform_1(%arg0: i32, %arg1: i32) -> (i32, i32) {
    %c0_i32 = arith.constant 0 : i32
    %c0_i32_0 = arith.constant 0 : i32
    %c0_i32_1 = arith.constant 0 : i32
    return %c0_i32, %c0_i32_0 : i32, i32
  }
  func.func @transform_2(%arg0: i32, %arg1: i32) -> (i32, i32) {
    %c0_i32 = arith.constant 0 : i32
    %c0_i32_0 = arith.constant 0 : i32
    %c0_i32_1 = arith.constant 0 : i32
    return %c0_i32, %c0_i32_0 : i32, i32
  }
  func.func @transform_3(%arg0: i32, %arg1: i32) -> (i32, i32) {
    %c0_i32 = arith.constant 0 : i32
    %c0_i32_0 = arith.constant 0 : i32
    %c0_i32_1 = arith.constant 0 : i32
    return %c0_i32, %c0_i32_0 : i32, i32
  }
  func.func @transform_4(%arg0: i32, %arg1: i32) -> (i32, i32) {
    %c0_i32 = arith.constant 0 : i32
    %c0_i32_0 = arith.constant 0 : i32
    %c0_i32_1 = arith.constant 0 : i32
    return %c0_i32, %c0_i32_0 : i32, i32
  }
  func.func @transform_5(%arg0: i32, %arg1: i32) -> (i32, i32) {
    %c0_i32 = arith.constant 0 : i32
    %c0_i32_0 = arith.constant 0 : i32
    %c0_i32_1 = arith.constant 0 : i32
    return %c0_i32, %c0_i32_0 : i32, i32
  }
  func.func @transform_6(%arg0: i32, %arg1: i32) -> (i32, i32) {
    %c0_i32 = arith.constant 0 : i32
    %c0_i32_0 = arith.constant 0 : i32
    %c0_i32_1 = arith.constant 0 : i32
    return %c0_i32, %c0_i32_0 : i32, i32
  }
  func.func @transform_7(%arg0: i32, %arg1: i32) -> (i32, i32) {
    %c0_i32 = arith.constant 0 : i32
    %c0_i32_0 = arith.constant 0 : i32
    %c0_i32_1 = arith.constant 0 : i32
    return %c0_i32, %c0_i32_0 : i32, i32
  }
  func.func @transform_8(%arg0: i32, %arg1: i32) -> (i32, i32, i32) {
    %c0_i32 = arith.constant 0 : i32
    %c0_i32_0 = arith.constant 0 : i32
    %c0_i32_1 = arith.constant 0 : i32
    return %arg0, %c0_i32, %c0_i32_0 : i32, i32, i32
  }
  func.func @transform_9(%arg0: i32, %arg1: i32) -> (i32, i32, i32) {
    %c0_i32 = arith.constant 0 : i32
    %c0_i32_0 = arith.constant 0 : i32
    %c0_i32_1 = arith.constant 0 : i32
    return %arg0, %c0_i32, %c0_i32_0 : i32, i32, i32
  }
  func.func @transform_10(%arg0: i32, %arg1: i32) -> (i32, i32, i32) {
    %c0_i32 = arith.constant 0 : i32
    %c0_i32_0 = arith.constant 0 : i32
    return %arg0, %arg1, %c0_i32 : i32, i32, i32
  }
}

module attributes {stable_mosaic.version = 11 : i64} {
  func.func @_proj_ln_kernel(%arg0: i32, %arg1: i32, %arg2: memref<1x4x512xf32, #tpu.memory_space<vmem>>, %arg3: memref<512x32xbf16, #tpu.memory_space<vmem>>, %arg4: memref<1x32xf32, #tpu.memory_space<vmem>>, %arg5: memref<1x32xf32, #tpu.memory_space<vmem>>, %arg6: memref<1x32xf32, #tpu.memory_space<vmem>>, %arg7: memref<1x4x32xf32, #tpu.memory_space<vmem>>) attributes {dimension_semantics = [#tpu.dimension_semantics<parallel>, #tpu.dimension_semantics<parallel>], iteration_bounds = array<i64: 2, 1>, scalar_prefetch = 0 : i64, scratch_operands = 0 : i64, tpu.core_type = #tpu.core_type<tc>, window_params = [{transform_indices = @transform_0, window_bounds = array<i64: 1, 4, 512>}, {pipeline_mode = #tpu.pipeline_mode<synchronous>, transform_indices = @transform_1, window_bounds = array<i64: 512, 32>}, {pipeline_mode = #tpu.pipeline_mode<synchronous>, transform_indices = @transform_2, window_bounds = array<i64: 1, 32>}, {pipeline_mode = #tpu.pipeline_mode<synchronous>, transform_indices = @transform_3, window_bounds = array<i64: 1, 32>}, {pipeline_mode = #tpu.pipeline_mode<synchronous>, transform_indices = @transform_4, window_bounds = array<i64: 1, 32>}, {transform_indices = @transform_5, window_bounds = array<i64: 1, 4, 32>}]} {
    %c0 = arith.constant 0 : index
    %c0_0 = arith.constant 0 : index
    %c0_1 = arith.constant 0 : index
    %0 = vector.load %arg2[%c0, %c0_0, %c0_1] : memref<1x4x512xf32, #tpu.memory_space<vmem>>, vector<1x4x512xf32>
    %1 = vector.shape_cast %0 : vector<1x4x512xf32> to vector<4x512xf32>
    %2 = arith.truncf %1 : vector<4x512xf32> to vector<4x512xbf16>
    %c0_2 = arith.constant 0 : index
    %c0_3 = arith.constant 0 : index
    %3 = vector.load %arg3[%c0_2, %c0_3] : memref<512x32xbf16, #tpu.memory_space<vmem>>, vector<512x32xbf16>
    %cst = arith.constant dense<0.000000e+00> : vector<4x32xf32>
    %4 = tpu.matmul %2, %3, %cst {dimension_numbers = #tpu.dot_dimension_numbers<[1], [0], [0], [1], [0, 0, 1, 1], [], []>} : vector<4x512xbf16>, vector<512x32xbf16>, vector<4x32xf32> -> vector<4x32xf32>
    %c0_4 = arith.constant 0 : index
    %c0_5 = arith.constant 0 : index
    %5 = vector.load %arg4[%c0_4, %c0_5] : memref<1x32xf32, #tpu.memory_space<vmem>>, vector<1x32xf32>
    %6 = vector.broadcast %5 : vector<1x32xf32> to vector<4x32xf32>
    %7 = arith.addf %4, %6 : vector<4x32xf32>
    %cst_6 = arith.constant dense<0.000000e+00> : vector<4xf32>
    %8 = vector.multi_reduction <add>, %7, %cst_6 [1] : vector<4x32xf32> to vector<4xf32>
    %9 = vector.shape_cast %8 : vector<4xf32> to vector<4x1xf32>
    %cst_7 = arith.constant 3.200000e+01 : f32
    %10 = vector.broadcast %cst_7 : f32 to vector<4x1xf32>
    %11 = arith.divf %9, %10 : vector<4x1xf32>
    %12 = vector.broadcast %11 : vector<4x1xf32> to vector<4x32xf32>
    %13 = arith.subf %7, %12 : vector<4x32xf32>
    %14 = arith.mulf %13, %13 : vector<4x32xf32>
    %cst_8 = arith.constant dense<0.000000e+00> : vector<4xf32>
    %15 = vector.multi_reduction <add>, %14, %cst_8 [1] : vector<4x32xf32> to vector<4xf32>
    %16 = vector.shape_cast %15 : vector<4xf32> to vector<4x1xf32>
    %cst_9 = arith.constant 3.200000e+01 : f32
    %17 = vector.broadcast %cst_9 : f32 to vector<4x1xf32>
    %18 = arith.divf %16, %17 : vector<4x1xf32>
    %19 = vector.broadcast %11 : vector<4x1xf32> to vector<4x32xf32>
    %20 = arith.subf %7, %19 : vector<4x32xf32>
    %cst_10 = arith.constant 9.99999996E-13 : f32
    %21 = vector.broadcast %cst_10 : f32 to vector<4x1xf32>
    %22 = arith.addf %18, %21 : vector<4x1xf32>
    %23 = math.rsqrt %22 : vector<4x1xf32>
    %24 = vector.broadcast %23 : vector<4x1xf32> to vector<4x32xf32>
    %25 = arith.mulf %20, %24 : vector<4x32xf32>
    %c0_11 = arith.constant 0 : index
    %c0_12 = arith.constant 0 : index
    %26 = vector.load %arg5[%c0_11, %c0_12] : memref<1x32xf32, #tpu.memory_space<vmem>>, vector<1x32xf32>
    %27 = vector.broadcast %26 : vector<1x32xf32> to vector<4x32xf32>
    %28 = arith.mulf %25, %27 : vector<4x32xf32>
    %c0_13 = arith.constant 0 : index
    %c0_14 = arith.constant 0 : index
    %29 = vector.load %arg6[%c0_13, %c0_14] : memref<1x32xf32, #tpu.memory_space<vmem>>, vector<1x32xf32>
    %30 = vector.broadcast %29 : vector<1x32xf32> to vector<4x32xf32>
    %31 = arith.addf %28, %30 : vector<4x32xf32>
    %c0_15 = arith.constant 0 : index
    %c0_16 = arith.constant 0 : index
    %c0_17 = arith.constant 0 : index
    %32 = vector.load %arg7[%c0_15, %c0_16, %c0_17] : memref<1x4x32xf32, #tpu.memory_space<vmem>>, vector<1x4x32xf32>
    %33 = vector.shape_cast %32 : vector<1x4x32xf32> to vector<4x32xf32>
    %34 = vector.shape_cast %31 : vector<4x32xf32> to vector<1x4x32xf32>
    tpu.vector_store %arg7[%c0_15, %c0_16, %c0_17], %34 {strides = array<i32>} : memref<1x4x32xf32, #tpu.memory_space<vmem>>, vector<1x4x32xf32>,
    return
  }
  func.func @transform_0(%arg0: i32, %arg1: i32) -> (i32, i32, i32) {
    %c0_i32 = arith.constant 0 : i32
    %c0_i32_0 = arith.constant 0 : i32
    return %arg0, %arg1, %c0_i32 : i32, i32, i32
  }
  func.func @transform_1(%arg0: i32, %arg1: i32) -> (i32, i32) {
    %c0_i32 = arith.constant 0 : i32
    %c0_i32_0 = arith.constant 0 : i32
    %c0_i32_1 = arith.constant 0 : i32
    return %c0_i32, %c0_i32_0 : i32, i32
  }
  func.func @transform_2(%arg0: i32, %arg1: i32) -> (i32, i32) {
    %c0_i32 = arith.constant 0 : i32
    %c0_i32_0 = arith.constant 0 : i32
    %c0_i32_1 = arith.constant 0 : i32
    return %c0_i32, %c0_i32_0 : i32, i32
  }
  func.func @transform_3(%arg0: i32, %arg1: i32) -> (i32, i32) {
    %c0_i32 = arith.constant 0 : i32
    %c0_i32_0 = arith.constant 0 : i32
    %c0_i32_1 = arith.constant 0 : i32
    return %c0_i32, %c0_i32_0 : i32, i32
  }
  func.func @transform_4(%arg0: i32, %arg1: i32) -> (i32, i32) {
    %c0_i32 = arith.constant 0 : i32
    %c0_i32_0 = arith.constant 0 : i32
    %c0_i32_1 = arith.constant 0 : i32
    return %c0_i32, %c0_i32_0 : i32, i32
  }
  func.func @transform_5(%arg0: i32, %arg1: i32) -> (i32, i32, i32) {
    %c0_i32 = arith.constant 0 : i32
    %c0_i32_0 = arith.constant 0 : i32
    return %arg0, %arg1, %c0_i32 : i32, i32, i32
  }
}

</mosaic_0001>

<bundles_post_ra>
// kernel: pool_stem_forward.9
= control target key start
LH: loop header
LB: loop body
LE: loop exit
PB: predicated region body
PF: predicated region fallthrough
CT: control target
= control target key end

     0   :  { %s1327_s13 = smov 0   ;;  %s1329_s14 = smov 0   ;;  %s1715_s0 = inlined_call_operand.vmem [shape: f32[2,64,32], index: 0, kind: input, shape index: {}]   ;;  %s1716_s1 = inlined_call_operand.vmem [shape: f32[1,32], index: 1, kind: input, shape index: {}]   ;;  %s1717_s2 = inlined_call_operand.vmem [shape: f32[1,32], index: 2, kind: input, shape index: {}]   ;;  %s1718_s3 = inlined_call_operand.vmem [shape: bf16[32,96], index: 3, kind: input, shape index: {}]   ;;  %s1719_s4 = inlined_call_operand.vmem [shape: f32[1,96], index: 4, kind: input, shape index: {}]   ;;  %s1720_s5 = inlined_call_operand.vmem [shape: bf16[96,32], index: 5, kind: input, shape index: {}]   ;;  %s1721_s6 = inlined_call_operand.vmem [shape: f32[1,32], index: 6, kind: input, shape index: {}]   ;;  %s1722_s7 = inlined_call_operand.vmem [shape: f32[1,32], index: 7, kind: input, shape index: {}]   ;;  %s1723_s8 = inlined_call_operand.vmem [shape: f32[2,1,128], index: 8, kind: input, shape index: {}]   ;;  %s1724_s9 = inlined_call_operand.vmem [shape: f32[2,1,128], index: 9, kind: input, shape index: {}]   ;;  %s1725_s10 = inlined_call_operand.vmem [shape: f32[2,64,32], index: 10, kind: output, shape index: {}]  }
   0x1   :  { %s1331_s15 = smov 0  }
   0x2 LB: > { %s32_s16 = sadd.s32 1, %s1265_s14  ;;  %p1111_p0 = scmp.ge.s32.totalorder %s1269_s15, 1  ;;  %s1269_s15 = sphi %s1331_s15, %s20_s15   ;;  %s1265_s14 = sphi %s1329_s14, %s1733_s14   ;;  %s1261_s13 = sphi %s1327_s13, %s1732_s13  }
   0x3   : > { %p34_p1 = scmp.ge.s32.totalorder %s32_s16, 2  ;;  %p349_p2 = scmp.lt.s32.totalorder %s1269_s15, 3 }
   0x5   : > { %s1735_s16 = smov (%p34_p1, %s32_s16), 0  ;;  %p350_p3 = pnand %p1111_p0, %p349_p2 }
   0x6   : > { %p402_p4 = scmp.lt.s32.totalorder (!%p350_p3), %s1261_s13, 1 }
   0x7   : > { %353 = sbr.rel (%p350_p3) target bundleno = 534 (0x216), region = 60 }
   0xc   : > { %v1271_v0 = vmov 0   ;;  %s1737_s13 = smov (!%p402_p4, %s1261_s13), 1  ;;  %v1161_v3 = vld [vmem:[%s1718_s3 + $0x8] sm:$0xff]  ;;  %v1160_v4 = vld [vmem:[%s1718_s3] sm:$0xff]  ;;  %vm514_vm0 = vcmask 261120  }
   0xd   : > { %1207 = vset.pattern.permute.xlu0 %v1271_v0  ;;  %s413_s19 = scalar_lea.vmem %s1723_s8, %s1737_s13  ;;  %s416_s22 = scalar_lea.vmem %s1724_s9, %s1737_s13  ;;  %533 = vmatpush.bf16.msra.mxu0 %v1161_v3  ;;  %v1210_v12 = vld [vmem:[%s1716_s1] ss:$0 sm:$0xff] }
   0xe   : > { %v1208_v1 = vld [vmem:[%s413_s19] ss:$0 sm:$0xff]  ;;  %1168 = vmatpush.bf16.msra.mxu3 %v1161_v3  ;;  %s1158_s27 = sshll.u32 %s1737_s13, 6 }
   0xf   : > { %441 = vperm.xlu0 %1207, %v1208_v1   ;;  %v1209_v2 = vld [vmem:[%s416_s22] ss:$0 sm:$0xff]  ;;  %s1367_s30 = scalar_lea.vmem %s1715_s0, %s1158_s27  ;;  %s1680_s24 = scalar_lea.vmem %s1725_s10, %s1158_s27 }
  0x10   : > { %v1370_v6 = vld [vmem:[%s1367_s30] sm:$0xff]  ;;  %v1373_v7 = vld [vmem:[%s1367_s30 + $0x8] sm:$0xff]  ;;  %v1376_v8 = vld [vmem:[%s1367_s30 + $0x10] sm:$0xff] }
  0x11   : > { %534 = vmatpush.bf16.msra.mxu0 %v1160_v4  ;;  %v1379_v9 = vld [vmem:[%s1367_s30 + $0x18] sm:$0xff]  ;;  %v1211_v18 = vld [vmem:[%s1717_s2] ss:$0 sm:$0xff]  ;;  %v1395_v30 = vld [vmem:[%s1367_s30 + $0x28] sm:$0xff] }
  0x12   : > { %1169 = vmatpush.bf16.msra.mxu3 %v1160_v4  ;;  %v1392_v29 = vld [vmem:[%s1367_s30 + $0x20] sm:$0xff]  ;;  %v1402_v41 = vld [vmem:[%s1367_s30 + $0x30] sm:$0xff]  ;;  %v1405_v42 = vld [vmem:[%s1367_s30 + $0x38] sm:$0xff] }
  0x13   : > { %v1414_v53 = vld [vmem:[%s1719_s4] ss:$0 sm:$0xff] }
  0x17   : > { %455 = vperm.xlu0 %1207, %v1209_v2  }
  0x81   : > { %v442_v5 = vpop.permute.xlu0 %441 }
  0x82   : > { %v444_v10 = vsub.f32 %v1370_v6, %v442_v5  ;;  %v445_v11 = vsub.f32 %v1373_v7, %v442_v5  ;;  %v446_v13 = vsub.f32 %v1376_v8, %v442_v5  ;;  %v447_v14 = vsub.f32 %v1379_v9, %v442_v5 }
  0x83   : > { %v448_v33 = vsub.f32 %v1392_v29, %v442_v5  ;;  %v449_v34 = vsub.f32 %v1395_v30, %v442_v5  ;;  %v450_v44 = vsub.f32 %v1402_v41, %v442_v5  ;;  %v451_v45 = vsub.f32 %v1405_v42, %v442_v5 }
  0x89   : > { %v456_v15 = vpop.permute.xlu0 %455 }
  0x8a   : > { %v458_v16 = vmul.f32 %v456_v15, %v444_v10  ;;  %v459_v17 = vmul.f32 %v456_v15, %v445_v11  ;;  %v460_v19 = vmul.f32 %v456_v15, %v446_v13  ;;  %v461_v20 = vmul.f32 %v456_v15, %v447_v14 }
  0x8b   : > { %v462_v35 = vmul.f32 %v456_v15, %v448_v33  ;;  %v463_v36 = vmul.f32 %v456_v15, %v449_v34  ;;  %v464_v46 = vmul.f32 %v456_v15, %v450_v44  ;;  %v465_v47 = vmul.f32 %v456_v15, %v451_v45  ;;  %v1167_v44 = vld [vmem:[%s1720_s5 + $0x28] sm:$0xff] }
  0x8c   : > { %v470_v21 = vmul.f32 %v1210_v12, %v458_v16  ;;  %v471_v22 = vmul.f32 %v1210_v12, %v459_v17  ;;  %v472_v23 = vmul.f32 %v1210_v12, %v460_v19  ;;  %v473_v24 = vmul.f32 %v1210_v12, %v461_v20  ;;  %947 = vmatpush.bf16.msrb.mxu0 %v1167_v44 }
  0x8d   : > { %v474_v37 = vmul.f32 %v1210_v12, %v462_v35  ;;  %v475_v38 = vmul.f32 %v1210_v12, %v463_v36  ;;  %v476_v48 = vmul.f32 %v1210_v12, %v464_v46  ;;  %v477_v49 = vmul.f32 %v1210_v12, %v465_v47  ;;  %1170 = vmatpush.bf16.msra.mxu1 %v1167_v44 }
  0x8e   : > { %v482_v25 = vadd.f32 %v1211_v18, %v470_v21  ;;  %v483_v26 = vadd.f32 %v1211_v18, %v471_v22  ;;  %v484_v27 = vadd.f32 %v1211_v18, %v472_v23  ;;  %v485_v28 = vadd.f32 %v1211_v18, %v473_v24  ;;  %1171 = vmatpush.bf16.msra.mxu2 %v1167_v44 }
  0x8f   : > { %v486_v39 = vadd.f32 %v1211_v18, %v474_v37  ;;  %v487_v40 = vadd.f32 %v1211_v18, %v475_v38  ;;  %v488_v50 = vadd.f32 %v1211_v18, %v476_v48  ;;  %v489_v51 = vadd.f32 %v1211_v18, %v477_v49 }
  0x90   : > { %v490_v31 = vpack.c.bf16 %v483_v26, %v482_v25  ;;  %v491_v32 = vpack.c.bf16 %v485_v28, %v484_v27 }
  0x91   : > { %v492_v43 = vpack.c.bf16 %v487_v40, %v486_v39  ;;  %v493_v52 = vpack.c.bf16 %v489_v51, %v488_v50 }
  0x92   : > { %1124 = vmatmul.msk.bf16.vlgmr.msra.gmra.mxu0 %vm514_vm0, %v490_v31  ;;  %1125 = vmatmul.msk.bf16.vlgmr.msra.gmra.mxu3 %vm514_vm0, %v491_v32 }
  0xa2   : > { %1126 = vmatmul.msk.bf16.gmra.mxu3 %vm514_vm0, %v492_v43 }
  0xb2   : > { %1127 = vmatmul.msk.bf16.gmra.mxu3 %vm514_vm0, %v493_v52 }
 0x10f   : > { %v536_v54 = vpop.f32.mrf.mxu0 }
 0x110   : > { %v1417_v55 = vadd.f32 %v1414_v53, %v536_v54 }
 0x112   : > { %v1420_v56 = vmul.f32 0.70710677, %v1417_v55 }
 0x114   : > { %v572_v57 = vand.u32 2147483647, %v1420_v56 }
 0x115   : > { %v541_v58 = vpop.f32.mrf.mxu3 }
 0x116   : > { %v580_v59 = vmul.f32 0.3275911, %v572_v57  ;;  %v1424_v60 = vadd.f32 %v1414_v53, %v541_v58  ;;  %v788_v3 = vsub.f32 0.0, %v572_v57 }
 0x117   : > { %v538_v61 = vpop.f32.mrf.mxu0 }
 0x118   : > { %v588_v62 = vadd.f32 1.0, %v580_v59  ;;  %v1427_v63 = vmul.f32 0.70710677, %v1424_v60  ;;  %v539_v0 = vadd.f32 %v1414_v53, %v538_v61  ;;  %v796_v17 = vmul.f32 %v788_v3, %v572_v57 }
 0x11a   : > { %1215 = vrcp.f32 %v588_v62  ;;  %v574_v1 = vand.u32 2147483647, %v1427_v63  ;;  %v1431_v2 = vmul.f32 0.70710677, %v539_v0  ;;  %v605_v20 = vand.u32 2147483647, %v588_v62 }
 0x11b   : > { %v607_v23 = vand.u32 2147483648, %v588_v62  ;;  %v804_v25 = vmul.f32 1.442695, %v796_v17  ;;  %vm601_vm2 = vweird.f32 %v588_v62  ;;  %v1466_v47 = vmul.f32 0.5, %v539_v0  ;;  %v1166_v17 = vld [vmem:[%s1720_s5 + $0x20] sm:$0xff] }
 0x11c   : > { %v582_v4 = vmul.f32 0.3275911, %v574_v1  ;;  %v573_v10 = vand.u32 2147483647, %v1431_v2  ;;  %v790_v21 = vsub.f32 0.0, %v574_v1  ;;  %vm606_vm3 = vcmp.eq.f32.partialorder %v605_v20, 8.507059e+37  ;;  %948 = vmatpush.bf16.msrb.mxu0 %v1166_v17  ;;  %1172 = vmatpush.bf16.msra.mxu1 %v1166_v17 }
 0x11d   : > { %v543_v5 = vpop.f32.mrf.mxu3  ;;  %v608_v35 = vor.u32 1.1754944e-38, %v607_v23  ;;  %1173 = vmatpush.bf16.msra.mxu2 %v1166_v17 }
 0x11e   : > { %v1435_v11 = vadd.f32 %v1414_v53, %v543_v5  ;;  %v1437_v12 = vadd.f32 1.0, %v582_v4  ;;  %v581_v14 = vmul.f32 0.3275911, %v573_v10  ;;  %v798_v34 = vmul.f32 %v790_v21, %v574_v1 }
 0x11f   : > { %v789_v40 = vsub.f32 0.0, %v573_v10 }
 0x120   : > { %v1216_v13 = vpop.eup %1215  ;;  %v1440_v15 = vmul.f32 0.70710677, %v1435_v11  ;;  %1217 = vrcp.f32 %v1437_v12  ;;  %v1443_v18 = vadd.f32 1.0, %v581_v14  ;;  %v635_v33 = vand.u32 2147483647, %v1437_v12 }
 0x121   : > { %v597_v16 = vmul.f32 %v1216_v13, %v588_v62  ;;  %vm602_vm1 = vweird.f32 %v1216_v13  ;;  %v637_v37 = vand.u32 2147483648, %v1437_v12  ;;  %vm631_vm5 = vweird.f32 %v1437_v12 }
 0x122   : > { %v1446_v22 = vand.u32 2147483647, %v1440_v15  ;;  %1219 = vrcp.f32 %v1443_v18  ;;  %vm603_vm4 = vmor %vm601_vm2, %vm602_vm1  ;;  %vm1471_vm6 = vcmp.eq.f32.partialorder %v635_v33, 8.507059e+37  ;;  %v1475_v51 = vmul.f32 1.442695, %v798_v34 }
 0x123   : > { %v598_v19 = vsub.f32 1.0, %v597_v16  ;;  %1221 = vpow2.f32 %v804_v25  ;;  %v638_v54 = vor.u32 1.1754944e-38, %v637_v37  ;;  %v620_v59 = vand.u32 2147483647, %v1443_v18 }
 0x124   : > { %v583_v27 = vmul.f32 0.3275911, %v1446_v22  ;;  %v797_v61 = vmul.f32 %v789_v40, %v573_v10  ;;  %v622_v4 = vand.u32 2147483648, %v1443_v18  ;;  %vm616_vm9 = vweird.f32 %v1443_v18 }
 0x125   : > { %v599_v24 = vmul.f32 %v1216_v13, %v598_v19  ;;  %v546_v26 = vpop.f32.mrf.mxu3  ;;  %v791_v10 = vsub.f32 0.0, %v1446_v22  ;;  %vm1505_vm11 = vcmp.eq.f32.partialorder %v620_v59, 8.507059e+37 }
 0x126   : > { %v1451_v28 = vadd.f32 %v1414_v53, %v546_v26  ;;  %v1218_v31 = vpop.eup %1217  ;;  %v1456_v38 = vadd.f32 1.0, %v583_v27 }
 0x127   : > { %v600_v32 = vadd.f32 %v1216_v13, %v599_v24  ;;  %v627_v36 = vmul.f32 %v1218_v31, %v1437_v12  ;;  %vm632_vm7 = vweird.f32 %v1218_v31 }
 0x128   : > { %v1459_v43 = vmul.f32 0.70710677, %v1451_v28  ;;  %1223 = vrcp.f32 %v1456_v38  ;;  %v1220_v48 = vpop.eup %1219  ;;  %vm633_vm8 = vmor %vm631_vm5, %vm632_vm7  ;;  %vm646_vm14 = vweird.f32 %v1456_v38  ;;  %vm836_vm5 = vcmp.lt.f32.partialorder %v1420_v56, 0.0 }
 0x129   : > { %v604_v39 = vsel %vm603_vm4, %v1216_v13, %v600_v32  ;;  %v628_v46 = vsub.f32 1.0, %v627_v36  ;;  %v612_v57 = vmul.f32 %v1220_v48, %v1443_v18  ;;  %v1486_v13 = vpop.eup %1221  ;;  %vm617_vm10 = vweird.f32 %v1220_v48 }
 0x12a   : > { %v1464_v45 = vsel %vm606_vm3, %v608_v35, %v604_v39  ;;  %v1480_v62 = vand.u32 2147483647, %v1459_v43  ;;  %v623_v32 = vor.u32 1.1754944e-38, %v622_v4  ;;  %vm618_vm12 = vmor %vm616_vm9, %vm617_vm10  ;;  %v650_v36 = vand.u32 2147483647, %v1456_v38  ;;  %v1165_v39 = vld [vmem:[%s1720_s5 + $0x18] sm:$0xff] }
 0x12b   : > { %v716_v49 = vmul.f32 1.0614054, %v1464_v45  ;;  %v629_v52 = vmul.f32 %v1218_v31, %v628_v46  ;;  %v613_v3 = vsub.f32 1.0, %v612_v57  ;;  %v652_v46 = vand.u32 2147483648, %v1456_v38  ;;  %949 = vmatpush.bf16.msrb.mxu0 %v1165_v39  ;;  %1174 = vmatpush.bf16.msra.mxu1 %v1165_v39 }
 0x12c   : > { %v584_v16 = vmul.f32 0.3275911, %v1480_v62  ;;  %v806_v57 = vmul.f32 1.442695, %v797_v61  ;;  %1175 = vmatpush.bf16.msra.mxu2 %v1165_v39  ;;  %vm651_vm1 = vcmp.eq.f32.partialorder %v650_v36, 8.507059e+37  ;;  %vm838_vm7 = vcmp.lt.f32.partialorder %v1427_v63, 0.0 }
 0x12d   : > { %v724_v58 = vadd.f32 -1.4531521, %v716_v49  ;;  %v548_v0 = vpop.f32.mrf.mxu3  ;;  %v630_v1 = vadd.f32 %v1218_v31, %v629_v52  ;;  %v614_v21 = vmul.f32 %v1220_v48, %v613_v3  ;;  %v653_v61 = vor.u32 1.1754944e-38, %v652_v46 }
 0x12e   : > { %v1484_v5 = vadd.f32 %v1414_v53, %v548_v0  ;;  %v1224_v19 = vpop.eup %1223  ;;  %v1511_v33 = vadd.f32 1.0, %v584_v16 }
 0x12f   : > { %v732_v14 = vmul.f32 %v724_v58, %v1464_v45  ;;  %v634_v20 = vsel %vm633_vm8, %v1218_v31, %v630_v1  ;;  %v642_v26 = vmul.f32 %v1224_v19, %v1456_v38  ;;  %v615_v31 = vadd.f32 %v1220_v48, %v614_v21  ;;  %v1164_v1 = vld [vmem:[%s1720_s5 + $0x10] sm:$0xff] }
 0x130   : > { %v1499_v23 = vmul.f32 0.70710677, %v1484_v5  ;;  %v1503_v12 = vsel %vm1471_vm6, %v638_v54, %v634_v20  ;;  %1225 = vrcp.f32 %v1511_v33  ;;  %vm647_vm13 = vweird.f32 %v1224_v19  ;;  %950 = vmatpush.bf16.msrb.mxu0 %v1164_v1  ;;  %1176 = vmatpush.bf16.msra.mxu1 %v1164_v1 }
 0x131   : > { %v740_v24 = vadd.f32 1.4214138, %v732_v14  ;;  %v718_v27 = vmul.f32 1.0614054, %v1503_v12  ;;  %v643_v35 = vsub.f32 1.0, %v642_v26  ;;  %v619_v44 = vsel %vm618_vm12, %v1220_v48, %v615_v31  ;;  %vm648_vm15 = vmor %vm646_vm14, %vm647_vm13  ;;  %1177 = vmatpush.bf16.msra.mxu2 %v1164_v1 }
 0x132   : > { %v1518_v37 = vand.u32 2147483647, %v1499_v23  ;;  %v1527_v18 = vsel %vm1505_vm11, %v623_v32, %v619_v44  ;;  %v799_v48 = vmul.f32 %v791_v10, %v1446_v22  ;;  %v792_v10 = vsub.f32 0.0, %v1480_v62 }
 0x133   : > { %v748_v34 = vmul.f32 %v740_v24, %v1464_v45  ;;  %v726_v40 = vadd.f32 -1.4531521, %v718_v27  ;;  %v644_v50 = vmul.f32 %v1224_v19, %v643_v35  ;;  %v717_v54 = vmul.f32 1.0614054, %v1527_v18  ;;  %v1163_v27 = vld [vmem:[%s1720_s5 + $0x8] sm:$0xff] }
 0x134   : > { %v585_v0 = vmul.f32 0.3275911, %v1518_v37  ;;  %1227 = vpow2.f32 %v1475_v51  ;;  %v810_v51 = vmul.f32 1.442695, %v799_v48  ;;  %v665_v36 = vand.u32 2147483647, %v1511_v33  ;;  %951 = vmatpush.bf16.msrb.mxu0 %v1163_v27  ;;  %1178 = vmatpush.bf16.msra.mxu1 %v1163_v27 }
 0x135   : > { %v756_v49 = vadd.f32 -0.28449672, %v748_v34  ;;  %v734_v52 = vmul.f32 %v726_v40, %v1503_v12  ;;  %v645_v59 = vadd.f32 %v1224_v19, %v644_v50  ;;  %v725_v4 = vadd.f32 -1.4531521, %v717_v54  ;;  %v551_v26 = vpop.f32.mrf.mxu3  ;;  %1179 = vmatpush.bf16.msra.mxu2 %v1163_v27 }
 0x136   : > { %v1540_v16 = vadd.f32 1.0, %v585_v0  ;;  %v1226_v38 = vpop.eup %1225  ;;  %1229 = vpow2.f32 %v806_v57  ;;  %v667_v46 = vand.u32 2147483648, %v1511_v33  ;;  %vm661_vm3 = vweird.f32 %v1511_v33 }
 0x137   : > { %v764_v58 = vmul.f32 %v756_v49, %v1464_v45  ;;  %v742_v3 = vadd.f32 1.4214138, %v734_v52  ;;  %v649_v22 = vsel %vm648_vm15, %v1224_v19, %v645_v59  ;;  %v733_v20 = vmul.f32 %v725_v4, %v1527_v18 }
 0x138   : > { %v1545_v21 = vsel %vm651_vm1, %v653_v61, %v649_v22  ;;  %v657_v25 = vmul.f32 %v1226_v38, %v1511_v33  ;;  %1231 = vrcp.f32 %v1540_v16  ;;  %vm662_vm2 = vweird.f32 %v1226_v38 }
 0x139   : > { %v772_v14 = vadd.f32 0.2548296, %v764_v58  ;;  %v750_v17 = vmul.f32 %v742_v3, %v1503_v12  ;;  %v719_v19 = vmul.f32 1.0614054, %v1545_v21  ;;  %v741_v32 = vadd.f32 1.4214138, %v733_v20  ;;  %vm663_vm6 = vmor %vm661_vm3, %vm662_vm2 }
 0x13a   : > { %v658_v35 = vsub.f32 1.0, %v657_v25  ;;  %v1564_v52 = vadd.f32 %v1414_v53, %v551_v26  ;;  %1233 = vpow2.f32 %v810_v51  ;;  %vm1570_vm4 = vcmp.eq.f32.partialorder %v665_v36, 8.507059e+37 }
 0x13b   : > { %v780_v24 = vmul.f32 %v772_v14, %v1464_v45  ;;  %v758_v31 = vadd.f32 -0.28449672, %v750_v17  ;;  %v727_v34 = vadd.f32 -1.4531521, %v719_v19  ;;  %v800_v45 = vmul.f32 %v792_v10, %v1480_v62  ;;  %v1162_v62 = vld [vmem:[%s1720_s5] sm:$0xff] }
 0x13c   : > { %v749_v44 = vmul.f32 %v741_v32, %v1527_v18  ;;  %v659_v50 = vmul.f32 %v1226_v38, %v658_v35  ;;  %952 = vmatpush.bf16.msrb.mxu0 %v1162_v62  ;;  %1180 = vmatpush.bf16.msra.mxu1 %v1162_v62  ;;  %v668_v14 = vor.u32 1.1754944e-38, %v667_v46  ;;  %v1584_v20 = vmul.f32 0.70710677, %v1564_v52 }
 0x13d   : > { %v1557_v39 = vmul.f32 %v1486_v13, %v780_v24  ;;  %v766_v40 = vmul.f32 %v758_v31, %v1503_v12  ;;  %v735_v49 = vmul.f32 %v727_v34, %v1545_v21  ;;  %v1228_v13 = vpop.eup %1227  ;;  %v1574_v1 = vmul.f32 1.442695, %v800_v45  ;;  %1181 = vmatpush.bf16.msra.mxu2 %v1162_v62  ;;  %v553_v32 = vpop.f32.mrf.mxu3 }
 0x13e   : > { %v757_v57 = vadd.f32 -0.28449672, %v749_v44  ;;  %v1230_v48 = vpop.eup %1229  ;;  %v660_v59 = vadd.f32 %v1226_v38, %v659_v50  ;;  %vm837_vm8 = vcmp.lt.f32.partialorder %v1431_v2, 0.0  ;;  %v682_v31 = vand.u32 2147483648, %v1540_v16 }
 0x13f   : > { %v774_v54 = vadd.f32 0.2548296, %v766_v40  ;;  %v743_v58 = vadd.f32 1.4214138, %v735_v49  ;;  %v1232_v3 = vpop.eup %1231  ;;  %v828_v4 = vsub.f32 1.0, %v1557_v39  ;;  %vm676_vm10 = vweird.f32 %v1540_v16 }
 0x140   : > { %v765_v33 = vmul.f32 %v757_v57, %v1527_v18  ;;  %v664_v10 = vsel %vm663_vm6, %v1226_v38, %v660_v59  ;;  %v672_v17 = vmul.f32 %v1232_v3, %v1540_v16  ;;  %v1234_v51 = vpop.eup %1233  ;;  %vm677_vm9 = vweird.f32 %v1232_v3 }
 0x141   : > { %v782_v61 = vmul.f32 %v774_v54, %v1503_v12  ;;  %v751_v22 = vmul.f32 %v743_v58, %v1545_v21  ;;  %v1588_v25 = vsel %vm1570_vm4, %v668_v14, %v664_v10  ;;  %v680_v12 = vand.u32 2147483647, %v1540_v16  ;;  %vm678_vm11 = vmor %vm676_vm10, %vm677_vm9 }
 0x142   : > { %v773_v19 = vadd.f32 0.2548296, %v765_v33  ;;  %v720_v38 = vmul.f32 1.0614054, %v1588_v25  ;;  %v673_v27 = vsub.f32 1.0, %v672_v17  ;;  %v844_v34 = vsub.f32 0.0, %v828_v4 }
 0x143   : > { %v822_v24 = vmul.f32 %v1228_v13, %v782_v61  ;;  %v759_v26 = vadd.f32 -0.28449672, %v751_v22  ;;  %v1598_v44 = vand.u32 2147483647, %v1584_v20  ;;  %v793_v49 = vsub.f32 0.0, %v1518_v37 }
 0x144   : > { %v781_v36 = vmul.f32 %v773_v19, %v1527_v18  ;;  %v728_v39 = vadd.f32 -1.4531521, %v720_v38  ;;  %v674_v40 = vmul.f32 %v1232_v3, %v673_v27  ;;  %v1603_v50 = vadd.f32 %v1414_v53, %v553_v32 }
 0x145   : > { %v830_v35 = vsub.f32 1.0, %v822_v24  ;;  %v767_v45 = vmul.f32 %v759_v26, %v1545_v21  ;;  %v586_v54 = vmul.f32 0.3275911, %v1598_v44  ;;  %vm681_vm12 = vcmp.eq.f32.partialorder %v680_v12, 8.507059e+37 }
 0x146   : > { %v821_v46 = vmul.f32 %v1230_v48, %v781_v36  ;;  %v736_v13 = vmul.f32 %v728_v39, %v1588_v25  ;;  %v675_v18 = vadd.f32 %v1232_v3, %v674_v40  ;;  %v683_v59 = vor.u32 1.1754944e-38, %v682_v31 }
 0x147   : > { %v775_v62 = vadd.f32 0.2548296, %v767_v45  ;;  %v846_v57 = vsub.f32 0.0, %v830_v35  ;;  %v852_v16 = vsel %vm836_vm5, %v844_v34, %v828_v4  ;;  %v1613_v14 = vadd.f32 1.0, %v586_v54 }
 0x148   : > { %v829_v58 = vsub.f32 1.0, %v821_v46  ;;  %v744_v0 = vadd.f32 1.4214138, %v736_v13  ;;  %v679_v53 = vsel %vm678_vm11, %v1232_v3, %v675_v18  ;;  %v1616_v22 = vmul.f32 0.70710677, %v1603_v50 }
 0x149   : > { %v783_v48 = vmul.f32 %v775_v62, %v1545_v21  ;;  %v1611_v33 = vsel %vm681_vm12, %v683_v59, %v679_v53  ;;  %v801_v56 = vmul.f32 %v793_v49, %v1518_v37  ;;  %v860_v4 = vadd.f32 1.0, %v852_v16 }
 0x14a   : > { %v845_v61 = vsub.f32 0.0, %v829_v58  ;;  %v752_v17 = vmul.f32 %v744_v0, %v1588_v25  ;;  %v721_v24 = vmul.f32 1.0614054, %v1611_v33  ;;  %v854_v21 = vsel %vm838_vm7, %v846_v57, %v830_v35 }
 0x14b   : > { %v823_v10 = vmul.f32 %v1234_v51, %v783_v48  ;;  %1235 = vrcp.f32 %v1613_v14  ;;  %v556_v27 = vmul.f32 0.5, %v1417_v55  ;;  %v1629_v31 = vand.u32 2147483647, %v1616_v22 }
 0x14c   : > { %v853_v3 = vsel %vm837_vm8, %v845_v61, %v829_v58  ;;  %v760_v26 = vadd.f32 -0.28449672, %v752_v17  ;;  %v729_v38 = vadd.f32 -1.4531521, %v721_v24  ;;  %1237 = vpow2.f32 %v1574_v1 }
 0x14d   : > { %v861_v19 = vadd.f32 1.0, %v853_v3  ;;  %v831_v12 = vsub.f32 1.0, %v823_v10  ;;  %v862_v51 = vadd.f32 1.0, %v854_v21  ;;  %vm839_vm13 = vcmp.lt.f32.partialorder %v1440_v15, 0.0 }
 0x14e   : > { %v768_v32 = vmul.f32 %v760_v26, %v1588_v25  ;;  %v737_v2 = vmul.f32 %v729_v38, %v1611_v33  ;;  %v814_v34 = vmul.f32 1.442695, %v801_v56  ;;  %v587_v35 = vmul.f32 0.3275911, %v1629_v31 }
 0x14f   : > { %v869_v37 = vmul.f32 %v861_v19, %v1466_v47  ;;  %v847_v63 = vsub.f32 0.0, %v831_v12  ;;  %v868_v36 = vmul.f32 %v860_v4, %v556_v27  ;;  %v558_v40 = vmul.f32 0.5, %v1424_v60 }
 0x150   : > { %v776_v45 = vadd.f32 0.2548296, %v768_v32  ;;  %v745_v1 = vadd.f32 1.4214138, %v737_v2  ;;  %v559_v47 = vmul.f32 0.5, %v1435_v11  ;;  %v1638_v49 = vadd.f32 1.0, %v587_v35 }
 0x151   : > { %v855_v55 = vsel %vm839_vm13, %v847_v63, %v831_v12  ;;  %v1236_v39 = vpop.eup %1235  ;;  %v876_v62 = vpack.c.bf16 %v869_v37, %v868_v36  ;;  %v870_v57 = vmul.f32 %v862_v51, %v558_v40  ;;  %v695_v11 = vand.u32 2147483647, %v1613_v14 }
 0x152   : > { %v863_v46 = vadd.f32 1.0, %v855_v55  ;;  %v784_v13 = vmul.f32 %v776_v45, %v1588_v25  ;;  %v753_v15 = vmul.f32 %v745_v1, %v1611_v33  ;;  %v687_v18 = vmul.f32 %v1236_v39, %v1613_v14  ;;  %v1238_v54 = vpop.eup %1237 }
 0x153   : > { %1239 = vrcp.f32 %v1638_v49  ;;  %v697_v48 = vand.u32 2147483648, %v1613_v14  ;;  %vm932_vm14 = vcmask 785408   ;;  %vm692_vm15 = vweird.f32 %v1236_v39 }
 0x154   : > { %v871_v58 = vmul.f32 %v863_v46, %v559_v47  ;;  %v824_v59 = vmul.f32 %v1238_v54, %v784_v13  ;;  %v761_v16 = vadd.f32 -0.28449672, %v753_v15  ;;  %1241 = vpow2.f32 %v814_v34  ;;  %1152 = vmatmul.msk.bf16.vlgmr.msrb.gmra.mxu0 %vm932_vm14, %v876_v62 }
 0x155   : > { %v688_v60 = vsub.f32 1.0, %v687_v18  ;;  %vm691_vm1 = vweird.f32 %v1613_v14  ;;  %v698_v4 = vor.u32 1.1754944e-38, %v697_v48  ;;  %vm696_vm3 = vcmp.eq.f32.partialorder %v695_v11, 8.507059e+37 }
 0x156   : > { %v877_v0 = vpack.c.bf16 %v871_v58, %v870_v57  ;;  %v832_v25 = vsub.f32 1.0, %v824_v59  ;;  %v769_v53 = vmul.f32 %v761_v16, %v1611_v33  ;;  %vm693_vm2 = vmor %vm691_vm1, %vm692_vm15  ;;  %v794_v38 = vsub.f32 0.0, %v1598_v44 }
 0x157   : > { %v689_v61 = vmul.f32 %v1236_v39, %v688_v60  ;;  %vm840_vm4 = vcmp.lt.f32.partialorder %v1459_v43, 0.0  ;;  %v710_v32 = vand.u32 2147483647, %v1638_v49  ;;  %v712_v2 = vand.u32 2147483648, %v1638_v49 }
 0x158   : > { %1153 = vmatmul.msk.bf16.vlgmr.msra.gmra.mxu1 %vm932_vm14, %v877_v0  ;;  %v777_v10 = vadd.f32 0.2548296, %v769_v53  ;;  %v848_v56 = vsub.f32 0.0, %v832_v25  ;;  %v560_v35 = vmul.f32 0.5, %v1451_v28  ;;  %v802_v36 = vmul.f32 %v794_v38, %v1598_v44 }
 0x159   : > { %v690_v17 = vadd.f32 %v1236_v39, %v689_v61  ;;  %v1240_v24 = vpop.eup %1239  ;;  %vm706_vm6 = vweird.f32 %v1638_v49  ;;  %vm841_vm7 = vcmp.lt.f32.partialorder %v1499_v23, 0.0  ;;  %v713_v40 = vor.u32 1.1754944e-38, %v712_v2 }
 0x15a   : > { %v1242_v21 = vpop.eup %1241  ;;  %v785_v3 = vmul.f32 %v777_v10, %v1611_v33  ;;  %v702_v12 = vmul.f32 %v1240_v24, %v1638_v49  ;;  %v856_v14 = vsel %vm840_vm4, %v848_v56, %v832_v25  ;;  %vm707_vm5 = vweird.f32 %v1240_v24 }
 0x15b   : > { %v694_v19 = vsel %vm693_vm2, %v1236_v39, %v690_v17  ;;  %v864_v43 = vadd.f32 1.0, %v856_v14  ;;  %v561_v39 = vmul.f32 0.5, %v1484_v5  ;;  %vm708_vm8 = vmor %vm706_vm6, %vm707_vm5  ;;  %vm711_vm9 = vcmp.eq.f32.partialorder %v710_v32, 8.507059e+37 }
 0x15c   : > { %v699_v26 = vsel %vm696_vm3, %v698_v4, %v694_v19  ;;  %v825_v27 = vmul.f32 %v1242_v21, %v785_v3  ;;  %v703_v63 = vsub.f32 1.0, %v702_v12  ;;  %v816_v28 = vmul.f32 1.442695, %v802_v36 }
 0x15d   : > { %v722_v37 = vmul.f32 1.0614054, %v699_v26  ;;  %v795_v44 = vsub.f32 0.0, %v1629_v31  ;;  %v872_v57 = vmul.f32 %v864_v43, %v560_v35  ;;  %vm842_vm10 = vcmp.lt.f32.partialorder %v1584_v20, 0.0  ;;  %v1213_v20 = vld [vmem:[%s1721_s6] ss:$0 sm:$0xff] }
 0x15e   : > { %v833_v51 = vsub.f32 1.0, %v825_v27  ;;  %v704_v33 = vmul.f32 %v1240_v24, %v703_v63  ;;  %1243 = vpow2.f32 %v816_v28  ;;  %vm843_vm11 = vcmp.lt.f32.partialorder %v1616_v22, 0.0  ;;  %v1214_v22 = vld [vmem:[%s1722_s7] ss:$0 sm:$0xff] }
 0x15f   : > { %v730_v34 = vadd.f32 -1.4531521, %v722_v37  ;;  %v803_v5 = vmul.f32 %v795_v44, %v1629_v31  ;;  %v562_v63 = vmul.f32 0.5, %v1564_v52  ;;  %v563_v14 = vmul.f32 0.5, %v1603_v50 }
 0x160   : > { %v849_v55 = vsub.f32 0.0, %v833_v51  ;;  %v705_v1 = vadd.f32 %v1240_v24, %v704_v33 }
 0x161   : > { %v738_v45 = vmul.f32 %v730_v34, %v699_v26  ;;  %v818_v0 = vmul.f32 1.442695, %v803_v5 }
 0x162   : > { %v857_v47 = vsel %vm841_vm7, %v849_v55, %v833_v51  ;;  %v709_v62 = vsel %vm708_vm8, %v1240_v24, %v705_v1 }
 0x163   : > { %v746_v46 = vadd.f32 1.4214138, %v738_v45  ;;  %v865_v13 = vadd.f32 1.0, %v857_v47  ;;  %v714_v15 = vsel %vm711_vm9, %v713_v40, %v709_v62  ;;  %1245 = vpow2.f32 %v818_v0 }
 0x164   : > { %v723_v54 = vmul.f32 1.0614054, %v714_v15  ;;  %v1244_v61 = vpop.eup %1243 }
 0x165   : > { %v754_v18 = vmul.f32 %v746_v46, %v699_v26  ;;  %v873_v49 = vmul.f32 %v865_v13, %v561_v39 }
 0x166   : > { %v731_v59 = vadd.f32 -1.4531521, %v723_v54 }
 0x167   : > { %v762_v58 = vadd.f32 -0.28449672, %v754_v18  ;;  %v878_v23 = vpack.c.bf16 %v873_v49, %v872_v57 }
 0x168   : > { %v739_v60 = vmul.f32 %v731_v59, %v714_v15 }
 0x169   : > { %v770_v16 = vmul.f32 %v762_v58, %v699_v26  ;;  %1154 = vmatmul.msk.bf16.vlgmr.msra.gmra.mxu2 %vm932_vm14, %v878_v23  ;;  %v1246_v31 = vpop.eup %1245 }
 0x16a   : > { %v747_v48 = vadd.f32 1.4214138, %v739_v60 }
 0x16b   : > { %v778_v11 = vadd.f32 0.2548296, %v770_v16 }
 0x16c   : > { %v755_v53 = vmul.f32 %v747_v48, %v714_v15 }
 0x16d   : > { %v786_v25 = vmul.f32 %v778_v11, %v699_v26 }
 0x16e   : > { %v763_v17 = vadd.f32 -0.28449672, %v755_v53 }
 0x16f   : > { %v826_v10 = vmul.f32 %v1244_v61, %v786_v25 }
 0x170   : > { %v771_v56 = vmul.f32 %v763_v17, %v714_v15 }
 0x171   : > { %v834_v24 = vsub.f32 1.0, %v826_v10 }
 0x172   : > { %v779_v4 = vadd.f32 0.2548296, %v771_v56 }
 0x173   : > { %v850_v21 = vsub.f32 0.0, %v834_v24 }
 0x174   : > { %v787_v3 = vmul.f32 %v779_v4, %v714_v15 }
 0x175   : > { %v858_v12 = vsel %vm842_vm10, %v850_v21, %v834_v24 }
 0x176   : > { %v827_v19 = vmul.f32 %v1246_v31, %v787_v3  ;;  %v866_v37 = vadd.f32 1.0, %v858_v12 }
 0x178   : > { %v835_v38 = vsub.f32 1.0, %v827_v19  ;;  %v874_v2 = vmul.f32 %v866_v37, %v562_v63 }
 0x17a   : > { %v851_v27 = vsub.f32 0.0, %v835_v38 }
 0x17c   : > { %v859_v26 = vsel %vm843_vm11, %v851_v27, %v835_v38 }
 0x17d   : > { %v867_v32 = vadd.f32 1.0, %v859_v26 }
 0x17f   : > { %v875_v51 = vmul.f32 %v867_v32, %v563_v14 }
 0x181   : > { %v879_v34 = vpack.c.bf16 %v875_v51, %v874_v2 }
 0x183   : > { %1155 = vmatmul.msk.bf16.gmra.mxu2 %vm932_vm14, %v879_v34 }
 0x1d1   : > { %v954_v33 = vpop.f32.mrf.mxu0 }
 0x1d2   : > { %v955_v35 = vadd.f32 %v1213_v20, %v954_v33 }
 0x1d4   : > { %v978_v55 = vmul.f32 %v1214_v22, %v955_v35 }
 0x1d5   : > { %v959_v36 = vpop.f32.mrf.mxu1 }
 0x1d6   : > { %v960_v52 = vadd.f32 %v1213_v20, %v959_v36  ;;  %v986_v45 = vadd.f32 %v978_v55, %v1370_v6 }
 0x1d8   : > { %v980_v50 = vmul.f32 %v1214_v22, %v960_v52  ;;  %994 = vst.msk [vmem:[%s1680_s24] sm:$0xff] %vm514_vm0, %v986_v45 }
 0x1d9   : > { %v956_v43 = vpop.f32.mrf.mxu0 }
 0x1da   : > { %v988_v1 = vadd.f32 %v980_v50, %v1376_v8  ;;  %v957_v39 = vadd.f32 %v1213_v20, %v956_v43 }
 0x1dc   : > { %996 = vst.msk [vmem:[%s1680_s24 + $0x10] sm:$0xff] %vm514_vm0, %v988_v1  ;;  %v979_v46 = vmul.f32 %v1214_v22, %v957_v39 }
 0x1dd   : > { %v961_v40 = vpop.f32.mrf.mxu1 }
 0x1de   : > { %v962_v47 = vadd.f32 %v1213_v20, %v961_v40  ;;  %v987_v13 = vadd.f32 %v979_v46, %v1373_v7 }
 0x1e0   : > { %v981_v62 = vmul.f32 %v1214_v22, %v962_v47  ;;  %995 = vst.msk [vmem:[%s1680_s24 + $0x8] sm:$0xff] %vm514_vm0, %v987_v13 }
 0x1e2   : > { %v989_v28 = vadd.f32 %v981_v62, %v1379_v9 }
 0x1e4   : > { %997 = vst.msk [vmem:[%s1680_s24 + $0x18] sm:$0xff] %vm514_vm0, %v989_v28 }
 0x1ec   : > { %v964_v6 = vpop.f32.mrf.mxu2 }
 0x1ed   : > { %v965_v8 = vadd.f32 %v1213_v20, %v964_v6 }
 0x1ef   : > { %v982_v15 = vmul.f32 %v1214_v22, %v965_v8 }
 0x1f1   : > { %v990_v44 = vadd.f32 %v982_v15, %v1392_v29 }
 0x1f3   : > { %998 = vst.msk [vmem:[%s1680_s24 + $0x20] sm:$0xff] %vm514_vm0, %v990_v44 }
 0x1f4   : > { %v966_v18 = vpop.f32.mrf.mxu2 }
 0x1f5   : > { %v967_v54 = vadd.f32 %v1213_v20, %v966_v18 }
 0x1f7   : > { %v983_v57 = vmul.f32 %v1214_v22, %v967_v54 }
 0x1f9   : > { %v991_v7 = vadd.f32 %v983_v57, %v1395_v30 }
 0x1fb   : > { %999 = vst.msk [vmem:[%s1680_s24 + $0x28] sm:$0xff] %vm514_vm0, %v991_v7 }
 0x206   : > { %v969_v9 = vpop.f32.mrf.mxu2 }
 0x207   : > { %v970_v49 = vadd.f32 %v1213_v20, %v969_v9 }
 0x209   : > { %v984_v58 = vmul.f32 %v1214_v22, %v970_v49 }
 0x20b   : > { %v992_v59 = vadd.f32 %v984_v58, %v1402_v41 }
 0x20d   : > { %1000 = vst.msk [vmem:[%s1680_s24 + $0x30] sm:$0xff] %vm514_vm0, %v992_v59 }
 0x20e   : > { %v971_v5 = vpop.f32.mrf.mxu2 }
 0x20f   : > { %v972_v23 = vadd.f32 %v1213_v20, %v971_v5 }
 0x211   : > { %v985_v29 = vmul.f32 %v1214_v22, %v972_v23 }
 0x213   : > { %v993_v16 = vadd.f32 %v985_v29, %v1405_v42 }
 0x215   : > { %1001 = vst.msk [vmem:[%s1680_s24 + $0x38] sm:$0xff] %vm514_vm0, %v993_v16 }
 0x216 PF: > { %s20_s15 = sadd.s32 1, %s1269_s15   ;;  %s1732_s13 = smov %s1265_s14 }
 0x217   : > { %p17_p5 = scmp.ge.s32.totalorder %s20_s15, 4   ;;  %s1733_s14 = smov %s1735_s16 }
 0x219   :  { %19 = sbr.rel (!%p17_p5) target bundleno = 2 (0x2), region = 96 }

// kernel: pool_stem_forward.7
= control target key start
LH: loop header
LB: loop body
LE: loop exit
PB: predicated region body
PF: predicated region fallthrough
CT: control target
= control target key end

     0   :  { %s763_s18 = smov 0   ;;  %s856_s0 = inlined_call_operand.vmem [shape: f32[2,10,16], index: 0, kind: input, shape index: {}]   ;;  %s857_s1 = inlined_call_operand.vmem [shape: bf16[3,16,256], index: 1, kind: input, shape index: {}]   ;;  %s858_s2 = inlined_call_operand.vmem [shape: f32[1,256], index: 2, kind: input, shape index: {}]   ;;  %s859_s3 = inlined_call_operand.vmem [shape: f32[2,8,256], index: 3, kind: output, shape index: {0}]   ;;  %s860_s4 = inlined_call_operand.vmem [shape: f32[2,1,128], index: 4, kind: output, shape index: {1}]   ;;  %s861_s5 = inlined_call_operand.vmem [shape: f32[2,1,128], index: 5, kind: output, shape index: {2}]  }
   0x1 LB: > { %s642_s19 = sadd.s32 4294967295, %s730_s18   ;;  %p646_p0 = scmp.ge.s32.totalorder %s730_s18, 1  ;;  %s730_s18 = sphi %s763_s18, %s16_s18  }
   0x2   : > { %p192_p1 = scmp.lt.s32.totalorder %s730_s18, 3 }
   0x4   : > { %p193_p2 = pnand %p646_p0, %p192_p1 }
   0x5   : > { %p226_p3 = scmp.lt.s32.totalorder (!%p193_p2), %s642_s19, 1 }
   0x6   : > { %196 = sbr.rel (%p193_p2) target bundleno = 674 (0x2a2), region = 32 }
   0xb   : > { %v665_v0 = vld [vmem:[%s857_s1] sm:$0xf]  ;;  %v690_v1 = vld [vmem:[%s857_s1 + $0x4] sm:$0xf0]  ;;  %v689_v2 = vld [vmem:[%s857_s1 + $0x4] sm:$0xf] }
   0xc   : > { %v666_v3 = vor.u32 %v690_v1, %v665_v0  ;;  %v667_v4 = vld [vmem:[%s857_s1 + $0x8] sm:$0xf0]  ;;  %v655_v5 = vld [vmem:[%s857_s1 + $0x10] sm:$0xf]  ;;  %v692_v7 = vld [vmem:[%s857_s1 + $0x14] sm:$0xf0] }
   0xd   : > { %v670_v6 = vor.u32 %v689_v2, %v667_v4  ;;  %v691_v8 = vld [vmem:[%s857_s1 + $0x14] sm:$0xf]  ;;  %v657_v9 = vld [vmem:[%s857_s1 + $0x18] sm:$0xf0]  ;;  %s863_s19 = smov (!%p226_p3, %s642_s19), 1  ;;  %v656_v10 = vor.u32 %v692_v7, %v655_v5  ;;  %vm274_vm0 = vcmask 130048  }
   0xe   : > { %324 = vmatpush.bf16.msra.mxu2 %v666_v3  ;;  %v660_v11 = vor.u32 %v691_v8, %v657_v9  ;;  %v677_v12 = vld [vmem:[%s857_s1 + $0x20] sm:$0xf]  ;;  %v694_v13 = vld [vmem:[%s857_s1 + $0x24] sm:$0xf0]  ;;  %v693_v15 = vld [vmem:[%s857_s1 + $0x24] sm:$0xf]  ;;  %s238_s9 = scalar_lea.vmem %s860_s4, %s863_s19  ;;  %s241_s16 = scalar_lea.vmem %s861_s5, %s863_s19 }
   0xf   : > { %337 = vmatpush.bf16.msra.mxu3 %v670_v6  ;;  %v678_v14 = vor.u32 %v694_v13, %v677_v12  ;;  %v679_v16 = vld [vmem:[%s857_s1 + $0x28] sm:$0xf0]  ;;  %s687_s21 = sshll.u32 %s863_s19, 4  ;;  %285 = vmatpush.bf16.msra.mxu0 %v656_v10  ;;  %v388_v38 = vld [vmem:[%s858_s2] sm:$0x3] }
  0x10   : > { %298 = vmatpush.bf16.msra.mxu1 %v660_v11  ;;  %v682_v17 = vor.u32 %v693_v15, %v679_v16  ;;  %s230_s24 = scalar_lea.vmem %s856_s0, %s687_s21  ;;  %v390_v41 = vperm.slane %v388_v38, 0  ;;  %v391_v42 = vperm.slane %v388_v38, 1  ;;  %s235_s29 = scalar_lea.vmem %s859_s3, %s687_s21 }
  0x11   : > { %v243_v18 = vld [vmem:[%s230_s24] sm:$0xff]  ;;  %v244_v19 = vld [vmem:[%s230_s24 + $0x8] sm:$0x3] }
  0x12   : > { %v245_v20 = vpack.c.bf16 %v243_v18, %v243_v18  ;;  %v246_v21 = vpack.c.bf16 %v244_v19, %v244_v19 }
  0x13   : > { %367 = vmatpush.bf16.msrb.mxu0 %v678_v14 }
  0x14   : > { %380 = vmatpush.bf16.msrb.mxu1 %v682_v17  ;;  %v254_v22 = vunpack.c.l.b16 %v245_v20  ;;  %v255_v23 = vunpack.c.l.b16 %v246_v21  ;;  %671 = vmatmul.msk.bf16.vlgmr.msra.gmra.mxu2 %vm274_vm0, %v245_v20 }
  0x15   : > { %672 = vmatmul.msk.bf16.vlgmr.msra.gmra.mxu3 %vm274_vm0, %v245_v20 }
  0x16   : > { %v256_v24 = vpack.c.b16 %v255_v23, %v254_v22 }
  0x18   : > { %v258_v25 = vshrl.u32 %v256_v24, 16  ;;  %v260_v26 = vshll.u32 %v256_v24, 16  ;;  %v346_v29 = vrot.slane %v256_v24, 1 }
  0x1a   : > { %v262_v27 = vrot.slane %v260_v26, 1 }
  0x1c   : > { %v263_v28 = vor.u32 %v262_v27, %v258_v25 }
  0x1e   : > { %661 = vmatmul.msk.bf16.vlgmr.msra.gmra.mxu0 %vm274_vm0, %v263_v28  ;;  %662 = vmatmul.msk.bf16.vlgmr.msra.gmra.mxu1 %vm274_vm0, %v263_v28 }
  0x2e   : > { %683 = vmatmul.msk.bf16.vlgmr.msrb.gmra.mxu0 %vm274_vm0, %v346_v29  ;;  %684 = vmatmul.msk.bf16.vlgmr.msrb.gmra.mxu1 %vm274_vm0, %v346_v29 }
  0x97   : > { %v326_v30 = vpop.f32.mrf.mxu2 }
  0x98   : > { %v339_v31 = vpop.f32.mrf.mxu3 }
  0x9b   : > { %v287_v32 = vpop.f32.mrf.mxu0  ;;  %v300_v33 = vpop.f32.mrf.mxu1 }
  0x9c   : > { %v327_v39 = vadd.f32 %v326_v30, %v287_v32  ;;  %v340_v40 = vadd.f32 %v339_v31, %v300_v33 }
  0x9f   : > { %v328_v34 = vpop.f32.mrf.mxu2 }
  0xa0   : > { %v341_v35 = vpop.f32.mrf.mxu3 }
  0xa3   : > { %v289_v36 = vpop.f32.mrf.mxu0  ;;  %v302_v37 = vpop.f32.mrf.mxu1 }
  0xab   : > { %v369_v43 = vpop.f32.mrf.mxu0  ;;  %v382_v44 = vpop.f32.mrf.mxu1 }
  0xac   : > { %v386_v45 = vadd.f32 %v369_v43, %v327_v39  ;;  %v387_v46 = vadd.f32 %v382_v44, %v340_v40 }
  0xae   : > { %v824_v47 = vadd.f32 %v390_v41, %v386_v45  ;;  %v826_v48 = vadd.f32 %v391_v42, %v387_v46 }
  0xb0   : > { %v829_v49 = vmul.f32 0.70710677, %v824_v47  ;;  %v832_v50 = vmul.f32 0.70710677, %v826_v48 }
  0xb2   : > { %v400_v51 = vand.u32 2147483647, %v829_v49  ;;  %v401_v52 = vand.u32 2147483647, %v832_v50  ;;  %vm466_vm9 = vcmp.lt.f32.partialorder %v829_v49, 0.0  ;;  %vm467_vm10 = vcmp.lt.f32.partialorder %v832_v50, 0.0 }
  0xb3   : > { %v371_v53 = vpop.f32.mrf.mxu0  ;;  %v384_v54 = vpop.f32.mrf.mxu1  ;;  %v732_v50 = vmov 2048.0  }
  0xb4   : > { %v402_v55 = vmul.f32 0.3275911, %v400_v51  ;;  %v403_v56 = vmul.f32 0.3275911, %v401_v52  ;;  %v454_v12 = vsub.f32 0.0, %v400_v51  ;;  %v455_v15 = vsub.f32 0.0, %v401_v52 }
  0xb6   : > { %v404_v57 = vadd.f32 1.0, %v402_v55  ;;  %v405_v58 = vadd.f32 1.0, %v403_v56  ;;  %v456_v20 = vmul.f32 %v454_v12, %v400_v51  ;;  %v457_v22 = vmul.f32 %v455_v15, %v401_v52 }
  0xb7   : > { %v396_v52 = vmul.f32 0.5, %v824_v47  ;;  %v397_v55 = vmul.f32 0.5, %v826_v48 }
  0xb8   : > { %712 = vrcp.f32 %v404_v57  ;;  %v417_v0 = vand.u32 2147483648, %v404_v57  ;;  %v432_v3 = vand.u32 2147483648, %v405_v58  ;;  %v415_v4 = vand.u32 2147483647, %v404_v57 }
  0xb9   : > { %714 = vrcp.f32 %v405_v58  ;;  %v430_v6 = vand.u32 2147483647, %v405_v58  ;;  %vm411_vm3 = vweird.f32 %v404_v57  ;;  %vm426_vm4 = vweird.f32 %v405_v58 }
  0xba   : > { %v418_v8 = vor.u32 1.1754944e-38, %v417_v0  ;;  %vm416_vm6 = vcmp.eq.f32.partialorder %v415_v4, 8.507059e+37  ;;  %v433_v11 = vor.u32 1.1754944e-38, %v432_v3  ;;  %v458_v26 = vmul.f32 1.442695, %v456_v20 }
  0xbb   : > { %vm431_vm8 = vcmp.eq.f32.partialorder %v430_v6, 8.507059e+37  ;;  %v460_v28 = vmul.f32 1.442695, %v457_v22 }
  0xbc   : > { %716 = vpow2.f32 %v458_v26 }
  0xbd   : > { %718 = vpow2.f32 %v460_v28 }
  0xbe   : > { %v713_v59 = vpop.eup %712  ;;  %720 = vrcp.f32 %v732_v50 }
  0xbf   : > { %v715_v60 = vpop.eup %714  ;;  %v407_v61 = vmul.f32 %v713_v59, %v404_v57  ;;  %vm412_vm1 = vweird.f32 %v713_v59 }
  0xc0   : > { %v422_v62 = vmul.f32 %v715_v60, %v405_v58  ;;  %vm427_vm2 = vweird.f32 %v715_v60  ;;  %vm413_vm5 = vmor %vm411_vm3, %vm412_vm1 }
  0xc1   : > { %v408_v63 = vsub.f32 1.0, %v407_v61  ;;  %vm428_vm7 = vmor %vm426_vm4, %vm427_vm2 }
  0xc2   : > { %v423_v1 = vsub.f32 1.0, %v422_v62  ;;  %v717_v38 = vpop.eup %716 }
  0xc3   : > { %v409_v2 = vmul.f32 %v713_v59, %v408_v63  ;;  %v719_v40 = vpop.eup %718 }
  0xc4   : > { %v424_v5 = vmul.f32 %v715_v60, %v423_v1 }
  0xc5   : > { %v410_v7 = vadd.f32 %v713_v59, %v409_v2 }
  0xc6   : > { %v425_v9 = vadd.f32 %v715_v60, %v424_v5 }
  0xc7   : > { %v414_v10 = vsel %vm413_vm5, %v713_v59, %v410_v7  ;;  %v721_v59 = vpop.eup %720 }
  0xc8   : > { %v419_v13 = vsel %vm416_vm6, %v418_v8, %v414_v10  ;;  %v429_v14 = vsel %vm428_vm7, %v715_v60, %v425_v9  ;;  %v489_v47 = vmul.f32 2048.0, %v721_v59  ;;  %vm493_vm11 = vweird.f32 %v721_v59 }
  0xc9   : > { %v434_v16 = vsel %vm431_vm8, %v433_v11, %v429_v14  ;;  %v436_v17 = vmul.f32 1.0614054, %v419_v13 }
  0xca   : > { %v437_v18 = vmul.f32 1.0614054, %v434_v16  ;;  %v490_v60 = vsub.f32 1.0, %v489_v47 }
  0xcb   : > { %v438_v19 = vadd.f32 -1.4531521, %v436_v17 }
  0xcc   : > { %v439_v21 = vadd.f32 -1.4531521, %v437_v18  ;;  %v491_v0 = vmul.f32 %v721_v59, %v490_v60 }
  0xcd   : > { %v440_v23 = vmul.f32 %v438_v19, %v419_v13 }
  0xce   : > { %v441_v24 = vmul.f32 %v439_v21, %v434_v16  ;;  %v492_v48 = vadd.f32 %v721_v59, %v491_v0 }
  0xcf   : > { %v442_v25 = vadd.f32 1.4214138, %v440_v23 }
  0xd0   : > { %v443_v27 = vadd.f32 1.4214138, %v441_v24  ;;  %v494_v5 = vsel %vm493_vm11, %v721_v59, %v492_v48 }
  0xd1   : > { %v444_v29 = vmul.f32 %v442_v25, %v419_v13 }
  0xd2   : > { %v445_v30 = vmul.f32 %v443_v27, %v434_v16 }
  0xd3   : > { %v446_v31 = vadd.f32 -0.28449672, %v444_v29 }
  0xd4   : > { %v447_v32 = vadd.f32 -0.28449672, %v445_v30 }
  0xd5   : > { %v448_v33 = vmul.f32 %v446_v31, %v419_v13 }
  0xd6   : > { %v449_v34 = vmul.f32 %v447_v32, %v434_v16 }
  0xd7   : > { %v450_v35 = vadd.f32 0.2548296, %v448_v33 }
  0xd8   : > { %v451_v36 = vadd.f32 0.2548296, %v449_v34 }
  0xd9   : > { %v452_v37 = vmul.f32 %v450_v35, %v419_v13 }
  0xda   : > { %v453_v39 = vmul.f32 %v451_v36, %v434_v16 }
  0xdb   : > { %v462_v41 = vmul.f32 %v717_v38, %v452_v37 }
  0xdc   : > { %v463_v42 = vmul.f32 %v719_v40, %v453_v39 }
  0xdd   : > { %v464_v43 = vsub.f32 1.0, %v462_v41 }
  0xde   : > { %v465_v44 = vsub.f32 1.0, %v463_v42 }
  0xdf   : > { %v468_v45 = vsub.f32 0.0, %v464_v43 }
  0xe0   : > { %v469_v46 = vsub.f32 0.0, %v465_v44 }
  0xe1   : > { %v470_v51 = vsel %vm466_vm9, %v468_v45, %v464_v43 }
  0xe2   : > { %v471_v53 = vsel %vm467_vm10, %v469_v46, %v465_v44  ;;  %v472_v54 = vadd.f32 1.0, %v470_v51 }
  0xe3   : > { %v473_v56 = vadd.f32 1.0, %v471_v53 }
  0xe4   : > { %v474_v57 = vmul.f32 %v472_v54, %v396_v52 }
  0xe5   : > { %v475_v58 = vmul.f32 %v473_v56, %v397_v55 }
  0xe6   : > { %476 = vst [vmem:[%s235_s29] sm:$0xff] %v474_v57 }
  0xe7   : > { %477 = vst [vmem:[%s235_s29 + $0x8] sm:$0xff] %v475_v58  ;;  %v478_v49 = vadd.f32 %v475_v58, %v474_v57 }
  0xe9   : > { %479 = vadd.xlane.f32.xlu0 %v478_v49 }
 0x15c   : > { %v480_v61 = vpop.xlane.xlu0 %479 }
 0x15d   : > { %v481_v62 = vrot.slane %v480_v61, 4 }
 0x15f   : > { %v482_v63 = vadd.f32 %v481_v62, %v480_v61 }
 0x161   : > { %v483_v1 = vrot.slane %v482_v63, 2 }
 0x163   : > { %v484_v2 = vadd.f32 %v483_v1, %v482_v63 }
 0x165   : > { %v485_v3 = vrot.slane %v484_v2, 1 }
 0x167   : > { %v486_v4 = vadd.f32 %v485_v3, %v484_v2 }
 0x169   : > { %695 = vpush %v486_v4 }
 0x16a   : > { %697 = vpush %v494_v5 }
 0x19a   : > { %s696_s30 = spop %695 }
 0x19b   : > { %s698_s6 = spop %697 }
 0x19c   : > { %s496_s10 = smul.f32 %s698_s6, %s696_s30 }
 0x19e   : > { %v497_v6 = vstv %s496_s10 }
 0x19f   : > { %521 = vst [vmem:[%s238_s9] sm:$0x1] %v497_v6  ;;  %v498_v7 = vsub.f32 %v474_v57, %v497_v6  ;;  %v499_v8 = vsub.f32 %v475_v58, %v497_v6 }
 0x1a1   : > { %v500_v9 = vmul.f32 %v498_v7, %v498_v7  ;;  %v501_v10 = vmul.f32 %v499_v8, %v499_v8 }
 0x1a3   : > { %v502_v11 = vadd.f32 %v501_v10, %v500_v9 }
 0x1a5   : > { %503 = vadd.xlane.f32.xlu0 %v502_v11 }
 0x218   : > { %v504_v12 = vpop.xlane.xlu0 %503 }
 0x219   : > { %v505_v13 = vrot.slane %v504_v12, 4 }
 0x21b   : > { %v506_v14 = vadd.f32 %v505_v13, %v504_v12 }
 0x21d   : > { %v507_v15 = vrot.slane %v506_v14, 2 }
 0x21f   : > { %v508_v16 = vadd.f32 %v507_v15, %v506_v14 }
 0x221   : > { %v509_v17 = vrot.slane %v508_v16, 1 }
 0x223   : > { %v510_v18 = vadd.f32 %v509_v17, %v508_v16 }
 0x225   : > { %699 = vpush %v510_v18 }
 0x256   : > { %s700_s11 = spop %699 }
 0x257   : > { %s520_s12 = smul.f32 %s700_s11, %s698_s6 }
 0x259   : > { %s522_s13 = sadd.f32 1e-05, %s520_s12 }
 0x25b   : > { %v523_v19 = vstv %s522_s13 }
 0x25c   : > { %722 = vrsqrt.f32 %v523_v19  ;;  %vm530_vm13 = vweird.f32 %v523_v19 }
 0x262   : > { %v723_v20 = vpop.eup %722 }
 0x263   : > { %v525_v21 = vmul.f32 %v723_v20, %v523_v19  ;;  %vm531_vm12 = vweird.f32 %v723_v20 }
 0x264   : > { %vm532_vm14 = vmor %vm530_vm13, %vm531_vm12 }
 0x265   : > { %v526_v22 = vmul.f32 %v723_v20, %v525_v21 }
 0x267   : > { %v527_v23 = vmul.f32 0.5, %v526_v22 }
 0x269   : > { %v528_v24 = vsub.f32 1.5, %v527_v23 }
 0x26b   : > { %v529_v25 = vmul.f32 %v723_v20, %v528_v24 }
 0x26d   : > { %v533_v26 = vsel %vm532_vm14, %v723_v20, %v529_v25 }
 0x26e   : > { %701 = vpush %v533_v26 }
 0x29f   : > { %s702_s17 = spop %701 }
 0x2a0   : > { %v535_v27 = vstv %s702_s17 }
 0x2a1   : > { %536 = vst [vmem:[%s241_s16] sm:$0x1] %v535_v27 }
 0x2a2 PF: > { %s16_s18 = sadd.s32 1, %s730_s18  }
 0x2a3   : > { %p13_p4 = scmp.ge.s32.totalorder %s16_s18, 4  }
 0x2a5   :  { %15 = sbr.rel (!%p13_p4) target bundleno = 1 (0x1), region = 88 }

// kernel: pool_stem_forward.8
= control target key start
LH: loop header
LB: loop body
LE: loop exit
PB: predicated region body
PF: predicated region fallthrough
CT: control target
= control target key end

     0   :  { %s1202_s27 = smov 0   ;;  %s1663_s0 = inlined_call_operand.vmem [shape: f32[2,8,8,32], index: 0, kind: input, shape index: {}]   ;;  %s1664_s1 = inlined_call_operand.vmem [shape: f32[1,32], index: 1, kind: input, shape index: {}]   ;;  %s1665_s2 = inlined_call_operand.vmem [shape: f32[1,32], index: 2, kind: input, shape index: {}]   ;;  %s1666_s3 = inlined_call_operand.vmem [shape: f32[1,32], index: 3, kind: input, shape index: {}]   ;;  %s1667_s4 = inlined_call_operand.vmem [shape: f32[2,1,128], index: 4, kind: input, shape index: {}]   ;;  %s1668_s5 = inlined_call_operand.vmem [shape: f32[2,1,128], index: 5, kind: input, shape index: {}]   ;;  %s1669_s6 = inlined_call_operand.vmem [shape: f32[2,8,8,32], index: 6, kind: output, shape index: {0}]   ;;  %s1670_s7 = inlined_call_operand.vmem [shape: f32[2,1,128], index: 7, kind: output, shape index: {1}]   ;;  %s1671_s8 = inlined_call_operand.vmem [shape: f32[2,1,128], index: 8, kind: output, shape index: {2}]  }
   0x1 LB: > { %s1097_s28 = sadd.s32 4294967295, %s1153_s27   ;;  %p1101_p0 = scmp.ge.s32.totalorder %s1153_s27, 1  ;;  %s1153_s27 = sphi %s1202_s27, %s19_s27  }
   0x2   : > { %p283_p1 = scmp.lt.s32.totalorder %s1153_s27, 3 }
   0x4   : > { %p284_p2 = pnand %p1101_p0, %p283_p1 }
   0x6   : > { %287 = sbr.rel (%p284_p2) target bundleno = 702 (0x2be), region = 44 }
   0xb   : > { %p329_p3 = scmp.lt.s32.totalorder %s1097_s28, 1  ;;  %v1155_v0 = vmov 0   ;;  %v1132_v9 = vld [vmem:[%s1664_s1] ss:$0 sm:$0xff]  ;;  %vm473_vm0 = vcmask 1042432   ;;  %vm506_vm1 = vcmask 1046528  }
   0xc   : > { %1129 = vset.pattern.permute.xlu0 %v1155_v0  ;;  %v1133_v17 = vld [vmem:[%s1665_s2] ss:$0 sm:$0xff]  ;;  %vm547_vm2 = vcmask 1045504   ;;  %vm588_vm3 = vcmask 1044480   ;;  %vm629_vm4 = vcmask 1043456   ;;  %vm710_vm7 = vcmask 1041408  }
   0xd   : > { %s1704_s28 = smov (!%p329_p3, %s1097_s28), 1 }
   0xe   : > { %s336_s9 = scalar_lea.vmem %s1667_s4, %s1704_s28  ;;  %s339_s12 = scalar_lea.vmem %s1668_s5, %s1704_s28 }
   0xf   : > { %v1130_v1 = vld [vmem:[%s336_s9] ss:$0 sm:$0xff]  ;;  %s1109_s13 = sshll.u32 %s1704_s28, 6  ;;  %s347_s10 = scalar_lea.vmem %s1670_s7, %s1704_s28 }
  0x10   : > { %366 = vperm.xlu0 %1129, %v1130_v1   ;;  %v1131_v2 = vld [vmem:[%s339_s12] ss:$0 sm:$0xff]  ;;  %s1226_s16 = scalar_lea.vmem %s1663_s0, %s1109_s13  ;;  %s1599_s25 = scalar_lea.vmem %s1669_s6, %s1109_s13 }
  0x11   : > { %v1229_v4 = vld [vmem:[%s1226_s16] sm:$0xff]  ;;  %v1232_v5 = vld [vmem:[%s1226_s16 + $0x8] sm:$0xff]  ;;  %v1235_v6 = vld [vmem:[%s1226_s16 + $0x10] sm:$0xff]  ;;  %s350_s17 = scalar_lea.vmem %s1671_s8, %s1704_s28 }
  0x12   : > { %1679 = vst [vmem:[#allocation2_spill] sm:$0xff] %v1232_v5  ;;  %v1238_v7 = vld [vmem:[%s1226_s16 + $0x18] sm:$0xff]  ;;  %v1241_v8 = vld [vmem:[%s1226_s16 + $0x20] sm:$0xff]  ;;  %v1250_v13 = vld [vmem:[%s1226_s16 + $0x28] sm:$0xff] }
  0x13   : > { %1680 = vst [vmem:[#allocation3_spill] sm:$0xff] %v1235_v6  ;;  %v1265_v32 = vld [vmem:[%s1226_s16 + $0x30] sm:$0xff]  ;;  %v1275_v39 = vld [vmem:[%s1226_s16 + $0x38] sm:$0xff] }
  0x14   : > { %1681 = vst [vmem:[#allocation4_spill] sm:$0xff] %v1238_v7 }
  0x15   : > { %1682 = vst [vmem:[#allocation5_spill] sm:$0xff] %v1241_v8 }
  0x16   : > { %1683 = vst [vmem:[#allocation6_spill] sm:$0xff] %v1250_v13 }
  0x17   : > { %1684 = vst [vmem:[#allocation7_spill] sm:$0xff] %v1265_v32 }
  0x18   : > { %380 = vperm.xlu0 %1129, %v1131_v2   ;;  %1685 = vst [vmem:[#allocation8_spill] sm:$0xff] %v1275_v39 }
  0x82   : > { %v367_v3 = vpop.permute.xlu0 %366 }
  0x83   : > { %v369_v10 = vsub.f32 %v1229_v4, %v367_v3  ;;  %v370_v11 = vsub.f32 %v1232_v5, %v367_v3  ;;  %v371_v12 = vsub.f32 %v1235_v6, %v367_v3  ;;  %v372_v14 = vsub.f32 %v1238_v7, %v367_v3 }
  0x84   : > { %v373_v16 = vsub.f32 %v1241_v8, %v367_v3  ;;  %v374_v22 = vsub.f32 %v1250_v13, %v367_v3  ;;  %v375_v37 = vsub.f32 %v1265_v32, %v367_v3  ;;  %v376_v45 = vsub.f32 %v1275_v39, %v367_v3 }
  0x8a   : > { %v381_v15 = vpop.permute.xlu0 %380 }
  0x8b   : > { %v383_v18 = vmul.f32 %v381_v15, %v369_v10  ;;  %v384_v19 = vmul.f32 %v381_v15, %v370_v11  ;;  %v385_v20 = vmul.f32 %v381_v15, %v371_v12  ;;  %v386_v21 = vmul.f32 %v381_v15, %v372_v14 }
  0x8c   : > { %v387_v23 = vmul.f32 %v381_v15, %v373_v16  ;;  %v388_v30 = vmul.f32 %v381_v15, %v374_v22  ;;  %v389_v41 = vmul.f32 %v381_v15, %v375_v37  ;;  %v390_v48 = vmul.f32 %v381_v15, %v376_v45 }
  0x8d   : > { %v394_v24 = vmul.f32 %v1132_v9, %v383_v18  ;;  %v395_v25 = vmul.f32 %v1132_v9, %v384_v19  ;;  %v396_v26 = vmul.f32 %v1132_v9, %v385_v20  ;;  %v397_v27 = vmul.f32 %v1132_v9, %v386_v21 }
  0x8e   : > { %v398_v33 = vmul.f32 %v1132_v9, %v387_v23  ;;  %v399_v38 = vmul.f32 %v1132_v9, %v388_v30  ;;  %v400_v49 = vmul.f32 %v1132_v9, %v389_v41  ;;  %v401_v55 = vmul.f32 %v1132_v9, %v390_v48 }
  0x8f   : > { %v1258_v28 = vadd.f32 %v1133_v17, %v395_v25  ;;  %v1260_v29 = vadd.f32 %v1133_v17, %v396_v26  ;;  %v1262_v31 = vadd.f32 %v1133_v17, %v394_v24  ;;  %v1267_v34 = vadd.f32 %v1133_v17, %v397_v27 }
  0x90   : > { %v1277_v40 = vadd.f32 %v1133_v17, %v398_v33  ;;  %v1284_v46 = vadd.f32 %v1133_v17, %v399_v38  ;;  %v1294_v56 = vadd.f32 %v1133_v17, %v400_v49  ;;  %v1301_v62 = vadd.f32 %v1133_v17, %v401_v55 }
  0x91   : > { %v414_v35 = vadd.f32 %v1258_v28, %v1262_v31  ;;  %v415_v36 = vadd.f32 %v1260_v29, %v1258_v28  ;;  %v416_v42 = vadd.f32 %v1267_v34, %v1260_v29 }
  0x92   : > { %v417_v47 = vadd.f32 %v1277_v40, %v1267_v34  ;;  %v418_v53 = vadd.f32 %v1284_v46, %v1277_v40 }
  0x93   : > { %v420_v43 = vadd.f32 %v414_v35, %v1260_v29  ;;  %v421_v44 = vadd.f32 %v415_v36, %v1267_v34  ;;  %v422_v50 = vadd.f32 %v416_v42, %v1277_v40 }
  0x94   : > { %v423_v54 = vadd.f32 %v417_v47, %v1284_v46  ;;  %v424_v60 = vadd.f32 %v418_v53, %v1294_v56 }
  0x95   : > { %v426_v51 = vadd.f32 %v420_v43, %v1267_v34  ;;  %v427_v52 = vadd.f32 %v421_v44, %v1277_v40  ;;  %v428_v57 = vadd.f32 %v422_v50, %v1284_v46 }
  0x96   : > { %v429_v61 = vadd.f32 %v423_v54, %v1294_v56  ;;  %v430_v2 = vadd.f32 %v424_v60, %v1301_v62 }
  0x97   : > { %v432_v58 = vadd.f32 %v426_v51, %v1277_v40  ;;  %v433_v59 = vadd.f32 %v427_v52, %v1284_v46  ;;  %v434_v63 = vadd.f32 %v428_v57, %v1294_v56  ;;  %v457_v12 = vrot.slane %v426_v51, 5 }
  0x98   : > { %v435_v3 = vadd.f32 %v429_v61, %v1301_v62  ;;  %v464_v15 = vrot.slane %v430_v2, 5 }
  0x99   : > { %v438_v0 = vadd.f32 %v432_v58, %v1284_v46  ;;  %v439_v1 = vadd.f32 %v433_v59, %v1294_v56  ;;  %v440_v9 = vadd.f32 %v434_v63, %v1301_v62  ;;  %v458_v14 = vrot.slane %v432_v58, 5 }
  0x9a   : > { %v463_v17 = vrot.slane %v435_v3, 5  ;;  %v1312_v21 = vsel %vm473_vm0, 0.0, %v457_v12  ;;  %v1318_v23 = vsel %vm473_vm0, 0.0, %v464_v15  ;;  %v1321_v24 = vsel %vm473_vm0, %v457_v12, 0.0 }
  0x9b   : > { %v444_v10 = vadd.f32 %v438_v0, %v1294_v56  ;;  %v445_v11 = vadd.f32 %v439_v1, %v1301_v62  ;;  %v459_v16 = vrot.slane %v438_v0, 5  ;;  %v462_v19 = vrot.slane %v440_v9, 5 }
  0x9c   : > { %v1315_v22 = vsel %vm473_vm0, 0.0, %v458_v14  ;;  %v1327_v26 = vsel %vm473_vm0, 0.0, %v463_v17  ;;  %v1330_v27 = vsel %vm473_vm0, %v458_v14, 0.0  ;;  %v1333_v30 = vsel %vm473_vm0, %v463_v17, 0.0 }
  0x9d   : > { %v460_v18 = vrot.slane %v444_v10, 5  ;;  %v461_v20 = vrot.slane %v445_v11, 5  ;;  %v1324_v25 = vsel %vm473_vm0, 0.0, %v459_v16  ;;  %v1339_v35 = vsel %vm473_vm0, 0.0, %v462_v19 }
  0x9e   : > { %v1342_v36 = vsel %vm473_vm0, %v459_v16, 0.0  ;;  %v1354_v42 = vsel %vm473_vm0, %v462_v19, 0.0  ;;  %v1357_v43 = vsel %vm473_vm0, %v464_v15, 0.0  ;;  %v507_v44 = vrot.slane %v1312_v21, 1 }
  0x9f   : > { %v1336_v33 = vsel %vm473_vm0, 0.0, %v460_v18  ;;  %v1345_v37 = vsel %vm473_vm0, %v460_v18, 0.0  ;;  %v1348_v38 = vsel %vm473_vm0, 0.0, %v461_v20  ;;  %v1351_v41 = vsel %vm473_vm0, %v461_v20, 0.0 }
  0xa0   : > { %v508_v45 = vrot.slane %v1321_v24, 1  ;;  %v510_v47 = vrot.slane %v1315_v22, 1  ;;  %v511_v48 = vrot.slane %v1330_v27, 1  ;;  %v513_v49 = vrot.slane %v1324_v25, 1 }
  0xa1   : > { %v514_v50 = vrot.slane %v1342_v36, 1  ;;  %v516_v51 = vrot.slane %v1336_v33, 1  ;;  %v517_v52 = vrot.slane %v1345_v37, 1  ;;  %v519_v53 = vrot.slane %v1348_v38, 1 }
  0xa2   : > { %v520_v54 = vrot.slane %v1351_v41, 1  ;;  %v522_v55 = vrot.slane %v1339_v35, 1  ;;  %v523_v57 = vrot.slane %v1354_v42, 1  ;;  %v525_v58 = vrot.slane %v1327_v26, 1 }
  0xa3   : > { %v526_v59 = vrot.slane %v1333_v30, 1  ;;  %v528_v60 = vrot.slane %v1318_v23, 1  ;;  %v529_v61 = vrot.slane %v1357_v43, 1  ;;  %v509_v63 = vsel %vm506_vm1, %v507_v44, %v508_v45 }
  0xa4   : > { %v512_v0 = vsel %vm506_vm1, %v510_v47, %v511_v48  ;;  %v515_v1 = vsel %vm506_vm1, %v513_v49, %v514_v50  ;;  %v518_v2 = vsel %vm506_vm1, %v516_v51, %v517_v52  ;;  %v521_v3 = vsel %vm506_vm1, %v519_v53, %v520_v54 }
  0xa5   : > { %v524_v9 = vsel %vm506_vm1, %v522_v55, %v523_v57  ;;  %v527_v10 = vsel %vm506_vm1, %v525_v58, %v526_v59  ;;  %v530_v11 = vsel %vm506_vm1, %v528_v60, %v529_v61  ;;  %v539_v12 = vadd.f32 %v509_v63, %v1312_v21 }
  0xa6   : > { %v540_v14 = vadd.f32 %v512_v0, %v1315_v22  ;;  %v548_v15 = vrot.slane %v1312_v21, 2  ;;  %v549_v16 = vrot.slane %v1321_v24, 2  ;;  %v551_v17 = vrot.slane %v1315_v22, 2 }
  0xa7   : > { %v552_v18 = vrot.slane %v1330_v27, 2  ;;  %v554_v19 = vrot.slane %v1324_v25, 2  ;;  %v555_v20 = vrot.slane %v1342_v36, 2  ;;  %v557_v44 = vrot.slane %v1336_v33, 2 }
  0xa8   : > { %v558_v45 = vrot.slane %v1345_v37, 2  ;;  %v560_v47 = vrot.slane %v1348_v38, 2  ;;  %v561_v48 = vrot.slane %v1351_v41, 2  ;;  %v563_v49 = vrot.slane %v1339_v35, 2 }
  0xa9   : > { %v564_v50 = vrot.slane %v1354_v42, 2  ;;  %v541_v51 = vadd.f32 %v515_v1, %v1324_v25  ;;  %v542_v52 = vadd.f32 %v518_v2, %v1336_v33  ;;  %v566_v53 = vrot.slane %v1327_v26, 2 }
  0xaa   : > { %v567_v54 = vrot.slane %v1333_v30, 2  ;;  %v543_v55 = vadd.f32 %v521_v3, %v1348_v38  ;;  %v544_v57 = vadd.f32 %v524_v9, %v1339_v35  ;;  %v545_v58 = vadd.f32 %v527_v10, %v1327_v26 }
  0xab   : > { %v546_v59 = vadd.f32 %v530_v11, %v1318_v23  ;;  %v550_v60 = vsel %vm547_vm2, %v548_v15, %v549_v16  ;;  %v553_v61 = vsel %vm547_vm2, %v551_v17, %v552_v18  ;;  %v556_v63 = vsel %vm547_vm2, %v554_v19, %v555_v20 }
  0xac   : > { %v559_v0 = vsel %vm547_vm2, %v557_v44, %v558_v45  ;;  %v562_v1 = vsel %vm547_vm2, %v560_v47, %v561_v48  ;;  %v565_v2 = vsel %vm547_vm2, %v563_v49, %v564_v50  ;;  %v569_v3 = vrot.slane %v1318_v23, 2 }
  0xad   : > { %v570_v9 = vrot.slane %v1357_v43, 2  ;;  %v568_v10 = vsel %vm547_vm2, %v566_v53, %v567_v54  ;;  %v580_v39 = vadd.f32 %v550_v60, %v539_v12  ;;  %v581_v11 = vadd.f32 %v553_v61, %v540_v14 }
  0xae   : > { %v582_v8 = vadd.f32 %v556_v63, %v541_v51  ;;  %v589_v15 = vrot.slane %v1312_v21, 3  ;;  %v590_v16 = vrot.slane %v1321_v24, 3  ;;  %v592_v17 = vrot.slane %v1315_v22, 3 }
  0xaf   : > { %v593_v18 = vrot.slane %v1330_v27, 3  ;;  %v595_v19 = vrot.slane %v1324_v25, 3  ;;  %v596_v20 = vrot.slane %v1342_v36, 3  ;;  %v598_v44 = vrot.slane %v1336_v33, 3 }
  0xb0   : > { %v599_v45 = vrot.slane %v1345_v37, 3  ;;  %v601_v12 = vrot.slane %v1348_v38, 3  ;;  %v602_v14 = vrot.slane %v1351_v41, 3  ;;  %v604_v47 = vrot.slane %v1339_v35, 3 }
  0xb1   : > { %v605_v48 = vrot.slane %v1354_v42, 3  ;;  %v571_v49 = vsel %vm547_vm2, %v569_v3, %v570_v9  ;;  %v583_v50 = vadd.f32 %v559_v0, %v542_v52  ;;  %v607_v51 = vrot.slane %v1327_v26, 3 }
  0xb2   : > { %v608_v53 = vrot.slane %v1333_v30, 3  ;;  %v584_v54 = vadd.f32 %v562_v1, %v543_v55  ;;  %v585_v60 = vadd.f32 %v565_v2, %v544_v57  ;;  %v586_v61 = vadd.f32 %v568_v10, %v545_v58 }
  0xb3   : > { %v587_v63 = vadd.f32 %v571_v49, %v546_v59  ;;  %v591_v7 = vsel %vm588_vm3, %v589_v15, %v590_v16  ;;  %v594_v32 = vsel %vm588_vm3, %v592_v17, %v593_v18  ;;  %v597_v13 = vsel %vm588_vm3, %v595_v19, %v596_v20 }
  0xb4   : > { %v600_v6 = vsel %vm588_vm3, %v598_v44, %v599_v45  ;;  %v603_v5 = vsel %vm588_vm3, %v601_v12, %v602_v14  ;;  %v606_v52 = vsel %vm588_vm3, %v604_v47, %v605_v48  ;;  %v610_v0 = vrot.slane %v1318_v23, 3 }
  0xb5   : > { %v611_v3 = vrot.slane %v1357_v43, 3  ;;  %v609_v55 = vsel %vm588_vm3, %v607_v51, %v608_v53  ;;  %v621_v57 = vadd.f32 %v591_v7, %v580_v39  ;;  %v622_v58 = vadd.f32 %v594_v32, %v581_v11 }
  0xb6   : > { %v623_v59 = vadd.f32 %v597_v13, %v582_v8  ;;  %v630_v1 = vrot.slane %v1312_v21, 4  ;;  %v631_v2 = vrot.slane %v1321_v24, 4  ;;  %v633_v9 = vrot.slane %v1315_v22, 4 }
  0xb7   : > { %v634_v10 = vrot.slane %v1330_v27, 4  ;;  %v636_v15 = vrot.slane %v1324_v25, 4  ;;  %v637_v16 = vrot.slane %v1342_v36, 4  ;;  %v639_v17 = vrot.slane %v1336_v33, 4 }
  0xb8   : > { %v640_v18 = vrot.slane %v1345_v37, 4  ;;  %v642_v7 = vrot.slane %v1348_v38, 4  ;;  %v643_v8 = vrot.slane %v1351_v41, 4  ;;  %v645_v13 = vrot.slane %v1339_v35, 4 }
  0xb9   : > { %v646_v32 = vrot.slane %v1354_v42, 4  ;;  %v612_v39 = vsel %vm588_vm3, %v610_v0, %v611_v3  ;;  %v624_v11 = vadd.f32 %v600_v6, %v583_v50  ;;  %v648_v19 = vrot.slane %v1327_v26, 4 }
  0xba   : > { %v649_v20 = vrot.slane %v1333_v30, 4  ;;  %v625_v44 = vadd.f32 %v603_v5, %v584_v54  ;;  %v626_v45 = vadd.f32 %v606_v52, %v585_v60  ;;  %v651_v12 = vrot.slane %v1318_v23, 4 }
  0xbb   : > { %v652_v14 = vrot.slane %v1357_v43, 4  ;;  %v627_v47 = vadd.f32 %v609_v55, %v586_v61  ;;  %v628_v48 = vadd.f32 %v612_v39, %v587_v63  ;;  %v632_v49 = vsel %vm629_vm4, %v630_v1, %v631_v2 }
  0xbc   : > { %v635_v51 = vsel %vm629_vm4, %v633_v9, %v634_v10  ;;  %v638_v53 = vsel %vm629_vm4, %v636_v15, %v637_v16  ;;  %v641_v6 = vsel %vm629_vm4, %v639_v17, %v640_v18  ;;  %v644_v50 = vsel %vm629_vm4, %v642_v7, %v643_v8 }
  0xbd   : > { %v647_v0 = vsel %vm629_vm4, %v645_v13, %v646_v32  ;;  %v650_v5 = vsel %vm629_vm4, %v648_v19, %v649_v20  ;;  %v662_v54 = vadd.f32 %v632_v49, %v621_v57  ;;  %v663_v60 = vadd.f32 %v635_v51, %v622_v58 }
  0xbe   : > { %v664_v52 = vadd.f32 %v638_v53, %v623_v59  ;;  %v653_v61 = vsel %vm629_vm4, %v651_v12, %v652_v14  ;;  %v665_v63 = vadd.f32 %v641_v6, %v624_v11  ;;  %v666_v3 = vadd.f32 %v644_v50, %v625_v44 }
  0xbf   : > { %v755_v55 = vlaneseq  ;;  %v667_v1 = vadd.f32 %v647_v0, %v626_v45  ;;  %v668_v2 = vadd.f32 %v650_v5, %v627_v47  ;;  %v669_v9 = vadd.f32 %v653_v61, %v628_v48 }
  0xc0   : > { %v670_v10 = vrot.slane %v1312_v21, 5  ;;  %v671_v15 = vrot.slane %v1321_v24, 5  ;;  %v673_v16 = vrot.slane %v1315_v22, 5  ;;  %v674_v17 = vrot.slane %v1330_v27, 5 }
  0xc1   : > { %v756_v18 = vshrl.u32 %v755_v55, 7  ;;  %v676_v57 = vrot.slane %v1324_v25, 5  ;;  %v677_v58 = vrot.slane %v1342_v36, 5  ;;  %v679_v59 = vrot.slane %v1336_v33, 5 }
  0xc2   : > { %v680_v7 = vrot.slane %v1345_v37, 5  ;;  %v682_v8 = vrot.slane %v1348_v38, 5  ;;  %v683_v13 = vrot.slane %v1351_v41, 5  ;;  %v685_v11 = vrot.slane %v1339_v35, 5 }
  0xc3   : > { %v757_v32 = vadd.s32 3, %v756_v18  ;;  %v1106_v39 = vadd.s32 4294967293, %v756_v18  ;;  %v686_v19 = vrot.slane %v1354_v42, 5  ;;  %v688_v20 = vrot.slane %v1327_v26, 5 }
  0xc4   : > { %v689_v44 = vrot.slane %v1333_v30, 5  ;;  %v691_v45 = vrot.slane %v1318_v23, 5  ;;  %v692_v12 = vrot.slane %v1357_v43, 5  ;;  %v672_v14 = vsel %vm473_vm0, %v670_v10, %v671_v15 }
  0xc5   : > { %vm758_vm5 = vcmp.lt.s32.totalorder %v757_v32, 7  ;;  %vm761_vm6 = vcmp.gt.s32.totalorder %v1106_v39, 0  ;;  %v675_v47 = vsel %vm473_vm0, %v673_v16, %v674_v17  ;;  %v678_v51 = vsel %vm473_vm0, %v676_v57, %v677_v58 }
  0xc6   : > { %v759_v48 = vsel %vm758_vm5, %v757_v32, 7  ;;  %v762_v49 = vsel %vm761_vm6, %v1106_v39, 0  ;;  %v681_v53 = vsel %vm473_vm0, %v679_v59, %v680_v7  ;;  %v684_v6 = vsel %vm473_vm0, %v682_v8, %v683_v13 }
  0xc7   : > { %v763_v50 = vsub.s32 %v759_v48, %v762_v49  ;;  %v687_v0 = vsel %vm473_vm0, %v685_v11, %v686_v19  ;;  %v702_v5 = vadd.f32 %v672_v14, %v662_v54  ;;  %v703_v61 = vadd.f32 %v675_v47, %v663_v60 }
  0xc8   : > { %v704_v55 = vadd.f32 %v678_v51, %v664_v52  ;;  %v690_v18 = vsel %vm473_vm0, %v688_v20, %v689_v44  ;;  %v693_v10 = vsel %vm473_vm0, %v691_v45, %v692_v12  ;;  %v705_v15 = vadd.f32 %v681_v53, %v665_v63 }
  0xc9   : > { %v764_v16 = vadd.s32 1, %v763_v50  ;;  %v706_v17 = vadd.f32 %v684_v6, %v666_v3  ;;  %v707_v32 = vadd.f32 %v687_v0, %v667_v1  ;;  %v708_v39 = vadd.f32 %v690_v18, %v668_v2 }
  0xca   : > { %v711_v57 = vrot.slane %v1312_v21, 6  ;;  %v712_v58 = vrot.slane %v1321_v24, 6  ;;  %v714_v59 = vrot.slane %v1315_v22, 6  ;;  %v715_v54 = vrot.slane %v1330_v27, 6 }
  0xcb   : > { %v765_v7 = vcvt.s32.f32 %v764_v16  ;;  %v717_v60 = vrot.slane %v1324_v25, 6  ;;  %v718_v52 = vrot.slane %v1342_v36, 6  ;;  %v720_v63 = vrot.slane %v1336_v33, 6 }
  0xcc   : > { %v721_v3 = vrot.slane %v1345_v37, 6  ;;  %v723_v21 = vrot.slane %v1348_v38, 6  ;;  %v724_v22 = vrot.slane %v1351_v41, 6  ;;  %v726_v24 = vrot.slane %v1339_v35, 6 }
  0xcd   : > { %v766_v1 = vmul.f32 4.0, %v765_v7  ;;  %v1495_v2 = vmul.f32 5.0, %v765_v7  ;;  %v1497_v8 = vmul.f32 6.0, %v765_v7  ;;  %v727_v27 = vrot.slane %v1354_v42, 6 }
  0xce   : > { %v709_v25 = vadd.f32 %v693_v10, %v669_v9  ;;  %v713_v36 = vsel %vm710_vm7, %v711_v57, %v712_v58  ;;  %v1504_v13 = vmul.f32 7.0, %v765_v7  ;;  %v716_v33 = vsel %vm710_vm7, %v714_v59, %v715_v54 }
  0xcf   : > { %1135 = vrcp.f32 %v766_v1  ;;  %v729_v37 = vrot.slane %v1327_v26, 6  ;;  %v730_v11 = vrot.slane %v1333_v30, 6  ;;  %v719_v38 = vsel %vm710_vm7, %v717_v60, %v718_v52 }
  0xd0   : > { %1137 = vrcp.f32 %v1495_v2  ;;  %v732_v35 = vrot.slane %v1318_v23, 6  ;;  %v733_v41 = vrot.slane %v1357_v43, 6  ;;  %v722_v42 = vsel %vm710_vm7, %v720_v63, %v721_v3 }
  0xd1   : > { %1139 = vrcp.f32 %v1497_v8  ;;  %v725_v9 = vsel %vm710_vm7, %v723_v21, %v724_v22  ;;  %v728_v19 = vsel %vm710_vm7, %v726_v24, %v727_v27  ;;  %v1517_v20 = vadd.f32 %v713_v36, %v702_v5 }
  0xd2   : > { %v1519_v26 = vadd.f32 %v716_v33, %v703_v61  ;;  %v779_v30 = vand.u32 2147483647, %v766_v1  ;;  %v781_v44 = vand.u32 2147483648, %v766_v1  ;;  %1141 = vrcp.f32 %v1504_v13 }
  0xd3   : > { %v731_v23 = vsel %vm710_vm7, %v729_v37, %v730_v11  ;;  %v1523_v45 = vadd.f32 %v719_v38, %v704_v55  ;;  %v1525_v43 = vadd.f32 %v722_v42, %v705_v15  ;;  %v796_v12 = vand.u32 2147483648, %v1495_v2 }
  0xd4   : > { %v734_v47 = vsel %vm710_vm7, %v732_v35, %v733_v41  ;;  %v1529_v48 = vadd.f32 %v725_v9, %v706_v17  ;;  %v748_v49 = vadd.f32 %v728_v19, %v707_v32  ;;  %v749_v51 = vadd.f32 %v731_v23, %v708_v39 }
  0xd5   : > { %v1136_v14 = vpop.eup %1135  ;;  %vm775_vm8 = vweird.f32 %v766_v1  ;;  %vm790_vm9 = vweird.f32 %v1495_v2  ;;  %v794_v50 = vand.u32 2147483647, %v1495_v2  ;;  %vm1533_vm10 = vcmp.eq.f32.partialorder %v779_v30, 8.507059e+37 }
  0xd6   : > { %v1138_v53 = vpop.eup %1137  ;;  %v771_v6 = vmul.f32 %v1136_v14, %v766_v1  ;;  %v782_v61 = vor.u32 1.1754944e-38, %v781_v44  ;;  %vm805_vm11 = vweird.f32 %v1497_v8  ;;  %vm776_vm12 = vweird.f32 %v1136_v14 }
  0xd7   : > { %v1140_v0 = vpop.eup %1139  ;;  %v786_v55 = vmul.f32 %v1138_v53, %v1495_v2  ;;  %v797_v10 = vor.u32 1.1754944e-38, %v796_v12  ;;  %vm791_vm13 = vweird.f32 %v1138_v53  ;;  %v809_v32 = vand.u32 2147483647, %v1497_v8  ;;  %vm1544_vm15 = vmor %vm775_vm8, %vm776_vm12 }
  0xd8   : > { %v772_v18 = vsub.f32 1.0, %v771_v6  ;;  %v801_v15 = vmul.f32 %v1140_v0, %v1497_v8  ;;  %v1142_v16 = vpop.eup %1141  ;;  %v811_v39 = vand.u32 2147483648, %v1497_v8  ;;  %vm806_vm14 = vweird.f32 %v1140_v0  ;;  %vm1553_vm1 = vmor %vm790_vm9, %vm791_vm13 }
  0xd9   : > { %v787_v17 = vsub.f32 1.0, %v786_v55  ;;  %v816_v59 = vmul.f32 %v1142_v16, %v1504_v13  ;;  %vm820_vm0 = vweird.f32 %v1504_v13  ;;  %v824_v60 = vand.u32 2147483647, %v1504_v13  ;;  %vm1560_vm4 = vmor %vm805_vm11, %vm806_vm14 }
  0xda   : > { %v773_v57 = vmul.f32 %v1136_v14, %v772_v18  ;;  %v802_v58 = vsub.f32 1.0, %v801_v15  ;;  %v826_v52 = vand.u32 2147483648, %v1504_v13  ;;  %vm821_vm2 = vweird.f32 %v1142_v16  ;;  %v1134_v13 = vld [vmem:[%s1666_s3] ss:$0 sm:$0xff]  ;;  %v1697_v15 = vld [vmem:[#allocation3_spill] sm:$0xff] }
  0xdb   : > { %v788_v54 = vmul.f32 %v1138_v53, %v787_v17  ;;  %v817_v1 = vsub.f32 1.0, %v816_v59  ;;  %v750_v22 = vadd.f32 %v734_v47, %v709_v25  ;;  %vm795_vm3 = vcmp.eq.f32.partialorder %v794_v50, 8.507059e+37  ;;  %vm1572_vm6 = vmor %vm820_vm0, %vm821_vm2  ;;  %v1698_v17 = vld [vmem:[#allocation6_spill] sm:$0xff]  ;;  %v1701_v59 = vld [vmem:[#allocation5_spill] sm:$0xff] }
  0xdc   : > { %v774_v63 = vadd.f32 %v1136_v14, %v773_v57  ;;  %v803_v21 = vmul.f32 %v1140_v0, %v802_v58  ;;  %v812_v36 = vor.u32 1.1754944e-38, %v811_v39  ;;  %vm810_vm5 = vcmp.eq.f32.partialorder %v809_v32, 8.507059e+37  ;;  %v1700_v57 = vld [vmem:[#allocation4_spill] sm:$0xff] }
  0xdd   : > { %v789_v24 = vadd.f32 %v1138_v53, %v788_v54  ;;  %v818_v37 = vmul.f32 %v1142_v16, %v817_v1  ;;  %vm825_vm7 = vcmp.eq.f32.partialorder %v824_v60, 8.507059e+37  ;;  %v827_v38 = vor.u32 1.1754944e-38, %v826_v52  ;;  %v1702_v52 = vld [vmem:[#allocation8_spill] sm:$0xff] }
  0xde   : > { %v778_v2 = vsel %vm1544_vm15, %v1136_v14, %v774_v63  ;;  %v804_v33 = vadd.f32 %v1140_v0, %v803_v21  ;;  %vm866_vm8 = vcmask 261120  }
  0xdf   : > { %v783_v11 = vsel %vm1533_vm10, %v782_v61, %v778_v2  ;;  %v793_v25 = vsel %vm1553_vm1, %v1138_v53, %v789_v24  ;;  %v819_v42 = vadd.f32 %v1142_v16, %v818_v37 }
  0xe0   : > { %v798_v35 = vsel %vm795_vm3, %v797_v10, %v793_v25  ;;  %v808_v41 = vsel %vm1560_vm4, %v1140_v0, %v804_v33  ;;  %v830_v9 = vmul.f32 %v783_v11, %v1517_v20  ;;  %v837_v23 = vmul.f32 %v783_v11, %v750_v22 }
  0xe1   : > { %v813_v19 = vsel %vm810_vm5, %v812_v36, %v808_v41  ;;  %v831_v30 = vmul.f32 %v798_v35, %v1519_v26  ;;  %v836_v44 = vmul.f32 %v798_v35, %v749_v51  ;;  %v823_v12 = vsel %vm1572_vm6, %v1142_v16, %v819_v42 }
  0xe2   : > { %v832_v14 = vmul.f32 %v813_v19, %v1523_v45  ;;  %v835_v47 = vmul.f32 %v813_v19, %v748_v49  ;;  %v839_v53 = vsub.f32 %v830_v9, %v1262_v31  ;;  %v828_v6 = vsel %vm825_vm7, %v827_v38, %v823_v12 }
  0xe3   : > { %v840_v20 = vsub.f32 %v831_v30, %v1258_v28  ;;  %v845_v26 = vsub.f32 %v836_v44, %v1294_v56  ;;  %v846_v51 = vsub.f32 %v837_v23, %v1301_v62  ;;  %v833_v50 = vmul.f32 %v828_v6, %v1525_v43  ;;  %v1696_v43 = vld [vmem:[#allocation2_spill] sm:$0xff] }
  0xe4   : > { %v834_v0 = vmul.f32 %v828_v6, %v1529_v48  ;;  %v841_v5 = vsub.f32 %v832_v14, %v1260_v29  ;;  %v844_v61 = vsub.f32 %v835_v47, %v1284_v46  ;;  %v850_v55 = vmul.f32 %v1134_v13, %v839_v53 }
  0xe5   : > { %v851_v45 = vmul.f32 %v1134_v13, %v840_v20  ;;  %v856_v49 = vmul.f32 %v1134_v13, %v845_v26  ;;  %v842_v28 = vsub.f32 %v833_v50, %v1267_v34  ;;  %v857_v62 = vmul.f32 %v1134_v13, %v846_v51  ;;  %v1699_v34 = vld [vmem:[#allocation7_spill] sm:$0xff] }
  0xe6   : > { %v843_v31 = vsub.f32 %v834_v0, %v1277_v40  ;;  %v852_v56 = vmul.f32 %v1134_v13, %v841_v5  ;;  %v855_v29 = vmul.f32 %v1134_v13, %v844_v61  ;;  %v858_v46 = vadd.f32 %v850_v55, %v1229_v4 }
  0xe7   : > { %v859_v48 = vadd.f32 %v851_v45, %v1696_v43  ;;  %v853_v18 = vmul.f32 %v1134_v13, %v842_v28  ;;  %v1608_v40 = vadd.f32 %v856_v49, %v1699_v34  ;;  %v865_v63 = vadd.f32 %v857_v62, %v1702_v52 }
  0xe8   : > { %v854_v10 = vmul.f32 %v1134_v13, %v843_v31  ;;  %v860_v16 = vadd.f32 %v852_v56, %v1697_v15  ;;  %v863_v32 = vadd.f32 %v855_v29, %v1698_v17  ;;  %867 = vst.msk [vmem:[%s1599_s25] sm:$0xff] %vm866_vm8, %v858_v46  ;;  %v875_v4 = vsel %vm866_vm8, %v858_v46, 0.0 }
  0xe9   : > { %v876_v39 = vsel %vm866_vm8, %v859_v48, 0.0  ;;  %v861_v58 = vadd.f32 %v853_v18, %v1700_v57  ;;  %868 = vst.msk [vmem:[%s1599_s25 + $0x8] sm:$0xff] %vm866_vm8, %v859_v48  ;;  %v886_v2 = vsel %vm866_vm8, %v1608_v40, 0.0  ;;  %v888_v37 = vsel %vm866_vm8, %v865_v63, 0.0 }
  0xea   : > { %v862_v7 = vadd.f32 %v854_v10, %v1701_v59  ;;  %v877_v54 = vadd.f32 %v876_v39, %v875_v4  ;;  %v878_v60 = vsel %vm866_vm8, %v860_v16, 0.0  ;;  %869 = vst.msk [vmem:[%s1599_s25 + $0x10] sm:$0xff] %vm866_vm8, %v860_v16  ;;  %v884_v27 = vsel %vm866_vm8, %v863_v32, 0.0 }
  0xeb   : > { %v880_v21 = vsel %vm866_vm8, %v861_v58, 0.0  ;;  %872 = vst.msk [vmem:[%s1599_s25 + $0x28] sm:$0xff] %vm866_vm8, %v863_v32  ;;  %v1156_v25 = vmov 2048.0  }
  0xec   : > { %871 = vst.msk [vmem:[%s1599_s25 + $0x20] sm:$0xff] %vm866_vm8, %v862_v7  ;;  %v879_v3 = vadd.f32 %v878_v60, %v877_v54  ;;  %v882_v22 = vsel %vm866_vm8, %v862_v7, 0.0  ;;  %1143 = vrcp.f32 %v1156_v25 }
  0xed   : > { %873 = vst.msk [vmem:[%s1599_s25 + $0x30] sm:$0xff] %vm866_vm8, %v1608_v40 }
  0xee   : > { %v881_v1 = vadd.f32 %v880_v21, %v879_v3  ;;  %874 = vst.msk [vmem:[%s1599_s25 + $0x38] sm:$0xff] %vm866_vm8, %v865_v63 }
  0xef   : > { %870 = vst.msk [vmem:[%s1599_s25 + $0x18] sm:$0xff] %vm866_vm8, %v861_v58 }
  0xf0   : > { %v883_v24 = vadd.f32 %v882_v22, %v881_v1 }
  0xf2   : > { %v885_v36 = vadd.f32 %v884_v27, %v883_v24  ;;  %v1144_v8 = vpop.eup %1143 }
  0xf3   : > { %v900_v38 = vmul.f32 2048.0, %v1144_v8  ;;  %vm904_vm9 = vweird.f32 %v1144_v8 }
  0xf4   : > { %v887_v33 = vadd.f32 %v886_v2, %v885_v36 }
  0xf5   : > { %v901_v35 = vsub.f32 1.0, %v900_v38 }
  0xf6   : > { %v889_v11 = vadd.f32 %v888_v37, %v887_v33 }
  0xf7   : > { %v902_v19 = vmul.f32 %v1144_v8, %v901_v35 }
  0xf8   : > { %890 = vadd.xlane.f32.xlu1 %v889_v11 }
  0xf9   : > { %v903_v23 = vadd.f32 %v1144_v8, %v902_v19 }
  0xfb   : > { %v905_v14 = vsel %vm904_vm9, %v1144_v8, %v903_v23 }
 0x16b   : > { %v891_v41 = vpop.xlane.xlu1 %890 }
 0x16c   : > { %v892_v42 = vrot.slane %v891_v41, 4 }
 0x16e   : > { %v893_v9 = vadd.f32 %v892_v42, %v891_v41 }
 0x170   : > { %v894_v30 = vrot.slane %v893_v9, 2 }
 0x172   : > { %v895_v44 = vadd.f32 %v894_v30, %v893_v9 }
 0x174   : > { %v896_v13 = vrot.slane %v895_v44, 1 }
 0x176   : > { %v897_v12 = vadd.f32 %v896_v13, %v895_v44 }
 0x178   : > { %1111 = vpush %v897_v12 }
 0x179   : > { %1113 = vpush %v905_v14 }
 0x1a9   : > { %s1112_s26 = spop %1111 }
 0x1aa   : > { %s1639_s29 = spop %1113 }
 0x1ab   : > { %s907_s11 = smul.f32 %s1639_s29, %s1112_s26 }
 0x1ad   : > { %v908_v47 = vstv %s907_s11 }
 0x1ae   : > { %958 = vst [vmem:[%s347_s10] sm:$0x1] %v908_v47  ;;  %v909_v53 = vsub.f32 %v858_v46, %v908_v47  ;;  %v910_v6 = vsub.f32 %v859_v48, %v908_v47  ;;  %v911_v20 = vsub.f32 %v860_v16, %v908_v47  ;;  %v912_v26 = vsub.f32 %v861_v58, %v908_v47 }
 0x1af   : > { %v913_v51 = vsub.f32 %v862_v7, %v908_v47  ;;  %v914_v61 = vsub.f32 %v863_v32, %v908_v47  ;;  %v915_v31 = vsub.f32 %v1608_v40, %v908_v47  ;;  %v916_v46 = vsub.f32 %v865_v63, %v908_v47 }
 0x1b0   : > { %v917_v50 = vmul.f32 %v909_v53, %v909_v53  ;;  %v918_v0 = vmul.f32 %v910_v6, %v910_v6  ;;  %v919_v5 = vmul.f32 %v911_v20, %v911_v20  ;;  %v920_v55 = vmul.f32 %v912_v26, %v912_v26 }
 0x1b1   : > { %v921_v56 = vmul.f32 %v913_v51, %v913_v51  ;;  %v922_v43 = vmul.f32 %v914_v61, %v914_v61  ;;  %v923_v10 = vmul.f32 %v915_v31, %v915_v31  ;;  %v924_v17 = vmul.f32 %v916_v46, %v916_v46 }
 0x1b2   : > { %v925_v45 = vsel %vm866_vm8, %v917_v50, 0.0  ;;  %v926_v49 = vsel %vm866_vm8, %v918_v0, 0.0  ;;  %v928_v29 = vsel %vm866_vm8, %v919_v5, 0.0  ;;  %v930_v48 = vsel %vm866_vm8, %v920_v55, 0.0 }
 0x1b3   : > { %v927_v28 = vadd.f32 %v926_v49, %v925_v45  ;;  %v932_v15 = vsel %vm866_vm8, %v921_v56, 0.0  ;;  %v934_v32 = vsel %vm866_vm8, %v922_v43, 0.0  ;;  %v936_v40 = vsel %vm866_vm8, %v923_v10, 0.0 }
 0x1b4   : > { %v938_v39 = vsel %vm866_vm8, %v924_v17, 0.0 }
 0x1b5   : > { %v929_v62 = vadd.f32 %v928_v29, %v927_v28 }
 0x1b7   : > { %v931_v18 = vadd.f32 %v930_v48, %v929_v62 }
 0x1b9   : > { %v933_v16 = vadd.f32 %v932_v15, %v931_v18 }
 0x1bb   : > { %v935_v34 = vadd.f32 %v934_v32, %v933_v16 }
 0x1bd   : > { %v937_v4 = vadd.f32 %v936_v40, %v935_v34 }
 0x1bf   : > { %v939_v57 = vadd.f32 %v938_v39, %v937_v4 }
 0x1c1   : > { %940 = vadd.xlane.f32.xlu1 %v939_v57 }
 0x234   : > { %v941_v58 = vpop.xlane.xlu1 %940 }
 0x235   : > { %v942_v59 = vrot.slane %v941_v58, 4 }
 0x237   : > { %v943_v7 = vadd.f32 %v942_v59, %v941_v58 }
 0x239   : > { %v944_v54 = vrot.slane %v943_v7, 2 }
 0x23b   : > { %v945_v60 = vadd.f32 %v944_v54, %v943_v7 }
 0x23d   : > { %v946_v52 = vrot.slane %v945_v60, 1 }
 0x23f   : > { %v947_v63 = vadd.f32 %v946_v52, %v945_v60 }
 0x241   : > { %1115 = vpush %v947_v63 }
 0x272   : > { %s1116_s12 = spop %1115 }
 0x273   : > { %s957_s13 = smul.f32 %s1116_s12, %s1639_s29 }
 0x275   : > { %s959_s14 = sadd.f32 1e-05, %s957_s13 }
 0x277   : > { %v960_v3 = vstv %s959_s14 }
 0x278   : > { %1145 = vrsqrt.f32 %v960_v3  ;;  %vm967_vm11 = vweird.f32 %v960_v3 }
 0x27e   : > { %v1146_v21 = vpop.eup %1145 }
 0x27f   : > { %v962_v1 = vmul.f32 %v1146_v21, %v960_v3  ;;  %vm968_vm10 = vweird.f32 %v1146_v21 }
 0x280   : > { %vm969_vm12 = vmor %vm967_vm11, %vm968_vm10 }
 0x281   : > { %v963_v22 = vmul.f32 %v1146_v21, %v962_v1 }
 0x283   : > { %v964_v24 = vmul.f32 0.5, %v963_v22 }
 0x285   : > { %v965_v27 = vsub.f32 1.5, %v964_v24 }
 0x287   : > { %v966_v36 = vmul.f32 %v1146_v21, %v965_v27 }
 0x289   : > { %v970_v2 = vsel %vm969_vm12, %v1146_v21, %v966_v36 }
 0x28a   : > { %1117 = vpush %v970_v2 }
 0x2bb   : > { %s1118_s18 = spop %1117 }
 0x2bc   : > { %v972_v33 = vstv %s1118_s18 }
 0x2bd   : > { %973 = vst [vmem:[%s350_s17] sm:$0x1] %v972_v33 }
 0x2be PF: > { %s19_s27 = sadd.s32 1, %s1153_s27  }
 0x2bf   : > { %p16_p4 = scmp.ge.s32.totalorder %s19_s27, 4  }
 0x2c1   :  { %18 = sbr.rel (!%p16_p4) target bundleno = 1 (0x1), region = 104 }

// kernel: pool_stem_forward.11
= control target key start
LH: loop header
LB: loop body
LE: loop exit
PB: predicated region body
PF: predicated region fallthrough
CT: control target
= control target key end

     0   :  { %s867_s27 = smov 0   ;;  %s946_s0 = inlined_call_operand.vmem [shape: f32[2,4,4,128], index: 0, kind: input, shape index: {}]   ;;  %s947_s1 = inlined_call_operand.vmem [shape: f32[1,128], index: 1, kind: input, shape index: {}]   ;;  %s948_s2 = inlined_call_operand.vmem [shape: f32[1,128], index: 2, kind: input, shape index: {}]   ;;  %s949_s3 = inlined_call_operand.vmem [shape: f32[1,128], index: 3, kind: input, shape index: {}]   ;;  %s950_s4 = inlined_call_operand.vmem [shape: f32[2,1,128], index: 4, kind: input, shape index: {}]   ;;  %s951_s5 = inlined_call_operand.vmem [shape: f32[2,1,128], index: 5, kind: input, shape index: {}]   ;;  %s952_s6 = inlined_call_operand.vmem [shape: f32[2,4,4,128], index: 6, kind: output, shape index: {0}]   ;;  %s953_s7 = inlined_call_operand.vmem [shape: f32[2,1,128], index: 7, kind: output, shape index: {1}]   ;;  %s954_s8 = inlined_call_operand.vmem [shape: f32[2,1,128], index: 8, kind: output, shape index: {2}]  }
   0x1 LB: > { %s766_s28 = sadd.s32 4294967295, %s817_s27   ;;  %p770_p0 = scmp.ge.s32.totalorder %s817_s27, 1  ;;  %s817_s27 = sphi %s867_s27, %s19_s27  }
   0x2   : > { %p283_p1 = scmp.lt.s32.totalorder %s817_s27, 3 }
   0x4   : > { %p284_p2 = pnand %p770_p0, %p283_p1 }
   0x5   : > { %p329_p3 = scmp.lt.s32.totalorder (!%p284_p2), %s766_s28, 1 }
   0x6   : > { %287 = sbr.rel (%p284_p2) target bundleno = 628 (0x274), region = 44 }
   0xb   : > { %v819_v0 = vmov 0   ;;  %s956_s28 = smov (!%p329_p3, %s766_s28), 1  ;;  %v516_v3 = vlaneseq  ;;  %v802_v16 = vld [vmem:[%s947_s1] ss:$0 sm:$0xff]  ;;  %vm417_vm1 = vcmask 1042432   ;;  %vm422_vm2 = vcmask 1046528  }
   0xc   : > { %799 = vset.pattern.permute.xlu0 %v819_v0  ;;  %s336_s9 = scalar_lea.vmem %s950_s4, %s956_s28  ;;  %s339_s12 = scalar_lea.vmem %s951_s5, %s956_s28  ;;  %v803_v22 = vld [vmem:[%s948_s2] ss:$0 sm:$0xff]  ;;  %v820_v53 = vmov 0.0   ;;  %vm497_vm6 = vcmask 1041408   ;;  %vm567_vm8 = vcmask 1043456  }
   0xd   : > { %v800_v1 = vld [vmem:[%s336_s9] ss:$0 sm:$0xff]  ;;  %v517_v4 = vshrl.u32 %v516_v3, 7  ;;  %s778_s13 = sshll.u32 %s956_s28, 4  ;;  %v481_v54 = vrot.slane %v820_v53, 5  ;;  %v499_v58 = vrot.slane %v820_v53, 6  ;;  %s347_s10 = scalar_lea.vmem %s953_s7, %s956_s28 }
   0xe   : > { %362 = vperm.xlu0 %799, %v800_v1   ;;  %v801_v2 = vld [vmem:[%s339_s12] ss:$0 sm:$0xff]  ;;  %s333_s16 = scalar_lea.vmem %s946_s0, %s778_s13  ;;  %s344_s25 = scalar_lea.vmem %s952_s6, %s778_s13 }
   0xf   : > { %v775_v5 = vadd.s32 4294967293, %v517_v4  ;;  %v891_v11 = vld [vmem:[%s333_s16] sm:$0xf]  ;;  %v893_v12 = vld [vmem:[%s333_s16 + $0x4] sm:$0xf]  ;;  %s350_s17 = scalar_lea.vmem %s954_s8, %s956_s28 }
  0x10   : > { %v895_v14 = vld [vmem:[%s333_s16 + $0x8] sm:$0xf]  ;;  %v897_v15 = vld [vmem:[%s333_s16 + $0xc] sm:$0xf]  ;;  %v804_v4 = vld [vmem:[%s949_s3] ss:$0 sm:$0xff] }
  0x11   : > { %vm522_vm0 = vcmp.gt.s32.totalorder %v775_v5, 0 }
  0x12   : > { %v523_v6 = vsel %vm522_vm0, %v775_v5, 0 }
  0x13   : > { %v524_v7 = vsub.s32 3, %v523_v6 }
  0x15   : > { %v525_v8 = vadd.s32 1, %v524_v7 }
  0x16   : > { %372 = vperm.xlu0 %799, %v801_v2  }
  0x17   : > { %v526_v10 = vcvt.s32.f32 %v525_v8 }
  0x19   : > { %v527_v13 = vmul.f32 4.0, %v526_v10 }
  0x1b   : > { %805 = vrcp.f32 %v527_v13  ;;  %vm533_vm3 = vweird.f32 %v527_v13  ;;  %v539_v48 = vand.u32 2147483648, %v527_v13  ;;  %v537_v50 = vand.u32 2147483647, %v527_v13 }
  0x1d   : > { %v540_v59 = vor.u32 1.1754944e-38, %v539_v48  ;;  %vm538_vm7 = vcmp.eq.f32.partialorder %v537_v50, 8.507059e+37 }
  0x21   : > { %v806_v33 = vpop.eup %805 }
  0x22   : > { %v529_v36 = vmul.f32 %v806_v33, %v527_v13  ;;  %vm534_vm4 = vweird.f32 %v806_v33 }
  0x23   : > { %vm535_vm5 = vmor %vm533_vm3, %vm534_vm4 }
  0x24   : > { %v530_v40 = vsub.f32 1.0, %v529_v36 }
  0x26   : > { %v531_v44 = vmul.f32 %v806_v33, %v530_v40 }
  0x28   : > { %v532_v49 = vadd.f32 %v806_v33, %v531_v44 }
  0x2a   : > { %v536_v61 = vsel %vm535_vm5, %v806_v33, %v532_v49 }
  0x2b   : > { %v541_v1 = vsel %vm538_vm7, %v540_v59, %v536_v61 }
  0x80   : > { %v363_v9 = vpop.permute.xlu0 %362 }
  0x81   : > { %v365_v17 = vsub.f32 %v891_v11, %v363_v9  ;;  %v366_v18 = vsub.f32 %v893_v12, %v363_v9  ;;  %v367_v19 = vsub.f32 %v895_v14, %v363_v9  ;;  %v368_v20 = vsub.f32 %v897_v15, %v363_v9 }
  0x88   : > { %v373_v21 = vpop.permute.xlu0 %372 }
  0x89   : > { %v375_v23 = vmul.f32 %v373_v21, %v365_v17  ;;  %v376_v24 = vmul.f32 %v373_v21, %v366_v18  ;;  %v377_v25 = vmul.f32 %v373_v21, %v367_v19  ;;  %v378_v26 = vmul.f32 %v373_v21, %v368_v20 }
  0x8b   : > { %v382_v27 = vmul.f32 %v802_v16, %v375_v23  ;;  %v383_v28 = vmul.f32 %v802_v16, %v376_v24  ;;  %v384_v29 = vmul.f32 %v802_v16, %v377_v25  ;;  %v385_v30 = vmul.f32 %v802_v16, %v378_v26 }
  0x8d   : > { %v389_v31 = vadd.f32 %v803_v22, %v382_v27  ;;  %v390_v32 = vadd.f32 %v803_v22, %v383_v28  ;;  %v391_v34 = vadd.f32 %v803_v22, %v384_v29  ;;  %v392_v37 = vadd.f32 %v803_v22, %v385_v30 }
  0x8f   : > { %v394_v35 = vadd.f32 %v390_v32, %v389_v31 }
  0x91   : > { %v396_v38 = vadd.f32 %v394_v35, %v391_v34 }
  0x93   : > { %v398_v39 = vadd.f32 %v396_v38, %v392_v37 }
  0x95   : > { %v409_v41 = vrot.slane %v398_v39, 5 }
  0x97   : > { %v418_v42 = vsel %vm417_vm1, 0.0, %v409_v41 }
  0x98   : > { %v423_v43 = vsel %vm422_vm2, %v418_v42, 0.0 }
  0x99   : > { %v431_v45 = vrot.slane %v423_v43, 1  ;;  %v443_v47 = vrot.slane %v423_v43, 2  ;;  %v455_v52 = vrot.slane %v423_v43, 3  ;;  %v480_v55 = vrot.slane %v423_v43, 5 }
  0x9a   : > { %v467_v57 = vrot.slane %v423_v43, 4  ;;  %v498_v60 = vrot.slane %v423_v43, 6 }
  0x9b   : > { %v439_v46 = vadd.f32 %v431_v45, %v423_v43  ;;  %v482_v63 = vsel %vm417_vm1, %v480_v55, %v481_v54 }
  0x9c   : > { %v500_v2 = vsel %vm497_vm6, %v498_v60, %v499_v58 }
  0x9d   : > { %v451_v51 = vadd.f32 %v443_v47, %v439_v46 }
  0x9f   : > { %v463_v56 = vadd.f32 %v455_v52, %v451_v51 }
  0xa1   : > { %v475_v62 = vadd.f32 %v467_v57, %v463_v56 }
  0xa3   : > { %v493_v0 = vadd.f32 %v482_v63, %v475_v62 }
  0xa5   : > { %v511_v3 = vadd.f32 %v500_v2, %v493_v0 }
  0xa7   : > { %v543_v5 = vmul.f32 %v541_v1, %v511_v3 }
  0xa9   : > { %v548_v6 = vsub.f32 %v543_v5, %v389_v31  ;;  %v549_v7 = vsub.f32 %v543_v5, %v390_v32  ;;  %v550_v8 = vsub.f32 %v543_v5, %v391_v34  ;;  %v551_v9 = vsub.f32 %v543_v5, %v392_v37 }
  0xab   : > { %v555_v10 = vmul.f32 %v804_v4, %v548_v6  ;;  %v556_v13 = vmul.f32 %v804_v4, %v549_v7  ;;  %v557_v16 = vmul.f32 %v804_v4, %v550_v8  ;;  %v558_v17 = vmul.f32 %v804_v4, %v551_v9 }
  0xad   : > { %v559_v18 = vadd.f32 %v555_v10, %v891_v11  ;;  %v560_v19 = vadd.f32 %v556_v13, %v893_v12  ;;  %v561_v20 = vadd.f32 %v557_v16, %v895_v14  ;;  %v562_v21 = vadd.f32 %v558_v17, %v897_v15 }
  0xae   : > { %v821_v12 = vmov 2048.0  }
  0xaf   : > { %563 = vst [vmem:[%s344_s25] sm:$0xf] %v559_v18  ;;  %v568_v22 = vsel %vm567_vm8, %v559_v18, 0.0  ;;  %v569_v23 = vsel %vm567_vm8, %v560_v19, 0.0  ;;  %v571_v25 = vsel %vm567_vm8, %v561_v20, 0.0  ;;  %v573_v11 = vsel %vm567_vm8, %v562_v21, 0.0 }
  0xb0   : > { %564 = vst [vmem:[%s344_s25 + $0x4] sm:$0xf] %v560_v19  ;;  %v570_v24 = vadd.f32 %v569_v23, %v568_v22  ;;  %807 = vrcp.f32 %v821_v12 }
  0xb1   : > { %565 = vst [vmem:[%s344_s25 + $0x8] sm:$0xf] %v561_v20 }
  0xb2   : > { %566 = vst [vmem:[%s344_s25 + $0xc] sm:$0xf] %v562_v21  ;;  %v572_v26 = vadd.f32 %v571_v25, %v570_v24 }
  0xb4   : > { %v574_v27 = vadd.f32 %v573_v11, %v572_v26 }
  0xb6   : > { %575 = vadd.xlane.f32.xlu1 %v574_v27  ;;  %v808_v14 = vpop.eup %807 }
  0xb7   : > { %v585_v15 = vmul.f32 2048.0, %v808_v14  ;;  %vm589_vm9 = vweird.f32 %v808_v14 }
  0xb9   : > { %v586_v28 = vsub.f32 1.0, %v585_v15 }
  0xbb   : > { %v587_v32 = vmul.f32 %v808_v14, %v586_v28 }
  0xbd   : > { %v588_v35 = vadd.f32 %v808_v14, %v587_v32 }
  0xbf   : > { %v590_v38 = vsel %vm589_vm9, %v808_v14, %v588_v35 }
 0x129   : > { %v576_v29 = vpop.xlane.xlu1 %575 }
 0x12a   : > { %v577_v30 = vrot.slane %v576_v29, 4 }
 0x12c   : > { %v578_v31 = vadd.f32 %v577_v30, %v576_v29 }
 0x12e   : > { %v579_v33 = vrot.slane %v578_v31, 2 }
 0x130   : > { %v580_v34 = vadd.f32 %v579_v33, %v578_v31 }
 0x132   : > { %v581_v36 = vrot.slane %v580_v34, 1 }
 0x134   : > { %v582_v37 = vadd.f32 %v581_v36, %v580_v34 }
 0x136   : > { %780 = vpush %v582_v37 }
 0x137   : > { %782 = vpush %v590_v38 }
 0x167   : > { %s781_s26 = spop %780 }
 0x168   : > { %s927_s29 = spop %782 }
 0x169   : > { %s592_s11 = smul.f32 %s927_s29, %s781_s26 }
 0x16b   : > { %v593_v39 = vstv %s592_s11 }
 0x16c   : > { %v594_v40 = vsub.f32 %v559_v18, %v593_v39  ;;  %v595_v41 = vsub.f32 %v560_v19, %v593_v39  ;;  %627 = vst [vmem:[%s347_s10] sm:$0x1] %v593_v39  ;;  %v596_v42 = vsub.f32 %v561_v20, %v593_v39  ;;  %v597_v43 = vsub.f32 %v562_v21, %v593_v39 }
 0x16e   : > { %v598_v44 = vmul.f32 %v594_v40, %v594_v40  ;;  %v599_v45 = vmul.f32 %v595_v41, %v595_v41  ;;  %v600_v46 = vmul.f32 %v596_v42, %v596_v42  ;;  %v601_v47 = vmul.f32 %v597_v43, %v597_v43 }
 0x170   : > { %v602_v48 = vsel %vm567_vm8, %v598_v44, 0.0  ;;  %v603_v49 = vsel %vm567_vm8, %v599_v45, 0.0  ;;  %v605_v51 = vsel %vm567_vm8, %v600_v46, 0.0  ;;  %v607_v53 = vsel %vm567_vm8, %v601_v47, 0.0 }
 0x171   : > { %v604_v50 = vadd.f32 %v603_v49, %v602_v48 }
 0x173   : > { %v606_v52 = vadd.f32 %v605_v51, %v604_v50 }
 0x175   : > { %v608_v54 = vadd.f32 %v607_v53, %v606_v52 }
 0x177   : > { %609 = vadd.xlane.f32.xlu1 %v608_v54 }
 0x1ea   : > { %v610_v55 = vpop.xlane.xlu1 %609 }
 0x1eb   : > { %v611_v56 = vrot.slane %v610_v55, 4 }
 0x1ed   : > { %v612_v57 = vadd.f32 %v611_v56, %v610_v55 }
 0x1ef   : > { %v613_v58 = vrot.slane %v612_v57, 2 }
 0x1f1   : > { %v614_v59 = vadd.f32 %v613_v58, %v612_v57 }
 0x1f3   : > { %v615_v60 = vrot.slane %v614_v59, 1 }
 0x1f5   : > { %v616_v61 = vadd.f32 %v615_v60, %v614_v59 }
 0x1f7   : > { %784 = vpush %v616_v61 }
 0x228   : > { %s785_s12 = spop %784 }
 0x229   : > { %s626_s13 = smul.f32 %s785_s12, %s927_s29 }
 0x22b   : > { %s628_s14 = sadd.f32 1e-05, %s626_s13 }
 0x22d   : > { %v629_v62 = vstv %s628_s14 }
 0x22e   : > { %809 = vrsqrt.f32 %v629_v62  ;;  %vm636_vm11 = vweird.f32 %v629_v62 }
 0x234   : > { %v810_v63 = vpop.eup %809 }
 0x235   : > { %v631_v0 = vmul.f32 %v810_v63, %v629_v62  ;;  %vm637_vm10 = vweird.f32 %v810_v63 }
 0x236   : > { %vm638_vm12 = vmor %vm636_vm11, %vm637_vm10 }
 0x237   : > { %v632_v1 = vmul.f32 %v810_v63, %v631_v0 }
 0x239   : > { %v633_v2 = vmul.f32 0.5, %v632_v1 }
 0x23b   : > { %v634_v3 = vsub.f32 1.5, %v633_v2 }
 0x23d   : > { %v635_v4 = vmul.f32 %v810_v63, %v634_v3 }
 0x23f   : > { %v639_v5 = vsel %vm638_vm12, %v810_v63, %v635_v4 }
 0x240   : > { %786 = vpush %v639_v5 }
 0x271   : > { %s787_s18 = spop %786 }
 0x272   : > { %v641_v6 = vstv %s787_s18 }
 0x273   : > { %642 = vst [vmem:[%s350_s17] sm:$0x1] %v641_v6 }
 0x274 PF: > { %s19_s27 = sadd.s32 1, %s817_s27  }
 0x275   : > { %p16_p4 = scmp.ge.s32.totalorder %s19_s27, 4  }
 0x277   :  { %18 = sbr.rel (!%p16_p4) target bundleno = 1 (0x1), region = 104 }

// kernel: pool_stem_forward.12
= control target key start
LH: loop header
LB: loop body
LE: loop exit
PB: predicated region body
PF: predicated region fallthrough
CT: control target
= control target key end

     0   :  { %s1655_s13 = smov 0   ;;  %s1657_s14 = smov 0   ;;  %s2158_s0 = inlined_call_operand.vmem [shape: f32[2,16,128], index: 0, kind: input, shape index: {}]   ;;  %s2159_s1 = inlined_call_operand.vmem [shape: f32[1,128], index: 1, kind: input, shape index: {}]   ;;  %s2160_s2 = inlined_call_operand.vmem [shape: f32[1,128], index: 2, kind: input, shape index: {}]   ;;  %s2161_s3 = inlined_call_operand.vmem [shape: bf16[128,384], index: 3, kind: input, shape index: {}]   ;;  %s2162_s4 = inlined_call_operand.vmem [shape: f32[1,384], index: 4, kind: input, shape index: {}]   ;;  %s2163_s5 = inlined_call_operand.vmem [shape: bf16[384,128], index: 5, kind: input, shape index: {}]   ;;  %s2164_s6 = inlined_call_operand.vmem [shape: f32[1,128], index: 6, kind: input, shape index: {}]   ;;  %s2165_s7 = inlined_call_operand.vmem [shape: f32[1,128], index: 7, kind: input, shape index: {}]   ;;  %s2166_s8 = inlined_call_operand.vmem [shape: f32[2,1,128], index: 8, kind: input, shape index: {}]   ;;  %s2167_s9 = inlined_call_operand.vmem [shape: f32[2,1,128], index: 9, kind: input, shape index: {}]   ;;  %s2168_s10 = inlined_call_operand.vmem [shape: f32[2,16,128], index: 10, kind: output, shape index: {}]  }
   0x1   :  { %s1659_s15 = smov 0  }
   0x2 LB: > { %s32_s16 = sadd.s32 1, %s1593_s14  ;;  %p1270_p0 = scmp.ge.s32.totalorder %s1597_s15, 1  ;;  %s1597_s15 = sphi %s1659_s15, %s20_s15   ;;  %s1593_s14 = sphi %s1657_s14, %s2176_s14   ;;  %s1589_s13 = sphi %s1655_s13, %s2175_s13  }
   0x3   : > { %p34_p1 = scmp.ge.s32.totalorder %s32_s16, 2  ;;  %p349_p2 = scmp.lt.s32.totalorder %s1597_s15, 3 }
   0x5   : > { %s2178_s16 = smov (%p34_p1, %s32_s16), 0  ;;  %p350_p3 = pnand %p1270_p0, %p349_p2 }
   0x6   : > { %p402_p4 = scmp.lt.s32.totalorder (!%p350_p3), %s1589_s13, 1 }
   0x7   : > { %353 = sbr.rel (%p350_p3) target bundleno = 493 (0x1ed), region = 60 }
   0xc   : > { %v1361_v0 = vld [vmem:[%s2161_s3 + $0xa8] sm:$0xf]  ;;  %v1493_v1 = vld [vmem:[%s2161_s3 + $0xb0] sm:$0xf0]  ;;  %v1599_v2 = vmov 0   ;;  %s2180_s13 = smov (!%p402_p4, %s1589_s13), 1 }
   0xd   : > { %1544 = vset.pattern.permute.xlu0 %v1599_v2  ;;  %v1362_v3 = vor.u32 %v1493_v1, %v1361_v0  ;;  %v1492_v4 = vld [vmem:[%s2161_s3 + $0xac] sm:$0xf]  ;;  %v1363_v5 = vld [vmem:[%s2161_s3 + $0xb4] sm:$0xf0]  ;;  %v1369_v6 = vld [vmem:[%s2161_s3 + $0xb0] sm:$0xf]  ;;  %s413_s23 = scalar_lea.vmem %s2166_s8, %s2180_s13  ;;  %s416_s26 = scalar_lea.vmem %s2167_s9, %s2180_s13 }
   0xe   : > { %v1366_v7 = vor.u32 %v1492_v4, %v1363_v5  ;;  %v1494_v8 = vld [vmem:[%s2161_s3 + $0xb8] sm:$0xf0]  ;;  %v1349_v9 = vld [vmem:[%s2161_s3 + $0x90] sm:$0xf]  ;;  %v1489_v12 = vld [vmem:[%s2161_s3 + $0x94] sm:$0xf] }
   0xf   : > { %628 = vmatpush.bf16.msra.mxu0 %v1362_v3  ;;  %v1370_v10 = vor.u32 %v1494_v8, %v1369_v6  ;;  %v1490_v11 = vld [vmem:[%s2161_s3 + $0x98] sm:$0xf0]  ;;  %v1351_v13 = vld [vmem:[%s2161_s3 + $0x9c] sm:$0xf0]  ;;  %v1357_v16 = vld [vmem:[%s2161_s3 + $0x98] sm:$0xf] }
  0x10   : > { %642 = vmatpush.bf16.msra.mxu1 %v1366_v7  ;;  %v1350_v14 = vor.u32 %v1490_v11, %v1349_v9  ;;  %v1354_v15 = vor.u32 %v1489_v12, %v1351_v13  ;;  %v1491_v17 = vld [vmem:[%s2161_s3 + $0xa0] sm:$0xf0]  ;;  %v1337_v18 = vld [vmem:[%s2161_s3 + $0x78] sm:$0xf]  ;;  %v1545_v19 = vld [vmem:[%s413_s23] ss:$0 sm:$0xff] }
  0x11   : > { %656 = vmatpush.bf16.msra.mxu2 %v1370_v10  ;;  %v1358_v20 = vor.u32 %v1491_v17, %v1357_v16  ;;  %v1487_v21 = vld [vmem:[%s2161_s3 + $0x80] sm:$0xf0]  ;;  %v1486_v22 = vld [vmem:[%s2161_s3 + $0x7c] sm:$0xf]  ;;  %434 = vperm.xlu0 %1544, %v1545_v19   ;;  %v1339_v24 = vld [vmem:[%s2161_s3 + $0x84] sm:$0xf0] }
  0x12   : > { %v1338_v23 = vor.u32 %v1487_v21, %v1337_v18  ;;  %v1345_v25 = vld [vmem:[%s2161_s3 + $0x80] sm:$0xf]  ;;  %v1488_v26 = vld [vmem:[%s2161_s3 + $0x88] sm:$0xf0]  ;;  %v1342_v27 = vor.u32 %v1486_v22, %v1339_v24  ;;  %v1483_v31 = vld [vmem:[%s2161_s3 + $0x64] sm:$0xf] }
  0x13   : > { %629 = vmatpush.bf16.msra.mxu0 %v1350_v14  ;;  %v1325_v28 = vld [vmem:[%s2161_s3 + $0x60] sm:$0xf]  ;;  %v1484_v29 = vld [vmem:[%s2161_s3 + $0x68] sm:$0xf0]  ;;  %v1346_v30 = vor.u32 %v1488_v26, %v1345_v25  ;;  %v1327_v32 = vld [vmem:[%s2161_s3 + $0x6c] sm:$0xf0] }
  0x14   : > { %643 = vmatpush.bf16.msra.mxu1 %v1354_v15  ;;  %v1333_v33 = vld [vmem:[%s2161_s3 + $0x68] sm:$0xf]  ;;  %v1485_v34 = vld [vmem:[%s2161_s3 + $0x70] sm:$0xf0]  ;;  %v1546_v35 = vld [vmem:[%s416_s26] ss:$0 sm:$0xff]  ;;  %v1326_v36 = vor.u32 %v1484_v29, %v1325_v28  ;;  %v1330_v37 = vor.u32 %v1483_v31, %v1327_v32 }
  0x15   : > { %657 = vmatpush.bf16.msra.mxu2 %v1358_v20  ;;  %v1334_v38 = vor.u32 %v1485_v34, %v1333_v33  ;;  %v1313_v39 = vld [vmem:[%s2161_s3 + $0x48] sm:$0xf]  ;;  %v1481_v40 = vld [vmem:[%s2161_s3 + $0x50] sm:$0xf0]  ;;  %v1480_v41 = vld [vmem:[%s2161_s3 + $0x4c] sm:$0xf] }
  0x16   : > { %v1314_v42 = vor.u32 %v1481_v40, %v1313_v39  ;;  %v1315_v43 = vld [vmem:[%s2161_s3 + $0x54] sm:$0xf0]  ;;  %v1321_v45 = vld [vmem:[%s2161_s3 + $0x50] sm:$0xf]  ;;  %v1482_v46 = vld [vmem:[%s2161_s3 + $0x58] sm:$0xf0] }
  0x17   : > { %630 = vmatpush.bf16.msra.mxu0 %v1338_v23  ;;  %v1318_v44 = vor.u32 %v1480_v41, %v1315_v43  ;;  %v1301_v47 = vld [vmem:[%s2161_s3 + $0x30] sm:$0xf]  ;;  %v1322_v48 = vor.u32 %v1482_v46, %v1321_v45  ;;  %v1478_v49 = vld [vmem:[%s2161_s3 + $0x38] sm:$0xf0]  ;;  %v1477_v50 = vld [vmem:[%s2161_s3 + $0x34] sm:$0xf] }
  0x18   : > { %644 = vmatpush.bf16.msra.mxu1 %v1342_v27  ;;  %v1303_v51 = vld [vmem:[%s2161_s3 + $0x3c] sm:$0xf0]  ;;  %v1302_v52 = vor.u32 %v1478_v49, %v1301_v47  ;;  %v1309_v54 = vld [vmem:[%s2161_s3 + $0x38] sm:$0xf]  ;;  %v1479_v55 = vld [vmem:[%s2161_s3 + $0x40] sm:$0xf0] }
  0x19   : > { %658 = vmatpush.bf16.msra.mxu2 %v1346_v30  ;;  %442 = vperm.xlu0 %1544, %v1546_v35   ;;  %v1306_v53 = vor.u32 %v1477_v50, %v1303_v51  ;;  %v1310_v56 = vor.u32 %v1479_v55, %v1309_v54  ;;  %v1289_v57 = vld [vmem:[%s2161_s3 + $0x18] sm:$0xf]  ;;  %v1475_v58 = vld [vmem:[%s2161_s3 + $0x20] sm:$0xf0]  ;;  %v1474_v59 = vld [vmem:[%s2161_s3 + $0x1c] sm:$0xf] }
  0x1a   : > { %v1290_v60 = vor.u32 %v1475_v58, %v1289_v57  ;;  %v1291_v61 = vld [vmem:[%s2161_s3 + $0x24] sm:$0xf0]  ;;  %v1297_v62 = vld [vmem:[%s2161_s3 + $0x20] sm:$0xf]  ;;  %v1476_v63 = vld [vmem:[%s2161_s3 + $0x28] sm:$0xf0] }
  0x1b   : > { %631 = vmatpush.bf16.msra.mxu0 %v1326_v36  ;;  %v1294_v0 = vor.u32 %v1474_v59, %v1291_v61  ;;  %v1298_v1 = vor.u32 %v1476_v63, %v1297_v62  ;;  %v1277_v2 = vld [vmem:[%s2161_s3] sm:$0xf]  ;;  %v1472_v3 = vld [vmem:[%s2161_s3 + $0x8] sm:$0xf0]  ;;  %v1471_v4 = vld [vmem:[%s2161_s3 + $0x4] sm:$0xf] }
  0x1c   : > { %645 = vmatpush.bf16.msra.mxu1 %v1330_v37  ;;  %v1278_v5 = vor.u32 %v1472_v3, %v1277_v2  ;;  %v1279_v6 = vld [vmem:[%s2161_s3 + $0xc] sm:$0xf0]  ;;  %v1285_v7 = vld [vmem:[%s2161_s3 + $0x8] sm:$0xf]  ;;  %v1473_v8 = vld [vmem:[%s2161_s3 + $0x10] sm:$0xf0] }
  0x1d   : > { %659 = vmatpush.bf16.msra.mxu2 %v1334_v38  ;;  %v1282_v9 = vor.u32 %v1471_v4, %v1279_v6  ;;  %v1286_v10 = vor.u32 %v1473_v8, %v1285_v7  ;;  %s1469_s25 = sshll.u32 %s2180_s13, 4  ;;  %v1547_v16 = vld [vmem:[%s2159_s1] ss:$0 sm:$0xff]  ;;  %v1509_v2 = vld [vmem:[%s2163_s5 + $0x70] sm:$0xff] }
  0x1e   : > { %s409_s28 = scalar_lea.vmem %s2158_s0, %s1469_s25  ;;  %v1548_v18 = vld [vmem:[%s2160_s2] ss:$0 sm:$0xff]  ;;  %s425_s29 = scalar_lea.vmem %s2168_s10, %s1469_s25 }
  0x1f   : > { %632 = vmatpush.bf16.msra.mxu0 %v1314_v42  ;;  %v1833_v12 = vld [vmem:[%s409_s28] sm:$0xff]  ;;  %v1835_v13 = vld [vmem:[%s409_s28 + $0x8] sm:$0xff] }
  0x20   : > { %646 = vmatpush.bf16.msra.mxu1 %v1318_v44  ;;  %v492_v26 = vld [vmem:[%s2162_s4] sm:$0x7] }
  0x21   : > { %660 = vmatpush.bf16.msra.mxu2 %v1322_v48  ;;  %v494_v27 = vperm.slane %v492_v26, 0  ;;  %v495_v28 = vperm.slane %v492_v26, 1  ;;  %v496_v35 = vperm.slane %v492_v26, 2 }
  0x23   : > { %633 = vmatpush.bf16.msra.mxu0 %v1302_v52  ;;  %v1502_v52 = vld [vmem:[%s2163_s5 + $0x38] sm:$0xff] }
  0x24   : > { %647 = vmatpush.bf16.msra.mxu1 %v1306_v53  ;;  %1109 = vmatpush.bf16.msra.mxu3 %v1502_v52 }
  0x25   : > { %661 = vmatpush.bf16.msra.mxu2 %v1310_v56  ;;  %v1510_v56 = vld [vmem:[%s2163_s5 + $0x78] sm:$0xff] }
  0x27   : > { %634 = vmatpush.bf16.msra.mxu0 %v1290_v60 }
  0x28   : > { %648 = vmatpush.bf16.msra.mxu1 %v1294_v0 }
  0x29   : > { %662 = vmatpush.bf16.msra.mxu2 %v1298_v1  ;;  %v1501_v1 = vld [vmem:[%s2163_s5 + $0x30] sm:$0xff] }
  0x2a   : > { %1110 = vmatpush.bf16.msra.mxu3 %v1501_v1 }
  0x2b   : > { %635 = vmatpush.bf16.msra.mxu0 %v1278_v5 }
  0x2c   : > { %649 = vmatpush.bf16.msra.mxu1 %v1282_v9 }
  0x2d   : > { %663 = vmatpush.bf16.msra.mxu2 %v1286_v10 }
  0x2f   : > { %1123 = vmatpush.bf16.msrb.mxu0 %v1510_v56 }
  0x33   : > { %1124 = vmatpush.bf16.msrb.mxu0 %v1509_v2 }
  0x83   : > { %v435_v11 = vpop.permute.xlu0 %434 }
  0x84   : > { %v437_v14 = vsub.f32 %v1833_v12, %v435_v11  ;;  %v438_v15 = vsub.f32 %v1835_v13, %v435_v11 }
  0x8b   : > { %v443_v17 = vpop.permute.xlu0 %442 }
  0x8c   : > { %v445_v19 = vmul.f32 %v443_v17, %v437_v14  ;;  %v446_v20 = vmul.f32 %v443_v17, %v438_v15  ;;  %v1518_v15 = vld [vmem:[%s2163_s5 + $0xb8] sm:$0xff] }
  0x8d   : > { %1137 = vmatpush.bf16.msrb.mxu1 %v1518_v15  ;;  %v1515_v15 = vld [vmem:[%s2163_s5 + $0xa0] sm:$0xff] }
  0x8e   : > { %v451_v21 = vmul.f32 %v1547_v16, %v445_v19  ;;  %v452_v22 = vmul.f32 %v1547_v16, %v446_v20  ;;  %v1500_v20 = vld [vmem:[%s2163_s5 + $0x28] sm:$0xff] }
  0x8f   : > { %1111 = vmatpush.bf16.msra.mxu3 %v1500_v20 }
  0x90   : > { %v457_v23 = vadd.f32 %v1548_v18, %v451_v21  ;;  %v458_v24 = vadd.f32 %v1548_v18, %v452_v22  ;;  %v1508_v21 = vld [vmem:[%s2163_s5 + $0x68] sm:$0xff] }
  0x91   : > { %1125 = vmatpush.bf16.msrb.mxu0 %v1508_v21 }
  0x92   : > { %v459_v25 = vpack.c.bf16 %v458_v24, %v457_v23 }
  0x94   : > { %636 = vmatmul.bf16.vlgmr.msra.gmra.mxu0 %v459_v25  ;;  %650 = vmatmul.bf16.vlgmr.msra.gmra.mxu1 %v459_v25 }
  0x95   : > { %664 = vmatmul.bf16.vlgmr.msra.gmra.mxu2 %v459_v25 }
 0x111   : > { %v637_v29 = vpop.f32.mrf.mxu0  ;;  %v651_v30 = vpop.f32.mrf.mxu1 }
 0x112   : > { %v1848_v31 = vadd.f32 %v637_v29, %v494_v27  ;;  %v1850_v32 = vadd.f32 %v651_v30, %v495_v28 }
 0x114   : > { %v1853_v33 = vmul.f32 0.70710677, %v1848_v31  ;;  %v1856_v34 = vmul.f32 0.70710677, %v1850_v32 }
 0x116   : > { %v682_v36 = vand.u32 2147483647, %v1853_v33  ;;  %v683_v37 = vand.u32 2147483647, %v1856_v34 }
 0x118   : > { %v688_v38 = vmul.f32 0.3275911, %v682_v36  ;;  %v689_v39 = vmul.f32 0.3275911, %v683_v37  ;;  %v665_v40 = vpop.f32.mrf.mxu2  ;;  %v844_v53 = vsub.f32 0.0, %v682_v36  ;;  %v845_v54 = vsub.f32 0.0, %v683_v37 }
 0x119   : > { %v1860_v41 = vadd.f32 %v665_v40, %v496_v35  ;;  %v639_v42 = vpop.f32.mrf.mxu0  ;;  %v653_v45 = vpop.f32.mrf.mxu1 }
 0x11a   : > { %v1862_v43 = vadd.f32 1.0, %v688_v38  ;;  %v1864_v44 = vadd.f32 1.0, %v689_v39  ;;  %v1870_v47 = vadd.f32 %v639_v42, %v494_v27  ;;  %v1873_v48 = vadd.f32 %v653_v45, %v495_v28  ;;  %v1517_v28 = vld [vmem:[%s2163_s5 + $0xb0] sm:$0xff]  ;;  %v1499_v38 = vld [vmem:[%s2163_s5 + $0x20] sm:$0xff] }
 0x11b   : > { %v1867_v46 = vmul.f32 0.70710677, %v1860_v41  ;;  %v850_v4 = vmul.f32 %v844_v53, %v682_v36  ;;  %v851_v5 = vmul.f32 %v845_v54, %v683_v37  ;;  %v1507_v39 = vld [vmem:[%s2163_s5 + $0x60] sm:$0xff]  ;;  %1138 = vmatpush.bf16.msrb.mxu1 %v1517_v28  ;;  %1112 = vmatpush.bf16.msra.mxu3 %v1499_v38  ;;  %v1516_v53 = vld [vmem:[%s2163_s5 + $0xa8] sm:$0xff] }
 0x11c   : > { %1551 = vrcp.f32 %v1862_v43  ;;  %v1877_v51 = vmul.f32 0.70710677, %v1870_v47  ;;  %v1883_v55 = vmul.f32 0.70710677, %v1873_v48  ;;  %v711_v3 = vand.u32 2147483648, %v1862_v43  ;;  %1126 = vmatpush.bf16.msrb.mxu0 %v1507_v39  ;;  %v1514_v39 = vld [vmem:[%s2163_s5 + $0x98] sm:$0xff] }
 0x11d   : > { %1553 = vrcp.f32 %v1864_v44  ;;  %v684_v49 = vand.u32 2147483647, %v1867_v46  ;;  %v724_v10 = vand.u32 2147483647, %v1864_v44  ;;  %v726_v11 = vand.u32 2147483648, %v1864_v44 }
 0x11e   : > { %v1893_v59 = vand.u32 2147483647, %v1877_v51  ;;  %v1896_v61 = vand.u32 2147483647, %v1883_v55  ;;  %v1928_v22 = vor.u32 1.1754944e-38, %v711_v3  ;;  %vm720_vm1 = vweird.f32 %v1864_v44 }
 0x11f   : > { %v690_v50 = vmul.f32 0.3275911, %v684_v49  ;;  %v846_v14 = vsub.f32 0.0, %v684_v49  ;;  %v856_v23 = vmul.f32 1.442695, %v850_v4  ;;  %vm705_vm2 = vweird.f32 %v1862_v43  ;;  %1139 = vmatpush.bf16.msrb.mxu1 %v1516_v53 }
 0x120   : > { %v667_v62 = vpop.f32.mrf.mxu2  ;;  %v691_v7 = vmul.f32 0.3275911, %v1893_v59  ;;  %v692_v8 = vmul.f32 0.3275911, %v1896_v61  ;;  %v1934_v26 = vmul.f32 1.442695, %v851_v5 }
 0x121   : > { %v1890_v58 = vadd.f32 1.0, %v690_v50  ;;  %v1911_v9 = vadd.f32 %v667_v62, %v496_v35  ;;  %v727_v29 = vor.u32 1.1754944e-38, %v726_v11  ;;  %v852_v35 = vmul.f32 %v846_v14, %v684_v49 }
 0x122   : > { %v1888_v57 = vpop.eup %1551  ;;  %v1918_v18 = vadd.f32 1.0, %v691_v7  ;;  %v1920_v19 = vadd.f32 1.0, %v692_v8  ;;  %vm725_vm4 = vcmp.eq.f32.partialorder %v724_v10, 8.507059e+37  ;;  %v709_v40 = vand.u32 2147483647, %v1862_v43  ;;  %v1498_v7 = vld [vmem:[%s2163_s5 + $0x18] sm:$0xff] }
 0x123   : > { %v1554_v60 = vpop.eup %1553  ;;  %v701_v63 = vmul.f32 %v1888_v57, %v1862_v43  ;;  %1555 = vrcp.f32 %v1890_v58  ;;  %v1938_v27 = vmul.f32 0.70710677, %v1911_v9  ;;  %v739_v45 = vand.u32 2147483647, %v1890_v58  ;;  %v1506_v8 = vld [vmem:[%s2163_s5 + $0x58] sm:$0xff]  ;;  %1113 = vmatpush.bf16.msra.mxu3 %v1498_v7  ;;  %1140 = vmatpush.bf16.msrb.mxu1 %v1515_v15 }
 0x124   : > { %v716_v0 = vmul.f32 %v1554_v60, %v1864_v44  ;;  %vm721_vm0 = vweird.f32 %v1554_v60  ;;  %1557 = vrcp.f32 %v1918_v18  ;;  %v741_v49 = vand.u32 2147483648, %v1890_v58  ;;  %1127 = vmatpush.bf16.msrb.mxu0 %v1506_v8 }
 0x125   : > { %v702_v16 = vsub.f32 1.0, %v701_v63  ;;  %vm722_vm3 = vmor %vm720_vm1, %vm721_vm0  ;;  %1559 = vrcp.f32 %v1920_v19  ;;  %vm706_vm5 = vweird.f32 %v1888_v57  ;;  %v1962_v52 = vand.u32 2147483647, %v1938_v27 }
 0x126   : > { %v717_v6 = vsub.f32 1.0, %v716_v0  ;;  %1561 = vpow2.f32 %v856_v23  ;;  %vm735_vm6 = vweird.f32 %v1890_v58  ;;  %v1970_v56 = vmul.f32 1.442695, %v852_v35  ;;  %vm2008_vm11 = vmor %vm705_vm2, %vm706_vm5 }
 0x127   : > { %v703_v36 = vmul.f32 %v1888_v57, %v702_v16  ;;  %v847_v63 = vsub.f32 0.0, %v1893_v59  ;;  %v693_v0 = vmul.f32 0.3275911, %v1962_v52  ;;  %vm1980_vm8 = vcmp.eq.f32.partialorder %v739_v45, 8.507059e+37  ;;  %1141 = vmatpush.bf16.msrb.mxu1 %v1514_v39  ;;  %v1503_v16 = vld [vmem:[%s2163_s5 + $0x40] sm:$0xff] }
 0x128   : > { %v718_v17 = vmul.f32 %v1554_v60, %v717_v6  ;;  %v742_v5 = vor.u32 1.1754944e-38, %v741_v49  ;;  %vm750_vm10 = vweird.f32 %v1918_v18  ;;  %v769_v14 = vand.u32 2147483647, %v1920_v19 }
 0x129   : > { %v1931_v24 = vpop.eup %1555  ;;  %v704_v1 = vadd.f32 %v1888_v57, %v703_v36  ;;  %v771_v20 = vand.u32 2147483648, %v1920_v19  ;;  %v2014_v21 = vadd.f32 1.0, %v693_v0  ;;  %vm710_vm14 = vcmp.eq.f32.partialorder %v709_v40, 8.507059e+37 }
 0x12a   : > { %v719_v25 = vadd.f32 %v1554_v60, %v718_v17  ;;  %v731_v30 = vmul.f32 %v1931_v24, %v1890_v58  ;;  %vm736_vm7 = vweird.f32 %v1931_v24  ;;  %vm765_vm0 = vweird.f32 %v1920_v19 }
 0x12b   : > { %vm737_vm9 = vmor %vm735_vm6, %vm736_vm7  ;;  %1563 = vrcp.f32 %v2014_v21  ;;  %vm770_vm2 = vcmp.eq.f32.partialorder %v769_v14, 8.507059e+37  ;;  %vm780_vm5 = vweird.f32 %v2014_v21 }
 0x12c   : > { %v723_v37 = vsel %vm722_vm3, %v1554_v60, %v719_v25  ;;  %v732_v44 = vsub.f32 1.0, %v731_v30  ;;  %v1972_v60 = vpop.eup %1557  ;;  %v708_v30 = vsel %vm2008_vm11, %v1888_v57, %v704_v1  ;;  %v772_v1 = vor.u32 1.1754944e-38, %v771_v20 }
 0x12d   : > { %v1955_v42 = vsel %vm725_vm4, %v727_v29, %v723_v37  ;;  %v1977_v2 = vpop.eup %1559  ;;  %v746_v6 = vmul.f32 %v1972_v60, %v1918_v18  ;;  %v1497_v29 = vld [vmem:[%s2163_s5 + $0x10] sm:$0xff]  ;;  %vm751_vm12 = vweird.f32 %v1972_v60  ;;  %v2043_v45 = vsel %vm710_vm14, %v1928_v22, %v708_v30  ;;  %v1496_v22 = vld [vmem:[%s2163_s5 + $0x8] sm:$0xff] }
 0x12e   : > { %v791_v50 = vmul.f32 1.0614054, %v1955_v42  ;;  %v733_v54 = vmul.f32 %v1931_v24, %v732_v44  ;;  %v761_v11 = vmul.f32 %v1977_v2, %v1920_v19  ;;  %v2016_v23 = vpop.eup %1561  ;;  %vm766_vm13 = vweird.f32 %v1977_v2  ;;  %1114 = vmatpush.bf16.msra.mxu3 %v1497_v29  ;;  %vm2050_vm15 = vmor %vm750_vm10, %vm751_vm12 }
 0x12f   : > { %v747_v17 = vsub.f32 1.0, %v746_v6  ;;  %v756_v44 = vand.u32 2147483648, %v1918_v18  ;;  %vm767_vm1 = vmor %vm765_vm0, %vm766_vm13  ;;  %v754_v19 = vand.u32 2147483647, %v1918_v18  ;;  %v790_v7 = vmul.f32 1.0614054, %v2043_v45 }
 0x130   : > { %v797_v62 = vadd.f32 -1.4531521, %v791_v50  ;;  %v734_v3 = vadd.f32 %v1931_v24, %v733_v54  ;;  %v762_v43 = vsub.f32 1.0, %v761_v11  ;;  %v848_v54 = vsub.f32 0.0, %v1896_v61 }
 0x131   : > { %v748_v36 = vmul.f32 %v1972_v60, %v747_v17  ;;  %v1564_v8 = vpop.eup %1563  ;;  %v757_v11 = vor.u32 1.1754944e-38, %v756_v44  ;;  %vm755_vm3 = vcmp.eq.f32.partialorder %v754_v19, 8.507059e+37  ;;  %1565 = vpow2.f32 %v1934_v26 }
 0x132   : > { %v803_v10 = vmul.f32 %v797_v62, %v1955_v42  ;;  %v738_v58 = vsel %vm737_vm9, %v1931_v24, %v734_v3  ;;  %v1505_v24 = vld [vmem:[%s2163_s5 + $0x50] sm:$0xff]  ;;  %v763_v38 = vmul.f32 %v1977_v2, %v762_v43  ;;  %v1504_v62 = vld [vmem:[%s2163_s5 + $0x48] sm:$0xff]  ;;  %1115 = vmatpush.bf16.msra.mxu3 %v1496_v22  ;;  %v776_v15 = vmul.f32 %v1564_v8, %v2014_v21 }
 0x133   : > { %v2020_v28 = vsel %vm1980_vm8, %v742_v5, %v738_v58  ;;  %1128 = vmatpush.bf16.msrb.mxu0 %v1505_v24  ;;  %v749_v49 = vadd.f32 %v1972_v60, %v748_v36  ;;  %v1513_v5 = vld [vmem:[%s2163_s5 + $0x90] sm:$0xff]  ;;  %v784_v17 = vand.u32 2147483647, %v2014_v21  ;;  %v796_v26 = vadd.f32 -1.4531521, %v790_v7  ;;  %v1512_v24 = vld [vmem:[%s2163_s5 + $0x88] sm:$0xff] }
 0x134   : > { %v809_v25 = vadd.f32 1.4214138, %v803_v10  ;;  %v792_v35 = vmul.f32 1.0614054, %v2020_v28  ;;  %v764_v40 = vadd.f32 %v1977_v2, %v763_v38  ;;  %1142 = vmatpush.bf16.msrb.mxu1 %v1513_v5  ;;  %v854_v43 = vmul.f32 %v848_v54, %v1896_v61 }
 0x135   : > { %v753_v6 = vsel %vm2050_vm15, %v1972_v60, %v749_v49  ;;  %v1495_v60 = vld [vmem:[%s2163_s5] sm:$0xff]  ;;  %v777_v29 = vsub.f32 1.0, %v776_v15  ;;  %vm781_vm4 = vweird.f32 %v1564_v8  ;;  %v786_v36 = vand.u32 2147483648, %v2014_v21 }
 0x136   : > { %v815_v37 = vmul.f32 %v809_v25, %v1955_v42  ;;  %v798_v57 = vadd.f32 -1.4531521, %v792_v35  ;;  %v768_v4 = vsel %vm767_vm1, %v1977_v2, %v764_v40  ;;  %v2089_v20 = vsel %vm755_vm3, %v757_v11, %v753_v6  ;;  %1116 = vmatpush.bf16.msra.mxu3 %v1495_v60  ;;  %vm782_vm6 = vmor %vm780_vm5, %vm781_vm4 }
 0x137   : > { %v2076_v14 = vsel %vm770_vm2, %v772_v1, %v768_v4  ;;  %1129 = vmatpush.bf16.msrb.mxu0 %v1504_v62  ;;  %v793_v30 = vmul.f32 1.0614054, %v2089_v20  ;;  %v778_v61 = vmul.f32 %v1564_v8, %v777_v29  ;;  %1567 = vpow2.f32 %v1970_v56  ;;  %v1566_v53 = vpop.eup %1565 }
 0x138   : > { %v821_v50 = vadd.f32 -0.28449672, %v815_v37  ;;  %v804_v0 = vmul.f32 %v798_v57, %v2020_v28  ;;  %v794_v2 = vmul.f32 1.0614054, %v2076_v14  ;;  %v802_v37 = vmul.f32 %v796_v26, %v2043_v45  ;;  %1143 = vmatpush.bf16.msrb.mxu1 %v1512_v24 }
 0x139   : > { %v799_v57 = vadd.f32 -1.4531521, %v793_v30  ;;  %v853_v44 = vmul.f32 %v847_v63, %v1893_v59  ;;  %v779_v54 = vadd.f32 %v1564_v8, %v778_v61  ;;  %v864_v56 = vmul.f32 1.442695, %v854_v43 }
 0x13a   : > { %v827_v3 = vmul.f32 %v821_v50, %v1955_v42  ;;  %v810_v10 = vadd.f32 1.4214138, %v804_v0  ;;  %v800_v25 = vadd.f32 -1.4531521, %v794_v2  ;;  %v808_v49 = vadd.f32 1.4214138, %v802_v37 }
 0x13b   : > { %1130 = vmatpush.bf16.msrb.mxu0 %v1503_v16  ;;  %v1511_v50 = vld [vmem:[%s2163_s5 + $0x80] sm:$0xff]  ;;  %v805_v22 = vmul.f32 %v799_v57, %v2089_v20  ;;  %vm785_vm7 = vcmp.eq.f32.partialorder %v784_v17, 8.507059e+37  ;;  %v787_v59 = vor.u32 1.1754944e-38, %v786_v36  ;;  %v783_v0 = vsel %vm782_vm6, %v1564_v8, %v779_v54 }
 0x13c   : > { %v833_v18 = vadd.f32 0.2548296, %v827_v3  ;;  %v816_v58 = vmul.f32 %v810_v10, %v2020_v28  ;;  %v806_v39 = vmul.f32 %v800_v25, %v2076_v14  ;;  %v814_v63 = vmul.f32 %v808_v49, %v2043_v45  ;;  %1144 = vmatpush.bf16.msrb.mxu1 %v1511_v50 }
 0x13d   : > { %v811_v1 = vadd.f32 1.4214138, %v805_v22  ;;  %v862_v19 = vmul.f32 1.442695, %v853_v44  ;;  %v788_v3 = vsel %vm785_vm7, %v787_v59, %v783_v0  ;;  %v849_v4 = vsub.f32 0.0, %v1962_v52 }
 0x13e   : > { %v822_v35 = vadd.f32 -0.28449672, %v816_v58  ;;  %v839_v38 = vmul.f32 %v833_v18, %v1955_v42  ;;  %v812_v40 = vadd.f32 1.4214138, %v806_v39  ;;  %v820_v5 = vadd.f32 -0.28449672, %v814_v63  ;;  %v1568_v18 = vpop.eup %1567 }
 0x13f   : > { %v795_v10 = vmul.f32 1.0614054, %v788_v3  ;;  %v817_v11 = vmul.f32 %v811_v1, %v2089_v20  ;;  %1569 = vpow2.f32 %v864_v56  ;;  %v855_v58 = vmul.f32 %v849_v4, %v1962_v52 }
 0x140   : > { %v828_v42 = vmul.f32 %v822_v35, %v2020_v28  ;;  %v869_v21 = vmul.f32 %v1566_v53, %v839_v38  ;;  %v818_v62 = vmul.f32 %v812_v40, %v2076_v14  ;;  %v826_v2 = vmul.f32 %v820_v5, %v2043_v45 }
 0x141   : > { %v801_v8 = vadd.f32 -1.4531521, %v795_v10  ;;  %v823_v16 = vadd.f32 -0.28449672, %v817_v11  ;;  %1571 = vpow2.f32 %v862_v19  ;;  %v866_v39 = vmul.f32 1.442695, %v855_v58 }
 0x142   : > { %v834_v6 = vadd.f32 0.2548296, %v828_v42  ;;  %v824_v7 = vadd.f32 -0.28449672, %v818_v62  ;;  %v875_v15 = vsub.f32 1.0, %v869_v21  ;;  %vm881_vm8 = vcmp.lt.f32.partialorder %v1856_v34, 0.0 }
 0x143   : > { %v832_v17 = vadd.f32 0.2548296, %v826_v2  ;;  %v807_v43 = vmul.f32 %v801_v8, %v788_v3  ;;  %v829_v29 = vmul.f32 %v823_v16, %v2089_v20  ;;  %vm880_vm9 = vcmp.lt.f32.partialorder %v1853_v33, 0.0 }
 0x144   : > { %v830_v60 = vmul.f32 %v824_v7, %v2076_v14  ;;  %v840_v26 = vmul.f32 %v834_v6, %v2020_v28  ;;  %v887_v30 = vsub.f32 0.0, %v875_v15  ;;  %1573 = vpow2.f32 %v866_v39 }
 0x145   : > { %v838_v24 = vmul.f32 %v832_v17, %v2043_v45  ;;  %v813_v36 = vadd.f32 1.4214138, %v807_v43  ;;  %v835_v37 = vadd.f32 0.2548296, %v829_v29  ;;  %v1570_v38 = vpop.eup %1569  ;;  %vm884_vm10 = vcmp.lt.f32.partialorder %v1883_v55, 0.0 }
 0x146   : > { %v836_v25 = vadd.f32 0.2548296, %v830_v60  ;;  %v870_v57 = vmul.f32 %v1568_v18, %v840_v26  ;;  %v893_v53 = vsel %vm881_vm8, %v887_v30, %v875_v15  ;;  %v671_v63 = vmul.f32 0.5, %v1850_v32  ;;  %v1549_v43 = vld [vmem:[%s2164_s6] ss:$0 sm:$0xff] }
 0x147   : > { %v868_v61 = vmul.f32 %v2016_v23, %v838_v24  ;;  %v819_v44 = vmul.f32 %v813_v36, %v788_v3  ;;  %v841_v28 = vmul.f32 %v835_v37, %v2089_v20  ;;  %v1572_v49 = vpop.eup %1571  ;;  %v899_v59 = vadd.f32 1.0, %v893_v53 }
 0x148   : > { %v842_v35 = vmul.f32 %v836_v25, %v2076_v14  ;;  %v876_v54 = vsub.f32 1.0, %v870_v57  ;;  %vm883_vm11 = vcmp.lt.f32.partialorder %v1877_v51, 0.0  ;;  %v674_v0 = vmul.f32 0.5, %v1873_v48 }
 0x149   : > { %v874_v50 = vsub.f32 1.0, %v868_v61  ;;  %v825_v42 = vadd.f32 -0.28449672, %v819_v44  ;;  %v871_v40 = vmul.f32 %v1572_v49, %v841_v28  ;;  %v670_v19 = vmul.f32 0.5, %v1848_v31 }
 0x14a   : > { %v872_v52 = vmul.f32 %v1570_v38, %v842_v35  ;;  %v888_v4 = vsub.f32 0.0, %v876_v54  ;;  %v1574_v7 = vpop.eup %1573  ;;  %v905_v10 = vmul.f32 %v899_v59, %v671_v63  ;;  %v673_v55 = vmul.f32 0.5, %v1870_v47 }
 0x14b   : > { %v886_v14 = vsub.f32 0.0, %v874_v50  ;;  %v831_v23 = vmul.f32 %v825_v42, %v788_v3  ;;  %v877_v56 = vsub.f32 1.0, %v871_v40  ;;  %vm882_vm12 = vcmp.lt.f32.partialorder %v1867_v46, 0.0 }
 0x14c   : > { %v878_v45 = vsub.f32 1.0, %v872_v52  ;;  %v894_v48 = vsel %vm882_vm12, %v888_v4, %v876_v54  ;;  %vm885_vm13 = vcmp.lt.f32.partialorder %v1938_v27, 0.0  ;;  %v672_v47 = vmul.f32 0.5, %v1860_v41  ;;  %v1550_v41 = vld [vmem:[%s2165_s7] ss:$0 sm:$0xff] }
 0x14d   : > { %v892_v20 = vsel %vm880_vm9, %v886_v14, %v874_v50  ;;  %v837_v21 = vadd.f32 0.2548296, %v831_v23  ;;  %v889_v62 = vsub.f32 0.0, %v877_v56  ;;  %v900_v16 = vadd.f32 1.0, %v894_v48 }
 0x14e   : > { %v890_v22 = vsub.f32 0.0, %v878_v45  ;;  %v898_v1 = vadd.f32 1.0, %v892_v20  ;;  %v675_v58 = vmul.f32 0.5, %v1911_v9 }
 0x14f   : > { %v843_v5 = vmul.f32 %v837_v21, %v788_v3  ;;  %v895_v6 = vsel %vm883_vm11, %v889_v62, %v877_v56  ;;  %v906_v46 = vmul.f32 %v900_v16, %v672_v47 }
 0x150   : > { %v896_v34 = vsel %vm884_vm10, %v890_v22, %v878_v45  ;;  %v901_v32 = vadd.f32 1.0, %v895_v6  ;;  %v904_v2 = vmul.f32 %v898_v1, %v670_v19 }
 0x151   : > { %v902_v33 = vadd.f32 1.0, %v896_v34  ;;  %v873_v18 = vmul.f32 %v1574_v7, %v843_v5 }
 0x152   : > { %v907_v51 = vmul.f32 %v901_v32, %v673_v55 }
 0x153   : > { %v908_v11 = vmul.f32 %v902_v33, %v674_v0  ;;  %v879_v60 = vsub.f32 1.0, %v873_v18 }
 0x154   : > { %v910_v8 = vpack.c.bf16 %v907_v51, %v904_v2 }
 0x155   : > { %v911_v15 = vpack.c.bf16 %v908_v11, %v905_v10  ;;  %v891_v31 = vsub.f32 0.0, %v879_v60 }
 0x156   : > { %1117 = vmatmul.bf16.vlgmr.msra.gmra.mxu3 %v910_v8 }
 0x157   : > { %1131 = vmatmul.bf16.vlgmr.msrb.gmra.mxu0 %v911_v15  ;;  %v897_v3 = vsel %vm885_vm13, %v891_v31, %v879_v60 }
 0x158   : > { %v903_v17 = vadd.f32 1.0, %v897_v3 }
 0x15a   : > { %v909_v26 = vmul.f32 %v903_v17, %v675_v58 }
 0x15c   : > { %v912_v25 = vpack.c.bf16 %v909_v26, %v906_v46 }
 0x15e   : > { %1145 = vmatmul.bf16.vlgmr.msrb.gmra.mxu1 %v912_v25 }
 0x1d4   : > { %v1132_v29 = vpop.f32.mrf.mxu0 }
 0x1d9   : > { %v1118_v24 = vpop.f32.mrf.mxu3 }
 0x1da   : > { %v1119_v30 = vadd.f32 %v1549_v43, %v1118_v24 }
 0x1db   : > { %v1146_v27 = vpop.f32.mrf.mxu1 }
 0x1dc   : > { %v1133_v35 = vadd.f32 %v1132_v29, %v1119_v30  ;;  %v1134_v61 = vpop.f32.mrf.mxu0 }
 0x1de   : > { %v1147_v36 = vadd.f32 %v1146_v27, %v1133_v35 }
 0x1e0   : > { %v1155_v9 = vmul.f32 %v1550_v41, %v1147_v36 }
 0x1e1   : > { %v1120_v37 = vpop.f32.mrf.mxu3 }
 0x1e2   : > { %v1157_v38 = vadd.f32 %v1155_v9, %v1833_v12  ;;  %v1121_v39 = vadd.f32 %v1549_v43, %v1120_v37 }
 0x1e3   : > { %v1148_v52 = vpop.f32.mrf.mxu1 }
 0x1e4   : > { %1159 = vst [vmem:[%s425_s29] sm:$0xff] %v1157_v38  ;;  %v1135_v57 = vadd.f32 %v1134_v61, %v1121_v39 }
 0x1e6   : > { %v1149_v44 = vadd.f32 %v1148_v52, %v1135_v57 }
 0x1e8   : > { %v1156_v28 = vmul.f32 %v1550_v41, %v1149_v44 }
 0x1ea   : > { %v1158_v49 = vadd.f32 %v1156_v28, %v1835_v13 }
 0x1ec   : > { %1160 = vst [vmem:[%s425_s29 + $0x8] sm:$0xff] %v1158_v49 }
 0x1ed PF: > { %s20_s15 = sadd.s32 1, %s1597_s15   ;;  %s2175_s13 = smov %s1593_s14 }
 0x1ee   : > { %p17_p5 = scmp.ge.s32.totalorder %s20_s15, 4   ;;  %s2176_s14 = smov %s2178_s16 }
 0x1f0   :  { %19 = sbr.rel (!%p17_p5) target bundleno = 2 (0x2), region = 96 }

// kernel: pool_stem_forward.13
= control target key start
LH: loop header
LB: loop body
LE: loop exit
PB: predicated region body
PF: predicated region fallthrough
CT: control target
= control target key end

     0   :  { %10 = vsyncpa [#allocation3], 0  ;;  %s1269_s0 = inlined_call_operand.vmem [shape: f32[2,4,512], index: 0, kind: input, shape index: {}]   ;;  %s1270_s1 = inlined_call_operand.vmem [shape: bf16[512,32], index: 1, kind: input, shape index: {}]   ;;  %s1271_s2 = inlined_call_operand.vmem [shape: f32[1,32], index: 2, kind: input, shape index: {}]   ;;  %s1272_s3 = inlined_call_operand.vmem [shape: f32[1,32], index: 3, kind: input, shape index: {}]   ;;  %s1273_s4 = inlined_call_operand.vmem [shape: f32[1,32], index: 4, kind: input, shape index: {}]   ;;  %s1274_s5 = inlined_call_operand.hbm [shape: f32[2,4,32], index: 5, kind: output, shape index: {}]  }
   0x1   :  { %12 = vsyncpa [#allocation3 + $0x1], 0  ;;  %s1064_s18 = smov 0   ;;  %s1066_s19 = smov 0  }
   0x2   :  { %s1068_s20 = smov 0   ;;  %s1070_s21 = smov 0  }
   0x3   :  { %s1072_s22 = smov 0   ;;  %s1074_s23 = smov 0  }
   0x4 LB: > { %s717_s24 = sadd.s32 4294967295, %s1031_s23   ;;  %s718_s25 = sadd.s32 4294967294, %s1031_s23   ;;  %s1031_s23 = sphi %s1074_s23, %s18_s23   ;;  %s1027_s22 = sphi %s1072_s22, %s1281_s22   ;;  %s1023_s21 = sphi %s1070_s21, %s1280_s21   ;;  %s1019_s20 = sphi %s1068_s20, %s1279_s20   ;;  %s1015_s19 = sphi %s1066_s19, %s1278_s19   ;;  %s1011_s18 = sphi %s1064_s18, %s1277_s18  }
   0x5   : > { %s30_s26 = sadd.s32 1, %s1027_s22  ;;  %s151_s27 = sadd.s32 1, %s1019_s20 }
   0x6   : > { %p32_p0 = scmp.ge.s32.totalorder %s30_s26, 2  ;;  %p161_p1 = scmp.ne.s32.totalorder %s1019_s20, %s1015_s19 }
   0x7   : > { %p162_p2 = scmp.eq.s32.totalorder %s717_s24, 1  ;;  %p167_p3 = scmp.ne.s32.totalorder %s1015_s19, %s1011_s18 }
   0x8   : > { %s1283_s26 = smov (%p32_p0, %s30_s26), 0  ;;  %p168_p5 = scmp.eq.s32.totalorder %s718_s25, 1 }
   0x9   : > { %p1104_p4 = por %p162_p2, %p161_p1  ;;  %s146_s29 = ssub.s32 %s1027_s22, %s1283_s26 }
   0xa   : > { %p721_p6 = scmp.ge.s32.totalorder %s1031_s23, 1  ;;  %p149_p7 = scmp.eq.s32.totalorder %s146_s29, 0 }
   0xb   : > { %p1111_p8 = por %p168_p5, %p167_p3  ;;  %p210_p9 = scmp.lt.s32.totalorder %s1031_s23, 3 }
   0xc   : > { %s1117_s6 = scalar_select %p149_p7, %s1019_s20, %s151_s27  }
   0xd   : > { %p211_p10 = pnand %p721_p6, %p210_p9 }
   0xe   : > { %p242_p11 = scmp.lt.s32.totalorder (!%p211_p10), %s1023_s21, 1  ;;  %s239_s24 = sand.u32 (!%p211_p10), 1, %s1015_s19  }
   0xf   : > { %214 = sbr.rel (%p211_p10) target bundleno = 461 (0x1cd), region = 40  ;;  %s854_s29 = sshll.u32 (!%p211_p10), %s1023_s21, 2 }
  0x10   : > { %s635_s11 = scalar_lea.hbm (!%p211_p10), %s1274_s5, %s854_s29  ;;  %s624_s15 = scalar_lea.sflag (!%p211_p10), [#allocation3], %s239_s24 }
  0x14   : > { %v865_v0 = vld [vmem:[%s1270_s1 + $0x38] sm:$0xff]  ;;  %v864_v4 = vld [vmem:[%s1270_s1 + $0x30] sm:$0xff]  ;;  %s243_s25 = scalar_select %p242_p11, %s1023_s21, 1  ;;  %v863_v8 = vld [vmem:[%s1270_s1 + $0x28] sm:$0xff]  ;;  %vm582_vm0 = vcmask 257024   ;;  %v1033_v56 = vmov 32.0  }
  0x15   : > { %v873_v1 = vld [vmem:[%s1270_s1 + $0x78] sm:$0xff]  ;;  %530 = vmatpush.bf16.msra.mxu0 %v865_v0  ;;  %v872_v5 = vld [vmem:[%s1270_s1 + $0x70] sm:$0xff]  ;;  %v871_v9 = vld [vmem:[%s1270_s1 + $0x68] sm:$0xff]  ;;  %949 = vrcp.f32 %v1033_v56 }
  0x16   : > { %v881_v2 = vld [vmem:[%s1270_s1 + $0xb8] sm:$0xff]  ;;  %543 = vmatpush.bf16.msra.mxu1 %v873_v1  ;;  %v880_v6 = vld [vmem:[%s1270_s1 + $0xb0] sm:$0xff]  ;;  %s857_s9 = sshll.u32 %s243_s25, 4  ;;  %v879_v10 = vld [vmem:[%s1270_s1 + $0xa8] sm:$0xff]  ;;  %s722_s25 = sshll.u32 %s239_s24, 2 }
  0x17   : > { %v889_v3 = vld [vmem:[%s1270_s1 + $0xf8] sm:$0xff]  ;;  %556 = vmatpush.bf16.msra.mxu2 %v881_v2  ;;  %v888_v7 = vld [vmem:[%s1270_s1 + $0xf0] sm:$0xff]  ;;  %v887_v11 = vld [vmem:[%s1270_s1 + $0xe8] sm:$0xff]  ;;  %s250_s27 = scalar_lea.vmem %s1269_s0, %s857_s9  ;;  %s241_s14 = scalar_lea.vmem [#allocation2], %s722_s25 }
  0x18   : > { %569 = vmatpush.bf16.msra.mxu3 %v889_v3  ;;  %v862_v12 = vld [vmem:[%s1270_s1 + $0x20] sm:$0xff]  ;;  %v252_v17 = vld [vmem:[%s250_s27 + $0x8] sm:$0xff]  ;;  %v861_v18 = vld [vmem:[%s1270_s1 + $0x18] sm:$0xff]  ;;  %s637_s21 = sshll.u32 %s241_s14, 4  ;;  %s639_s9 = sshll.u32 %s635_s11, 4  ;;  %s638_s21 = int_to_ptr.vmem [resolvable:$true] %s637_s21  ;;  %s640_s9 = int_to_ptr.hbm [resolvable:$true] %s639_s9 }
  0x19   : > { %531 = vmatpush.bf16.msra.mxu0 %v864_v4  ;;  %v870_v13 = vld [vmem:[%s1270_s1 + $0x60] sm:$0xff]  ;;  %257 = vst [vmem:[#allocation1 + $0x10] ss:$2 sm:$0xff] %v252_v17  ;;  %v869_v19 = vld [vmem:[%s1270_s1 + $0x58] sm:$0xff]  ;;  %v860_v22 = vld [vmem:[%s1270_s1 + $0x10] sm:$0xff]  ;;  %s967_s16 = sshra.s32 %s640_s9, 4  ;;  %s968_s16 = int_to_ptr.hbm [resolvable:$true] %s967_s16 }
  0x1a   : > { %544 = vmatpush.bf16.msra.mxu1 %v872_v5  ;;  %v878_v14 = vld [vmem:[%s1270_s1 + $0xa0] sm:$0xff]  ;;  %v877_v20 = vld [vmem:[%s1270_s1 + $0x98] sm:$0xff]  ;;  %v868_v23 = vld [vmem:[%s1270_s1 + $0x50] sm:$0xff]  ;;  %s969_s17 = scalar_lea.hbm %s968_s16, 4  ;;  %s973_s25 = scalar_lea.hbm %s1274_s5, 8 }
  0x1b   : > { %557 = vmatpush.bf16.msra.mxu2 %v880_v6  ;;  %v251_v15 = vld [vmem:[%s250_s27] sm:$0xff]  ;;  %v885_v21 = vld [vmem:[%s1270_s1 + $0xd8] sm:$0xff]  ;;  %v876_v24 = vld [vmem:[%s1270_s1 + $0x90] sm:$0xff]  ;;  %v950_v57 = vpop.eup %949  ;;  %p970_p12 = scmp.ne.s32.totalorder %s968_s16, %s969_s17  ;;  %p974_p1 = scmp.lt.s32.totalorder %s968_s16, %s1274_s5 }
  0x1c   : > { %570 = vmatpush.bf16.msra.mxu3 %v888_v7  ;;  %v886_v16 = vld [vmem:[%s1270_s1 + $0xe0] sm:$0xff]  ;;  %255 = vst [vmem:[#allocation1] ss:$2 sm:$0xff] %v251_v15  ;;  %v884_v25 = vld [vmem:[%s1270_s1 + $0xd0] sm:$0xff]  ;;  %v859_v26 = vld [vmem:[%s1270_s1 + $0x8] sm:$0xff]  ;;  %v587_v58 = vmul.f32 32.0, %v950_v57  ;;  %vm591_vm1 = vweird.f32 %v950_v57  ;;  %p975_p2 = scmp.lt.s32.totalorder %s973_s25, %s969_s17 }
  0x1d   : > { %532 = vmatpush.bf16.msra.mxu0 %v863_v8  ;;  %v867_v27 = vld [vmem:[%s1270_s1 + $0x48] sm:$0xff]  ;;  %v858_v30 = vld [vmem:[%s1270_s1] sm:$0xff]  ;;  %p971_p13 = pnand %p970_p12, %p1104_p4 }
  0x1e   : > { %545 = vmatpush.bf16.msra.mxu1 %v871_v9  ;;  %v875_v28 = vld [vmem:[%s1270_s1 + $0x88] sm:$0xff]  ;;  %v866_v31 = vld [vmem:[%s1270_s1 + $0x40] sm:$0xff]  ;;  %v588_v59 = vsub.f32 1.0, %v587_v58  ;;  %p976_p3 = por %p975_p2, %p974_p1 }
  0x1f   : > { %558 = vmatpush.bf16.msra.mxu2 %v879_v10  ;;  %v883_v29 = vld [vmem:[%s1270_s1 + $0xc8] sm:$0xff]  ;;  %v874_v32 = vld [vmem:[%s1270_s1 + $0x80] sm:$0xff]  ;;  %p972_p0 = pneg %p971_p13 }
  0x20   : > { %571 = vmatpush.bf16.msra.mxu3 %v887_v11  ;;  %v882_v33 = vld [vmem:[%s1270_s1 + $0xc0] sm:$0xff]  ;;  %v260_v36 = vld.sshfl [vmem:[#allocation1 + $0x10] sm:$0xff pattern:$0x75316420]  ;;  %v589_v60 = vmul.f32 %v950_v57, %v588_v59 }
  0x21   : > { %533 = vmatpush.bf16.msra.mxu0 %v862_v12  ;;  %v261_v37 = vld.sshfl [vmem:[#allocation1 + $0x18] sm:$0xff pattern:$0x75316420]  ;;  %v268_v40 = vpack.c.bf16 %v260_v36, %v260_v36  ;;  %v946_v42 = vld [vmem:[%s1271_s2] ss:$0 sm:$0xff]  ;;  %p977_p5 = pnand %p976_p3, %p972_p0 }
  0x22   : > { %546 = vmatpush.bf16.msra.mxu1 %v870_v13  ;;  %v269_v41 = vpack.c.bf16 %v261_v37, %v261_v37  ;;  %v590_v61 = vadd.f32 %v950_v57, %v589_v60  ;;  %v947_v13 = vld [vmem:[%s1272_s3] ss:$0 sm:$0xff] }
  0x23   : > { %559 = vmatpush.bf16.msra.mxu2 %v878_v14  ;;  %v258_v34 = vld.sshfl [vmem:[#allocation1] sm:$0xff pattern:$0x75316420]  ;;  %v259_v35 = vld.sshfl [vmem:[#allocation1 + $0x8] sm:$0xff pattern:$0x75316420] }
  0x24   : > { %572 = vmatpush.bf16.msra.mxu3 %v886_v16  ;;  %v266_v38 = vpack.c.bf16 %v258_v34, %v258_v34  ;;  %v267_v39 = vpack.c.bf16 %v259_v35, %v259_v35  ;;  %v592_v62 = vsel %vm591_vm1, %v950_v57, %v590_v61  ;;  %v948_v16 = vld [vmem:[%s1273_s4] ss:$0 sm:$0xff] }
  0x25   : > { %534 = vmatpush.bf16.msra.mxu0 %v861_v18 }
  0x26   : > { %547 = vmatpush.bf16.msra.mxu1 %v869_v19 }
  0x27   : > { %560 = vmatpush.bf16.msra.mxu2 %v877_v20 }
  0x28   : > { %573 = vmatpush.bf16.msra.mxu3 %v885_v21 }
  0x29   : > { %535 = vmatpush.bf16.msra.mxu0 %v860_v22 }
  0x2a   : > { %548 = vmatpush.bf16.msra.mxu1 %v868_v23 }
  0x2b   : > { %561 = vmatpush.bf16.msra.mxu2 %v876_v24 }
  0x2c   : > { %574 = vmatpush.bf16.msra.mxu3 %v884_v25 }
  0x2d   : > { %536 = vmatpush.bf16.msra.mxu0 %v859_v26 }
  0x2e   : > { %549 = vmatpush.bf16.msra.mxu1 %v867_v27 }
  0x2f   : > { %562 = vmatpush.bf16.msra.mxu2 %v875_v28 }
  0x30   : > { %575 = vmatpush.bf16.msra.mxu3 %v883_v29 }
  0x31   : > { %537 = vmatpush.bf16.msra.mxu0 %v858_v30 }
  0x32   : > { %550 = vmatpush.bf16.msra.mxu1 %v866_v31 }
  0x33   : > { %563 = vmatpush.bf16.msra.mxu2 %v874_v32 }
  0x34   : > { %576 = vmatpush.bf16.msra.mxu3 %v882_v33  ;;  %538 = vmatmul.bf16.vlgmr.msra.gmra.mxu0 %v266_v38 }
  0x35   : > { %551 = vmatmul.bf16.vlgmr.msra.gmra.mxu1 %v267_v39 }
  0x36   : > { %564 = vmatmul.bf16.vlgmr.msra.gmra.mxu2 %v268_v40 }
  0x37   : > { %577 = vmatmul.bf16.vlgmr.msra.gmra.mxu3 %v269_v41 }
  0xb1   : > { %v539_v43 = vpop.f32.mrf.mxu0 }
  0xb2   : > { %v552_v44 = vpop.f32.mrf.mxu1  ;;  %v540_v45 = vadd.f32 %v946_v42, %v539_v43 }
  0xb4   : > { %v553_v46 = vadd.f32 %v552_v44, %v540_v45 }
  0xb9   : > { %v565_v47 = vpop.f32.mrf.mxu2  ;;  %v541_v50 = vpop.f32.mrf.mxu0 }
  0xba   : > { %v578_v48 = vpop.f32.mrf.mxu3  ;;  %v566_v49 = vadd.f32 %v565_v47, %v553_v46  ;;  %v554_v51 = vpop.f32.mrf.mxu1 }
  0xbc   : > { %v579_v52 = vadd.f32 %v578_v48, %v566_v49 }
  0xbe   : > { %v583_v53 = vsel %vm582_vm0, %v579_v52, 0.0 }
  0xbf   : > { %584 = vadd.xlane.f32.xlu0 %v583_v53 }
  0xc1   : > { %v567_v54 = vpop.f32.mrf.mxu2 }
  0xc2   : > { %v580_v55 = vpop.f32.mrf.mxu3 }
 0x132   : > { %v585_v63 = vpop.xlane.xlu0 %584 }
 0x133   : > { %v593_v0 = vmul.f32 %v592_v62, %v585_v63 }
 0x135   : > { %v594_v1 = vsub.f32 %v579_v52, %v593_v0 }
 0x137   : > { %v595_v2 = vmul.f32 %v594_v1, %v594_v1 }
 0x139   : > { %v596_v3 = vsel %vm582_vm0, %v595_v2, 0.0 }
 0x13a   : > { %597 = vadd.xlane.f32.xlu0 %v596_v3 }
 0x1ad   : > { %v598_v4 = vpop.xlane.xlu0 %597 }
 0x1ae   : > { %v599_v5 = vmul.f32 %v598_v4, %v592_v62 }
 0x1b0   : > { %v600_v6 = vadd.f32 1e-12, %v599_v5 }
 0x1b2   : > { %951 = vrsqrt.f32 %v600_v6  ;;  %vm607_vm3 = vweird.f32 %v600_v6 }
 0x1b8   : > { %v952_v7 = vpop.eup %951 }
 0x1b9   : > { %v602_v8 = vmul.f32 %v952_v7, %v600_v6  ;;  %vm608_vm2 = vweird.f32 %v952_v7 }
 0x1ba   : > { %vm609_vm4 = vmor %vm607_vm3, %vm608_vm2 }
 0x1bb   : > { %v603_v9 = vmul.f32 %v952_v7, %v602_v8 }
 0x1bd   : > { %v604_v10 = vmul.f32 0.5, %v603_v9 }
 0x1bf   : > { %v605_v11 = vsub.f32 1.5, %v604_v10 }
 0x1c1   : > { %v606_v12 = vmul.f32 %v952_v7, %v605_v11 }
 0x1c3   : > { %v610_v14 = vsel %vm609_vm4, %v952_v7, %v606_v12 }
 0x1c4   : > { %v611_v15 = vmul.f32 %v610_v14, %v594_v1 }
 0x1c6   : > { %v616_v17 = vmul.f32 %v947_v13, %v611_v15 }
 0x1c8   : > { %v621_v18 = vadd.f32 %v948_v16, %v616_v17 }
 0x1ca   : > { %622 = vst.msk [vmem:[%s241_s14] sm:$0xf] %vm582_vm0, %v621_v18 }
 0x1cb   : > { %980 = shalt.err (!%p977_p5)
}
 0x1cc   : > { %890 = dma.vmem_to_hbm [thread:$0]  (%p1104_p4), %s638_s21, 64, %s640_s9, %s624_s15  }
 0x1cd PF: > { %p896_p6 = scmp.ge.s32.totalorder %s1031_s23, 2  ;;  %s651_s24 = sand.u32 1, %s1011_s18  }
 0x1ce   : > { %s652_s10 = scalar_lea.sflag [#allocation3], %s651_s24 }
 0x1cf   : > { %p893_p7 = pnand %p896_p6, %p1111_p8 }
 0x1d1   : > { %p894_p9 = pneg %p893_p7 }
 0x1d3   : > { %1006 = dma.done.wait (%p894_p9), %s652_s10, 64  }
 0x1d4   : > { %1008 = vsyncadd (%p894_p9), %s652_s10, 4294967232  ;;  %s18_s23 = sadd.s32 1, %s1031_s23   ;;  %s1277_s18 = smov %s1015_s19 }
 0x1d5   : > { %p15_p10 = scmp.ge.s32.totalorder %s18_s23, 4   ;;  %s1278_s19 = smov %s1019_s20 }
 0x1d6   : > { %s1279_s20 = smov %s1117_s6  ;;  %s1280_s21 = smov %s1027_s22 }
 0x1d7   : > { %s1281_s22 = smov %s1283_s26  ;;  %17 = sbr.rel (!%p15_p10) target bundleno = 4 (0x4), region = 76 }
 0x1dc   :  { %658 = vsyncpa [#allocation3], 1 }
 0x1dd   :  { %660 = vsyncpa [#allocation3 + $0x1], 1 }

// kernel: pool_stem_forward.10
= control target key start
LH: loop header
LB: loop body
LE: loop exit
PB: predicated region body
PF: predicated region fallthrough
CT: control target
= control target key end

     0   :  { %12 = vsyncpa [#allocation3], 0  ;;  %s3312_s21 = smov 0   ;;  %s3488_s0 = inlined_call_operand.vmem [shape: f32[2,5,256], index: 0, kind: input, shape index: {}]   ;;  %s3489_s1 = inlined_call_operand.vmem [shape: f32[2,5,256], index: 1, kind: input, shape index: {}]   ;;  %s3490_s2 = inlined_call_operand.hbm [shape: bf16[3,256,512], index: 2, kind: input, shape index: {}]   ;;  %s3491_s3 = inlined_call_operand.vmem [shape: f32[1,512], index: 3, kind: input, shape index: {}]   ;;  %s3492_s4 = inlined_call_operand.vmem [shape: f32[2,4,512], index: 4, kind: output, shape index: {0}]   ;;  %s3493_s5 = inlined_call_operand.vmem [shape: f32[2,1,128], index: 5, kind: output, shape index: {1}]   ;;  %s3494_s6 = inlined_call_operand.vmem [shape: f32[2,1,128], index: 6, kind: output, shape index: {2}]  }
   0x1 LB: > { %s206_s24 = sshll.u32 %s3490_s2, 4  ;;  %s3321_s25 = sadd.s32 4294967295, %s3271_s21   ;;  %s3271_s21 = sphi %s3312_s21, %s18_s21   ;;  %s207_s24 = int_to_ptr.hbm [resolvable:$true] %s206_s24 }
   0x2   : > { %p2205_p0 = scmp.ge.s32.totalorder %s3271_s21, 1  ;;  %p195_p1 = scmp.lt.s32.totalorder %s3271_s21, 3 }
   0x3   : > { %p3197_p2 = scmp.eq.s32.totalorder %s3321_s25, 0  ;;  %s3273_s26 = smov [#allocation2]  }
   0x4   : > { %p196_p3 = pnand %p2205_p0, %p195_p1  ;;  %s208_s27 = sshll.u32 %s3273_s26, 4  ;;  %s209_s27 = int_to_ptr.vmem [resolvable:$true] %s208_s27 }
   0x5   : > { %s3274_s28 = smov 256   ;;  %s3275_s29 = smov 16  }
   0x6   : > { %p3193_p4 = pneg %p196_p3  ;;  %243 = sbr.rel (%p196_p3) target bundleno = 850 (0x352), region = 36 }
   0x8   : > { %p3194_p5 = pnand %p3197_p2, %p3193_p4 }
   0xa   : > { %3196 = dma.hbm_to_vmem [thread:$0]  (!%p3194_p5), %s207_s24, 24576, %s209_s27, [#allocation3], %s3274_s28, %s3274_s28, %s3275_s29  }
   0xb   : > { %3266 = dma.done.wait (%p3197_p2), [#allocation3], 24576  }
   0xc   : > { %3268 = vsyncadd (%p3197_p2), [#allocation3], 4294942720  ;;  %v2330_v0 = vld [vmem:[#allocation2 + $0x2e0] sm:$0xf]  ;;  %v3083_v1 = vld [vmem:[#allocation2 + $0x2ec] sm:$0xf0] }
   0xd   : > { %v2458_v2 = vld [vmem:[#allocation2 + $0x3e0] sm:$0xf]  ;;  %v2331_v3 = vor.u32 %v3083_v1, %v2330_v0  ;;  %v3115_v4 = vld [vmem:[#allocation2 + $0x3ec] sm:$0xf0]  ;;  %v3081_v5 = vld [vmem:[#allocation2 + $0x2e4] sm:$0xf] }
   0xe   : > { %v2332_v6 = vld [vmem:[#allocation2 + $0x2f0] sm:$0xf0]  ;;  %v2459_v7 = vor.u32 %v3115_v4, %v2458_v2  ;;  %v3113_v9 = vld [vmem:[#allocation2 + $0x3e4] sm:$0xf]  ;;  %v2314_v11 = vld [vmem:[#allocation2 + $0x2c0] sm:$0xf] }
   0xf   : > { %v2335_v8 = vor.u32 %v3081_v5, %v2332_v6  ;;  %v2460_v10 = vld [vmem:[#allocation2 + $0x3f0] sm:$0xf0]  ;;  %768 = vmatpush.bf16.msra.mxu0 %v2331_v3  ;;  %v3079_v13 = vld [vmem:[#allocation2 + $0x2cc] sm:$0xf0]  ;;  %v2442_v14 = vld [vmem:[#allocation2 + $0x3c0] sm:$0xf] }
  0x10   : > { %v2463_v12 = vor.u32 %v3113_v9, %v2460_v10  ;;  %v3111_v15 = vld [vmem:[#allocation2 + $0x3cc] sm:$0xf0]  ;;  %781 = vmatpush.bf16.msra.mxu1 %v2459_v7  ;;  %v2315_v16 = vor.u32 %v3079_v13, %v2314_v11  ;;  %v3077_v18 = vld [vmem:[#allocation2 + $0x2c4] sm:$0xf]  ;;  %v2316_v19 = vld [vmem:[#allocation2 + $0x2d0] sm:$0xf0] }
  0x11   : > { %794 = vmatpush.bf16.msra.mxu2 %v2335_v8  ;;  %v2443_v17 = vor.u32 %v3111_v15, %v2442_v14  ;;  %v3109_v20 = vld [vmem:[#allocation2 + $0x3c4] sm:$0xf]  ;;  %v2319_v21 = vor.u32 %v3077_v18, %v2316_v19  ;;  %v2444_v22 = vld [vmem:[#allocation2 + $0x3d0] sm:$0xf0]  ;;  %v2298_v23 = vld [vmem:[#allocation2 + $0x2a0] sm:$0xf] }
  0x12   : > { %807 = vmatpush.bf16.msra.mxu3 %v2463_v12  ;;  %v3075_v24 = vld [vmem:[#allocation2 + $0x2ac] sm:$0xf0]  ;;  %v2447_v25 = vor.u32 %v3109_v20, %v2444_v22  ;;  %v2426_v26 = vld [vmem:[#allocation2 + $0x3a0] sm:$0xf]  ;;  %v3073_v28 = vld [vmem:[#allocation2 + $0x2a4] sm:$0xf] }
  0x13   : > { %v3107_v27 = vld [vmem:[#allocation2 + $0x3ac] sm:$0xf0]  ;;  %769 = vmatpush.bf16.msra.mxu0 %v2315_v16  ;;  %v2299_v29 = vor.u32 %v3075_v24, %v2298_v23  ;;  %v2300_v30 = vld [vmem:[#allocation2 + $0x2b0] sm:$0xf0]  ;;  %v3105_v31 = vld [vmem:[#allocation2 + $0x3a4] sm:$0xf] }
  0x14   : > { %v2428_v32 = vld [vmem:[#allocation2 + $0x3b0] sm:$0xf0]  ;;  %782 = vmatpush.bf16.msra.mxu1 %v2443_v17  ;;  %v2427_v33 = vor.u32 %v3107_v27, %v2426_v26  ;;  %v2303_v34 = vor.u32 %v3073_v28, %v2300_v30  ;;  %v2282_v35 = vld [vmem:[#allocation2 + $0x280] sm:$0xf]  ;;  %v3071_v36 = vld [vmem:[#allocation2 + $0x28c] sm:$0xf0] }
  0x15   : > { %795 = vmatpush.bf16.msra.mxu2 %v2319_v21  ;;  %v2410_v37 = vld [vmem:[#allocation2 + $0x380] sm:$0xf]  ;;  %v2431_v38 = vor.u32 %v3105_v31, %v2428_v32  ;;  %v3103_v39 = vld [vmem:[#allocation2 + $0x38c] sm:$0xf0]  ;;  %v3069_v40 = vld [vmem:[#allocation2 + $0x284] sm:$0xf]  ;;  %v2283_v44 = vor.u32 %v3071_v36, %v2282_v35 }
  0x16   : > { %808 = vmatpush.bf16.msra.mxu3 %v2447_v25  ;;  %v2284_v41 = vld [vmem:[#allocation2 + $0x290] sm:$0xf0]  ;;  %v3101_v42 = vld [vmem:[#allocation2 + $0x384] sm:$0xf]  ;;  %v2411_v45 = vor.u32 %v3103_v39, %v2410_v37  ;;  %v2266_v47 = vld [vmem:[#allocation2 + $0x260] sm:$0xf] }
  0x17   : > { %v2412_v43 = vld [vmem:[#allocation2 + $0x390] sm:$0xf0]  ;;  %770 = vmatpush.bf16.msra.mxu0 %v2299_v29  ;;  %v2287_v46 = vor.u32 %v3069_v40, %v2284_v41  ;;  %v3067_v48 = vld [vmem:[#allocation2 + $0x26c] sm:$0xf0]  ;;  %v2394_v49 = vld [vmem:[#allocation2 + $0x360] sm:$0xf] }
  0x18   : > { %783 = vmatpush.bf16.msra.mxu1 %v2427_v33  ;;  %v2415_v50 = vor.u32 %v3101_v42, %v2412_v43  ;;  %v3099_v51 = vld [vmem:[#allocation2 + $0x36c] sm:$0xf0]  ;;  %v3065_v52 = vld [vmem:[#allocation2 + $0x264] sm:$0xf]  ;;  %v2268_v53 = vld [vmem:[#allocation2 + $0x270] sm:$0xf0]  ;;  %v2267_v56 = vor.u32 %v3067_v48, %v2266_v47 }
  0x19   : > { %796 = vmatpush.bf16.msra.mxu2 %v2303_v34  ;;  %v3097_v54 = vld [vmem:[#allocation2 + $0x364] sm:$0xf]  ;;  %v2396_v55 = vld [vmem:[#allocation2 + $0x370] sm:$0xf0]  ;;  %v2395_v57 = vor.u32 %v3099_v51, %v2394_v49  ;;  %v2271_v58 = vor.u32 %v3065_v52, %v2268_v53  ;;  %v2250_v59 = vld [vmem:[#allocation2 + $0x240] sm:$0xf] }
  0x1a   : > { %809 = vmatpush.bf16.msra.mxu3 %v2431_v38  ;;  %v3063_v60 = vld [vmem:[#allocation2 + $0x24c] sm:$0xf0]  ;;  %v2378_v61 = vld [vmem:[#allocation2 + $0x340] sm:$0xf]  ;;  %v2399_v62 = vor.u32 %v3097_v54, %v2396_v55  ;;  %v3061_v0 = vld [vmem:[#allocation2 + $0x244] sm:$0xf] }
  0x1b   : > { %771 = vmatpush.bf16.msra.mxu0 %v2283_v44  ;;  %v3095_v63 = vld [vmem:[#allocation2 + $0x34c] sm:$0xf0]  ;;  %v2252_v1 = vld [vmem:[#allocation2 + $0x250] sm:$0xf0]  ;;  %v3093_v2 = vld [vmem:[#allocation2 + $0x344] sm:$0xf]  ;;  %v2251_v4 = vor.u32 %v3063_v60, %v2250_v59 }
  0x1c   : > { %784 = vmatpush.bf16.msra.mxu1 %v2411_v45  ;;  %v2380_v3 = vld [vmem:[#allocation2 + $0x350] sm:$0xf0]  ;;  %v2379_v5 = vor.u32 %v3095_v63, %v2378_v61  ;;  %v2255_v6 = vor.u32 %v3061_v0, %v2252_v1  ;;  %v2234_v7 = vld [vmem:[#allocation2 + $0x220] sm:$0xf]  ;;  %v3059_v8 = vld [vmem:[#allocation2 + $0x22c] sm:$0xf0] }
  0x1d   : > { %797 = vmatpush.bf16.msra.mxu2 %v2287_v46  ;;  %v2362_v9 = vld [vmem:[#allocation2 + $0x320] sm:$0xf]  ;;  %v2383_v10 = vor.u32 %v3093_v2, %v2380_v3  ;;  %v3091_v11 = vld [vmem:[#allocation2 + $0x32c] sm:$0xf0]  ;;  %v3057_v12 = vld [vmem:[#allocation2 + $0x224] sm:$0xf]  ;;  %v2235_v16 = vor.u32 %v3059_v8, %v2234_v7 }
  0x1e   : > { %810 = vmatpush.bf16.msra.mxu3 %v2415_v50  ;;  %v2236_v13 = vld [vmem:[#allocation2 + $0x230] sm:$0xf0]  ;;  %v3089_v14 = vld [vmem:[#allocation2 + $0x324] sm:$0xf]  ;;  %v2218_v17 = vld [vmem:[#allocation2 + $0x200] sm:$0xf]  ;;  %v2363_v19 = vor.u32 %v3091_v11, %v2362_v9 }
  0x1f   : > { %772 = vmatpush.bf16.msra.mxu0 %v2267_v56  ;;  %v2364_v15 = vld [vmem:[#allocation2 + $0x330] sm:$0xf0]  ;;  %v3055_v18 = vld [vmem:[#allocation2 + $0x20c] sm:$0xf0]  ;;  %p285_p6 = scmp.lt.s32.totalorder %s3321_s25, 1  ;;  %v2239_v20 = vor.u32 %v3057_v12, %v2236_v13 }
  0x20   : > { %785 = vmatpush.bf16.msra.mxu1 %v2395_v57  ;;  %v2346_v21 = vld [vmem:[#allocation2 + $0x300] sm:$0xf]  ;;  %v3087_v22 = vld [vmem:[#allocation2 + $0x30c] sm:$0xf0]  ;;  %v3053_v23 = vld [vmem:[#allocation2 + $0x204] sm:$0xf]  ;;  %v2367_v24 = vor.u32 %v3089_v14, %v2364_v15  ;;  %v2219_v31 = vor.u32 %v3055_v18, %v2218_v17 }
  0x21   : > { %798 = vmatpush.bf16.msra.mxu2 %v2271_v58  ;;  %v2220_v25 = vld [vmem:[#allocation2 + $0x210] sm:$0xf0]  ;;  %v3085_v26 = vld [vmem:[#allocation2 + $0x304] sm:$0xf]  ;;  %v2338_v28 = vld [vmem:[#allocation2 + $0x2e8] sm:$0xf]  ;;  %v2347_v35 = vor.u32 %v3087_v22, %v2346_v21 }
  0x22   : > { %811 = vmatpush.bf16.msra.mxu3 %v2399_v62  ;;  %v2348_v27 = vld [vmem:[#allocation2 + $0x310] sm:$0xf0]  ;;  %v3084_v29 = vld [vmem:[#allocation2 + $0x2f4] sm:$0xf0]  ;;  %v2466_v30 = vld [vmem:[#allocation2 + $0x3e8] sm:$0xf]  ;;  %v2223_v36 = vor.u32 %v3053_v23, %v2220_v25 }
  0x23   : > { %773 = vmatpush.bf16.msra.mxu0 %v2251_v4  ;;  %v3116_v32 = vld [vmem:[#allocation2 + $0x3f4] sm:$0xf0]  ;;  %v3082_v33 = vld [vmem:[#allocation2 + $0x2ec] sm:$0xf]  ;;  %v2340_v34 = vld [vmem:[#allocation2 + $0x2f8] sm:$0xf0]  ;;  %v2351_v39 = vor.u32 %v3085_v26, %v2348_v27  ;;  %v2339_v40 = vor.u32 %v3084_v29, %v2338_v28 }
  0x24   : > { %786 = vmatpush.bf16.msra.mxu1 %v2379_v5  ;;  %v3114_v37 = vld [vmem:[#allocation2 + $0x3ec] sm:$0xf]  ;;  %v2468_v38 = vld [vmem:[#allocation2 + $0x3f8] sm:$0xf0]  ;;  %s3496_s25 = smov (!%p285_p6, %s3321_s25), 1  ;;  %v2467_v41 = vor.u32 %v3116_v32, %v2466_v30  ;;  %v2343_v42 = vor.u32 %v3082_v33, %v2340_v34 }
  0x25   : > { %799 = vmatpush.bf16.msra.mxu2 %v2255_v6  ;;  %v2322_v43 = vld [vmem:[#allocation2 + $0x2c8] sm:$0xf]  ;;  %v3080_v44 = vld [vmem:[#allocation2 + $0x2d4] sm:$0xf0]  ;;  %v2471_v46 = vor.u32 %v3114_v37, %v2468_v38  ;;  %v3078_v48 = vld [vmem:[#allocation2 + $0x2cc] sm:$0xf]  ;;  %s302_s23 = scalar_lea.vmem %s3493_s5, %s3496_s25  ;;  %s305_s7 = scalar_lea.vmem %s3494_s6, %s3496_s25 }
  0x26   : > { %812 = vmatpush.bf16.msra.mxu3 %v2383_v10  ;;  %v2450_v45 = vld [vmem:[#allocation2 + $0x3c8] sm:$0xf]  ;;  %v3112_v47 = vld [vmem:[#allocation2 + $0x3d4] sm:$0xf0]  ;;  %v2324_v49 = vld [vmem:[#allocation2 + $0x2d8] sm:$0xf0]  ;;  %v2323_v52 = vor.u32 %v3080_v44, %v2322_v43 }
  0x27   : > { %774 = vmatpush.bf16.msra.mxu0 %v2235_v16  ;;  %v3110_v50 = vld [vmem:[#allocation2 + $0x3cc] sm:$0xf]  ;;  %v2452_v51 = vld [vmem:[#allocation2 + $0x3d8] sm:$0xf0]  ;;  %s3333_s30 = sshll.u32 %s3496_s25, 4  ;;  %v2451_v53 = vor.u32 %v3112_v47, %v2450_v45  ;;  %v2327_v54 = vor.u32 %v3078_v48, %v2324_v49 }
  0x28   : > { %787 = vmatpush.bf16.msra.mxu1 %v2363_v19  ;;  %v2306_v55 = vld [vmem:[#allocation2 + $0x2a8] sm:$0xf]  ;;  %v3076_v56 = vld [vmem:[#allocation2 + $0x2b4] sm:$0xf0]  ;;  %v2455_v58 = vor.u32 %v3110_v50, %v2452_v51  ;;  %v3074_v60 = vld [vmem:[#allocation2 + $0x2ac] sm:$0xf]  ;;  %s294_s9 = scalar_lea.vmem %s3489_s1, %s3333_s30  ;;  %s289_s12 = scalar_lea.vmem %s3488_s0, %s3333_s30 }
  0x29   : > { %800 = vmatpush.bf16.msra.mxu2 %v2239_v20  ;;  %v2434_v57 = vld [vmem:[#allocation2 + $0x3a8] sm:$0xf]  ;;  %v3108_v59 = vld [vmem:[#allocation2 + $0x3b4] sm:$0xf0]  ;;  %v2308_v61 = vld [vmem:[#allocation2 + $0x2b8] sm:$0xf0]  ;;  %v2307_v0 = vor.u32 %v3076_v56, %v2306_v55  ;;  %s3449_s17 = scalar_lea.vmem %s3492_s4, %s3333_s30 }
  0x2a   : > { %813 = vmatpush.bf16.msra.mxu3 %v2367_v24  ;;  %v3106_v62 = vld [vmem:[#allocation2 + $0x3ac] sm:$0xf]  ;;  %v2436_v63 = vld [vmem:[#allocation2 + $0x3b8] sm:$0xf0]  ;;  %v2290_v1 = vld [vmem:[#allocation2 + $0x288] sm:$0xf]  ;;  %v2435_v3 = vor.u32 %v3108_v59, %v2434_v57  ;;  %v2311_v4 = vor.u32 %v3074_v60, %v2308_v61 }
  0x2b   : > { %775 = vmatpush.bf16.msra.mxu0 %v2219_v31  ;;  %v3072_v2 = vld [vmem:[#allocation2 + $0x294] sm:$0xf0]  ;;  %v2418_v5 = vld [vmem:[#allocation2 + $0x388] sm:$0xf]  ;;  %v309_v6 = vld [vmem:[%s294_s9] sm:$0x1f]  ;;  %v2439_v8 = vor.u32 %v3106_v62, %v2436_v63 }
  0x2c   : > { %788 = vmatpush.bf16.msra.mxu1 %v2347_v35  ;;  %v310_v7 = vld [vmem:[%s294_s9 + $0x8] sm:$0x1f]  ;;  %v3104_v9 = vld [vmem:[#allocation2 + $0x394] sm:$0xf0]  ;;  %v2292_v11 = vld [vmem:[#allocation2 + $0x298] sm:$0xf0]  ;;  %v2291_v15 = vor.u32 %v3072_v2, %v2290_v1 }
  0x2d   : > { %801 = vmatpush.bf16.msra.mxu2 %v2223_v36  ;;  %v3070_v10 = vld [vmem:[#allocation2 + $0x28c] sm:$0xf]  ;;  %v311_v12 = vpack.c.bf16 %v310_v7, %v309_v6  ;;  %v2420_v14 = vld [vmem:[#allocation2 + $0x398] sm:$0xf0]  ;;  %v2419_v18 = vor.u32 %v3104_v9, %v2418_v5  ;;  %v2274_v20 = vld [vmem:[#allocation2 + $0x268] sm:$0xf] }
  0x2e   : > { %814 = vmatpush.bf16.msra.mxu3 %v2351_v39  ;;  %v3102_v13 = vld [vmem:[#allocation2 + $0x38c] sm:$0xf]  ;;  %v2295_v19 = vor.u32 %v3070_v10, %v2292_v11  ;;  %v3068_v21 = vld [vmem:[#allocation2 + $0x274] sm:$0xf0]  ;;  %v2402_v22 = vld [vmem:[#allocation2 + $0x368] sm:$0xf] }
  0x2f   : > { %820 = vmatpush.bf16.msrb.mxu0 %v2339_v40  ;;  %v442_v16 = vunpack.c.l.b16 %v311_v12  ;;  %v443_v17 = vunpack.c.h.b16 %v311_v12  ;;  %v2423_v23 = vor.u32 %v3102_v13, %v2420_v14  ;;  %v3100_v24 = vld [vmem:[#allocation2 + $0x374] sm:$0xf0]  ;;  %v3066_v25 = vld [vmem:[#allocation2 + $0x26c] sm:$0xf]  ;;  %v2276_v26 = vld [vmem:[#allocation2 + $0x278] sm:$0xf0]  ;;  %v2275_v31 = vor.u32 %v3068_v21, %v2274_v20 }
  0x30   : > { %833 = vmatpush.bf16.msrb.mxu1 %v2467_v41  ;;  %v3098_v28 = vld [vmem:[#allocation2 + $0x36c] sm:$0xf]  ;;  %v2404_v29 = vld [vmem:[#allocation2 + $0x378] sm:$0xf0]  ;;  %v2403_v32 = vor.u32 %v3100_v24, %v2402_v22  ;;  %v2279_v33 = vor.u32 %v3066_v25, %v2276_v26  ;;  %v2258_v34 = vld [vmem:[#allocation2 + $0x248] sm:$0xf] }
  0x31   : > { %846 = vmatpush.bf16.msrb.mxu2 %v2343_v42  ;;  %v3339_v27 = vpack.c.b16 %v442_v16, %v442_v16  ;;  %v3341_v30 = vpack.c.b16 %v443_v17, %v443_v17  ;;  %v3064_v35 = vld [vmem:[#allocation2 + $0x254] sm:$0xf0]  ;;  %v2386_v36 = vld [vmem:[#allocation2 + $0x348] sm:$0xf]  ;;  %v2407_v37 = vor.u32 %v3098_v28, %v2404_v29  ;;  %v3062_v39 = vld [vmem:[#allocation2 + $0x24c] sm:$0xf] }
  0x32   : > { %859 = vmatpush.bf16.msrb.mxu3 %v2471_v46  ;;  %v3096_v38 = vld [vmem:[#allocation2 + $0x354] sm:$0xf0]  ;;  %v2260_v40 = vld [vmem:[#allocation2 + $0x258] sm:$0xf0]  ;;  %v3094_v41 = vld [vmem:[#allocation2 + $0x34c] sm:$0xf]  ;;  %v2259_v43 = vor.u32 %v3064_v35, %v2258_v34 }
  0x33   : > { %821 = vmatpush.bf16.msrb.mxu0 %v2323_v52  ;;  %802 = vmatmul.bf16.vlgmr.msra.gmra.mxu2 %v3339_v27  ;;  %v2388_v42 = vld [vmem:[#allocation2 + $0x358] sm:$0xf0]  ;;  %v2387_v44 = vor.u32 %v3096_v38, %v2386_v36  ;;  %v2263_v45 = vor.u32 %v3062_v39, %v2260_v40  ;;  %v2242_v46 = vld [vmem:[#allocation2 + $0x228] sm:$0xf]  ;;  %v3060_v47 = vld [vmem:[#allocation2 + $0x234] sm:$0xf0] }
  0x34   : > { %834 = vmatpush.bf16.msrb.mxu1 %v2451_v53  ;;  %776 = vmatmul.bf16.vlgmr.msra.gmra.mxu0 %v3339_v27  ;;  %v2370_v48 = vld [vmem:[#allocation2 + $0x328] sm:$0xf]  ;;  %v2391_v49 = vor.u32 %v3094_v41, %v2388_v42  ;;  %v3092_v50 = vld [vmem:[#allocation2 + $0x334] sm:$0xf0]  ;;  %v3058_v51 = vld [vmem:[#allocation2 + $0x22c] sm:$0xf]  ;;  %v2243_v55 = vor.u32 %v3060_v47, %v2242_v46 }
  0x35   : > { %847 = vmatpush.bf16.msrb.mxu2 %v2327_v54  ;;  %815 = vmatmul.bf16.vlgmr.msra.gmra.mxu3 %v3341_v30  ;;  %v2244_v52 = vld [vmem:[#allocation2 + $0x238] sm:$0xf0]  ;;  %v3090_v53 = vld [vmem:[#allocation2 + $0x32c] sm:$0xf]  ;;  %v2226_v56 = vld [vmem:[#allocation2 + $0x208] sm:$0xf] }
  0x36   : > { %860 = vmatpush.bf16.msrb.mxu3 %v2455_v58  ;;  %789 = vmatmul.bf16.vlgmr.msra.gmra.mxu1 %v3341_v30  ;;  %v2372_v54 = vld [vmem:[#allocation2 + $0x338] sm:$0xf0]  ;;  %v3056_v57 = vld [vmem:[#allocation2 + $0x214] sm:$0xf0]  ;;  %v2371_v58 = vor.u32 %v3092_v50, %v2370_v48  ;;  %v2247_v59 = vor.u32 %v3058_v51, %v2244_v52  ;;  %v2354_v60 = vld [vmem:[#allocation2 + $0x308] sm:$0xf] }
  0x37   : > { %822 = vmatpush.bf16.msrb.mxu0 %v2307_v0  ;;  %v3088_v61 = vld [vmem:[#allocation2 + $0x314] sm:$0xf0]  ;;  %v3054_v62 = vld [vmem:[#allocation2 + $0x20c] sm:$0xf]  ;;  %v2375_v63 = vor.u32 %v3090_v53, %v2372_v54  ;;  %v2228_v0 = vld [vmem:[#allocation2 + $0x218] sm:$0xf0]  ;;  %v2227_v6 = vor.u32 %v3056_v57, %v2226_v56 }
  0x38   : > { %835 = vmatpush.bf16.msrb.mxu1 %v2435_v3  ;;  %v3086_v1 = vld [vmem:[#allocation2 + $0x30c] sm:$0xf]  ;;  %v2356_v2 = vld [vmem:[#allocation2 + $0x318] sm:$0xf0]  ;;  %v2586_v3 = vld [vmem:[#allocation2 + $0xe0] sm:$0xf]  ;;  %v2355_v10 = vor.u32 %v3088_v61, %v2354_v60  ;;  %v2231_v11 = vor.u32 %v3054_v62, %v2228_v0 }
  0x39   : > { %848 = vmatpush.bf16.msrb.mxu2 %v2311_v4  ;;  %v3019_v4 = vld [vmem:[#allocation2 + $0xec] sm:$0xf0]  ;;  %v2714_v5 = vld [vmem:[#allocation2 + $0x1e0] sm:$0xf]  ;;  %v2588_v9 = vld [vmem:[#allocation2 + $0xf0] sm:$0xf0]  ;;  %v2359_v14 = vor.u32 %v3086_v1, %v2356_v2 }
  0x3a   : > { %861 = vmatpush.bf16.msrb.mxu3 %v2439_v8  ;;  %v3051_v7 = vld [vmem:[#allocation2 + $0x1ec] sm:$0xf0]  ;;  %v3017_v8 = vld [vmem:[#allocation2 + $0xe4] sm:$0xf]  ;;  %v2716_v13 = vld [vmem:[#allocation2 + $0x1f0] sm:$0xf0] }
  0x3b   : > { %823 = vmatpush.bf16.msrb.mxu0 %v2291_v15  ;;  %v3049_v12 = vld [vmem:[#allocation2 + $0x1e4] sm:$0xf]  ;;  %v2587_v15 = vor.u32 %v3019_v4, %v2586_v3  ;;  %v2715_v16 = vor.u32 %v3051_v7, %v2714_v5  ;;  %v2591_v17 = vor.u32 %v3017_v8, %v2588_v9  ;;  %v2698_v20 = vld [vmem:[#allocation2 + $0x1c0] sm:$0xf]  ;;  %v3047_v22 = vld [vmem:[#allocation2 + $0x1cc] sm:$0xf0] }
  0x3c   : > { %836 = vmatpush.bf16.msrb.mxu1 %v2419_v18  ;;  %v2570_v18 = vld [vmem:[#allocation2 + $0xc0] sm:$0xf]  ;;  %v2719_v21 = vor.u32 %v3049_v12, %v2716_v13  ;;  %v2572_v24 = vld [vmem:[#allocation2 + $0xd0] sm:$0xf0]  ;;  %v3045_v25 = vld [vmem:[#allocation2 + $0x1c4] sm:$0xf]  ;;  %v2699_v29 = vor.u32 %v3047_v22, %v2698_v20 }
  0x3d   : > { %849 = vmatpush.bf16.msrb.mxu2 %v2295_v19  ;;  %v3015_v19 = vld [vmem:[#allocation2 + $0xcc] sm:$0xf0]  ;;  %v2700_v26 = vld [vmem:[#allocation2 + $0x1d0] sm:$0xf0]  ;;  %v2682_v34 = vld [vmem:[#allocation2 + $0x1a0] sm:$0xf] }
  0x3e   : > { %862 = vmatpush.bf16.msrb.mxu3 %v2423_v23  ;;  %v3013_v23 = vld [vmem:[#allocation2 + $0xc4] sm:$0xf]  ;;  %v2571_v28 = vor.u32 %v3015_v19, %v2570_v18  ;;  %v2703_v35 = vor.u32 %v3045_v25, %v2700_v26  ;;  %v3043_v36 = vld [vmem:[#allocation2 + $0x1ac] sm:$0xf0]  ;;  %v2556_v38 = vld [vmem:[#allocation2 + $0xb0] sm:$0xf0] }
  0x3f   : > { %824 = vmatpush.bf16.msrb.mxu0 %v2275_v31  ;;  %v2575_v31 = vor.u32 %v3013_v23, %v2572_v24  ;;  %v3041_v39 = vld [vmem:[#allocation2 + $0x1a4] sm:$0xf]  ;;  %v2684_v40 = vld [vmem:[#allocation2 + $0x1b0] sm:$0xf0]  ;;  %v2683_v42 = vor.u32 %v3043_v36, %v2682_v34  ;;  %v2666_v46 = vld [vmem:[#allocation2 + $0x180] sm:$0xf] }
  0x40   : > { %837 = vmatpush.bf16.msrb.mxu1 %v2403_v32  ;;  %v2554_v32 = vld [vmem:[#allocation2 + $0xa0] sm:$0xf]  ;;  %v2687_v47 = vor.u32 %v3041_v39, %v2684_v40  ;;  %v3039_v48 = vld [vmem:[#allocation2 + $0x18c] sm:$0xf0]  ;;  %v2540_v50 = vld [vmem:[#allocation2 + $0x90] sm:$0xf0] }
  0x41   : > { %850 = vmatpush.bf16.msrb.mxu2 %v2279_v33  ;;  %v3011_v33 = vld [vmem:[#allocation2 + $0xac] sm:$0xf0]  ;;  %v3037_v51 = vld [vmem:[#allocation2 + $0x184] sm:$0xf]  ;;  %v2522_v54 = vld [vmem:[#allocation2 + $0x60] sm:$0xf] }
  0x42   : > { %863 = vmatpush.bf16.msrb.mxu3 %v2407_v37  ;;  %v3009_v37 = vld [vmem:[#allocation2 + $0xa4] sm:$0xf]  ;;  %v2555_v41 = vor.u32 %v3011_v33, %v2554_v32  ;;  %v2650_v56 = vld [vmem:[#allocation2 + $0x160] sm:$0xf]  ;;  %v2524_v60 = vld [vmem:[#allocation2 + $0x70] sm:$0xf0] }
  0x43   : > { %825 = vmatpush.bf16.msrb.mxu0 %v2259_v43  ;;  %v2559_v43 = vor.u32 %v3009_v37, %v2556_v38  ;;  %v3033_v61 = vld [vmem:[#allocation2 + $0x164] sm:$0xf]  ;;  %v2652_v62 = vld [vmem:[#allocation2 + $0x170] sm:$0xf0]  ;;  %v2506_v2 = vld [vmem:[#allocation2 + $0x40] sm:$0xf] }
  0x44   : > { %838 = vmatpush.bf16.msrb.mxu1 %v2387_v44  ;;  %v2538_v44 = vld [vmem:[#allocation2 + $0x80] sm:$0xf]  ;;  %v2999_v3 = vld [vmem:[#allocation2 + $0x4c] sm:$0xf0]  ;;  %v2655_v5 = vor.u32 %v3033_v61, %v2652_v62  ;;  %v2997_v7 = vld [vmem:[#allocation2 + $0x44] sm:$0xf] }
  0x45   : > { %851 = vmatpush.bf16.msrb.mxu2 %v2263_v45  ;;  %v3007_v45 = vld [vmem:[#allocation2 + $0x8c] sm:$0xf0]  ;;  %v2634_v4 = vld [vmem:[#allocation2 + $0x140] sm:$0xf]  ;;  %v2508_v8 = vld [vmem:[#allocation2 + $0x50] sm:$0xf0]  ;;  %v2507_v13 = vor.u32 %v2999_v3, %v2506_v2 }
  0x46   : > { %864 = vmatpush.bf16.msrb.mxu3 %v2391_v49  ;;  %v3005_v49 = vld [vmem:[#allocation2 + $0x84] sm:$0xf]  ;;  %v2539_v52 = vor.u32 %v3007_v45, %v2538_v44  ;;  %v307_v12 = vld [vmem:[%s289_s12 + $0x8] sm:$0x1f]  ;;  %v2618_v18 = vld [vmem:[#allocation2 + $0x120] sm:$0xf] }
  0x47   : > { %826 = vmatpush.bf16.msrb.mxu0 %v2243_v55  ;;  %v2543_v53 = vor.u32 %v3005_v49, %v2540_v50  ;;  %v3003_v55 = vld [vmem:[#allocation2 + $0x6c] sm:$0xf0]  ;;  %v3029_v9 = vld [vmem:[#allocation2 + $0x144] sm:$0xf]  ;;  %v2492_v22 = vld [vmem:[#allocation2 + $0x30] sm:$0xf0] }
  0x48   : > { %839 = vmatpush.bf16.msrb.mxu1 %v2371_v58  ;;  %v3035_v58 = vld [vmem:[#allocation2 + $0x16c] sm:$0xf0]  ;;  %v3025_v23 = vld [vmem:[#allocation2 + $0x124] sm:$0xf]  ;;  %v2620_v24 = vld [vmem:[#allocation2 + $0x130] sm:$0xf0] }
  0x49   : > { %852 = vmatpush.bf16.msrb.mxu2 %v2247_v59  ;;  %v3001_v59 = vld [vmem:[#allocation2 + $0x64] sm:$0xf]  ;;  %v2651_v0 = vor.u32 %v3035_v58, %v2650_v56  ;;  %v3027_v20 = vld [vmem:[#allocation2 + $0x12c] sm:$0xf0]  ;;  %v2602_v33 = vld [vmem:[#allocation2 + $0x100] sm:$0xf]  ;;  %v2623_v36 = vor.u32 %v3025_v23, %v2620_v24 }
  0x4a   : > { %865 = vmatpush.bf16.msrb.mxu3 %v2375_v63  ;;  %v2523_v63 = vor.u32 %v3003_v55, %v2522_v54  ;;  %v2527_v1 = vor.u32 %v3001_v59, %v2524_v60  ;;  %v3023_v34 = vld [vmem:[#allocation2 + $0x10c] sm:$0xf0]  ;;  %v2476_v37 = vld [vmem:[#allocation2 + $0x10] sm:$0xf0]  ;;  %v3021_v38 = vld [vmem:[#allocation2 + $0x104] sm:$0xf] }
  0x4b   : > { %827 = vmatpush.bf16.msrb.mxu0 %v2227_v6  ;;  %v3031_v6 = vld [vmem:[#allocation2 + $0x14c] sm:$0xf0]  ;;  %v2604_v39 = vld [vmem:[#allocation2 + $0x110] sm:$0xf0]  ;;  %v2594_v40 = vld [vmem:[#allocation2 + $0xe8] sm:$0xf] }
  0x4c   : > { %840 = vmatpush.bf16.msrb.mxu1 %v2355_v10  ;;  %v2636_v10 = vld [vmem:[#allocation2 + $0x150] sm:$0xf0]  ;;  %v3052_v44 = vld [vmem:[#allocation2 + $0x1f4] sm:$0xf0]  ;;  %v3018_v45 = vld [vmem:[#allocation2 + $0xec] sm:$0xf] }
  0x4d   : > { %853 = vmatpush.bf16.msrb.mxu2 %v2231_v11  ;;  %v306_v11 = vld [vmem:[%s289_s12] sm:$0x1f]  ;;  %v2639_v19 = vor.u32 %v3029_v9, %v2636_v10  ;;  %v3050_v50 = vld [vmem:[#allocation2 + $0x1ec] sm:$0xf]  ;;  %v2578_v55 = vld [vmem:[#allocation2 + $0xc8] sm:$0xf] }
  0x4e   : > { %866 = vmatpush.bf16.msrb.mxu3 %v2359_v14  ;;  %828 = vmatmul.bf16.vlgmr.msrb.gmra.mxu0 %v3339_v27  ;;  %v2635_v14 = vor.u32 %v3031_v6, %v2634_v4  ;;  %v308_v25 = vpack.c.bf16 %v307_v12, %v306_v11  ;;  %v3016_v56 = vld [vmem:[#allocation2 + $0xd4] sm:$0xf0]  ;;  %v3014_v61 = vld [vmem:[#allocation2 + $0xcc] sm:$0xf]  ;;  %v2580_v62 = vld [vmem:[#allocation2 + $0xd8] sm:$0xf0] }
  0x4f   : > { %1199 = vmatpush.bf16.msra.mxu0 %v2587_v15  ;;  %841 = vmatmul.bf16.vlgmr.msrb.gmra.mxu1 %v3341_v30  ;;  %v2511_v15 = vor.u32 %v2997_v7, %v2508_v8  ;;  %v3048_v60 = vld [vmem:[#allocation2 + $0x1d4] sm:$0xf0]  ;;  %v2579_v2 = vor.u32 %v3016_v56, %v2578_v55  ;;  %v2583_v4 = vor.u32 %v3014_v61, %v2580_v62  ;;  %v2690_v7 = vld [vmem:[#allocation2 + $0x1a8] sm:$0xf]  ;;  %v3010_v10 = vld [vmem:[#allocation2 + $0xac] sm:$0xf] }
  0x50   : > { %1212 = vmatpush.bf16.msra.mxu1 %v2715_v16  ;;  %854 = vmatmul.bf16.vlgmr.msrb.gmra.mxu2 %v3339_v27  ;;  %v2668_v27 = vld [vmem:[#allocation2 + $0x190] sm:$0xf0]  ;;  %v2490_v16 = vld [vmem:[#allocation2 + $0x20] sm:$0xf]  ;;  %v3012_v6 = vld [vmem:[#allocation2 + $0xb4] sm:$0xf0] }
  0x51   : > { %1225 = vmatpush.bf16.msra.mxu2 %v2591_v17  ;;  %867 = vmatmul.bf16.vlgmr.msrb.gmra.mxu3 %v3341_v30  ;;  %v2667_v30 = vor.u32 %v3039_v48, %v2666_v46  ;;  %v2671_v57 = vor.u32 %v3037_v51, %v2668_v27  ;;  %v2995_v17 = vld [vmem:[#allocation2 + $0x2c] sm:$0xf0]  ;;  %v2596_v46 = vld [vmem:[#allocation2 + $0xf8] sm:$0xf0]  ;;  %v2603_v48 = vor.u32 %v3023_v34, %v2602_v33  ;;  %v874_v27 = vunpack.c.h.b16 %v308_v25  ;;  %v3044_v9 = vld [vmem:[#allocation2 + $0x1b4] sm:$0xf0] }
  0x52   : > { %1238 = vmatpush.bf16.msra.mxu3 %v2719_v21  ;;  %v2993_v21 = vld [vmem:[#allocation2 + $0x24] sm:$0xf]  ;;  %v2491_v26 = vor.u32 %v2995_v17, %v2490_v16  ;;  %v2724_v51 = vld [vmem:[#allocation2 + $0x1f8] sm:$0xf0]  ;;  %v2599_v54 = vor.u32 %v3018_v45, %v2596_v46  ;;  %v3042_v12 = vld [vmem:[#allocation2 + $0x1ac] sm:$0xf] }
  0x53   : > { %1200 = vmatpush.bf16.msra.mxu0 %v2571_v28  ;;  %v2474_v28 = vld [vmem:[#allocation2] sm:$0xf]  ;;  %v2495_v32 = vor.u32 %v2993_v21, %v2492_v22  ;;  %v2727_v58 = vor.u32 %v3050_v50, %v2724_v51  ;;  %v2564_v11 = vld [vmem:[#allocation2 + $0xb8] sm:$0xf0]  ;;  %v2546_v17 = vld [vmem:[#allocation2 + $0x88] sm:$0xf] }
  0x54   : > { %1213 = vmatpush.bf16.msra.mxu1 %v2699_v29  ;;  %v2991_v29 = vld [vmem:[#allocation2 + $0xc] sm:$0xf0]  ;;  %v2567_v16 = vor.u32 %v3010_v10, %v2564_v11  ;;  %v3040_v21 = vld [vmem:[#allocation2 + $0x194] sm:$0xf0]  ;;  %v3006_v22 = vld [vmem:[#allocation2 + $0x8c] sm:$0xf] }
  0x55   : > { %1226 = vmatpush.bf16.msra.mxu2 %v2575_v31  ;;  %v2619_v31 = vor.u32 %v3027_v20, %v2618_v18  ;;  %v3008_v18 = vld [vmem:[#allocation2 + $0x94] sm:$0xf0]  ;;  %v2548_v23 = vld [vmem:[#allocation2 + $0x98] sm:$0xf0]  ;;  %v3038_v24 = vld [vmem:[#allocation2 + $0x18c] sm:$0xf] }
  0x56   : > { %1239 = vmatpush.bf16.msra.mxu3 %v2703_v35  ;;  %v2989_v35 = vld [vmem:[#allocation2 + $0x4] sm:$0xf]  ;;  %v2658_v33 = vld [vmem:[#allocation2 + $0x168] sm:$0xf]  ;;  %v3030_v50 = vld [vmem:[#allocation2 + $0x14c] sm:$0xf] }
  0x57   : > { %1201 = vmatpush.bf16.msra.mxu0 %v2555_v41  ;;  %v3020_v41 = vld [vmem:[#allocation2 + $0xf4] sm:$0xf0]  ;;  %v2479_v49 = vor.u32 %v2989_v35, %v2476_v37  ;;  %v2532_v37 = vld [vmem:[#allocation2 + $0x78] sm:$0xf0]  ;;  %v2642_v45 = vld [vmem:[#allocation2 + $0x148] sm:$0xf] }
  0x58   : > { %1214 = vmatpush.bf16.msra.mxu1 %v2683_v42  ;;  %v2722_v42 = vld [vmem:[#allocation2 + $0x1e8] sm:$0xf]  ;;  %v3036_v35 = vld [vmem:[#allocation2 + $0x174] sm:$0xf0]  ;;  %v2644_v51 = vld [vmem:[#allocation2 + $0x158] sm:$0xf0] }
  0x59   : > { %1227 = vmatpush.bf16.msra.mxu2 %v2559_v43  ;;  %v2475_v43 = vor.u32 %v2991_v29, %v2474_v28  ;;  %v2551_v29 = vor.u32 %v3006_v22, %v2548_v23  ;;  %v2626_v55 = vld [vmem:[#allocation2 + $0x128] sm:$0xf]  ;;  %v2647_v56 = vor.u32 %v3030_v50, %v2644_v51  ;;  %v3026_v61 = vld [vmem:[#allocation2 + $0x12c] sm:$0xf]  ;;  %v2628_v62 = vld [vmem:[#allocation2 + $0x138] sm:$0xf0] }
  0x5a   : > { %1240 = vmatpush.bf16.msra.mxu3 %v2687_v47  ;;  %v873_v47 = vunpack.c.l.b16 %v308_v25  ;;  %v2676_v25 = vld [vmem:[#allocation2 + $0x198] sm:$0xf0]  ;;  %v3022_v10 = vld [vmem:[#allocation2 + $0x10c] sm:$0xf]  ;;  %v2972_v22 = vld [vmem:[#allocation2 + $0x5f0] sm:$0xf0] }
  0x5b   : > { %1202 = vmatpush.bf16.msra.mxu0 %v2539_v52  ;;  %v2607_v52 = vor.u32 %v3021_v38, %v2604_v39  ;;  %v2679_v34 = vor.u32 %v3038_v24, %v2676_v25  ;;  %v3034_v38 = vld [vmem:[#allocation2 + $0x16c] sm:$0xf]  ;;  %v2660_v39 = vld [vmem:[#allocation2 + $0x178] sm:$0xf0] }
  0x5c   : > { %1215 = vmatpush.bf16.msra.mxu1 %v2667_v30  ;;  %v2595_v30 = vor.u32 %v3020_v41, %v2594_v40  ;;  %v3355_v59 = vpack.c.b16 %v873_v47, %v873_v47  ;;  %v2659_v41 = vor.u32 %v3036_v35, %v2658_v33  ;;  %v2663_v46 = vor.u32 %v3034_v38, %v2660_v39  ;;  %v3032_v47 = vld [vmem:[#allocation2 + $0x154] sm:$0xf0]  ;;  %v2612_v11 = vld [vmem:[#allocation2 + $0x118] sm:$0xf0]  ;;  %v3175_v33 = vld [vmem:[#allocation2 + $0x5cc] sm:$0xf0] }
  0x5d   : > { %1228 = vmatpush.bf16.msra.mxu2 %v2543_v53  ;;  %v2723_v53 = vor.u32 %v3052_v44, %v2722_v42  ;;  %v3000_v44 = vld [vmem:[#allocation2 + $0x54] sm:$0xf0]  ;;  %v2615_v23 = vor.u32 %v3022_v10, %v2612_v11  ;;  %v2828_v35 = vld [vmem:[#allocation2 + $0x4d0] sm:$0xf0] }
  0x5e   : > { %1241 = vmatpush.bf16.msra.mxu3 %v2671_v57  ;;  %v2706_v57 = vld [vmem:[#allocation2 + $0x1c8] sm:$0xf] }
  0x5f   : > { %1203 = vmatpush.bf16.msra.mxu0 %v2523_v63  ;;  %v3357_v63 = vpack.c.b16 %v874_v27, %v874_v27  ;;  %v2707_v3 = vor.u32 %v3048_v60, %v2706_v57  ;;  %v3028_v57 = vld [vmem:[#allocation2 + $0x134] sm:$0xf0]  ;;  %v2500_v60 = vld [vmem:[#allocation2 + $0x38] sm:$0xf0] }
  0x60   : > { %1216 = vmatpush.bf16.msra.mxu1 %v2651_v0  ;;  %v3046_v0 = vld [vmem:[#allocation2 + $0x1cc] sm:$0xf] }
  0x61   : > { %1229 = vmatpush.bf16.msra.mxu2 %v2527_v1  ;;  %v2708_v1 = vld [vmem:[#allocation2 + $0x1d8] sm:$0xf0] }
  0x62   : > { %1242 = vmatpush.bf16.msra.mxu3 %v2655_v5  ;;  %v2562_v5 = vld [vmem:[#allocation2 + $0xa8] sm:$0xf]  ;;  %v2711_v8 = vor.u32 %v3046_v0, %v2708_v1 }
  0x63   : > { %1204 = vmatpush.bf16.msra.mxu0 %v2507_v13  ;;  %v2692_v13 = vld [vmem:[#allocation2 + $0x1b8] sm:$0xf0]  ;;  %v2482_v1 = vld [vmem:[#allocation2 + $0x8] sm:$0xf] }
  0x64   : > { %1217 = vmatpush.bf16.msra.mxu1 %v2635_v14  ;;  %v2563_v14 = vor.u32 %v3012_v6, %v2562_v5  ;;  %v2695_v20 = vor.u32 %v3042_v12, %v2692_v13  ;;  %v2610_v5 = vld [vmem:[#allocation2 + $0x108] sm:$0xf]  ;;  %v3024_v6 = vld [vmem:[#allocation2 + $0x114] sm:$0xf0]  ;;  %v2842_v12 = vld [vmem:[#allocation2 + $0x4e0] sm:$0xf] }
  0x65   : > { %1230 = vmatpush.bf16.msra.mxu2 %v2511_v15  ;;  %v2691_v15 = vor.u32 %v3044_v9, %v2690_v7  ;;  %v2990_v7 = vld [vmem:[#allocation2 + $0xc] sm:$0xf]  ;;  %v2484_v9 = vld [vmem:[#allocation2 + $0x18] sm:$0xf0]  ;;  %v3147_v13 = vld [vmem:[#allocation2 + $0x4ec] sm:$0xf0] }
  0x66   : > { %1243 = vmatpush.bf16.msra.mxu3 %v2639_v19  ;;  %v2674_v19 = vld [vmem:[#allocation2 + $0x188] sm:$0xf]  ;;  %v2843_v24 = vor.u32 %v3147_v13, %v2842_v12  ;;  %v2762_v13 = vld [vmem:[#allocation2 + $0x440] sm:$0xf] }
  0x67   : > { %1205 = vmatpush.bf16.msra.mxu0 %v2491_v26  ;;  %v2547_v26 = vor.u32 %v3008_v18, %v2546_v17  ;;  %v2675_v28 = vor.u32 %v3040_v21, %v2674_v19  ;;  %v3145_v17 = vld [vmem:[#allocation2 + $0x4e4] sm:$0xf]  ;;  %v2844_v18 = vld [vmem:[#allocation2 + $0x4f0] sm:$0xf0]  ;;  %v2611_v19 = vor.u32 %v3024_v6, %v2610_v5  ;;  %v3163_v5 = vld [vmem:[#allocation2 + $0x56c] sm:$0xf0] }
  0x68   : > { %1218 = vmatpush.bf16.msra.mxu1 %v2619_v31  ;;  %v2530_v31 = vld [vmem:[#allocation2 + $0x68] sm:$0xf]  ;;  %v3177_v21 = vld [vmem:[#allocation2 + $0x5e4] sm:$0xf] }
  0x69   : > { %1231 = vmatpush.bf16.msra.mxu2 %v2495_v32  ;;  %v3004_v32 = vld [vmem:[#allocation2 + $0x74] sm:$0xf0]  ;;  %v3129_v6 = vld [vmem:[#allocation2 + $0x464] sm:$0xf] }
  0x6a   : > { %1244 = vmatpush.bf16.msra.mxu3 %v2623_v36  ;;  %v3002_v36 = vld [vmem:[#allocation2 + $0x6c] sm:$0xf]  ;;  %v2531_v40 = vor.u32 %v3004_v32, %v2530_v31  ;;  %v2954_v31 = vld [vmem:[#allocation2 + $0x5c0] sm:$0xf]  ;;  %v2975_v32 = vor.u32 %v3177_v21, %v2972_v22  ;;  %v2892_v21 = vld [vmem:[#allocation2 + $0x550] sm:$0xf0] }
  0x6b   : > { %1206 = vmatpush.bf16.msra.mxu0 %v2475_v43  ;;  %v2535_v42 = vor.u32 %v3002_v36, %v2532_v37  ;;  %v2514_v43 = vld [vmem:[#allocation2 + $0x48] sm:$0xf]  ;;  %v3173_v36 = vld [vmem:[#allocation2 + $0x5c4] sm:$0xf]  ;;  %v2956_v37 = vld [vmem:[#allocation2 + $0x5d0] sm:$0xf0]  ;;  %v2955_v39 = vor.u32 %v3175_v33, %v2954_v31 }
  0x6c   : > { %1219 = vmatpush.bf16.msra.mxu1 %v2603_v48  ;;  %v2998_v48 = vld [vmem:[#allocation2 + $0x4c] sm:$0xf]  ;;  %v2515_v27 = vor.u32 %v3000_v44, %v2514_v43  ;;  %v2938_v43 = vld [vmem:[#allocation2 + $0x5a0] sm:$0xf]  ;;  %v2959_v44 = vor.u32 %v3173_v36, %v2956_v37  ;;  %v2748_v33 = vld [vmem:[#allocation2 + $0x430] sm:$0xf0] }
  0x6d   : > { %1232 = vmatpush.bf16.msra.mxu2 %v2479_v49  ;;  %v2516_v49 = vld [vmem:[#allocation2 + $0x58] sm:$0xf0]  ;;  %v2730_v36 = vld [vmem:[#allocation2 + $0x400] sm:$0xf]  ;;  %v3119_v37 = vld [vmem:[#allocation2 + $0x40c] sm:$0xf0] }
  0x6e   : > { %1245 = vmatpush.bf16.msra.mxu3 %v2607_v52  ;;  %1207 = vmatmul.bf16.vlgmr.msra.gmra.mxu0 %v3355_v59  ;;  %v2643_v52 = vor.u32 %v3032_v47, %v2642_v45  ;;  %v3171_v45 = vld [vmem:[#allocation2 + $0x5ac] sm:$0xf0]  ;;  %v2812_v47 = vld [vmem:[#allocation2 + $0x4b0] sm:$0xf0] }
  0x6f   : > { %1251 = vmatpush.bf16.msrb.mxu0 %v2595_v30  ;;  %1220 = vmatmul.bf16.vlgmr.msra.gmra.mxu1 %v3357_v63  ;;  %v2519_v30 = vor.u32 %v2998_v48, %v2516_v49  ;;  %v3169_v48 = vld [vmem:[#allocation2 + $0x5a4] sm:$0xf]  ;;  %v2940_v49 = vld [vmem:[#allocation2 + $0x5b0] sm:$0xf0]  ;;  %v2939_v51 = vor.u32 %v3171_v45, %v2938_v43 }
  0x70   : > { %1264 = vmatpush.bf16.msrb.mxu1 %v2723_v53  ;;  %1233 = vmatmul.bf16.vlgmr.msra.gmra.mxu2 %v3355_v59  ;;  %v2498_v53 = vld [vmem:[#allocation2 + $0x28] sm:$0xf]  ;;  %v2732_v45 = vld [vmem:[#allocation2 + $0x410] sm:$0xf0] }
  0x71   : > { %1277 = vmatpush.bf16.msrb.mxu2 %v2599_v54  ;;  %1246 = vmatmul.bf16.vlgmr.msra.gmra.mxu3 %v3357_v63  ;;  %v2996_v54 = vld [vmem:[#allocation2 + $0x34] sm:$0xf0] }
  0x72   : > { %1290 = vmatpush.bf16.msrb.mxu3 %v2727_v58  ;;  %v2994_v58 = vld [vmem:[#allocation2 + $0x2c] sm:$0xf]  ;;  %v2499_v0 = vor.u32 %v2996_v54, %v2498_v53  ;;  %v2922_v53 = vld [vmem:[#allocation2 + $0x580] sm:$0xf]  ;;  %v2943_v54 = vor.u32 %v3169_v48, %v2940_v49  ;;  %v3149_v48 = vld [vmem:[#allocation2 + $0x504] sm:$0xf] }
  0x73   : > { %1252 = vmatpush.bf16.msrb.mxu0 %v2579_v2  ;;  %v2992_v2 = vld [vmem:[#allocation2 + $0x14] sm:$0xf0]  ;;  %v2860_v49 = vld [vmem:[#allocation2 + $0x510] sm:$0xf0] }
  0x74   : > { %1265 = vmatpush.bf16.msrb.mxu1 %v2707_v3  ;;  %v2627_v3 = vor.u32 %v3028_v57, %v2626_v55  ;;  %v3167_v55 = vld [vmem:[#allocation2 + $0x58c] sm:$0xf0]  ;;  %v2796_v57 = vld [vmem:[#allocation2 + $0x490] sm:$0xf0] }
  0x75   : > { %1278 = vmatpush.bf16.msrb.mxu2 %v2583_v4  ;;  %v2503_v4 = vor.u32 %v2994_v58, %v2500_v60  ;;  %v3165_v58 = vld [vmem:[#allocation2 + $0x584] sm:$0xf]  ;;  %v2924_v60 = vld [vmem:[#allocation2 + $0x590] sm:$0xf0] }
  0x76   : > { %1291 = vmatpush.bf16.msrb.mxu3 %v2711_v8  ;;  %v2631_v8 = vor.u32 %v3026_v61, %v2628_v62  ;;  %v2923_v62 = vor.u32 %v3167_v55, %v2922_v53  ;;  %v3146_v53 = vld [vmem:[#allocation2 + $0x4ec] sm:$0xf]  ;;  %v1369_v55 = vshrl.u32 %v3355_v59, 16 }
  0x77   : > { %1253 = vmatpush.bf16.msrb.mxu0 %v2563_v14  ;;  %v2970_v14 = vld [vmem:[#allocation2 + $0x5e0] sm:$0xf] }
  0x78   : > { %1266 = vmatpush.bf16.msrb.mxu1 %v2691_v15  ;;  %v2483_v15 = vor.u32 %v2992_v2, %v2482_v1  ;;  %v2778_v1 = vld [vmem:[#allocation2 + $0x460] sm:$0xf]  ;;  %v3131_v2 = vld [vmem:[#allocation2 + $0x46c] sm:$0xf0] }
  0x79   : > { %1279 = vmatpush.bf16.msrb.mxu2 %v2567_v16  ;;  %v3179_v16 = vld [vmem:[#allocation2 + $0x5ec] sm:$0xf0]  ;;  %v2779_v10 = vor.u32 %v3131_v2, %v2778_v1  ;;  %v2863_v1 = vor.u32 %v3149_v48, %v2860_v49  ;;  %v3130_v48 = vld [vmem:[#allocation2 + $0x46c] sm:$0xf]  ;;  %v2788_v49 = vld [vmem:[#allocation2 + $0x478] sm:$0xf0] }
  0x7a   : > { %1292 = vmatpush.bf16.msrb.mxu3 %v2695_v20  ;;  %v2487_v20 = vor.u32 %v2990_v7, %v2484_v9  ;;  %v2971_v25 = vor.u32 %v3179_v16, %v2970_v14  ;;  %v2780_v7 = vld [vmem:[#allocation2 + $0x470] sm:$0xf0]  ;;  %v3127_v14 = vld [vmem:[#allocation2 + $0x44c] sm:$0xf0] }
  0x7b   : > { %1254 = vmatpush.bf16.msrb.mxu0 %v2547_v26  ;;  %v2847_v26 = vor.u32 %v3145_v17, %v2844_v18  ;;  %v2908_v9 = vld [vmem:[#allocation2 + $0x570] sm:$0xf0]  ;;  %v2783_v12 = vor.u32 %v3129_v6, %v2780_v7  ;;  %v3159_v17 = vld [vmem:[#allocation2 + $0x54c] sm:$0xf0]  ;;  %v3125_v18 = vld [vmem:[#allocation2 + $0x444] sm:$0xf]  ;;  %v2763_v22 = vor.u32 %v3127_v14, %v2762_v13 }
  0x7c   : > { %1267 = vmatpush.bf16.msrb.mxu1 %v2675_v28  ;;  %v2826_v28 = vld [vmem:[#allocation2 + $0x4c0] sm:$0xf]  ;;  %v3144_v6 = vld [vmem:[#allocation2 + $0x4d4] sm:$0xf0]  ;;  %v2962_v7 = vld [vmem:[#allocation2 + $0x5c8] sm:$0xf] }
  0x7d   : > { %1280 = vmatpush.bf16.msrb.mxu2 %v2551_v29  ;;  %v3143_v29 = vld [vmem:[#allocation2 + $0x4cc] sm:$0xf0]  ;;  %v2964_v13 = vld [vmem:[#allocation2 + $0x5d8] sm:$0xf0] }
  0x7e   : > { %1293 = vmatpush.bf16.msrb.mxu3 %v2679_v34  ;;  %v3141_v34 = vld [vmem:[#allocation2 + $0x4c4] sm:$0xf]  ;;  %v2827_v38 = vor.u32 %v3143_v29, %v2826_v28  ;;  %v2874_v28 = vld [vmem:[#allocation2 + $0x520] sm:$0xf]  ;;  %v3155_v29 = vld [vmem:[#allocation2 + $0x52c] sm:$0xf0] }
  0x7f   : > { %1255 = vmatpush.bf16.msrb.mxu0 %v2531_v40  ;;  %v2831_v40 = vor.u32 %v3141_v34, %v2828_v35  ;;  %v3153_v34 = vld [vmem:[#allocation2 + $0x524] sm:$0xf]  ;;  %v2876_v35 = vld [vmem:[#allocation2 + $0x530] sm:$0xf0] }
  0x80   : > { %1268 = vmatpush.bf16.msrb.mxu1 %v2659_v41  ;;  %v2810_v41 = vld [vmem:[#allocation2 + $0x4a0] sm:$0xf] }
  0x81   : > { %1281 = vmatpush.bf16.msrb.mxu2 %v2535_v42  ;;  %v3139_v42 = vld [vmem:[#allocation2 + $0x4ac] sm:$0xf0] }
  0x82   : > { %1294 = vmatpush.bf16.msrb.mxu3 %v2663_v46  ;;  %v3137_v46 = vld [vmem:[#allocation2 + $0x4a4] sm:$0xf]  ;;  %v2811_v50 = vor.u32 %v3139_v42, %v2810_v41  ;;  %v1371_v41 = vshll.u32 %v3355_v59, 16  ;;  %v2875_v42 = vor.u32 %v3155_v29, %v2874_v28 }
  0x83   : > { %1256 = vmatpush.bf16.msrb.mxu0 %v2515_v27  ;;  %v2815_v27 = vor.u32 %v3137_v46, %v2812_v47  ;;  %v1378_v46 = vshll.u32 %v3357_v63, 16  ;;  %v2879_v47 = vor.u32 %v3153_v34, %v2876_v35  ;;  %v3168_v35 = vld [vmem:[#allocation2 + $0x594] sm:$0xf0] }
  0x84   : > { %1269 = vmatpush.bf16.msrb.mxu1 %v2643_v52  ;;  %v2794_v52 = vld [vmem:[#allocation2 + $0x480] sm:$0xf] }
  0x85   : > { %1282 = vmatpush.bf16.msrb.mxu2 %v2519_v30  ;;  %v3135_v30 = vld [vmem:[#allocation2 + $0x48c] sm:$0xf0] }
  0x86   : > { %1295 = vmatpush.bf16.msrb.mxu3 %v2647_v56  ;;  %v3133_v56 = vld [vmem:[#allocation2 + $0x484] sm:$0xf]  ;;  %v2795_v61 = vor.u32 %v3135_v30, %v2794_v52  ;;  %v3180_v52 = vld [vmem:[#allocation2 + $0x5f4] sm:$0xf0]  ;;  %v2731_v30 = vor.u32 %v3119_v37, %v2730_v36  ;;  %v3134_v36 = vld [vmem:[#allocation2 + $0x48c] sm:$0xf] }
  0x87   : > { %1257 = vmatpush.bf16.msrb.mxu0 %v2499_v0  ;;  %v2799_v0 = vor.u32 %v3133_v56, %v2796_v57  ;;  %v1373_v56 = vrot.slane %v1371_v41, 1  ;;  %v2804_v37 = vld [vmem:[#allocation2 + $0x498] sm:$0xf0] }
  0x88   : > { %1270 = vmatpush.bf16.msrb.mxu1 %v2627_v3  ;;  %v2906_v3 = vld [vmem:[#allocation2 + $0x560] sm:$0xf] }
  0x89   : > { %1283 = vmatpush.bf16.msrb.mxu2 %v2503_v4  ;;  %v2927_v4 = vor.u32 %v3165_v58, %v2924_v60  ;;  %v2907_v11 = vor.u32 %v3163_v5, %v2906_v3  ;;  %v3178_v60 = vld [vmem:[#allocation2 + $0x5ec] sm:$0xf]  ;;  %v2834_v5 = vld [vmem:[#allocation2 + $0x4c8] sm:$0xf] }
  0x8a   : > { %1296 = vmatpush.bf16.msrb.mxu3 %v2631_v8  ;;  %v3161_v8 = vld [vmem:[#allocation2 + $0x564] sm:$0xf]  ;;  %v2835_v14 = vor.u32 %v3144_v6, %v2834_v5  ;;  %v2882_v5 = vld [vmem:[#allocation2 + $0x528] sm:$0xf] }
  0x8b   : > { %1258 = vmatpush.bf16.msrb.mxu0 %v2483_v15  ;;  %v2890_v15 = vld [vmem:[#allocation2 + $0x540] sm:$0xf]  ;;  %v2911_v16 = vor.u32 %v3161_v8, %v2908_v9  ;;  %v3371_v8 = vor.u32 %v1373_v56, %v1369_v55  ;;  %v3176_v9 = vld [vmem:[#allocation2 + $0x5d4] sm:$0xf0]  ;;  %v2898_v55 = vld [vmem:[#allocation2 + $0x548] sm:$0xf] }
  0x8c   : > { %1271 = vmatpush.bf16.msrb.mxu1 %v2611_v19  ;;  %v2764_v19 = vld [vmem:[#allocation2 + $0x450] sm:$0xf0] }
  0x8d   : > { %1284 = vmatpush.bf16.msrb.mxu2 %v2487_v20  ;;  %v3157_v20 = vld [vmem:[#allocation2 + $0x544] sm:$0xf] }
  0x8e   : > { %1297 = vmatpush.bf16.msrb.mxu3 %v2615_v23  ;;  %1259 = vmatmul.bf16.vlgmr.msrb.gmra.mxu0 %v3355_v59  ;;  %v2746_v23 = vld [vmem:[#allocation2 + $0x420] sm:$0xf]  ;;  %v2895_v31 = vor.u32 %v3157_v20, %v2892_v21  ;;  %v3172_v21 = vld [vmem:[#allocation2 + $0x5b4] sm:$0xf0] }
  0x8f   : > { %1704 = vmatpush.bf16.msra.mxu0 %v2843_v24  ;;  %1272 = vmatmul.bf16.vlgmr.msrb.gmra.mxu1 %v3357_v63  ;;  %v2891_v24 = vor.u32 %v3159_v17, %v2890_v15  ;;  %v2963_v15 = vor.u32 %v3176_v9, %v2962_v7  ;;  %v2818_v17 = vld [vmem:[#allocation2 + $0x4a8] sm:$0xf]  ;;  %v3156_v7 = vld [vmem:[#allocation2 + $0x534] sm:$0xf0]  ;;  %v2756_v9 = vld [vmem:[#allocation2 + $0x438] sm:$0xf0] }
  0x90   : > { %1717 = vmatpush.bf16.msra.mxu1 %v2971_v25  ;;  %1285 = vmatmul.bf16.vlgmr.msrb.gmra.mxu2 %v3355_v59  ;;  %v2767_v25 = vor.u32 %v3125_v18, %v2764_v19  ;;  %v3140_v18 = vld [vmem:[#allocation2 + $0x4b4] sm:$0xf0]  ;;  %v2946_v19 = vld [vmem:[#allocation2 + $0x5a8] sm:$0xf] }
  0x91   : > { %1730 = vmatpush.bf16.msra.mxu2 %v2847_v26  ;;  %1298 = vmatmul.bf16.vlgmr.msrb.gmra.mxu3 %v3357_v63  ;;  %v3123_v26 = vld [vmem:[#allocation2 + $0x42c] sm:$0xf0]  ;;  %v2947_v28 = vor.u32 %v3172_v21, %v2946_v19  ;;  %v2866_v19 = vld [vmem:[#allocation2 + $0x508] sm:$0xf] }
  0x92   : > { %1743 = vmatpush.bf16.msra.mxu3 %v2975_v32  ;;  %v3121_v32 = vld [vmem:[#allocation2 + $0x424] sm:$0xf] }
  0x93   : > { %1705 = vmatpush.bf16.msra.mxu0 %v2827_v38  ;;  %v2747_v38 = vor.u32 %v3123_v26, %v2746_v23  ;;  %v2751_v43 = vor.u32 %v3121_v32, %v2748_v33  ;;  %v2820_v23 = vld [vmem:[#allocation2 + $0x4b8] sm:$0xf0]  ;;  %v2819_v26 = vor.u32 %v3140_v18, %v2818_v17  ;;  %v3136_v32 = vld [vmem:[#allocation2 + $0x494] sm:$0xf0]  ;;  %v2930_v33 = vld [vmem:[#allocation2 + $0x588] sm:$0xf] }
  0x94   : > { %1718 = vmatpush.bf16.msra.mxu1 %v2955_v39  ;;  %v2858_v39 = vld [vmem:[#allocation2 + $0x500] sm:$0xf]  ;;  %v2931_v41 = vor.u32 %v3168_v35, %v2930_v33  ;;  %v2738_v17 = vld [vmem:[#allocation2 + $0x408] sm:$0xf]  ;;  %v3120_v18 = vld [vmem:[#allocation2 + $0x414] sm:$0xf0] }
  0x95   : > { %1731 = vmatpush.bf16.msra.mxu2 %v2831_v40  ;;  %v3151_v40 = vld [vmem:[#allocation2 + $0x50c] sm:$0xf0] }
  0x96   : > { %1744 = vmatpush.bf16.msra.mxu3 %v2959_v44  ;;  %v3117_v44 = vld [vmem:[#allocation2 + $0x404] sm:$0xf]  ;;  %v2859_v57 = vor.u32 %v3151_v40, %v2858_v39  ;;  %v2932_v39 = vld [vmem:[#allocation2 + $0x598] sm:$0xf0] }
  0x97   : > { %1706 = vmatpush.bf16.msra.mxu0 %v2811_v50  ;;  %v2850_v50 = vld [vmem:[#allocation2 + $0x4e8] sm:$0xf]  ;;  %v2735_v58 = vor.u32 %v3117_v44, %v2732_v45  ;;  %v3132_v44 = vld [vmem:[#allocation2 + $0x474] sm:$0xf0] }
  0x98   : > { %1719 = vmatpush.bf16.msra.mxu1 %v2939_v51  ;;  %v3148_v51 = vld [vmem:[#allocation2 + $0x4f4] sm:$0xf0]  ;;  %v2914_v45 = vld [vmem:[#allocation2 + $0x568] sm:$0xf] }
  0x99   : > { %1732 = vmatpush.bf16.msra.mxu2 %v2815_v27  ;;  %v2978_v27 = vld [vmem:[#allocation2 + $0x5e8] sm:$0xf]  ;;  %v2851_v2 = vor.u32 %v3148_v51, %v2850_v50  ;;  %v3162_v50 = vld [vmem:[#allocation2 + $0x56c] sm:$0xf]  ;;  %v2916_v51 = vld [vmem:[#allocation2 + $0x578] sm:$0xf0] }
  0x9a   : > { %1745 = vmatpush.bf16.msra.mxu3 %v2943_v54  ;;  %v2852_v54 = vld [vmem:[#allocation2 + $0x4f8] sm:$0xf0]  ;;  %v2979_v3 = vor.u32 %v3180_v52, %v2978_v27  ;;  %v2919_v56 = vor.u32 %v3162_v50, %v2916_v51 }
  0x9b   : > { %1707 = vmatpush.bf16.msra.mxu0 %v2795_v61  ;;  %v2980_v61 = vld [vmem:[#allocation2 + $0x5f8] sm:$0xf0] }
  0x9c   : > { %1720 = vmatpush.bf16.msra.mxu1 %v2923_v62  ;;  %v1376_v62 = vshrl.u32 %v3357_v63, 16  ;;  %v2983_v59 = vor.u32 %v3178_v60, %v2980_v61  ;;  %v3174_v63 = vld [vmem:[#allocation2 + $0x5cc] sm:$0xf]  ;;  %v2772_v60 = vld [vmem:[#allocation2 + $0x458] sm:$0xf0] }
  0x9d   : > { %1733 = vmatpush.bf16.msra.mxu2 %v2799_v0  ;;  %v1380_v0 = vrot.slane %v1378_v46, 1  ;;  %v2967_v20 = vor.u32 %v3174_v63, %v2964_v13  ;;  %v3158_v61 = vld [vmem:[#allocation2 + $0x54c] sm:$0xf] }
  0x9e   : > { %1746 = vmatpush.bf16.msra.mxu3 %v2927_v4  ;;  %v2855_v4 = vor.u32 %v3146_v53, %v2852_v54  ;;  %v2770_v53 = vld [vmem:[#allocation2 + $0x448] sm:$0xf]  ;;  %v3128_v54 = vld [vmem:[#allocation2 + $0x454] sm:$0xf0] }
  0x9f   : > { %1708 = vmatpush.bf16.msra.mxu0 %v2779_v10  ;;  %v3142_v10 = vld [vmem:[#allocation2 + $0x4cc] sm:$0xf] }
  0xa0   : > { %1721 = vmatpush.bf16.msra.mxu1 %v2907_v11  ;;  %v2836_v11 = vld [vmem:[#allocation2 + $0x4d8] sm:$0xf0] }
  0xa1   : > { %1734 = vmatpush.bf16.msra.mxu2 %v2783_v12  ;;  %v3373_v12 = vor.u32 %v1380_v0, %v1376_v62  ;;  %v2900_v62 = vld [vmem:[#allocation2 + $0x558] sm:$0xf0]  ;;  %v2771_v0 = vor.u32 %v3128_v54, %v2770_v53 }
  0xa2   : > { %1747 = vmatpush.bf16.msra.mxu3 %v2911_v16  ;;  %v2839_v16 = vor.u32 %v3142_v10, %v2836_v11  ;;  %v2903_v6 = vor.u32 %v3158_v61, %v2900_v62  ;;  %v3154_v10 = vld [vmem:[#allocation2 + $0x52c] sm:$0xf]  ;;  %v2884_v11 = vld [vmem:[#allocation2 + $0x538] sm:$0xf0] }
  0xa3   : > { %1709 = vmatpush.bf16.msra.mxu0 %v2763_v22  ;;  %v3138_v22 = vld [vmem:[#allocation2 + $0x4ac] sm:$0xf]  ;;  %v2887_v21 = vor.u32 %v3154_v10, %v2884_v11 }
  0xa4   : > { %1722 = vmatpush.bf16.msra.mxu1 %v2891_v24  ;;  %v3170_v24 = vld [vmem:[#allocation2 + $0x5ac] sm:$0xf]  ;;  %v2823_v29 = vor.u32 %v3138_v22, %v2820_v23  ;;  %v3152_v22 = vld [vmem:[#allocation2 + $0x514] sm:$0xf0] }
  0xa5   : > { %1735 = vmatpush.bf16.msra.mxu2 %v2767_v25  ;;  %v2948_v25 = vld [vmem:[#allocation2 + $0x5b8] sm:$0xf0]  ;;  %v3118_v23 = vld [vmem:[#allocation2 + $0x40c] sm:$0xf] }
  0xa6   : > { %1748 = vmatpush.bf16.msra.mxu3 %v2895_v31  ;;  %v2802_v31 = vld [vmem:[#allocation2 + $0x488] sm:$0xf]  ;;  %v2951_v34 = vor.u32 %v3170_v24, %v2948_v25  ;;  %v2740_v24 = vld [vmem:[#allocation2 + $0x418] sm:$0xf0]  ;;  %v3150_v25 = vld [vmem:[#allocation2 + $0x50c] sm:$0xf] }
  0xa7   : > { %1710 = vmatpush.bf16.msra.mxu0 %v2747_v38  ;;  %v3166_v38 = vld [vmem:[#allocation2 + $0x58c] sm:$0xf]  ;;  %v2803_v40 = vor.u32 %v3136_v32, %v2802_v31  ;;  %v2867_v31 = vor.u32 %v3152_v22, %v2866_v19  ;;  %v2743_v32 = vor.u32 %v3118_v23, %v2740_v24 }
  0xa8   : > { %1723 = vmatpush.bf16.msra.mxu1 %v2875_v42  ;;  %v2807_v42 = vor.u32 %v3134_v36, %v2804_v37  ;;  %v2935_v46 = vor.u32 %v3166_v38, %v2932_v39 }
  0xa9   : > { %1736 = vmatpush.bf16.msra.mxu2 %v2751_v43  ;;  %v2786_v43 = vld [vmem:[#allocation2 + $0x468] sm:$0xf] }
  0xaa   : > { %1749 = vmatpush.bf16.msra.mxu3 %v2879_v47  ;;  %v3164_v47 = vld [vmem:[#allocation2 + $0x574] sm:$0xf0]  ;;  %v2787_v27 = vor.u32 %v3132_v44, %v2786_v43 }
  0xab   : > { %1711 = vmatpush.bf16.msra.mxu0 %v2731_v30  ;;  %v2915_v52 = vor.u32 %v3164_v47, %v2914_v45  ;;  %v2791_v30 = vor.u32 %v3130_v48, %v2788_v49 }
  0xac   : > { %1724 = vmatpush.bf16.msra.mxu1 %v2859_v57  ;;  %v3160_v57 = vld [vmem:[#allocation2 + $0x554] sm:$0xf0] }
  0xad   : > { %1737 = vmatpush.bf16.msra.mxu2 %v2735_v58  ;;  %v3126_v58 = vld [vmem:[#allocation2 + $0x44c] sm:$0xf] }
  0xae   : > { %1750 = vmatpush.bf16.msra.mxu3 %v2863_v1  ;;  %1712 = vmatmul.bf16.vlgmr.msra.gmra.mxu0 %v3371_v8  ;;  %v2899_v1 = vor.u32 %v3160_v57, %v2898_v55 }
  0xaf   : > { %1756 = vmatpush.bf16.msrb.mxu0 %v2851_v2  ;;  %1725 = vmatmul.bf16.vlgmr.msra.gmra.mxu1 %v3373_v12  ;;  %v2775_v2 = vor.u32 %v3126_v58, %v2772_v60 }
  0xb0   : > { %1769 = vmatpush.bf16.msrb.mxu1 %v2979_v3  ;;  %1738 = vmatmul.bf16.vlgmr.msra.gmra.mxu2 %v3371_v8  ;;  %v2754_v3 = vld [vmem:[#allocation2 + $0x428] sm:$0xf] }
  0xb1   : > { %1782 = vmatpush.bf16.msrb.mxu2 %v2855_v4  ;;  %1751 = vmatmul.bf16.vlgmr.msra.gmra.mxu3 %v3373_v12  ;;  %v3124_v4 = vld [vmem:[#allocation2 + $0x434] sm:$0xf0]  ;;  %v777_v63 = vpop.f32.mrf.mxu0 }
  0xb2   : > { %1795 = vmatpush.bf16.msrb.mxu3 %v2983_v59  ;;  %v3122_v59 = vld [vmem:[#allocation2 + $0x42c] sm:$0xf]  ;;  %v2755_v13 = vor.u32 %v3124_v4, %v2754_v3  ;;  %v3390_v4 = vld [vmem:[%s3491_s3] sm:$0xf] }
  0xb3   : > { %1757 = vmatpush.bf16.msrb.mxu0 %v2835_v14  ;;  %v790_v14 = vpop.f32.mrf.mxu1 }
  0xb4   : > { %1770 = vmatpush.bf16.msrb.mxu1 %v2963_v15  ;;  %v2883_v15 = vor.u32 %v3156_v7, %v2882_v5 }
  0xb5   : > { %1783 = vmatpush.bf16.msrb.mxu2 %v2839_v16  ;;  %v2759_v16 = vor.u32 %v3122_v59, %v2756_v9  ;;  %v1814_v59 = vperm.slane %v3390_v4, 0 }
  0xb6   : > { %1796 = vmatpush.bf16.msrb.mxu3 %v2967_v20  ;;  %v791_v20 = vadd.f32 %v790_v14, %v777_v63 }
  0xb7   : > { %1758 = vmatpush.bf16.msrb.mxu0 %v2819_v26  ;;  %v2868_v26 = vld [vmem:[#allocation2 + $0x518] sm:$0xf0] }
  0xb8   : > { %1771 = vmatpush.bf16.msrb.mxu1 %v2947_v28  ;;  %v803_v28 = vpop.f32.mrf.mxu2  ;;  %v2871_v33 = vor.u32 %v3150_v25, %v2868_v26 }
  0xb9   : > { %1784 = vmatpush.bf16.msrb.mxu2 %v2823_v29  ;;  %v2739_v29 = vor.u32 %v3120_v18, %v2738_v17  ;;  %v779_v36 = vpop.f32.mrf.mxu0  ;;  %v1815_v18 = vperm.slane %v3390_v4, 1 }
  0xba   : > { %1797 = vmatpush.bf16.msrb.mxu3 %v2951_v34  ;;  %v816_v34 = vpop.f32.mrf.mxu3 }
  0xbb   : > { %1759 = vmatpush.bf16.msrb.mxu0 %v2803_v40  ;;  %v817_v35 = vadd.f32 %v816_v34, %v803_v28  ;;  %v792_v37 = vpop.f32.mrf.mxu1 }
  0xbc   : > { %1772 = vmatpush.bf16.msrb.mxu1 %v2931_v41 }
  0xbd   : > { %1785 = vmatpush.bf16.msrb.mxu2 %v2807_v42 }
  0xbe   : > { %1798 = vmatpush.bf16.msrb.mxu3 %v2935_v46 }
  0xbf   : > { %1760 = vmatpush.bf16.msrb.mxu0 %v2787_v27 }
  0xc0   : > { %1773 = vmatpush.bf16.msrb.mxu1 %v2915_v52  ;;  %v805_v38 = vpop.f32.mrf.mxu2 }
  0xc1   : > { %1786 = vmatpush.bf16.msrb.mxu2 %v2791_v30 }
  0xc2   : > { %1799 = vmatpush.bf16.msrb.mxu3 %v2919_v56  ;;  %v818_v39 = vpop.f32.mrf.mxu3 }
  0xc3   : > { %1761 = vmatpush.bf16.msrb.mxu0 %v2771_v0 }
  0xc4   : > { %1774 = vmatpush.bf16.msrb.mxu1 %v2899_v1 }
  0xc5   : > { %1787 = vmatpush.bf16.msrb.mxu2 %v2775_v2 }
  0xc6   : > { %1800 = vmatpush.bf16.msrb.mxu3 %v2903_v6 }
  0xc7   : > { %1762 = vmatpush.bf16.msrb.mxu0 %v2755_v13 }
  0xc8   : > { %1775 = vmatpush.bf16.msrb.mxu1 %v2883_v15 }
  0xc9   : > { %1788 = vmatpush.bf16.msrb.mxu2 %v2759_v16 }
  0xca   : > { %1801 = vmatpush.bf16.msrb.mxu3 %v2887_v21 }
  0xcb   : > { %1763 = vmatpush.bf16.msrb.mxu0 %v2739_v29  ;;  %v829_v40 = vpop.f32.mrf.mxu0 }
  0xcc   : > { %1776 = vmatpush.bf16.msrb.mxu1 %v2867_v31  ;;  %v842_v41 = vpop.f32.mrf.mxu1 }
  0xcd   : > { %1789 = vmatpush.bf16.msrb.mxu2 %v2743_v32  ;;  %v843_v42 = vadd.f32 %v842_v41, %v829_v40 }
  0xce   : > { %1802 = vmatpush.bf16.msrb.mxu3 %v2871_v33  ;;  %1764 = vmatmul.bf16.vlgmr.msrb.gmra.mxu0 %v3371_v8 }
  0xcf   : > { %1777 = vmatmul.bf16.vlgmr.msrb.gmra.mxu1 %v3373_v12 }
  0xd0   : > { %1790 = vmatmul.bf16.vlgmr.msrb.gmra.mxu2 %v3371_v8 }
  0xd1   : > { %1803 = vmatmul.bf16.vlgmr.msrb.gmra.mxu3 %v3373_v12 }
  0xd3   : > { %v855_v43 = vpop.f32.mrf.mxu2  ;;  %v831_v44 = vpop.f32.mrf.mxu0 }
  0xd4   : > { %v868_v45 = vpop.f32.mrf.mxu3  ;;  %v844_v47 = vpop.f32.mrf.mxu1 }
  0xd5   : > { %v3383_v46 = vadd.f32 %v868_v45, %v855_v43 }
  0xdb   : > { %v857_v48 = vpop.f32.mrf.mxu2 }
  0xdc   : > { %v870_v49 = vpop.f32.mrf.mxu3  ;;  %v1816_v48 = vperm.slane %v3390_v4, 2 }
  0xeb   : > { %v1208_v50 = vpop.f32.mrf.mxu0 }
  0xec   : > { %v1209_v51 = vadd.f32 %v1208_v50, %v791_v20  ;;  %v1221_v27 = vpop.f32.mrf.mxu1 }
  0xee   : > { %v1222_v52 = vadd.f32 %v1221_v27, %v1209_v51 }
  0xf3   : > { %v1234_v30 = vpop.f32.mrf.mxu2  ;;  %v1210_v53 = vpop.f32.mrf.mxu0 }
  0xf4   : > { %v1247_v8 = vpop.f32.mrf.mxu3  ;;  %v1223_v12 = vpop.f32.mrf.mxu1  ;;  %v1235_v10 = vadd.f32 %v1234_v30, %v817_v35 }
  0xf6   : > { %v1248_v16 = vadd.f32 %v1247_v8, %v1235_v10 }
  0xfb   : > { %v1236_v54 = vpop.f32.mrf.mxu2 }
  0xfc   : > { %v1249_v55 = vpop.f32.mrf.mxu3 }
 0x10b   : > { %v1260_v56 = vpop.f32.mrf.mxu0 }
 0x10c   : > { %v1261_v57 = vadd.f32 %v1260_v56, %v843_v42  ;;  %v1273_v58 = vpop.f32.mrf.mxu1 }
 0x10e   : > { %v1274_v60 = vadd.f32 %v1273_v58, %v1261_v57 }
 0x113   : > { %v1286_v61 = vpop.f32.mrf.mxu2  ;;  %v1262_v0 = vpop.f32.mrf.mxu0 }
 0x114   : > { %v3385_v62 = vpop.f32.mrf.mxu3  ;;  %v1275_v1 = vpop.f32.mrf.mxu1  ;;  %v1287_v27 = vadd.f32 %v1286_v61, %v3383_v46 }
 0x116   : > { %v1300_v0 = vadd.f32 %v3385_v62, %v1287_v27 }
 0x11b   : > { %v1288_v2 = vpop.f32.mrf.mxu2 }
 0x11c   : > { %v1301_v3 = vpop.f32.mrf.mxu3 }
 0x12b   : > { %v1713_v5 = vpop.f32.mrf.mxu0 }
 0x12c   : > { %v1726_v6 = vpop.f32.mrf.mxu1 }
 0x12d   : > { %v1727_v7 = vadd.f32 %v1726_v6, %v1713_v5  ;;  %v1817_v6 = vperm.slane %v3390_v4, 3 }
 0x12f   : > { %v1808_v9 = vadd.f32 %v1727_v7, %v1222_v52 }
 0x131   : > { %v3393_v11 = vadd.f32 %v1814_v59, %v1808_v9 }
 0x133   : > { %v1739_v63 = vpop.f32.mrf.mxu2  ;;  %v3396_v13 = vmul.f32 0.70710677, %v3393_v11  ;;  %v1715_v15 = vpop.f32.mrf.mxu0 }
 0x134   : > { %v1752_v14 = vpop.f32.mrf.mxu3  ;;  %v1728_v19 = vpop.f32.mrf.mxu1 }
 0x135   : > { %v1753_v17 = vadd.f32 %v1752_v14, %v1739_v63  ;;  %v1834_v20 = vand.u32 2147483647, %v3396_v13  ;;  %vm1966_vm12 = vcmp.lt.f32.partialorder %v3396_v13, 0.0 }
 0x137   : > { %v1809_v21 = vadd.f32 %v1753_v17, %v1248_v16  ;;  %v1838_v22 = vmul.f32 0.3275911, %v1834_v20  ;;  %v1942_v50 = vsub.f32 0.0, %v1834_v20 }
 0x139   : > { %v3400_v23 = vadd.f32 %v1815_v18, %v1809_v21  ;;  %v1842_v24 = vadd.f32 1.0, %v1838_v22  ;;  %v1946_v56 = vmul.f32 %v1942_v50, %v1834_v20 }
 0x13b   : > { %v3403_v25 = vmul.f32 0.70710677, %v3400_v23  ;;  %v1741_v26 = vpop.f32.mrf.mxu2  ;;  %3211 = vrcp.f32 %v1842_v24  ;;  %v1857_v36 = vand.u32 2147483648, %v1842_v24  ;;  %v1855_v38 = vand.u32 2147483647, %v1842_v24 }
 0x13c   : > { %v1754_v28 = vpop.f32.mrf.mxu3  ;;  %vm1851_vm1 = vweird.f32 %v1842_v24  ;;  %v1950_v63 = vmul.f32 1.442695, %v1946_v56 }
 0x13d   : > { %v3406_v29 = vand.u32 2147483647, %v3403_v25  ;;  %v1858_v42 = vor.u32 1.1754944e-38, %v1857_v36  ;;  %vm1856_vm3 = vcmp.eq.f32.partialorder %v1855_v38, 8.507059e+37  ;;  %vm1967_vm13 = vcmp.lt.f32.partialorder %v3403_v25, 0.0 }
 0x13f   : > { %v1839_v31 = vmul.f32 0.3275911, %v3406_v29  ;;  %v1943_v10 = vsub.f32 0.0, %v3406_v29 }
 0x141   : > { %v1843_v32 = vadd.f32 1.0, %v1839_v31  ;;  %v3212_v33 = vpop.eup %3211  ;;  %v1947_v4 = vmul.f32 %v1943_v10, %v3406_v29 }
 0x142   : > { %v1847_v34 = vmul.f32 %v3212_v33, %v1842_v24  ;;  %vm1852_vm0 = vweird.f32 %v3212_v33 }
 0x143   : > { %3213 = vrcp.f32 %v1843_v32  ;;  %vm1853_vm2 = vmor %vm1851_vm1, %vm1852_vm0  ;;  %v1872_v30 = vand.u32 2147483648, %v1843_v32  ;;  %v1870_v12 = vand.u32 2147483647, %v1843_v32  ;;  %vm1866_vm5 = vweird.f32 %v1843_v32 }
 0x144   : > { %v1848_v35 = vsub.f32 1.0, %v1847_v34  ;;  %3215 = vpow2.f32 %v1950_v63 }
 0x145   : > { %v1873_v2 = vor.u32 1.1754944e-38, %v1872_v30  ;;  %vm1871_vm7 = vcmp.eq.f32.partialorder %v1870_v12, 8.507059e+37 }
 0x146   : > { %v1849_v37 = vmul.f32 %v3212_v33, %v1848_v35  ;;  %v1952_v35 = vmul.f32 1.442695, %v1947_v4 }
 0x148   : > { %v1850_v40 = vadd.f32 %v3212_v33, %v1849_v37 }
 0x149   : > { %v3214_v39 = vpop.eup %3213 }
 0x14a   : > { %v1862_v43 = vmul.f32 %v3214_v39, %v1843_v32  ;;  %v1854_v45 = vsel %vm1853_vm2, %v3212_v33, %v1850_v40  ;;  %vm1867_vm4 = vweird.f32 %v3214_v39  ;;  %v3216_v38 = vpop.eup %3215  ;;  %vm1992_vm2 = vcmask 1043456  }
 0x14b   : > { %v1765_v41 = vpop.f32.mrf.mxu0  ;;  %v1859_v49 = vsel %vm1856_vm3, %v1858_v42, %v1854_v45  ;;  %vm1868_vm6 = vmor %vm1866_vm5, %vm1867_vm4 }
 0x14c   : > { %v1778_v44 = vpop.f32.mrf.mxu1  ;;  %v1863_v51 = vsub.f32 1.0, %v1862_v43  ;;  %v1906_v52 = vmul.f32 1.0614054, %v1859_v49 }
 0x14d   : > { %v1779_v47 = vadd.f32 %v1778_v44, %v1765_v41 }
 0x14e   : > { %v1864_v53 = vmul.f32 %v3214_v39, %v1863_v51  ;;  %v1910_v54 = vadd.f32 -1.4531521, %v1906_v52 }
 0x14f   : > { %v1810_v8 = vadd.f32 %v1779_v47, %v1274_v60 }
 0x150   : > { %v1865_v57 = vadd.f32 %v3214_v39, %v1864_v53  ;;  %v1914_v1 = vmul.f32 %v1910_v54, %v1859_v49 }
 0x151   : > { %v3411_v55 = vadd.f32 %v1816_v48, %v1810_v8 }
 0x152   : > { %v1869_v3 = vsel %vm1868_vm6, %v3214_v39, %v1865_v57  ;;  %v1918_v59 = vadd.f32 1.4214138, %v1914_v1 }
 0x153   : > { %v1791_v58 = vpop.f32.mrf.mxu2  ;;  %v3415_v46 = vmul.f32 0.70710677, %v3411_v55  ;;  %v1767_v60 = vpop.f32.mrf.mxu0  ;;  %v1874_v9 = vsel %vm1871_vm7, %v1873_v2, %v1869_v3 }
 0x154   : > { %v1804_v61 = vpop.f32.mrf.mxu3  ;;  %v1780_v7 = vpop.f32.mrf.mxu1  ;;  %v1907_v14 = vmul.f32 1.0614054, %v1874_v9  ;;  %v1922_v16 = vmul.f32 %v1918_v59, %v1859_v49  ;;  %v1827_v59 = vmul.f32 0.5, %v3400_v23 }
 0x155   : > { %v1805_v5 = vadd.f32 %v1804_v61, %v1791_v58  ;;  %v3420_v62 = vand.u32 2147483647, %v3415_v46  ;;  %vm1968_vm3 = vcmp.lt.f32.partialorder %v3415_v46, 0.0 }
 0x156   : > { %v1911_v18 = vadd.f32 -1.4531521, %v1907_v14  ;;  %v1926_v20 = vadd.f32 -0.28449672, %v1922_v16 }
 0x157   : > { %v1811_v15 = vadd.f32 %v1805_v5, %v1300_v0  ;;  %v1840_v17 = vmul.f32 0.3275911, %v3420_v62  ;;  %v1944_v58 = vsub.f32 0.0, %v3420_v62 }
 0x158   : > { %v1915_v22 = vmul.f32 %v1911_v18, %v1874_v9  ;;  %v1930_v28 = vmul.f32 %v1926_v20, %v1859_v49  ;;  %v1826_v18 = vmul.f32 0.5, %v3393_v11 }
 0x159   : > { %v3423_v19 = vadd.f32 %v1817_v6, %v1811_v15  ;;  %v1844_v21 = vadd.f32 1.0, %v1840_v17  ;;  %v1948_v10 = vmul.f32 %v1944_v58, %v3420_v62 }
 0x15a   : > { %v1919_v32 = vadd.f32 1.4214138, %v1915_v22  ;;  %v1934_v34 = vadd.f32 0.2548296, %v1930_v28 }
 0x15b   : > { %v3427_v24 = vmul.f32 0.70710677, %v3423_v19  ;;  %v1793_v26 = vpop.f32.mrf.mxu2  ;;  %3217 = vrcp.f32 %v1844_v21  ;;  %v1887_v50 = vand.u32 2147483648, %v1844_v21  ;;  %v1885_v52 = vand.u32 2147483647, %v1844_v21 }
 0x15c   : > { %v1806_v31 = vpop.f32.mrf.mxu3  ;;  %v1923_v36 = vmul.f32 %v1919_v32, %v1874_v9  ;;  %v1938_v29 = vmul.f32 %v1934_v34, %v1859_v49  ;;  %3219 = vpow2.f32 %v1952_v35  ;;  %vm1881_vm9 = vweird.f32 %v1844_v21 }
 0x15d   : > { %v3430_v33 = vand.u32 2147483647, %v3427_v24  ;;  %v1888_v54 = vor.u32 1.1754944e-38, %v1887_v50  ;;  %vm1886_vm11 = vcmp.eq.f32.partialorder %v1885_v52, 8.507059e+37  ;;  %v1954_v26 = vmul.f32 1.442695, %v1948_v10 }
 0x15e   : > { %v1927_v39 = vadd.f32 -0.28449672, %v1923_v36  ;;  %v1958_v42 = vmul.f32 %v3216_v38, %v1938_v29  ;;  %vm1969_vm4 = vcmp.lt.f32.partialorder %v3427_v24, 0.0 }
 0x15f   : > { %v1841_v37 = vmul.f32 0.3275911, %v3430_v33  ;;  %v1945_v23 = vsub.f32 0.0, %v3430_v33 }
 0x160   : > { %v1931_v43 = vmul.f32 %v1927_v39, %v1874_v9  ;;  %v1962_v45 = vsub.f32 1.0, %v1958_v42 }
 0x161   : > { %v1845_v40 = vadd.f32 1.0, %v1841_v37  ;;  %v3218_v41 = vpop.eup %3217  ;;  %v1949_v34 = vmul.f32 %v1945_v23, %v3430_v33 }
 0x162   : > { %v1877_v44 = vmul.f32 %v3218_v41, %v1844_v21  ;;  %v1935_v47 = vadd.f32 0.2548296, %v1931_v43  ;;  %vm1882_vm8 = vweird.f32 %v3218_v41  ;;  %v3220_v30 = vpop.eup %3219  ;;  %v1970_v49 = vsub.f32 0.0, %v1962_v45 }
 0x163   : > { %3221 = vrcp.f32 %v1845_v40  ;;  %vm1883_vm10 = vmor %vm1881_vm9, %vm1882_vm8  ;;  %v1902_v3 = vand.u32 2147483648, %v1845_v40  ;;  %v1900_v7 = vand.u32 2147483647, %v1845_v40  ;;  %vm1896_vm15 = vweird.f32 %v1845_v40 }
 0x164   : > { %v1878_v48 = vsub.f32 1.0, %v1877_v44  ;;  %v1939_v51 = vmul.f32 %v1935_v47, %v1874_v9  ;;  %v1974_v61 = vsel %vm1966_vm12, %v1970_v49, %v1962_v45  ;;  %3223 = vpow2.f32 %v1954_v26 }
 0x165   : > { %v1978_v14 = vadd.f32 1.0, %v1974_v61  ;;  %v1903_v16 = vor.u32 1.1754944e-38, %v1902_v3  ;;  %vm1901_vm1 = vcmp.eq.f32.partialorder %v1900_v7, 8.507059e+37  ;;  %v1956_v38 = vmul.f32 1.442695, %v1949_v34 }
 0x166   : > { %v1879_v27 = vmul.f32 %v3218_v41, %v1878_v48  ;;  %v1959_v53 = vmul.f32 %v3220_v30, %v1939_v51 }
 0x167   : > { %v3442_v62 = vmul.f32 %v1978_v14, %v1826_v18  ;;  %3225 = vpow2.f32 %v1956_v38 }
 0x168   : > { %v1880_v12 = vadd.f32 %v3218_v41, %v1879_v27  ;;  %v1963_v57 = vsub.f32 1.0, %v1959_v53 }
 0x169   : > { %v3222_v8 = vpop.eup %3221  ;;  %v1999_v58 = vsel %vm1992_vm2, %v3442_v62, 0.0 }
 0x16a   : > { %v1892_v56 = vmul.f32 %v3222_v8, %v1845_v40  ;;  %v1884_v0 = vsel %vm1883_vm10, %v3218_v41, %v1880_v12  ;;  %v1971_v60 = vsub.f32 0.0, %v1963_v57  ;;  %vm1897_vm14 = vweird.f32 %v3222_v8  ;;  %v3224_v42 = vpop.eup %3223 }
 0x16b   : > { %v1889_v2 = vsel %vm1886_vm11, %v1888_v54, %v1884_v0  ;;  %vm1898_vm0 = vmor %vm1896_vm15, %vm1897_vm14 }
 0x16c   : > { %v1893_v1 = vsub.f32 1.0, %v1892_v56  ;;  %v1908_v5 = vmul.f32 1.0614054, %v1889_v2  ;;  %v1975_v9 = vsel %vm1967_vm13, %v1971_v60, %v1963_v57  ;;  %v1829_v57 = vmul.f32 0.5, %v3423_v19 }
 0x16d   : > { %v1979_v15 = vadd.f32 1.0, %v1975_v9  ;;  %v3226_v51 = vpop.eup %3225 }
 0x16e   : > { %v1894_v6 = vmul.f32 %v3222_v8, %v1893_v1  ;;  %v1912_v63 = vadd.f32 -1.4531521, %v1908_v5  ;;  %v3276_v5 = vmov 2048.0  }
 0x16f   : > { %v3439_v25 = vmul.f32 %v1979_v15, %v1827_v59  ;;  %3227 = vrcp.f32 %v3276_v5 }
 0x170   : > { %v1895_v13 = vadd.f32 %v3222_v8, %v1894_v6  ;;  %v1916_v17 = vmul.f32 %v1912_v63, %v1889_v2 }
 0x171   : > { %v1990_v22 = vrot.slane %v3439_v25, 4  ;;  %v2000_v54 = vsel %vm1992_vm2, %v3439_v25, 0.0 }
 0x172   : > { %v1899_v20 = vsel %vm1898_vm0, %v3222_v8, %v1895_v13  ;;  %v1920_v21 = vadd.f32 1.4214138, %v1916_v17  ;;  %v1828_v8 = vmul.f32 0.5, %v3411_v55  ;;  %v2001_v1 = vadd.f32 %v2000_v54, %v1999_v58 }
 0x173   : > { %v1904_v4 = vsel %vm1901_vm1, %v1903_v16, %v1899_v20  ;;  %v1993_v31 = vsel %vm1992_vm2, %v3442_v62, %v1990_v22 }
 0x174   : > { %v1909_v11 = vmul.f32 1.0614054, %v1904_v4  ;;  %v1924_v28 = vmul.f32 %v1920_v21, %v1889_v2  ;;  %1997 = vst [vmem:[%s3449_s17] sm:$0xff] %v1993_v31 }
 0x175   : > { %v3228_v19 = vpop.eup %3227 }
 0x176   : > { %v1913_v32 = vadd.f32 -1.4531521, %v1909_v11  ;;  %v1928_v35 = vadd.f32 -0.28449672, %v1924_v28  ;;  %v2016_v6 = vmul.f32 2048.0, %v3228_v19  ;;  %vm2020_vm5 = vweird.f32 %v3228_v19 }
 0x178   : > { %v1917_v36 = vmul.f32 %v1913_v32, %v1904_v4  ;;  %v1932_v37 = vmul.f32 %v1928_v35, %v1889_v2  ;;  %v2017_v7 = vsub.f32 1.0, %v2016_v6 }
 0x17a   : > { %v1921_v29 = vadd.f32 1.4214138, %v1917_v36  ;;  %v1936_v39 = vadd.f32 0.2548296, %v1932_v37  ;;  %v2018_v63 = vmul.f32 %v3228_v19, %v2017_v7 }
 0x17c   : > { %v1925_v40 = vmul.f32 %v1921_v29, %v1904_v4  ;;  %v1940_v41 = vmul.f32 %v1936_v39, %v1889_v2  ;;  %v2019_v13 = vadd.f32 %v3228_v19, %v2018_v63 }
 0x17e   : > { %v1929_v43 = vadd.f32 -0.28449672, %v1925_v40  ;;  %v1960_v44 = vmul.f32 %v3224_v42, %v1940_v41  ;;  %v2021_v18 = vsel %vm2020_vm5, %v3228_v19, %v2019_v13 }
 0x180   : > { %v1933_v45 = vmul.f32 %v1929_v43, %v1904_v4  ;;  %v1964_v47 = vsub.f32 1.0, %v1960_v44 }
 0x182   : > { %v1937_v48 = vadd.f32 0.2548296, %v1933_v45  ;;  %v1972_v50 = vsub.f32 0.0, %v1964_v47 }
 0x184   : > { %v1941_v33 = vmul.f32 %v1937_v48, %v1904_v4  ;;  %v1976_v27 = vsel %vm1968_vm3, %v1972_v50, %v1964_v47 }
 0x185   : > { %v1980_v30 = vadd.f32 1.0, %v1976_v27 }
 0x186   : > { %v1961_v52 = vmul.f32 %v3226_v51, %v1941_v33 }
 0x187   : > { %v1984_v53 = vmul.f32 %v1980_v30, %v1828_v8 }
 0x188   : > { %v1965_v49 = vsub.f32 1.0, %v1961_v52 }
 0x189   : > { %v2002_v0 = vsel %vm1992_vm2, %v1984_v53, 0.0 }
 0x18a   : > { %v1973_v12 = vsub.f32 0.0, %v1965_v49  ;;  %v2003_v2 = vadd.f32 %v2002_v0, %v2001_v1 }
 0x18c   : > { %v1977_v56 = vsel %vm1969_vm4, %v1973_v12, %v1965_v49 }
 0x18d   : > { %v1981_v46 = vadd.f32 1.0, %v1977_v56 }
 0x18f   : > { %v1985_v55 = vmul.f32 %v1981_v46, %v1829_v57 }
 0x191   : > { %v1991_v61 = vrot.slane %v1985_v55, 4  ;;  %v2004_v60 = vsel %vm1992_vm2, %v1985_v55, 0.0 }
 0x192   : > { %v2005_v3 = vadd.f32 %v2004_v60, %v2003_v2 }
 0x193   : > { %v1994_v24 = vsel %vm1992_vm2, %v1984_v53, %v1991_v61 }
 0x194   : > { %1998 = vst [vmem:[%s3449_s17 + $0x8] sm:$0xff] %v1994_v24  ;;  %2006 = vadd.xlane.f32.xlu0 %v2005_v3 }
 0x207   : > { %v2007_v59 = vpop.xlane.xlu0 %2006 }
 0x208   : > { %v2008_v9 = vrot.slane %v2007_v59, 4 }
 0x20a   : > { %v2009_v10 = vadd.f32 %v2008_v9, %v2007_v59 }
 0x20c   : > { %v2010_v14 = vrot.slane %v2009_v10, 2 }
 0x20e   : > { %v2011_v15 = vadd.f32 %v2010_v14, %v2009_v10 }
 0x210   : > { %v2012_v16 = vrot.slane %v2011_v15, 1 }
 0x212   : > { %v2013_v17 = vadd.f32 %v2012_v16, %v2011_v15 }
 0x214   : > { %3181 = vpush %v2013_v17 }
 0x215   : > { %3183 = vpush %v2021_v18 }
 0x245   : > { %s3182_s18 = spop %3181 }
 0x246   : > { %s3467_s19 = spop %3183 }
 0x247   : > { %s2023_s24 = smul.f32 %s3467_s19, %s3182_s18 }
 0x249   : > { %v2024_v20 = vstv %s2023_s24 }
 0x24a   : > { %v2025_v23 = vsub.f32 %v3442_v62, %v2024_v20  ;;  %v2026_v4 = vsub.f32 %v3439_v25, %v2024_v20  ;;  %2058 = vst [vmem:[%s302_s23] sm:$0x1] %v2024_v20  ;;  %v2027_v21 = vsub.f32 %v1984_v53, %v2024_v20  ;;  %v2028_v22 = vsub.f32 %v1985_v55, %v2024_v20 }
 0x24c   : > { %v2029_v26 = vmul.f32 %v2025_v23, %v2025_v23  ;;  %v2030_v11 = vmul.f32 %v2026_v4, %v2026_v4  ;;  %v2031_v28 = vmul.f32 %v2027_v21, %v2027_v21  ;;  %v2032_v31 = vmul.f32 %v2028_v22, %v2028_v22 }
 0x24e   : > { %v2033_v32 = vsel %vm1992_vm2, %v2029_v26, 0.0  ;;  %v2034_v34 = vsel %vm1992_vm2, %v2030_v11, 0.0  ;;  %v2036_v36 = vsel %vm1992_vm2, %v2031_v28, 0.0  ;;  %v2038_v62 = vsel %vm1992_vm2, %v2032_v31, 0.0 }
 0x24f   : > { %v2035_v35 = vadd.f32 %v2034_v34, %v2033_v32 }
 0x251   : > { %v2037_v37 = vadd.f32 %v2036_v36, %v2035_v35 }
 0x253   : > { %v2039_v29 = vadd.f32 %v2038_v62, %v2037_v37 }
 0x255   : > { %2040 = vadd.xlane.f32.xlu0 %v2039_v29 }
 0x2c8   : > { %v2041_v25 = vpop.xlane.xlu0 %2040 }
 0x2c9   : > { %v2042_v38 = vrot.slane %v2041_v25, 4 }
 0x2cb   : > { %v2043_v39 = vadd.f32 %v2042_v38, %v2041_v25 }
 0x2cd   : > { %v2044_v40 = vrot.slane %v2043_v39, 2 }
 0x2cf   : > { %v2045_v41 = vadd.f32 %v2044_v40, %v2043_v39 }
 0x2d1   : > { %v2046_v42 = vrot.slane %v2045_v41, 1 }
 0x2d3   : > { %v2047_v43 = vadd.f32 %v2046_v42, %v2045_v41 }
 0x2d5   : > { %3185 = vpush %v2047_v43 }
 0x306   : > { %s3186_s26 = spop %3185 }
 0x307   : > { %s2057_s27 = smul.f32 %s3186_s26, %s3467_s19 }
 0x309   : > { %s2059_s28 = sadd.f32 1e-05, %s2057_s27 }
 0x30b   : > { %v2060_v44 = vstv %s2059_s28 }
 0x30c   : > { %3229 = vrsqrt.f32 %v2060_v44  ;;  %vm2067_vm7 = vweird.f32 %v2060_v44 }
 0x312   : > { %v3230_v45 = vpop.eup %3229 }
 0x313   : > { %v2062_v47 = vmul.f32 %v3230_v45, %v2060_v44  ;;  %vm2068_vm6 = vweird.f32 %v3230_v45 }
 0x314   : > { %vm2069_vm8 = vmor %vm2067_vm7, %vm2068_vm6 }
 0x315   : > { %v2063_v48 = vmul.f32 %v3230_v45, %v2062_v47 }
 0x317   : > { %v2064_v50 = vmul.f32 0.5, %v2063_v48 }
 0x319   : > { %v2065_v33 = vsub.f32 1.5, %v2064_v50 }
 0x31b   : > { %v2066_v51 = vmul.f32 %v3230_v45, %v2065_v33 }
 0x31d   : > { %v2070_v27 = vsel %vm2069_vm8, %v3230_v45, %v2066_v51 }
 0x31e   : > { %3187 = vpush %v2070_v27 }
 0x34f   : > { %s3188_s8 = spop %3187 }
 0x350   : > { %v2072_v52 = vstv %s3188_s8 }
 0x351   : > { %2073 = vst [vmem:[%s305_s7] sm:$0x1] %v2072_v52 }
 0x352 PF: > { %s18_s21 = sadd.s32 1, %s3271_s21  }
 0x353   : > { %p15_p7 = scmp.ge.s32.totalorder %s18_s21, 4  }
 0x355   :  { %17 = sbr.rel (!%p15_p7) target bundleno = 1 (0x1), region = 100 }
 0x35a   :  { %2119 = vsyncpa [#allocation3], 1 }
 0x35b   :  { %2121 = vsyncpa [#allocation3 + $0x1], 1 }

</bundles_post_ra>
